<compile_context>
chip_gen: v7x
topology: tpu7x:2x2x1
jax: 0.10.0
libtpu: 0.0.40
codegen_flags: <defaults>
</compile_context>

<pallas_src>
import math

import jax
import jax.numpy as jnp
from jax.experimental import pallas as pl
from jax.experimental.pallas import tpu as pltpu


def _round_up(x, m):
    return ((x + m - 1) // m) * m


def _pick_tm(M):
    """Conv M tile: 2-4 grid steps per layer, even tile count (v7x megacore)."""
    if M >= 4096:
        return 2048
    if M >= 1024:
        return 1024
    if M >= 256:
        return 256
    return _round_up(M, 8)


# ----------------------------------------------------------------------------
# Pallas kernel: conv-as-matmul, full K / full O in one block, fused bias+ReLU
# ----------------------------------------------------------------------------
def _conv_mm_kernel(a_ref, b_ref, bias_ref, o_ref):
    acc = jnp.dot(a_ref[...], b_ref[...], preferred_element_type=jnp.float32)
    o_ref[...] = jnp.maximum(acc + bias_ref[...], 0.0).astype(o_ref.dtype)


def conv_matmul_bias_relu(a, b, bias):
    """relu(a @ b + bias).

    a: (M, K) bf16 patches, b: (K, O) bf16 weight, bias: (1, O) f32.
    K (<=576) and O (<=128) are small, so the whole K/O extent lives in one
    block; the grid is 1-D over M tiles only (no K loop, no accumulator).
    The weight/bias index maps are constant, so they are DMA'd exactly once.
    """
    M, K = a.shape
    Kb, O = b.shape
    assert K == Kb

    tm = _pick_tm(M)
    Mp = _round_up(M, tm)
    if Mp != M:
        a = jnp.pad(a, ((0, Mp - M), (0, 0)))

    out = pl.pallas_call(
        _conv_mm_kernel,
        out_shape=jax.ShapeDtypeStruct((Mp, O), jnp.bfloat16),
        grid_spec=pltpu.PrefetchScalarGridSpec(
            num_scalar_prefetch=0,
            grid=(Mp // tm,),
            in_specs=[
                pl.BlockSpec((tm, K), lambda i: (i, 0)),
                pl.BlockSpec((K, O), lambda i: (0, 0)),
                pl.BlockSpec((1, O), lambda i: (0, 0)),
            ],
            out_specs=pl.BlockSpec((tm, O), lambda i: (i, 0)),
        ),
        compiler_params=pltpu.CompilerParams(
            dimension_semantics=("parallel",)),
    )(a, b, bias)
    return out[:M]


# ----------------------------------------------------------------------------
# Pallas kernel: single-block FC GEMV with lane-dense (ncls, K) weight,
# fused bias + log_softmax
# ----------------------------------------------------------------------------
def _fc_kernel(a_ref, w_ref, bias_ref, o_ref):
    # a: (N, K) bf16, w: (ncls, K) bf16  ->  logits = a @ w.T  (contract lanes)
    logits = jax.lax.dot_general(
        a_ref[...], w_ref[...],
        dimension_numbers=(((1,), (1,)), ((), ())),
        preferred_element_type=jnp.float32) + bias_ref[...]
    m = jnp.max(logits, axis=-1, keepdims=True)
    lse = m + jnp.log(jnp.sum(jnp.exp(logits - m), axis=-1, keepdims=True))
    o_ref[...] = (logits - lse).astype(o_ref.dtype)


def fc_log_softmax(a, w, bias):
    """log_softmax(a @ w.T + bias, axis=-1).

    a: (N, K) bf16 activations (K multiple of 128, no per-call padding).
    w: (ncls, K) bf16 weight, lane-dense.  bias: (1, ncls) f32.
    The whole GEMV runs in one grid step: operands are ~0.5 MiB / ~0.9 MiB in
    VMEM, far under the scoped limit on every TPU generation.
    """
    N, K = a.shape
    ncls, Kw = w.shape
    assert K == Kw and K % 128 == 0

    return pl.pallas_call(
        _fc_kernel,
        out_shape=jax.ShapeDtypeStruct((N, ncls), jnp.float32),
        grid_spec=pltpu.PrefetchScalarGridSpec(
            num_scalar_prefetch=0,
            grid=(1,),
            in_specs=[
                pl.BlockSpec((N, K), lambda i: (0, 0)),
                pl.BlockSpec((ncls, K), lambda i: (0, 0)),
                pl.BlockSpec((1, ncls), lambda i: (0, 0)),
            ],
            out_specs=pl.BlockSpec((N, ncls), lambda i: (0, 0)),
        ),
        compiler_params=pltpu.CompilerParams(
            dimension_semantics=("arbitrary",)),
    )(a, w, bias)


# ----------------------------------------------------------------------------
# Glue: NHWC im2col (valid padding), feature order = (KH, KW, C)
# ----------------------------------------------------------------------------
def im2col_nhwc(x, kh, kw, stride):
    N, H, W, C = x.shape
    Ho = (H - kh) // stride + 1
    Wo = (W - kw) // stride + 1
    cols = []
    for i in range(kh):
        for j in range(kw):
            cols.append(
                x[:, i:i + stride * Ho:stride, j:j + stride * Wo:stride, :])
    p = jnp.stack(cols, axis=3)                      # (N, Ho, Wo, KH*KW, C)
    return p.reshape(N * Ho * Wo, kh * kw * C), Ho, Wo


def conv2d_relu_nhwc(x, w2d, bias2d, stride, kh=3, kw=3):
    """x: (N,H,W,C) bf16; w2d: (KH*KW*C, O) bf16; bias2d: (1, O) f32."""
    N = x.shape[0]
    O = w2d.shape[1]
    patches, Ho, Wo = im2col_nhwc(x, kh, kw, stride)   # (N*Ho*Wo, KH*KW*C)
    y = conv_matmul_bias_relu(patches, w2d, bias2d)    # (N*Ho*Wo, O) bf16
    return y.reshape(N, Ho, Wo, O)                     # stays NHWC


# ----------------------------------------------------------------------------
# Params (PyTorch layout) and one-time kernel-friendly preparation
# ----------------------------------------------------------------------------
def init_params(num_classes, key):
    ks = jax.random.split(key, 8)

    def w(k, shape, fan_in):
        return jax.random.normal(k, shape, jnp.float32) / math.sqrt(fan_in)

    return {
        "conv1_w": w(ks[0], (32, 3, 3, 3), 3 * 9),
        "conv1_b": 0.01 * jax.random.normal(ks[1], (32,), jnp.float32),
        "conv2_w": w(ks[2], (64, 32, 3, 3), 32 * 9),
        "conv2_b": 0.01 * jax.random.normal(ks[3], (64,), jnp.float32),
        "conv3_w": w(ks[4], (124, 64, 3, 3), 64 * 9),
        "conv3_b": 0.01 * jax.random.normal(ks[5], (124,), jnp.float32),
        "fc_w": w(ks[6], (num_classes, 124 * 15 * 15), 124 * 15 * 15),
        "fc_b": 0.01 * jax.random.normal(ks[7], (num_classes,), jnp.float32),
    }


def prepare_params(params):
    """One-time reshape / permute / pad / cast of the PyTorch-layout params."""
    prep = {}
    pad_o = {"conv1": 32, "conv2": 64, "conv3": 128}   # conv3: 124 -> 128
    for name in ("conv1", "conv2", "conv3"):
        w = params[name + "_w"]                          # (O, C, KH, KW)
        O, C, KH, KW = w.shape
        Op = pad_o[name]
        # match im2col feature order (KH, KW, C):
        w2d = w.transpose(2, 3, 1, 0).reshape(KH * KW * C, O)
        b = params[name + "_b"]
        if Op != O:
            w2d = jnp.pad(w2d, ((0, 0), (0, Op - O)))    # zero output channels
            b = jnp.pad(b, (0, Op - O))
        prep[name + "_w"] = w2d.astype(jnp.bfloat16)
        prep[name + "_b"] = b.reshape(1, Op).astype(jnp.float32)

    ncls, K = params["fc_w"].shape                       # (ncls, 124*15*15)
    C3, H3, W3, C3p = 124, 15, 15, 128
    assert K == C3 * H3 * W3
    # PyTorch flattens NCHW (C,H,W order); our activations flatten as (H,W,C)
    # with C zero-padded to 128.  Keep the weight lane-dense as (ncls, K).
    fcw = params["fc_w"].reshape(ncls, C3, H3, W3)
    fcw = fcw.transpose(0, 2, 3, 1)                      # (ncls, H, W, C)
    fcw = jnp.pad(fcw, ((0, 0), (0, 0), (0, 0), (0, C3p - C3)))
    fcw = fcw.reshape(ncls, H3 * W3 * C3p)               # (ncls, 28800)
    prep["fc_w"] = fcw.astype(jnp.bfloat16)
    prep["fc_b"] = params["fc_b"].reshape(1, ncls).astype(jnp.float32)
    return prep


# ----------------------------------------------------------------------------
# Full model forward
# ----------------------------------------------------------------------------
@jax.jit
def custom_model_forward(prep, x):
    # x arrives NCHW like the PyTorch module; convert to NHWC once, bf16.
    x = jnp.transpose(x, (0, 2, 3, 1)).astype(jnp.bfloat16)
    x = conv2d_relu_nhwc(x, prep["conv1_w"], prep["conv1_b"], stride=2)  # (N,63,63,32)
    x = conv2d_relu_nhwc(x, prep["conv2_w"], prep["conv2_b"], stride=2)  # (N,31,31,64)
    x = conv2d_relu_nhwc(x, prep["conv3_w"], prep["conv3_b"], stride=2)  # (N,15,15,128)
    feats = x.reshape(x.shape[0], -1)            # (N, 28800), HWC flatten
    return fc_log_softmax(feats, prep["fc_w"], prep["fc_b"])  # (N, num_classes)


if __name__ == "__main__":
    num_classes = 10
    key = jax.random.PRNGKey(0)
    k_param, k_x = jax.random.split(key)

    # Input spatial size 127 is implied by Linear(124*15*15, ...):
    # 127 -> 63 -> 31 -> 15 under three k=3, s=2 valid convs.
    x = jax.random.normal(k_x, (2, 3, 127, 127), jnp.float32)
    params = init_params(num_classes, k_param)
    prep = prepare_params(params)

    out = custom_model_forward(prep, x)
    out = jax.block_until_ready(out)

    assert out.shape == (2, num_classes)
    # log_softmax rows must exponentiate-and-sum to ~1
    assert bool(jnp.all(jnp.abs(jnp.sum(jnp.exp(out), axis=1) - 1.0) < 1e-3))
    print("KERNEL_OK")
</pallas_src>

<mosaic_0001>
module attributes {stable_mosaic.version = 11 : i64} {
  func.func @_conv_mm_kernel(%arg0: i32, %arg1: memref<2048x27xbf16, #tpu.memory_space<vmem>>, %arg2: memref<27x32xbf16, #tpu.memory_space<vmem>>, %arg3: memref<1x32xf32, #tpu.memory_space<vmem>>, %arg4: memref<2048x32xbf16, #tpu.memory_space<vmem>>) attributes {dimension_semantics = [#tpu.dimension_semantics<parallel>], iteration_bounds = array<i64: 4>, scalar_prefetch = 0 : i64, scratch_operands = 0 : i64, tpu.core_type = #tpu.core_type<tc>, window_params = [{transform_indices = @transform_0, window_bounds = array<i64: 2048, 27>}, {pipeline_mode = #tpu.pipeline_mode<synchronous>, transform_indices = @transform_1, window_bounds = array<i64: 27, 32>}, {pipeline_mode = #tpu.pipeline_mode<synchronous>, transform_indices = @transform_2, window_bounds = array<i64: 1, 32>}, {transform_indices = @transform_3, window_bounds = array<i64: 2048, 32>}]} {
    %c0 = arith.constant 0 : index
    %c0_0 = arith.constant 0 : index
    %0 = vector.load %arg1[%c0, %c0_0] : memref<2048x27xbf16, #tpu.memory_space<vmem>>, vector<2048x27xbf16>
    %c0_1 = arith.constant 0 : index
    %c0_2 = arith.constant 0 : index
    %1 = vector.load %arg2[%c0_1, %c0_2] : memref<27x32xbf16, #tpu.memory_space<vmem>>, vector<27x32xbf16>
    %cst = arith.constant dense<0.000000e+00> : vector<2048x32xf32>
    %2 = tpu.matmul %0, %1, %cst {dimension_numbers = #tpu.dot_dimension_numbers<[1], [0], [0], [1], [0, 0, 1, 1], [], []>} : vector<2048x27xbf16>, vector<27x32xbf16>, vector<2048x32xf32> -> vector<2048x32xf32>
    %c0_3 = arith.constant 0 : index
    %c0_4 = arith.constant 0 : index
    %3 = vector.load %arg3[%c0_3, %c0_4] : memref<1x32xf32, #tpu.memory_space<vmem>>, vector<1x32xf32>
    %4 = vector.broadcast %3 : vector<1x32xf32> to vector<2048x32xf32>
    %5 = arith.addf %2, %4 : vector<2048x32xf32>
    %cst_5 = arith.constant 0.000000e+00 : f32
    %6 = vector.broadcast %cst_5 : f32 to vector<2048x32xf32>
    %7 = arith.maximumf %5, %6 : vector<2048x32xf32>
    %8 = arith.truncf %7 : vector<2048x32xf32> to vector<2048x32xbf16>
    %c0_6 = arith.constant 0 : index
    %c0_7 = arith.constant 0 : index
    %9 = vector.load %arg4[%c0_6, %c0_7] : memref<2048x32xbf16, #tpu.memory_space<vmem>>, vector<2048x32xbf16>
    tpu.vector_store %arg4[%c0_6, %c0_7], %8 {strides = array<i32>} : memref<2048x32xbf16, #tpu.memory_space<vmem>>, vector<2048x32xbf16>,
    return
  }
  func.func @transform_0(%arg0: i32) -> (i32, i32) {
    %c0_i32 = arith.constant 0 : i32
    %c0_i32_0 = arith.constant 0 : i32
    return %arg0, %c0_i32 : i32, i32
  }
  func.func @transform_1(%arg0: i32) -> (i32, i32) {
    %c0_i32 = arith.constant 0 : i32
    %c0_i32_0 = arith.constant 0 : i32
    %c0_i32_1 = arith.constant 0 : i32
    return %c0_i32, %c0_i32_0 : i32, i32
  }
  func.func @transform_2(%arg0: i32) -> (i32, i32) {
    %c0_i32 = arith.constant 0 : i32
    %c0_i32_0 = arith.constant 0 : i32
    %c0_i32_1 = arith.constant 0 : i32
    return %c0_i32, %c0_i32_0 : i32, i32
  }
  func.func @transform_3(%arg0: i32) -> (i32, i32) {
    %c0_i32 = arith.constant 0 : i32
    %c0_i32_0 = arith.constant 0 : i32
    return %arg0, %c0_i32 : i32, i32
  }
}

module attributes {stable_mosaic.version = 11 : i64} {
  func.func @_conv_mm_kernel(%arg0: i32, %arg1: memref<1024x288xbf16, #tpu.memory_space<vmem>>, %arg2: memref<288x64xbf16, #tpu.memory_space<vmem>>, %arg3: memref<1x64xf32, #tpu.memory_space<vmem>>, %arg4: memref<1024x64xbf16, #tpu.memory_space<vmem>>) attributes {dimension_semantics = [#tpu.dimension_semantics<parallel>], iteration_bounds = array<i64: 2>, scalar_prefetch = 0 : i64, scratch_operands = 0 : i64, tpu.core_type = #tpu.core_type<tc>, window_params = [{transform_indices = @transform_0, window_bounds = array<i64: 1024, 288>}, {pipeline_mode = #tpu.pipeline_mode<synchronous>, transform_indices = @transform_1, window_bounds = array<i64: 288, 64>}, {pipeline_mode = #tpu.pipeline_mode<synchronous>, transform_indices = @transform_2, window_bounds = array<i64: 1, 64>}, {transform_indices = @transform_3, window_bounds = array<i64: 1024, 64>}]} {
    %c0 = arith.constant 0 : index
    %c0_0 = arith.constant 0 : index
    %0 = vector.load %arg1[%c0, %c0_0] : memref<1024x288xbf16, #tpu.memory_space<vmem>>, vector<1024x288xbf16>
    %c0_1 = arith.constant 0 : index
    %c0_2 = arith.constant 0 : index
    %1 = vector.load %arg2[%c0_1, %c0_2] : memref<288x64xbf16, #tpu.memory_space<vmem>>, vector<288x64xbf16>
    %cst = arith.constant dense<0.000000e+00> : vector<1024x64xf32>
    %2 = tpu.matmul %0, %1, %cst {dimension_numbers = #tpu.dot_dimension_numbers<[1], [0], [0], [1], [0, 0, 1, 1], [], []>} : vector<1024x288xbf16>, vector<288x64xbf16>, vector<1024x64xf32> -> vector<1024x64xf32>
    %c0_3 = arith.constant 0 : index
    %c0_4 = arith.constant 0 : index
    %3 = vector.load %arg3[%c0_3, %c0_4] : memref<1x64xf32, #tpu.memory_space<vmem>>, vector<1x64xf32>
    %4 = vector.broadcast %3 : vector<1x64xf32> to vector<1024x64xf32>
    %5 = arith.addf %2, %4 : vector<1024x64xf32>
    %cst_5 = arith.constant 0.000000e+00 : f32
    %6 = vector.broadcast %cst_5 : f32 to vector<1024x64xf32>
    %7 = arith.maximumf %5, %6 : vector<1024x64xf32>
    %8 = arith.truncf %7 : vector<1024x64xf32> to vector<1024x64xbf16>
    %c0_6 = arith.constant 0 : index
    %c0_7 = arith.constant 0 : index
    %9 = vector.load %arg4[%c0_6, %c0_7] : memref<1024x64xbf16, #tpu.memory_space<vmem>>, vector<1024x64xbf16>
    tpu.vector_store %arg4[%c0_6, %c0_7], %8 {strides = array<i32>} : memref<1024x64xbf16, #tpu.memory_space<vmem>>, vector<1024x64xbf16>,
    return
  }
  func.func @transform_0(%arg0: i32) -> (i32, i32) {
    %c0_i32 = arith.constant 0 : i32
    %c0_i32_0 = arith.constant 0 : i32
    return %arg0, %c0_i32 : i32, i32
  }
  func.func @transform_1(%arg0: i32) -> (i32, i32) {
    %c0_i32 = arith.constant 0 : i32
    %c0_i32_0 = arith.constant 0 : i32
    %c0_i32_1 = arith.constant 0 : i32
    return %c0_i32, %c0_i32_0 : i32, i32
  }
  func.func @transform_2(%arg0: i32) -> (i32, i32) {
    %c0_i32 = arith.constant 0 : i32
    %c0_i32_0 = arith.constant 0 : i32
    %c0_i32_1 = arith.constant 0 : i32
    return %c0_i32, %c0_i32_0 : i32, i32
  }
  func.func @transform_3(%arg0: i32) -> (i32, i32) {
    %c0_i32 = arith.constant 0 : i32
    %c0_i32_0 = arith.constant 0 : i32
    return %arg0, %c0_i32 : i32, i32
  }
}

module attributes {stable_mosaic.version = 11 : i64} {
  func.func @_conv_mm_kernel(%arg0: i32, %arg1: memref<256x576xbf16, #tpu.memory_space<vmem>>, %arg2: memref<576x128xbf16, #tpu.memory_space<vmem>>, %arg3: memref<1x128xf32, #tpu.memory_space<vmem>>, %arg4: memref<256x128xbf16, #tpu.memory_space<vmem>>) attributes {dimension_semantics = [#tpu.dimension_semantics<parallel>], iteration_bounds = array<i64: 2>, scalar_prefetch = 0 : i64, scratch_operands = 0 : i64, tpu.core_type = #tpu.core_type<tc>, window_params = [{transform_indices = @transform_0, window_bounds = array<i64: 256, 576>}, {pipeline_mode = #tpu.pipeline_mode<synchronous>, transform_indices = @transform_1, window_bounds = array<i64: 576, 128>}, {pipeline_mode = #tpu.pipeline_mode<synchronous>, transform_indices = @transform_2, window_bounds = array<i64: 1, 128>}, {transform_indices = @transform_3, window_bounds = array<i64: 256, 128>}]} {
    %c0 = arith.constant 0 : index
    %c0_0 = arith.constant 0 : index
    %0 = vector.load %arg1[%c0, %c0_0] : memref<256x576xbf16, #tpu.memory_space<vmem>>, vector<256x576xbf16>
    %c0_1 = arith.constant 0 : index
    %c0_2 = arith.constant 0 : index
    %1 = vector.load %arg2[%c0_1, %c0_2] : memref<576x128xbf16, #tpu.memory_space<vmem>>, vector<576x128xbf16>
    %cst = arith.constant dense<0.000000e+00> : vector<256x128xf32>
    %2 = tpu.matmul %0, %1, %cst {dimension_numbers = #tpu.dot_dimension_numbers<[1], [0], [0], [1], [0, 0, 1, 1], [], []>} : vector<256x576xbf16>, vector<576x128xbf16>, vector<256x128xf32> -> vector<256x128xf32>
    %c0_3 = arith.constant 0 : index
    %c0_4 = arith.constant 0 : index
    %3 = vector.load %arg3[%c0_3, %c0_4] : memref<1x128xf32, #tpu.memory_space<vmem>>, vector<1x128xf32>
    %4 = vector.broadcast %3 : vector<1x128xf32> to vector<256x128xf32>
    %5 = arith.addf %2, %4 : vector<256x128xf32>
    %cst_5 = arith.constant 0.000000e+00 : f32
    %6 = vector.broadcast %cst_5 : f32 to vector<256x128xf32>
    %7 = arith.maximumf %5, %6 : vector<256x128xf32>
    %8 = arith.truncf %7 : vector<256x128xf32> to vector<256x128xbf16>
    %c0_6 = arith.constant 0 : index
    %c0_7 = arith.constant 0 : index
    %9 = vector.load %arg4[%c0_6, %c0_7] : memref<256x128xbf16, #tpu.memory_space<vmem>>, vector<256x128xbf16>
    tpu.vector_store %arg4[%c0_6, %c0_7], %8 {strides = array<i32>} : memref<256x128xbf16, #tpu.memory_space<vmem>>, vector<256x128xbf16>,
    return
  }
  func.func @transform_0(%arg0: i32) -> (i32, i32) {
    %c0_i32 = arith.constant 0 : i32
    %c0_i32_0 = arith.constant 0 : i32
    return %arg0, %c0_i32 : i32, i32
  }
  func.func @transform_1(%arg0: i32) -> (i32, i32) {
    %c0_i32 = arith.constant 0 : i32
    %c0_i32_0 = arith.constant 0 : i32
    %c0_i32_1 = arith.constant 0 : i32
    return %c0_i32, %c0_i32_0 : i32, i32
  }
  func.func @transform_2(%arg0: i32) -> (i32, i32) {
    %c0_i32 = arith.constant 0 : i32
    %c0_i32_0 = arith.constant 0 : i32
    %c0_i32_1 = arith.constant 0 : i32
    return %c0_i32, %c0_i32_0 : i32, i32
  }
  func.func @transform_3(%arg0: i32) -> (i32, i32) {
    %c0_i32 = arith.constant 0 : i32
    %c0_i32_0 = arith.constant 0 : i32
    return %arg0, %c0_i32 : i32, i32
  }
}

module attributes {stable_mosaic.version = 11 : i64} {
  func.func @_fc_kernel(%arg0: i32, %arg1: memref<2x28800xbf16, #tpu.memory_space<vmem>>, %arg2: memref<10x28800xbf16, #tpu.memory_space<vmem>>, %arg3: memref<1x10xf32, #tpu.memory_space<vmem>>, %arg4: memref<2x10xf32, #tpu.memory_space<vmem>>) attributes {dimension_semantics = [#tpu.dimension_semantics<arbitrary>], iteration_bounds = array<i64: 1>, scalar_prefetch = 0 : i64, scratch_operands = 0 : i64, tpu.core_type = #tpu.core_type<tc>, window_params = [{pipeline_mode = #tpu.pipeline_mode<synchronous>, transform_indices = @transform_0, window_bounds = array<i64: 2, 28800>}, {pipeline_mode = #tpu.pipeline_mode<synchronous>, transform_indices = @transform_1, window_bounds = array<i64: 10, 28800>}, {pipeline_mode = #tpu.pipeline_mode<synchronous>, transform_indices = @transform_2, window_bounds = array<i64: 1, 10>}, {pipeline_mode = #tpu.pipeline_mode<synchronous>, transform_indices = @transform_3, window_bounds = array<i64: 2, 10>}]} {
    %c0 = arith.constant 0 : index
    %c0_0 = arith.constant 0 : index
    %0 = vector.load %arg1[%c0, %c0_0] : memref<2x28800xbf16, #tpu.memory_space<vmem>>, vector<2x28800xbf16>
    %c0_1 = arith.constant 0 : index
    %c0_2 = arith.constant 0 : index
    %1 = vector.load %arg2[%c0_1, %c0_2] : memref<10x28800xbf16, #tpu.memory_space<vmem>>, vector<10x28800xbf16>
    %cst = arith.constant dense<0.000000e+00> : vector<2x10xf32>
    %2 = tpu.matmul %0, %1, %cst {dimension_numbers = #tpu.dot_dimension_numbers<[1], [1], [0], [0], [0, 0, 1, 0], [], []>} : vector<2x28800xbf16>, vector<10x28800xbf16>, vector<2x10xf32> -> vector<2x10xf32>
    %c0_3 = arith.constant 0 : index
    %c0_4 = arith.constant 0 : index
    %3 = vector.load %arg3[%c0_3, %c0_4] : memref<1x10xf32, #tpu.memory_space<vmem>>, vector<1x10xf32>
    %4 = vector.broadcast %3 : vector<1x10xf32> to vector<2x10xf32>
    %5 = arith.addf %2, %4 : vector<2x10xf32>
    %cst_5 = arith.constant dense<0xFF800000> : vector<2xf32>
    %6 = vector.multi_reduction <maximumf>, %5, %cst_5 [1] : vector<2x10xf32> to vector<2xf32>
    %7 = vector.shape_cast %6 : vector<2xf32> to vector<2x1xf32>
    %8 = vector.broadcast %7 : vector<2x1xf32> to vector<2x10xf32>
    %9 = arith.subf %5, %8 : vector<2x10xf32>
    %10 = math.exp %9 : vector<2x10xf32>
    %cst_6 = arith.constant dense<0.000000e+00> : vector<2xf32>
    %11 = vector.multi_reduction <add>, %10, %cst_6 [1] : vector<2x10xf32> to vector<2xf32>
    %12 = vector.shape_cast %11 : vector<2xf32> to vector<2x1xf32>
    %13 = math.log %12 : vector<2x1xf32>
    %14 = arith.addf %7, %13 : vector<2x1xf32>
    %15 = vector.broadcast %14 : vector<2x1xf32> to vector<2x10xf32>
    %16 = arith.subf %5, %15 : vector<2x10xf32>
    %c0_7 = arith.constant 0 : index
    %c0_8 = arith.constant 0 : index
    %17 = vector.load %arg4[%c0_7, %c0_8] : memref<2x10xf32, #tpu.memory_space<vmem>>, vector<2x10xf32>
    tpu.vector_store %arg4[%c0_7, %c0_8], %16 {strides = array<i32>} : memref<2x10xf32, #tpu.memory_space<vmem>>, vector<2x10xf32>,
    return
  }
  func.func @transform_0(%arg0: i32) -> (i32, i32) {
    %c0_i32 = arith.constant 0 : i32
    %c0_i32_0 = arith.constant 0 : i32
    %c0_i32_1 = arith.constant 0 : i32
    return %c0_i32, %c0_i32_0 : i32, i32
  }
  func.func @transform_1(%arg0: i32) -> (i32, i32) {
    %c0_i32 = arith.constant 0 : i32
    %c0_i32_0 = arith.constant 0 : i32
    %c0_i32_1 = arith.constant 0 : i32
    return %c0_i32, %c0_i32_0 : i32, i32
  }
  func.func @transform_2(%arg0: i32) -> (i32, i32) {
    %c0_i32 = arith.constant 0 : i32
    %c0_i32_0 = arith.constant 0 : i32
    %c0_i32_1 = arith.constant 0 : i32
    return %c0_i32, %c0_i32_0 : i32, i32
  }
  func.func @transform_3(%arg0: i32) -> (i32, i32) {
    %c0_i32 = arith.constant 0 : i32
    %c0_i32_0 = arith.constant 0 : i32
    %c0_i32_1 = arith.constant 0 : i32
    return %c0_i32, %c0_i32_0 : i32, i32
  }
}

</mosaic_0001>

<bundles_post_ra>
// kernel: custom_model_forward.4
= control target key start
LH: loop header
LB: loop body
LE: loop exit
PB: predicated region body
PF: predicated region fallthrough
CT: control target
= control target key end

     0   :  { %s5481_s12 = smov 0   ;;  %s6554_s0 = inlined_call_operand.vmem [shape: bf16[8192,27], index: 0, kind: input, shape index: {}]   ;;  %s6555_s1 = inlined_call_operand.vmem [shape: bf16[27,32], index: 1, kind: input, shape index: {}]   ;;  %s6556_s2 = inlined_call_operand.vmem [shape: f32[1,32], index: 2, kind: input, shape index: {}]   ;;  %s6557_s3 = inlined_call_operand.vmem [shape: bf16[8192,32], index: 3, kind: output, shape index: {}]  }
   0x1 LB: > { %s4135_s13 = sadd.s32 4294967295, %s5458_s12   ;;  %p4139_p0 = scmp.ge.s32.totalorder %s5458_s12, 1  ;;  %s5458_s12 = sphi %s5481_s12, %s13_s12  }
   0x2   : > { %p138_p1 = scmp.lt.s32.totalorder %s5458_s12, 5 }
   0x4   : > { %p139_p2 = pnand %p4139_p0, %p138_p1 }
   0x5   : > { %v5320_v0 = vld [vmem:[%s6555_s1] sm:$0xff] (!%p139_p2)   ;;  %vm1478_vm0 = vcmask (!%p139_p2), 1044480   ;;  %v5321_v1 = vld [vmem:[%s6555_s1 + $0x8] sm:$0x3f] (!%p139_p2)   ;;  %vm1479_vm1 = vcmask (!%p139_p2), 1045504   ;;  %s4140_s18 = sshll.u32 (!%p139_p2), %s4135_s13, 8 }
   0x6   : > { %142 = sbr.rel (%p139_p2) target bundleno = 489 (0x1e9), region = 32  ;;  %5047 = vmatprep.subr.bf16.mxu0 (!%p139_p2), %v5320_v0  ;;  %5307 = vmatprep.subr.bf16.mxu1 (!%p139_p2), %v5320_v0  ;;  %v5460_v2 = vmov (!%p139_p2), 65535   ;;  %p163_p3 = scmp.lt.s32.totalorder (!%p139_p2), %s4140_s18, 1023  ;;  %vm1093_vm2 = vcmask (!%p139_p2), 220160   ;;  %vm3822_vm3 = vcmask (!%p139_p2), 257024  }
   0x7   : > { %5048 = vmatpush3.bf16.msra.mxu0 (!%p139_p2), %v5320_v0  ;;  %5309 = vmatpush3.bf16.msra.mxu1 (!%p139_p2), %v5320_v0  ;;  %v1480_v3 = vsel (!%p139_p2), %vm1478_vm0, 4294967295, %v5460_v2 }
   0x8   : > { %v1481_v4 = vsel (!%p139_p2), %vm1479_vm1, %v1480_v3, 0 }
   0x9   : > { %v1483_v5 = vand.u32 (!%p139_p2), %v5321_v1, %v1481_v4 }
   0xb   : > { %5049 = vmatprep.subr.bf16.mxu0 (!%p139_p2), %v1483_v5  ;;  %5308 = vmatprep.subr.bf16.mxu1 (!%p139_p2), %v1483_v5 }
   0xc   : > { %5050 = vmatpush3.bf16.msra.mxu0 (!%p139_p2), %v1483_v5  ;;  %5310 = vmatpush3.bf16.msra.mxu1 (!%p139_p2), %v1483_v5 }
   0xd   : > { %s6559_s18 = smov (!%p163_p3, %s4140_s18), 1023 }
   0xe   : > { %s4141_s19 = sshll.u32 %s6559_s18, 2 }
   0xf   : > { %s5503_s22 = scalar_lea.vmem %s6554_s0, %s4141_s19  ;;  %s5744_s27 = scalar_lea.vmem %s6557_s3, %s4141_s19 }
  0x10   : > { %v5322_v6 = vld [vmem:[%s5503_s22] sm:$0xff]   ;;  %v5324_v8 = vld [vmem:[%s5503_s22 + $0x8] sm:$0xff]   ;;  %v5326_v10 = vld [vmem:[%s5503_s22 + $0x10] sm:$0xff]  }
  0x11   : > { %v5323_v7 = vld [vmem:[%s5503_s22 + $0x200] sm:$0xff]   ;;  %5051 = vmatprep.mubr.msk.bf16.mxu0 %vm1093_vm2, %v5322_v6  ;;  %v5325_v9 = vld [vmem:[%s5503_s22 + $0x208] sm:$0xff]   ;;  %v5327_v11 = vld [vmem:[%s5503_s22 + $0x210] sm:$0xff]  }
  0x12   : > { %5179 = vmatprep.mubr.msk.bf16.mxu1 %vm1093_vm2, %v5323_v7  ;;  %5052 = vmatmul.mubr.msk.bf16.vlgmr.msra.gmra.mrb[0].mxu0 %vm1093_vm2, %v5324_v8  ;;  %v5328_v12 = vld [vmem:[%s5503_s22 + $0x18] sm:$0xff]   ;;  %v5330_v14 = vld [vmem:[%s5503_s22 + $0x20] sm:$0xff]   ;;  %v5332_v16 = vld [vmem:[%s5503_s22 + $0x28] sm:$0xff]  }
  0x13   : > { %5180 = vmatmul.mubr.msk.bf16.vlgmr.msra.gmra.mrb[0].mxu1 %vm1093_vm2, %v5325_v9  ;;  %5055 = vmatprep.mubr.msk.bf16.mxu0 %vm1093_vm2, %v5326_v10  ;;  %v5329_v13 = vld [vmem:[%s5503_s22 + $0x218] sm:$0xff]   ;;  %v5331_v15 = vld [vmem:[%s5503_s22 + $0x220] sm:$0xff]   ;;  %v5333_v17 = vld [vmem:[%s5503_s22 + $0x228] sm:$0xff]  }
  0x14   : > { %5183 = vmatprep.mubr.msk.bf16.mxu1 %vm1093_vm2, %v5327_v11  ;;  %v5334_v18 = vld [vmem:[%s5503_s22 + $0x30] sm:$0xff]   ;;  %v5336_v20 = vld [vmem:[%s5503_s22 + $0x38] sm:$0xff]   ;;  %v5338_v22 = vld [vmem:[%s5503_s22 + $0x40] sm:$0xff]  }
  0x15   : > { %v5335_v19 = vld [vmem:[%s5503_s22 + $0x230] sm:$0xff]   ;;  %v5337_v21 = vld [vmem:[%s5503_s22 + $0x238] sm:$0xff]   ;;  %v5339_v23 = vld [vmem:[%s5503_s22 + $0x240] sm:$0xff]  }
  0x16   : > { %v5340_v24 = vld [vmem:[%s5503_s22 + $0x48] sm:$0xff]   ;;  %v5342_v26 = vld [vmem:[%s5503_s22 + $0x50] sm:$0xff]   ;;  %v5344_v28 = vld [vmem:[%s5503_s22 + $0x58] sm:$0xff]  }
  0x17   : > { %v5341_v25 = vld [vmem:[%s5503_s22 + $0x248] sm:$0xff]   ;;  %v5343_v27 = vld [vmem:[%s5503_s22 + $0x250] sm:$0xff]   ;;  %v5345_v29 = vld [vmem:[%s5503_s22 + $0x258] sm:$0xff]  }
  0x18   : > { %v5346_v30 = vld [vmem:[%s5503_s22 + $0x60] sm:$0xff]   ;;  %v5348_v32 = vld [vmem:[%s5503_s22 + $0x68] sm:$0xff]   ;;  %v5350_v34 = vld [vmem:[%s5503_s22 + $0x70] sm:$0xff]  }
  0x19   : > { %v5347_v31 = vld [vmem:[%s5503_s22 + $0x260] sm:$0xff]   ;;  %v5349_v33 = vld [vmem:[%s5503_s22 + $0x268] sm:$0xff]   ;;  %v5351_v35 = vld [vmem:[%s5503_s22 + $0x270] sm:$0xff]  }
  0x1a   : > { %5056 = vmatmul.mubr.msk.bf16.gmra.mrb[4].mxu0 %vm1093_vm2, %v5328_v12  ;;  %v5352_v36 = vld [vmem:[%s5503_s22 + $0x78] sm:$0xff]   ;;  %v5354_v38 = vld [vmem:[%s5503_s22 + $0x80] sm:$0xff]   ;;  %v5356_v40 = vld [vmem:[%s5503_s22 + $0x88] sm:$0xff]  }
  0x1b   : > { %5184 = vmatmul.mubr.msk.bf16.gmra.mrb[4].mxu1 %vm1093_vm2, %v5329_v13  ;;  %5059 = vmatprep.mubr.msk.bf16.mxu0 %vm1093_vm2, %v5330_v14  ;;  %v5353_v37 = vld [vmem:[%s5503_s22 + $0x278] sm:$0xff]   ;;  %v5355_v39 = vld [vmem:[%s5503_s22 + $0x280] sm:$0xff]   ;;  %v5357_v41 = vld [vmem:[%s5503_s22 + $0x288] sm:$0xff]  }
  0x1c   : > { %5187 = vmatprep.mubr.msk.bf16.mxu1 %vm1093_vm2, %v5331_v15  ;;  %v5358_v42 = vld [vmem:[%s5503_s22 + $0x90] sm:$0xff]   ;;  %v5360_v44 = vld [vmem:[%s5503_s22 + $0x98] sm:$0xff]   ;;  %v5362_v46 = vld [vmem:[%s5503_s22 + $0xa0] sm:$0xff]  }
  0x1d   : > { %v5359_v43 = vld [vmem:[%s5503_s22 + $0x290] sm:$0xff]   ;;  %v5361_v45 = vld [vmem:[%s5503_s22 + $0x298] sm:$0xff]   ;;  %v5363_v47 = vld [vmem:[%s5503_s22 + $0x2a0] sm:$0xff]  }
  0x1e   : > { %v5364_v48 = vld [vmem:[%s5503_s22 + $0xa8] sm:$0xff]   ;;  %v5366_v50 = vld [vmem:[%s5503_s22 + $0xb0] sm:$0xff]   ;;  %v5368_v52 = vld [vmem:[%s5503_s22 + $0xb8] sm:$0xff]  }
  0x1f   : > { %v5365_v49 = vld [vmem:[%s5503_s22 + $0x2a8] sm:$0xff]   ;;  %v5367_v51 = vld [vmem:[%s5503_s22 + $0x2b0] sm:$0xff]   ;;  %v5369_v53 = vld [vmem:[%s5503_s22 + $0x2b8] sm:$0xff]  }
  0x20   : > { %v5370_v54 = vld [vmem:[%s5503_s22 + $0xc0] sm:$0xff]   ;;  %v5372_v56 = vld [vmem:[%s5503_s22 + $0xc8] sm:$0xff]   ;;  %v5374_v58 = vld [vmem:[%s5503_s22 + $0xd0] sm:$0xff]  }
  0x21   : > { %v5371_v55 = vld [vmem:[%s5503_s22 + $0x2c0] sm:$0xff]   ;;  %v5373_v57 = vld [vmem:[%s5503_s22 + $0x2c8] sm:$0xff]   ;;  %v5375_v59 = vld [vmem:[%s5503_s22 + $0x2d0] sm:$0xff]  }
  0x22   : > { %5060 = vmatmul.mubr.msk.bf16.gmra.mrb[8].mxu0 %vm1093_vm2, %v5332_v16  ;;  %v5376_v60 = vld [vmem:[%s5503_s22 + $0xd8] sm:$0xff]   ;;  %v5378_v62 = vld [vmem:[%s5503_s22 + $0xe0] sm:$0xff]   ;;  %v5380_v0 = vld [vmem:[%s5503_s22 + $0xe8] sm:$0xff]  }
  0x23   : > { %5188 = vmatmul.mubr.msk.bf16.gmra.mrb[8].mxu1 %vm1093_vm2, %v5333_v17  ;;  %5063 = vmatprep.mubr.msk.bf16.mxu0 %vm1093_vm2, %v5334_v18  ;;  %v5377_v61 = vld [vmem:[%s5503_s22 + $0x2d8] sm:$0xff]   ;;  %v5379_v63 = vld [vmem:[%s5503_s22 + $0x2e0] sm:$0xff]   ;;  %v5381_v1 = vld [vmem:[%s5503_s22 + $0x2e8] sm:$0xff]  }
  0x24   : > { %5191 = vmatprep.mubr.msk.bf16.mxu1 %vm1093_vm2, %v5335_v19  ;;  %v5382_v2 = vld [vmem:[%s5503_s22 + $0xf0] sm:$0xff]   ;;  %v5384_v4 = vld [vmem:[%s5503_s22 + $0xf8] sm:$0xff]   ;;  %v5386_v6 = vld [vmem:[%s5503_s22 + $0x100] sm:$0xff]  }
  0x25   : > { %v5383_v3 = vld [vmem:[%s5503_s22 + $0x2f0] sm:$0xff]   ;;  %v5385_v5 = vld [vmem:[%s5503_s22 + $0x2f8] sm:$0xff]   ;;  %v5387_v7 = vld [vmem:[%s5503_s22 + $0x300] sm:$0xff]  }
  0x26   : > { %v5388_v8 = vld [vmem:[%s5503_s22 + $0x108] sm:$0xff]   ;;  %v5390_v10 = vld [vmem:[%s5503_s22 + $0x110] sm:$0xff]   ;;  %v5392_v12 = vld [vmem:[%s5503_s22 + $0x118] sm:$0xff]  }
  0x27   : > { %v5389_v9 = vld [vmem:[%s5503_s22 + $0x308] sm:$0xff]   ;;  %v5391_v11 = vld [vmem:[%s5503_s22 + $0x310] sm:$0xff]   ;;  %v5393_v13 = vld [vmem:[%s5503_s22 + $0x318] sm:$0xff]  }
  0x28   : > { %v5394_v14 = vld [vmem:[%s5503_s22 + $0x120] sm:$0xff]   ;;  %v5396_v16 = vld [vmem:[%s5503_s22 + $0x128] sm:$0xff]   ;;  %v5398_v18 = vld [vmem:[%s5503_s22 + $0x130] sm:$0xff]  }
  0x29   : > { %v5395_v15 = vld [vmem:[%s5503_s22 + $0x320] sm:$0xff]   ;;  %v5397_v17 = vld [vmem:[%s5503_s22 + $0x328] sm:$0xff]   ;;  %v5399_v19 = vld [vmem:[%s5503_s22 + $0x330] sm:$0xff]  }
  0x2a   : > { %5064 = vmatmul.mubr.msk.bf16.gmra.mrb[12].mxu0 %vm1093_vm2, %v5336_v20  ;;  %v5400_v20 = vld [vmem:[%s5503_s22 + $0x138] sm:$0xff]  }
  0x2b   : > { %5192 = vmatmul.mubr.msk.bf16.gmra.mrb[12].mxu1 %vm1093_vm2, %v5337_v21  ;;  %5067 = vmatprep.mubr.msk.bf16.mxu0 %vm1093_vm2, %v5338_v22  ;;  %v5401_v21 = vld [vmem:[%s5503_s22 + $0x338] sm:$0xff]   ;;  %v5402_v22 = vld [vmem:[%s5503_s22 + $0x140] sm:$0xff]  }
  0x2c   : > { %5195 = vmatprep.mubr.msk.bf16.mxu1 %vm1093_vm2, %v5339_v23  ;;  %v5403_v23 = vld [vmem:[%s5503_s22 + $0x340] sm:$0xff]  }
  0x32   : > { %5068 = vmatmul.mubr.msk.bf16.gmra.mrb[16].mxu0 %vm1093_vm2, %v5340_v24  ;;  %v5404_v24 = vld [vmem:[%s5503_s22 + $0x148] sm:$0xff]  }
  0x33   : > { %5196 = vmatmul.mubr.msk.bf16.gmra.mrb[16].mxu1 %vm1093_vm2, %v5341_v25  ;;  %5071 = vmatprep.mubr.msk.bf16.mxu0 %vm1093_vm2, %v5342_v26  ;;  %v5405_v25 = vld [vmem:[%s5503_s22 + $0x348] sm:$0xff]   ;;  %v5406_v26 = vld [vmem:[%s5503_s22 + $0x150] sm:$0xff]  }
  0x34   : > { %5199 = vmatprep.mubr.msk.bf16.mxu1 %vm1093_vm2, %v5343_v27  ;;  %v5407_v27 = vld [vmem:[%s5503_s22 + $0x350] sm:$0xff]  }
  0x3a   : > { %5072 = vmatmul.mubr.msk.bf16.gmra.mrb[20].mxu0 %vm1093_vm2, %v5344_v28  ;;  %v5408_v28 = vld [vmem:[%s5503_s22 + $0x158] sm:$0xff]  }
  0x3b   : > { %5200 = vmatmul.mubr.msk.bf16.gmra.mrb[20].mxu1 %vm1093_vm2, %v5345_v29  ;;  %5075 = vmatprep.mubr.msk.bf16.mxu0 %vm1093_vm2, %v5346_v30  ;;  %v5409_v29 = vld [vmem:[%s5503_s22 + $0x358] sm:$0xff]   ;;  %v5410_v30 = vld [vmem:[%s5503_s22 + $0x160] sm:$0xff]  }
  0x3c   : > { %5203 = vmatprep.mubr.msk.bf16.mxu1 %vm1093_vm2, %v5347_v31  ;;  %v5411_v31 = vld [vmem:[%s5503_s22 + $0x360] sm:$0xff]  }
  0x42   : > { %5076 = vmatmul.mubr.msk.bf16.gmra.mrb[24].mxu0 %vm1093_vm2, %v5348_v32  ;;  %v5412_v32 = vld [vmem:[%s5503_s22 + $0x168] sm:$0xff]  }
  0x43   : > { %5204 = vmatmul.mubr.msk.bf16.gmra.mrb[24].mxu1 %vm1093_vm2, %v5349_v33  ;;  %5079 = vmatprep.mubr.msk.bf16.mxu0 %vm1093_vm2, %v5350_v34  ;;  %v5413_v33 = vld [vmem:[%s5503_s22 + $0x368] sm:$0xff]   ;;  %v5414_v34 = vld [vmem:[%s5503_s22 + $0x170] sm:$0xff]  }
  0x44   : > { %5207 = vmatprep.mubr.msk.bf16.mxu1 %vm1093_vm2, %v5351_v35  ;;  %v5415_v35 = vld [vmem:[%s5503_s22 + $0x370] sm:$0xff]  }
  0x4a   : > { %5080 = vmatmul.mubr.msk.bf16.gmra.mrb[28].mxu0 %vm1093_vm2, %v5352_v36  ;;  %v5416_v36 = vld [vmem:[%s5503_s22 + $0x178] sm:$0xff]  }
  0x4b   : > { %5208 = vmatmul.mubr.msk.bf16.gmra.mrb[28].mxu1 %vm1093_vm2, %v5353_v37  ;;  %5083 = vmatprep.mubr.msk.bf16.mxu0 %vm1093_vm2, %v5354_v38  ;;  %v5417_v37 = vld [vmem:[%s5503_s22 + $0x378] sm:$0xff]   ;;  %v5418_v38 = vld [vmem:[%s5503_s22 + $0x180] sm:$0xff]  }
  0x4c   : > { %5211 = vmatprep.mubr.msk.bf16.mxu1 %vm1093_vm2, %v5355_v39  ;;  %v5419_v39 = vld [vmem:[%s5503_s22 + $0x380] sm:$0xff]  }
  0x52   : > { %5084 = vmatmul.mubr.msk.bf16.gmra.mrb[32].mxu0 %vm1093_vm2, %v5356_v40  ;;  %v5420_v40 = vld [vmem:[%s5503_s22 + $0x188] sm:$0xff]  }
  0x53   : > { %5212 = vmatmul.mubr.msk.bf16.gmra.mrb[32].mxu1 %vm1093_vm2, %v5357_v41  ;;  %5087 = vmatprep.mubr.msk.bf16.mxu0 %vm1093_vm2, %v5358_v42  ;;  %v5421_v41 = vld [vmem:[%s5503_s22 + $0x388] sm:$0xff]   ;;  %v5422_v42 = vld [vmem:[%s5503_s22 + $0x190] sm:$0xff]  }
  0x54   : > { %5215 = vmatprep.mubr.msk.bf16.mxu1 %vm1093_vm2, %v5359_v43  ;;  %v5423_v43 = vld [vmem:[%s5503_s22 + $0x390] sm:$0xff]  }
  0x5a   : > { %5088 = vmatmul.mubr.msk.bf16.gmra.mrb[36].mxu0 %vm1093_vm2, %v5360_v44  ;;  %v5424_v44 = vld [vmem:[%s5503_s22 + $0x198] sm:$0xff]  }
  0x5b   : > { %5216 = vmatmul.mubr.msk.bf16.gmra.mrb[36].mxu1 %vm1093_vm2, %v5361_v45  ;;  %5091 = vmatprep.mubr.msk.bf16.mxu0 %vm1093_vm2, %v5362_v46  ;;  %v5425_v45 = vld [vmem:[%s5503_s22 + $0x398] sm:$0xff]   ;;  %v5426_v46 = vld [vmem:[%s5503_s22 + $0x1a0] sm:$0xff]  }
  0x5c   : > { %5219 = vmatprep.mubr.msk.bf16.mxu1 %vm1093_vm2, %v5363_v47  ;;  %v5427_v47 = vld [vmem:[%s5503_s22 + $0x3a0] sm:$0xff]  }
  0x62   : > { %5092 = vmatmul.mubr.msk.bf16.gmra.mrb[40].mxu0 %vm1093_vm2, %v5364_v48  ;;  %v5428_v48 = vld [vmem:[%s5503_s22 + $0x1a8] sm:$0xff]  }
  0x63   : > { %5220 = vmatmul.mubr.msk.bf16.gmra.mrb[40].mxu1 %vm1093_vm2, %v5365_v49  ;;  %5095 = vmatprep.mubr.msk.bf16.mxu0 %vm1093_vm2, %v5366_v50  ;;  %v5429_v49 = vld [vmem:[%s5503_s22 + $0x3a8] sm:$0xff]   ;;  %v5430_v50 = vld [vmem:[%s5503_s22 + $0x1b0] sm:$0xff]  }
  0x64   : > { %5223 = vmatprep.mubr.msk.bf16.mxu1 %vm1093_vm2, %v5367_v51  ;;  %v5431_v51 = vld [vmem:[%s5503_s22 + $0x3b0] sm:$0xff]  }
  0x6a   : > { %5096 = vmatmul.mubr.msk.bf16.gmra.mrb[44].mxu0 %vm1093_vm2, %v5368_v52  ;;  %v5726_v52 = vld [vmem:[%s6556_s2] ss:$0 sm:$0xff] }
  0x6b   : > { %5224 = vmatmul.mubr.msk.bf16.gmra.mrb[44].mxu1 %vm1093_vm2, %v5369_v53  ;;  %5099 = vmatprep.mubr.msk.bf16.mxu0 %vm1093_vm2, %v5370_v54 }
  0x6c   : > { %5227 = vmatprep.mubr.msk.bf16.mxu1 %vm1093_vm2, %v5371_v55 }
  0x72   : > { %5100 = vmatmul.mubr.msk.bf16.gmra.mrb[48].mxu0 %vm1093_vm2, %v5372_v56 }
  0x73   : > { %5228 = vmatmul.mubr.msk.bf16.gmra.mrb[48].mxu1 %vm1093_vm2, %v5373_v57  ;;  %5103 = vmatprep.mubr.msk.bf16.mxu0 %vm1093_vm2, %v5374_v58  ;;  %v5432_v57 = vld [vmem:[%s5503_s22 + $0x1b8] sm:$0xff]  }
  0x74   : > { %5231 = vmatprep.mubr.msk.bf16.mxu1 %vm1093_vm2, %v5375_v59 }
  0x7a   : > { %5104 = vmatmul.mubr.msk.bf16.gmra.mrb[52].mxu0 %vm1093_vm2, %v5376_v60 }
  0x7b   : > { %5232 = vmatmul.mubr.msk.bf16.gmra.mrb[52].mxu1 %vm1093_vm2, %v5377_v61  ;;  %5107 = vmatprep.mubr.msk.bf16.mxu0 %vm1093_vm2, %v5378_v62  ;;  %v5433_v62 = vld [vmem:[%s5503_s22 + $0x3b8] sm:$0xff]  }
  0x7c   : > { %5235 = vmatprep.mubr.msk.bf16.mxu1 %vm1093_vm2, %v5379_v63  ;;  %v5434_v63 = vld [vmem:[%s5503_s22 + $0x1c0] sm:$0xff]  }
  0x82   : > { %5108 = vmatmul.mubr.msk.bf16.gmra.mrb[56].mxu0 %vm1093_vm2, %v5380_v0 }
  0x83   : > { %5236 = vmatmul.mubr.msk.bf16.gmra.mrb[56].mxu1 %vm1093_vm2, %v5381_v1  ;;  %5111 = vmatprep.mubr.msk.bf16.mxu0 %vm1093_vm2, %v5382_v2 }
  0x84   : > { %5239 = vmatprep.mubr.msk.bf16.mxu1 %vm1093_vm2, %v5383_v3 }
  0x8a   : > { %5112 = vmatmul.mubr.msk.bf16.gmra.mrb[60].mxu0 %vm1093_vm2, %v5384_v4 }
  0x8b   : > { %5240 = vmatmul.mubr.msk.bf16.gmra.mrb[60].mxu1 %vm1093_vm2, %v5385_v5  ;;  %5115 = vmatprep.mubr.msk.bf16.mxu0 %vm1093_vm2, %v5386_v6  ;;  %v5435_v5 = vld [vmem:[%s5503_s22 + $0x3c0] sm:$0xff]  }
  0x8c   : > { %5243 = vmatprep.mubr.msk.bf16.mxu1 %vm1093_vm2, %v5387_v7 }
  0x92   : > { %5116 = vmatmul.mubr.msk.bf16.gmra.mrb[64].mxu0 %vm1093_vm2, %v5388_v8 }
  0x93   : > { %5244 = vmatmul.mubr.msk.bf16.gmra.mrb[64].mxu1 %vm1093_vm2, %v5389_v9  ;;  %5119 = vmatprep.mubr.msk.bf16.mxu0 %vm1093_vm2, %v5390_v10 }
  0x94   : > { %5247 = vmatprep.mubr.msk.bf16.mxu1 %vm1093_vm2, %v5391_v11 }
  0x9a   : > { %5120 = vmatmul.mubr.msk.bf16.gmra.mrb[68].mxu0 %vm1093_vm2, %v5392_v12 }
  0x9b   : > { %5248 = vmatmul.mubr.msk.bf16.gmra.mrb[68].mxu1 %vm1093_vm2, %v5393_v13  ;;  %5123 = vmatprep.mubr.msk.bf16.mxu0 %vm1093_vm2, %v5394_v14 }
  0x9c   : > { %5251 = vmatprep.mubr.msk.bf16.mxu1 %vm1093_vm2, %v5395_v15 }
  0xa2   : > { %5124 = vmatmul.mubr.msk.bf16.gmra.mrb[72].mxu0 %vm1093_vm2, %v5396_v16 }
  0xa3   : > { %5252 = vmatmul.mubr.msk.bf16.gmra.mrb[72].mxu1 %vm1093_vm2, %v5397_v17  ;;  %5127 = vmatprep.mubr.msk.bf16.mxu0 %vm1093_vm2, %v5398_v18 }
  0xa4   : > { %5255 = vmatprep.mubr.msk.bf16.mxu1 %vm1093_vm2, %v5399_v19 }
  0xaa   : > { %5128 = vmatmul.mubr.msk.bf16.gmra.mrb[76].mxu0 %vm1093_vm2, %v5400_v20 }
  0xab   : > { %5256 = vmatmul.mubr.msk.bf16.gmra.mrb[76].mxu1 %vm1093_vm2, %v5401_v21  ;;  %5131 = vmatprep.mubr.msk.bf16.mxu0 %vm1093_vm2, %v5402_v22 }
  0xac   : > { %5259 = vmatprep.mubr.msk.bf16.mxu1 %vm1093_vm2, %v5403_v23 }
  0xb2   : > { %5132 = vmatmul.mubr.msk.bf16.gmra.mrb[80].mxu0 %vm1093_vm2, %v5404_v24 }
  0xb3   : > { %5260 = vmatmul.mubr.msk.bf16.gmra.mrb[80].mxu1 %vm1093_vm2, %v5405_v25  ;;  %5135 = vmatprep.mubr.msk.bf16.mxu0 %vm1093_vm2, %v5406_v26 }
  0xb4   : > { %5263 = vmatprep.mubr.msk.bf16.mxu1 %vm1093_vm2, %v5407_v27 }
  0xba   : > { %5136 = vmatmul.mubr.msk.bf16.gmra.mrb[84].mxu0 %vm1093_vm2, %v5408_v28 }
  0xbb   : > { %5264 = vmatmul.mubr.msk.bf16.gmra.mrb[84].mxu1 %vm1093_vm2, %v5409_v29  ;;  %5139 = vmatprep.mubr.msk.bf16.mxu0 %vm1093_vm2, %v5410_v30  ;;  %v5436_v29 = vld [vmem:[%s5503_s22 + $0x1c8] sm:$0xff]  }
  0xbc   : > { %5267 = vmatprep.mubr.msk.bf16.mxu1 %vm1093_vm2, %v5411_v31 }
  0xc2   : > { %5140 = vmatmul.mubr.msk.bf16.gmra.mrb[88].mxu0 %vm1093_vm2, %v5412_v32 }
  0xc3   : > { %5268 = vmatmul.mubr.msk.bf16.gmra.mrb[88].mxu1 %vm1093_vm2, %v5413_v33  ;;  %5143 = vmatprep.mubr.msk.bf16.mxu0 %vm1093_vm2, %v5414_v34  ;;  %v5437_v34 = vld [vmem:[%s5503_s22 + $0x3c8] sm:$0xff]  }
  0xc4   : > { %5271 = vmatprep.mubr.msk.bf16.mxu1 %vm1093_vm2, %v5415_v35  ;;  %v5438_v35 = vld [vmem:[%s5503_s22 + $0x1d0] sm:$0xff]  }
  0xca   : > { %5144 = vmatmul.mubr.msk.bf16.gmra.mrb[92].mxu0 %vm1093_vm2, %v5416_v36 }
  0xcb   : > { %5272 = vmatmul.mubr.msk.bf16.gmra.mrb[92].mxu1 %vm1093_vm2, %v5417_v37  ;;  %5147 = vmatprep.mubr.msk.bf16.mxu0 %vm1093_vm2, %v5418_v38 }
  0xcc   : > { %5275 = vmatprep.mubr.msk.bf16.mxu1 %vm1093_vm2, %v5419_v39 }
  0xd2   : > { %5148 = vmatmul.mubr.msk.bf16.gmra.mrb[96].mxu0 %vm1093_vm2, %v5420_v40 }
  0xd3   : > { %5276 = vmatmul.mubr.msk.bf16.gmra.mrb[96].mxu1 %vm1093_vm2, %v5421_v41  ;;  %5151 = vmatprep.mubr.msk.bf16.mxu0 %vm1093_vm2, %v5422_v42  ;;  %v5439_v41 = vld [vmem:[%s5503_s22 + $0x3d0] sm:$0xff]  }
  0xd4   : > { %5279 = vmatprep.mubr.msk.bf16.mxu1 %vm1093_vm2, %v5423_v43 }
  0xda   : > { %5152 = vmatmul.mubr.msk.bf16.gmra.mrb[100].mxu0 %vm1093_vm2, %v5424_v44 }
  0xdb   : > { %5280 = vmatmul.mubr.msk.bf16.gmra.mrb[100].mxu1 %vm1093_vm2, %v5425_v45  ;;  %5155 = vmatprep.mubr.msk.bf16.mxu0 %vm1093_vm2, %v5426_v46 }
  0xdc   : > { %5283 = vmatprep.mubr.msk.bf16.mxu1 %vm1093_vm2, %v5427_v47 }
  0xe2   : > { %5156 = vmatmul.mubr.msk.bf16.gmra.mrb[104].mxu0 %vm1093_vm2, %v5428_v48 }
  0xe3   : > { %5284 = vmatmul.mubr.msk.bf16.gmra.mrb[104].mxu1 %vm1093_vm2, %v5429_v49  ;;  %5159 = vmatprep.mubr.msk.bf16.mxu0 %vm1093_vm2, %v5430_v50 }
  0xe4   : > { %5287 = vmatprep.mubr.msk.bf16.mxu1 %vm1093_vm2, %v5431_v51 }
  0xe5   : > { %v5053_v53 = vpop.f32.mrb[0].mxu0 }
  0xe6   : > { %v1528_v54 = vadd.f32 %v5053_v53, %v5726_v52  ;;  %v5181_v55 = vpop.f32.mrb[0].mxu1  ;;  %v1519_v56 = vpop.f32.mrb[1].mxu0 }
  0xe7   : > { %v2040_v58 = vadd.f32 %v5181_v55, %v5726_v52  ;;  %v1520_v59 = vadd.f32 %v5726_v52, %v1519_v56  ;;  %v2031_v60 = vpop.f32.mrb[1].mxu1  ;;  %v5054_v61 = vpop.f32.mrb[2].mxu0 }
  0xe8   : > { %v2544_v0 = vmax.f32 %v1528_v54, 0.0  ;;  %v2032_v1 = vadd.f32 %v5726_v52, %v2031_v60  ;;  %v1531_v2 = vadd.f32 %v5054_v61, %v5726_v52  ;;  %v5182_v3 = vpop.f32.mrb[2].mxu1  ;;  %v1522_v4 = vpop.f32.mrb[3].mxu0 }
  0xe9   : > { %v2672_v6 = vmax.f32 %v2040_v58, 0.0  ;;  %v2542_v7 = vmax.f32 %v1520_v59, 0.0  ;;  %v2043_v8 = vadd.f32 %v5182_v3, %v5726_v52  ;;  %v1523_v9 = vadd.f32 %v5726_v52, %v1522_v4  ;;  %v2034_v10 = vpop.f32.mrb[3].mxu1 }
  0xea   : > { %v4663_v11 = vpack.c.bf16 %v2544_v0, %v2544_v0  ;;  %v2670_v12 = vmax.f32 %v2032_v1, 0.0  ;;  %v2545_v13 = vmax.f32 %v1531_v2, 0.0  ;;  %v2035_v14 = vadd.f32 %v5726_v52, %v2034_v10  ;;  %5160 = vmatmul.mubr.msk.bf16.gmra.mrb[108].mxu0 %vm1093_vm2, %v5432_v57  ;;  %v5440_v2 = vld [vmem:[%s5503_s22 + $0x1d8] sm:$0xff]  }
  0xeb   : > { %v4791_v15 = vpack.c.bf16 %v2672_v6, %v2672_v6  ;;  %v4661_v16 = vpack.c.bf16 %v2542_v7, %v2542_v7  ;;  %v2673_v17 = vmax.f32 %v2043_v8, 0.0  ;;  %v2543_v18 = vmax.f32 %v1523_v9, 0.0  ;;  %5288 = vmatmul.mubr.msk.bf16.gmra.mrb[108].mxu1 %vm1093_vm2, %v5433_v62  ;;  %5163 = vmatprep.mubr.msk.bf16.mxu0 %vm1093_vm2, %v5434_v63  ;;  %v5441_v7 = vld [vmem:[%s5503_s22 + $0x3d8] sm:$0xff]   ;;  %v5442_v8 = vld [vmem:[%s5503_s22 + $0x1e0] sm:$0xff]  }
  0xec   : > { %3825 = vst.msk [vmem:[%s5744_s27 + $0x8] sm:$0xf] %vm3822_vm3, %v4663_v11  ;;  %v4789_v19 = vpack.c.bf16 %v2670_v12, %v2670_v12  ;;  %v4664_v20 = vpack.c.bf16 %v2545_v13, %v2545_v13  ;;  %v2671_v21 = vmax.f32 %v2035_v14, 0.0  ;;  %5291 = vmatprep.mubr.msk.bf16.mxu1 %vm1093_vm2, %v5435_v5  ;;  %v5443_v14 = vld [vmem:[%s5503_s22 + $0x3e0] sm:$0xff]  }
  0xed   : > { %3953 = vst.msk [vmem:[%s5744_s27 + $0x208] sm:$0xf] %vm3822_vm3, %v4791_v15  ;;  %3823 = vst.msk [vmem:[%s5744_s27] sm:$0xf] %vm3822_vm3, %v4661_v16  ;;  %v4792_v22 = vpack.c.bf16 %v2673_v17, %v2673_v17  ;;  %v4662_v23 = vpack.c.bf16 %v2543_v18, %v2543_v18  ;;  %v5057_v24 = vpop.f32.mrb[4].mxu0 }
  0xee   : > { %3951 = vst.msk [vmem:[%s5744_s27 + $0x200] sm:$0xf] %vm3822_vm3, %v4789_v19  ;;  %3826 = vst.msk [vmem:[%s5744_s27 + $0xc] sm:$0xf] %vm3822_vm3, %v4664_v20  ;;  %v4790_v25 = vpack.c.bf16 %v2671_v21, %v2671_v21  ;;  %v1544_v26 = vadd.f32 %v5057_v24, %v5726_v52  ;;  %v5185_v27 = vpop.f32.mrb[4].mxu1  ;;  %v1535_v28 = vpop.f32.mrb[5].mxu0 }
  0xef   : > { %3954 = vst.msk [vmem:[%s5744_s27 + $0x20c] sm:$0xf] %vm3822_vm3, %v4792_v22  ;;  %3824 = vst.msk [vmem:[%s5744_s27 + $0x4] sm:$0xf] %vm3822_vm3, %v4662_v23  ;;  %v2056_v30 = vadd.f32 %v5185_v27, %v5726_v52  ;;  %v1536_v31 = vadd.f32 %v5726_v52, %v1535_v28  ;;  %v2047_v32 = vpop.f32.mrb[5].mxu1  ;;  %v5058_v33 = vpop.f32.mrb[6].mxu0 }
  0xf0   : > { %3952 = vst.msk [vmem:[%s5744_s27 + $0x204] sm:$0xf] %vm3822_vm3, %v4790_v25  ;;  %v2548_v36 = vmax.f32 %v1544_v26, 0.0  ;;  %v2048_v37 = vadd.f32 %v5726_v52, %v2047_v32  ;;  %v1547_v38 = vadd.f32 %v5058_v33, %v5726_v52  ;;  %v5186_v39 = vpop.f32.mrb[6].mxu1  ;;  %v1538_v40 = vpop.f32.mrb[7].mxu0 }
  0xf1   : > { %v2676_v42 = vmax.f32 %v2056_v30, 0.0  ;;  %v2546_v43 = vmax.f32 %v1536_v31, 0.0  ;;  %v2059_v44 = vadd.f32 %v5186_v39, %v5726_v52  ;;  %v1539_v45 = vadd.f32 %v5726_v52, %v1538_v40  ;;  %v2050_v46 = vpop.f32.mrb[7].mxu1 }
  0xf2   : > { %v4667_v47 = vpack.c.bf16 %v2548_v36, %v2548_v36  ;;  %v2674_v48 = vmax.f32 %v2048_v37, 0.0  ;;  %v2549_v49 = vmax.f32 %v1547_v38, 0.0  ;;  %v2051_v50 = vadd.f32 %v5726_v52, %v2050_v46  ;;  %5164 = vmatmul.mubr.msk.bf16.gmra.mrb[112].mxu0 %vm1093_vm2, %v5436_v29  ;;  %v5444_v38 = vld [vmem:[%s5503_s22 + $0x1e8] sm:$0xff]  }
  0xf3   : > { %v4795_v51 = vpack.c.bf16 %v2676_v42, %v2676_v42  ;;  %v4665_v53 = vpack.c.bf16 %v2546_v43, %v2546_v43  ;;  %v2677_v54 = vmax.f32 %v2059_v44, 0.0  ;;  %v2547_v55 = vmax.f32 %v1539_v45, 0.0  ;;  %5292 = vmatmul.mubr.msk.bf16.gmra.mrb[112].mxu1 %vm1093_vm2, %v5437_v34  ;;  %5167 = vmatprep.mubr.msk.bf16.mxu0 %vm1093_vm2, %v5438_v35  ;;  %v5445_v43 = vld [vmem:[%s5503_s22 + $0x3e8] sm:$0xff]   ;;  %v5446_v44 = vld [vmem:[%s5503_s22 + $0x1f0] sm:$0xff]  }
  0xf4   : > { %3829 = vst.msk [vmem:[%s5744_s27 + $0x18] sm:$0xf] %vm3822_vm3, %v4667_v47  ;;  %v4793_v56 = vpack.c.bf16 %v2674_v48, %v2674_v48  ;;  %v4668_v57 = vpack.c.bf16 %v2549_v49, %v2549_v49  ;;  %v2675_v58 = vmax.f32 %v2051_v50, 0.0  ;;  %5295 = vmatprep.mubr.msk.bf16.mxu1 %vm1093_vm2, %v5439_v41  ;;  %v5447_v50 = vld [vmem:[%s5503_s22 + $0x3f0] sm:$0xff]  }
  0xf5   : > { %3957 = vst.msk [vmem:[%s5744_s27 + $0x218] sm:$0xf] %vm3822_vm3, %v4795_v51  ;;  %3827 = vst.msk [vmem:[%s5744_s27 + $0x10] sm:$0xf] %vm3822_vm3, %v4665_v53  ;;  %v4796_v59 = vpack.c.bf16 %v2677_v54, %v2677_v54  ;;  %v4666_v60 = vpack.c.bf16 %v2547_v55, %v2547_v55  ;;  %v5061_v61 = vpop.f32.mrb[8].mxu0 }
  0xf6   : > { %3955 = vst.msk [vmem:[%s5744_s27 + $0x210] sm:$0xf] %vm3822_vm3, %v4793_v56  ;;  %3830 = vst.msk [vmem:[%s5744_s27 + $0x1c] sm:$0xf] %vm3822_vm3, %v4668_v57  ;;  %v4794_v62 = vpack.c.bf16 %v2675_v58, %v2675_v58  ;;  %v1560_v63 = vadd.f32 %v5061_v61, %v5726_v52  ;;  %v5189_v0 = vpop.f32.mrb[8].mxu1  ;;  %v1551_v1 = vpop.f32.mrb[9].mxu0 }
  0xf7   : > { %3958 = vst.msk [vmem:[%s5744_s27 + $0x21c] sm:$0xf] %vm3822_vm3, %v4796_v59  ;;  %3828 = vst.msk [vmem:[%s5744_s27 + $0x14] sm:$0xf] %vm3822_vm3, %v4666_v60  ;;  %v2072_v3 = vadd.f32 %v5189_v0, %v5726_v52  ;;  %v1552_v4 = vadd.f32 %v5726_v52, %v1551_v1  ;;  %v2063_v5 = vpop.f32.mrb[9].mxu1  ;;  %v5062_v6 = vpop.f32.mrb[10].mxu0 }
  0xf8   : > { %3956 = vst.msk [vmem:[%s5744_s27 + $0x214] sm:$0xf] %vm3822_vm3, %v4794_v62  ;;  %v2552_v9 = vmax.f32 %v1560_v63, 0.0  ;;  %v2064_v10 = vadd.f32 %v5726_v52, %v2063_v5  ;;  %v1563_v11 = vadd.f32 %v5062_v6, %v5726_v52  ;;  %v5190_v12 = vpop.f32.mrb[10].mxu1  ;;  %v1554_v13 = vpop.f32.mrb[11].mxu0 }
  0xf9   : > { %v2680_v15 = vmax.f32 %v2072_v3, 0.0  ;;  %v2550_v16 = vmax.f32 %v1552_v4, 0.0  ;;  %v2075_v17 = vadd.f32 %v5190_v12, %v5726_v52  ;;  %v1555_v18 = vadd.f32 %v5726_v52, %v1554_v13  ;;  %v2066_v19 = vpop.f32.mrb[11].mxu1 }
  0xfa   : > { %v4671_v20 = vpack.c.bf16 %v2552_v9, %v2552_v9  ;;  %v2678_v21 = vmax.f32 %v2064_v10, 0.0  ;;  %v2553_v22 = vmax.f32 %v1563_v11, 0.0  ;;  %v2067_v23 = vadd.f32 %v5726_v52, %v2066_v19  ;;  %5168 = vmatmul.mubr.msk.bf16.gmra.mrb[116].mxu0 %vm1093_vm2, %v5440_v2  ;;  %v5448_v11 = vld [vmem:[%s5503_s22 + $0x1f8] sm:$0xff]  }
  0xfb   : > { %v4799_v24 = vpack.c.bf16 %v2680_v15, %v2680_v15  ;;  %v4669_v25 = vpack.c.bf16 %v2550_v16, %v2550_v16  ;;  %v2681_v26 = vmax.f32 %v2075_v17, 0.0  ;;  %v2551_v27 = vmax.f32 %v1555_v18, 0.0  ;;  %5296 = vmatmul.mubr.msk.bf16.gmra.mrb[116].mxu1 %vm1093_vm2, %v5441_v7  ;;  %5171 = vmatprep.mubr.msk.bf16.mxu0 %vm1093_vm2, %v5442_v8  ;;  %v5449_v16 = vld [vmem:[%s5503_s22 + $0x3f8] sm:$0xff]  }
  0xfc   : > { %3833 = vst.msk [vmem:[%s5744_s27 + $0x28] sm:$0xf] %vm3822_vm3, %v4671_v20  ;;  %v4797_v28 = vpack.c.bf16 %v2678_v21, %v2678_v21  ;;  %v4672_v29 = vpack.c.bf16 %v2553_v22, %v2553_v22  ;;  %v2679_v30 = vmax.f32 %v2067_v23, 0.0  ;;  %5299 = vmatprep.mubr.msk.bf16.mxu1 %vm1093_vm2, %v5443_v14 }
  0xfd   : > { %3961 = vst.msk [vmem:[%s5744_s27 + $0x228] sm:$0xf] %vm3822_vm3, %v4799_v24  ;;  %3831 = vst.msk [vmem:[%s5744_s27 + $0x20] sm:$0xf] %vm3822_vm3, %v4669_v25  ;;  %v4800_v31 = vpack.c.bf16 %v2681_v26, %v2681_v26  ;;  %v4670_v32 = vpack.c.bf16 %v2551_v27, %v2551_v27  ;;  %v5065_v33 = vpop.f32.mrb[12].mxu0 }
  0xfe   : > { %3959 = vst.msk [vmem:[%s5744_s27 + $0x220] sm:$0xf] %vm3822_vm3, %v4797_v28  ;;  %3834 = vst.msk [vmem:[%s5744_s27 + $0x2c] sm:$0xf] %vm3822_vm3, %v4672_v29  ;;  %v4798_v34 = vpack.c.bf16 %v2679_v30, %v2679_v30  ;;  %v1576_v35 = vadd.f32 %v5065_v33, %v5726_v52  ;;  %v5193_v36 = vpop.f32.mrb[12].mxu1  ;;  %v1567_v37 = vpop.f32.mrb[13].mxu0 }
  0xff   : > { %3962 = vst.msk [vmem:[%s5744_s27 + $0x22c] sm:$0xf] %vm3822_vm3, %v4800_v31  ;;  %3832 = vst.msk [vmem:[%s5744_s27 + $0x24] sm:$0xf] %vm3822_vm3, %v4670_v32  ;;  %v2088_v39 = vadd.f32 %v5193_v36, %v5726_v52  ;;  %v1568_v40 = vadd.f32 %v5726_v52, %v1567_v37  ;;  %v2079_v41 = vpop.f32.mrb[13].mxu1  ;;  %v5066_v42 = vpop.f32.mrb[14].mxu0 }
 0x100   : > { %3960 = vst.msk [vmem:[%s5744_s27 + $0x224] sm:$0xf] %vm3822_vm3, %v4798_v34  ;;  %v2556_v45 = vmax.f32 %v1576_v35, 0.0  ;;  %v2080_v46 = vadd.f32 %v5726_v52, %v2079_v41  ;;  %v1579_v47 = vadd.f32 %v5066_v42, %v5726_v52  ;;  %v5194_v48 = vpop.f32.mrb[14].mxu1  ;;  %v1570_v49 = vpop.f32.mrb[15].mxu0 }
 0x101   : > { %v2684_v51 = vmax.f32 %v2088_v39, 0.0  ;;  %v2554_v53 = vmax.f32 %v1568_v40, 0.0  ;;  %v2091_v54 = vadd.f32 %v5194_v48, %v5726_v52  ;;  %v1571_v55 = vadd.f32 %v5726_v52, %v1570_v49  ;;  %v2082_v56 = vpop.f32.mrb[15].mxu1 }
 0x102   : > { %v4675_v57 = vpack.c.bf16 %v2556_v45, %v2556_v45  ;;  %v2682_v58 = vmax.f32 %v2080_v46, 0.0  ;;  %v2557_v59 = vmax.f32 %v1579_v47, 0.0  ;;  %v2083_v60 = vadd.f32 %v5726_v52, %v2082_v56  ;;  %5172 = vmatmul.mubr.msk.bf16.gmra.mrb[120].mxu0 %vm1093_vm2, %v5444_v38 }
 0x103   : > { %v4803_v61 = vpack.c.bf16 %v2684_v51, %v2684_v51  ;;  %v4673_v62 = vpack.c.bf16 %v2554_v53, %v2554_v53  ;;  %v2685_v63 = vmax.f32 %v2091_v54, 0.0  ;;  %v2555_v0 = vmax.f32 %v1571_v55, 0.0  ;;  %5300 = vmatmul.mubr.msk.bf16.gmra.mrb[120].mxu1 %vm1093_vm2, %v5445_v43  ;;  %5175 = vmatprep.mubr.msk.bf16.mxu0 %vm1093_vm2, %v5446_v44 }
 0x104   : > { %3837 = vst.msk [vmem:[%s5744_s27 + $0x38] sm:$0xf] %vm3822_vm3, %v4675_v57  ;;  %v4801_v1 = vpack.c.bf16 %v2682_v58, %v2682_v58  ;;  %v4676_v2 = vpack.c.bf16 %v2557_v59, %v2557_v59  ;;  %v2683_v3 = vmax.f32 %v2083_v60, 0.0  ;;  %5303 = vmatprep.mubr.msk.bf16.mxu1 %vm1093_vm2, %v5447_v50 }
 0x105   : > { %3965 = vst.msk [vmem:[%s5744_s27 + $0x238] sm:$0xf] %vm3822_vm3, %v4803_v61  ;;  %3835 = vst.msk [vmem:[%s5744_s27 + $0x30] sm:$0xf] %vm3822_vm3, %v4673_v62  ;;  %v4804_v4 = vpack.c.bf16 %v2685_v63, %v2685_v63  ;;  %v4674_v5 = vpack.c.bf16 %v2555_v0, %v2555_v0  ;;  %v5069_v6 = vpop.f32.mrb[16].mxu0 }
 0x106   : > { %3963 = vst.msk [vmem:[%s5744_s27 + $0x230] sm:$0xf] %vm3822_vm3, %v4801_v1  ;;  %3838 = vst.msk [vmem:[%s5744_s27 + $0x3c] sm:$0xf] %vm3822_vm3, %v4676_v2  ;;  %v4802_v7 = vpack.c.bf16 %v2683_v3, %v2683_v3  ;;  %v1592_v8 = vadd.f32 %v5069_v6, %v5726_v52  ;;  %v5197_v9 = vpop.f32.mrb[16].mxu1  ;;  %v1583_v10 = vpop.f32.mrb[17].mxu0 }
 0x107   : > { %3966 = vst.msk [vmem:[%s5744_s27 + $0x23c] sm:$0xf] %vm3822_vm3, %v4804_v4  ;;  %3836 = vst.msk [vmem:[%s5744_s27 + $0x34] sm:$0xf] %vm3822_vm3, %v4674_v5  ;;  %v2104_v12 = vadd.f32 %v5197_v9, %v5726_v52  ;;  %v1584_v13 = vadd.f32 %v5726_v52, %v1583_v10  ;;  %v2095_v14 = vpop.f32.mrb[17].mxu1  ;;  %v5070_v15 = vpop.f32.mrb[18].mxu0 }
 0x108   : > { %3964 = vst.msk [vmem:[%s5744_s27 + $0x234] sm:$0xf] %vm3822_vm3, %v4802_v7  ;;  %v2560_v17 = vmax.f32 %v1592_v8, 0.0  ;;  %v2096_v18 = vadd.f32 %v5726_v52, %v2095_v14  ;;  %v1595_v19 = vadd.f32 %v5070_v15, %v5726_v52  ;;  %v5198_v20 = vpop.f32.mrb[18].mxu1  ;;  %v1586_v21 = vpop.f32.mrb[19].mxu0 }
 0x109   : > { %v2688_v22 = vmax.f32 %v2104_v12, 0.0  ;;  %v2558_v23 = vmax.f32 %v1584_v13, 0.0  ;;  %v2107_v24 = vadd.f32 %v5198_v20, %v5726_v52  ;;  %v1587_v25 = vadd.f32 %v5726_v52, %v1586_v21  ;;  %v2098_v26 = vpop.f32.mrb[19].mxu1 }
 0x10a   : > { %v4679_v27 = vpack.c.bf16 %v2560_v17, %v2560_v17  ;;  %v2686_v28 = vmax.f32 %v2096_v18, 0.0  ;;  %v2561_v29 = vmax.f32 %v1595_v19, 0.0  ;;  %v2099_v30 = vadd.f32 %v5726_v52, %v2098_v26  ;;  %5176 = vmatmul.mubr.msk.bf16.gmra.mrb[124].mxu0 %vm1093_vm2, %v5448_v11 }
 0x10b   : > { %v4807_v31 = vpack.c.bf16 %v2688_v22, %v2688_v22  ;;  %v4677_v32 = vpack.c.bf16 %v2558_v23, %v2558_v23  ;;  %v2689_v33 = vmax.f32 %v2107_v24, 0.0  ;;  %v2559_v34 = vmax.f32 %v1587_v25, 0.0  ;;  %5304 = vmatmul.mubr.msk.bf16.gmra.mrb[124].mxu1 %vm1093_vm2, %v5449_v16 }
 0x10c   : > { %3841 = vst.msk [vmem:[%s5744_s27 + $0x48] sm:$0xf] %vm3822_vm3, %v4679_v27  ;;  %v4805_v35 = vpack.c.bf16 %v2686_v28, %v2686_v28  ;;  %v4680_v36 = vpack.c.bf16 %v2561_v29, %v2561_v29  ;;  %v2687_v37 = vmax.f32 %v2099_v30, 0.0 }
 0x10d   : > { %3969 = vst.msk [vmem:[%s5744_s27 + $0x248] sm:$0xf] %vm3822_vm3, %v4807_v31  ;;  %3839 = vst.msk [vmem:[%s5744_s27 + $0x40] sm:$0xf] %vm3822_vm3, %v4677_v32  ;;  %v4808_v38 = vpack.c.bf16 %v2689_v33, %v2689_v33  ;;  %v4678_v39 = vpack.c.bf16 %v2559_v34, %v2559_v34  ;;  %v5073_v40 = vpop.f32.mrb[20].mxu0 }
 0x10e   : > { %3967 = vst.msk [vmem:[%s5744_s27 + $0x240] sm:$0xf] %vm3822_vm3, %v4805_v35  ;;  %3842 = vst.msk [vmem:[%s5744_s27 + $0x4c] sm:$0xf] %vm3822_vm3, %v4680_v36  ;;  %v4806_v41 = vpack.c.bf16 %v2687_v37, %v2687_v37  ;;  %v1608_v42 = vadd.f32 %v5073_v40, %v5726_v52  ;;  %v5201_v43 = vpop.f32.mrb[20].mxu1  ;;  %v1599_v44 = vpop.f32.mrb[21].mxu0 }
 0x10f   : > { %3970 = vst.msk [vmem:[%s5744_s27 + $0x24c] sm:$0xf] %vm3822_vm3, %v4808_v38  ;;  %3840 = vst.msk [vmem:[%s5744_s27 + $0x44] sm:$0xf] %vm3822_vm3, %v4678_v39  ;;  %v2120_v45 = vadd.f32 %v5201_v43, %v5726_v52  ;;  %v1600_v46 = vadd.f32 %v5726_v52, %v1599_v44  ;;  %v2111_v47 = vpop.f32.mrb[21].mxu1  ;;  %v5074_v48 = vpop.f32.mrb[22].mxu0 }
 0x110   : > { %3968 = vst.msk [vmem:[%s5744_s27 + $0x244] sm:$0xf] %vm3822_vm3, %v4806_v41  ;;  %v2564_v49 = vmax.f32 %v1608_v42, 0.0  ;;  %v2112_v50 = vadd.f32 %v5726_v52, %v2111_v47  ;;  %v1611_v51 = vadd.f32 %v5074_v48, %v5726_v52  ;;  %v5202_v53 = vpop.f32.mrb[22].mxu1  ;;  %v1602_v54 = vpop.f32.mrb[23].mxu0 }
 0x111   : > { %v2692_v55 = vmax.f32 %v2120_v45, 0.0  ;;  %v2562_v56 = vmax.f32 %v1600_v46, 0.0  ;;  %v2123_v57 = vadd.f32 %v5202_v53, %v5726_v52  ;;  %v1603_v58 = vadd.f32 %v5726_v52, %v1602_v54  ;;  %v2114_v59 = vpop.f32.mrb[23].mxu1 }
 0x112   : > { %v4683_v60 = vpack.c.bf16 %v2564_v49, %v2564_v49  ;;  %v2690_v61 = vmax.f32 %v2112_v50, 0.0  ;;  %v2565_v62 = vmax.f32 %v1611_v51, 0.0  ;;  %v2115_v63 = vadd.f32 %v5726_v52, %v2114_v59 }
 0x113   : > { %v4811_v0 = vpack.c.bf16 %v2692_v55, %v2692_v55  ;;  %v4681_v1 = vpack.c.bf16 %v2562_v56, %v2562_v56  ;;  %v2693_v2 = vmax.f32 %v2123_v57, 0.0  ;;  %v2563_v3 = vmax.f32 %v1603_v58, 0.0 }
 0x114   : > { %3845 = vst.msk [vmem:[%s5744_s27 + $0x58] sm:$0xf] %vm3822_vm3, %v4683_v60  ;;  %v4809_v4 = vpack.c.bf16 %v2690_v61, %v2690_v61  ;;  %v4684_v5 = vpack.c.bf16 %v2565_v62, %v2565_v62  ;;  %v2691_v6 = vmax.f32 %v2115_v63, 0.0 }
 0x115   : > { %3973 = vst.msk [vmem:[%s5744_s27 + $0x258] sm:$0xf] %vm3822_vm3, %v4811_v0  ;;  %3843 = vst.msk [vmem:[%s5744_s27 + $0x50] sm:$0xf] %vm3822_vm3, %v4681_v1  ;;  %v4812_v7 = vpack.c.bf16 %v2693_v2, %v2693_v2  ;;  %v4682_v8 = vpack.c.bf16 %v2563_v3, %v2563_v3  ;;  %v5077_v9 = vpop.f32.mrb[24].mxu0 }
 0x116   : > { %3971 = vst.msk [vmem:[%s5744_s27 + $0x250] sm:$0xf] %vm3822_vm3, %v4809_v4  ;;  %3846 = vst.msk [vmem:[%s5744_s27 + $0x5c] sm:$0xf] %vm3822_vm3, %v4684_v5  ;;  %v4810_v10 = vpack.c.bf16 %v2691_v6, %v2691_v6  ;;  %v1624_v11 = vadd.f32 %v5077_v9, %v5726_v52  ;;  %v5205_v12 = vpop.f32.mrb[24].mxu1  ;;  %v1615_v13 = vpop.f32.mrb[25].mxu0 }
 0x117   : > { %3974 = vst.msk [vmem:[%s5744_s27 + $0x25c] sm:$0xf] %vm3822_vm3, %v4812_v7  ;;  %3844 = vst.msk [vmem:[%s5744_s27 + $0x54] sm:$0xf] %vm3822_vm3, %v4682_v8  ;;  %v2136_v14 = vadd.f32 %v5205_v12, %v5726_v52  ;;  %v1616_v15 = vadd.f32 %v5726_v52, %v1615_v13  ;;  %v2127_v16 = vpop.f32.mrb[25].mxu1  ;;  %v5078_v17 = vpop.f32.mrb[26].mxu0 }
 0x118   : > { %3972 = vst.msk [vmem:[%s5744_s27 + $0x254] sm:$0xf] %vm3822_vm3, %v4810_v10  ;;  %v2568_v18 = vmax.f32 %v1624_v11, 0.0  ;;  %v2128_v19 = vadd.f32 %v5726_v52, %v2127_v16  ;;  %v1627_v20 = vadd.f32 %v5078_v17, %v5726_v52  ;;  %v5206_v21 = vpop.f32.mrb[26].mxu1  ;;  %v1618_v22 = vpop.f32.mrb[27].mxu0 }
 0x119   : > { %v2696_v23 = vmax.f32 %v2136_v14, 0.0  ;;  %v2566_v24 = vmax.f32 %v1616_v15, 0.0  ;;  %v2139_v25 = vadd.f32 %v5206_v21, %v5726_v52  ;;  %v1619_v26 = vadd.f32 %v5726_v52, %v1618_v22  ;;  %v2130_v27 = vpop.f32.mrb[27].mxu1 }
 0x11a   : > { %v4687_v28 = vpack.c.bf16 %v2568_v18, %v2568_v18  ;;  %v2694_v29 = vmax.f32 %v2128_v19, 0.0  ;;  %v2569_v30 = vmax.f32 %v1627_v20, 0.0  ;;  %v2131_v31 = vadd.f32 %v5726_v52, %v2130_v27 }
 0x11b   : > { %v4815_v32 = vpack.c.bf16 %v2696_v23, %v2696_v23  ;;  %v4685_v33 = vpack.c.bf16 %v2566_v24, %v2566_v24  ;;  %v2697_v34 = vmax.f32 %v2139_v25, 0.0  ;;  %v2567_v35 = vmax.f32 %v1619_v26, 0.0 }
 0x11c   : > { %3849 = vst.msk [vmem:[%s5744_s27 + $0x68] sm:$0xf] %vm3822_vm3, %v4687_v28  ;;  %v4813_v36 = vpack.c.bf16 %v2694_v29, %v2694_v29  ;;  %v4688_v37 = vpack.c.bf16 %v2569_v30, %v2569_v30  ;;  %v2695_v38 = vmax.f32 %v2131_v31, 0.0 }
 0x11d   : > { %3977 = vst.msk [vmem:[%s5744_s27 + $0x268] sm:$0xf] %vm3822_vm3, %v4815_v32  ;;  %3847 = vst.msk [vmem:[%s5744_s27 + $0x60] sm:$0xf] %vm3822_vm3, %v4685_v33  ;;  %v4816_v39 = vpack.c.bf16 %v2697_v34, %v2697_v34  ;;  %v4686_v40 = vpack.c.bf16 %v2567_v35, %v2567_v35  ;;  %v5081_v41 = vpop.f32.mrb[28].mxu0 }
 0x11e   : > { %3975 = vst.msk [vmem:[%s5744_s27 + $0x260] sm:$0xf] %vm3822_vm3, %v4813_v36  ;;  %3850 = vst.msk [vmem:[%s5744_s27 + $0x6c] sm:$0xf] %vm3822_vm3, %v4688_v37  ;;  %v4814_v42 = vpack.c.bf16 %v2695_v38, %v2695_v38  ;;  %v1640_v43 = vadd.f32 %v5081_v41, %v5726_v52  ;;  %v5209_v44 = vpop.f32.mrb[28].mxu1  ;;  %v1631_v45 = vpop.f32.mrb[29].mxu0 }
 0x11f   : > { %3978 = vst.msk [vmem:[%s5744_s27 + $0x26c] sm:$0xf] %vm3822_vm3, %v4816_v39  ;;  %3848 = vst.msk [vmem:[%s5744_s27 + $0x64] sm:$0xf] %vm3822_vm3, %v4686_v40  ;;  %v2152_v46 = vadd.f32 %v5209_v44, %v5726_v52  ;;  %v1632_v47 = vadd.f32 %v5726_v52, %v1631_v45  ;;  %v2143_v48 = vpop.f32.mrb[29].mxu1  ;;  %v5082_v49 = vpop.f32.mrb[30].mxu0 }
 0x120   : > { %3976 = vst.msk [vmem:[%s5744_s27 + $0x264] sm:$0xf] %vm3822_vm3, %v4814_v42  ;;  %v2572_v50 = vmax.f32 %v1640_v43, 0.0  ;;  %v2144_v51 = vadd.f32 %v5726_v52, %v2143_v48  ;;  %v1643_v53 = vadd.f32 %v5082_v49, %v5726_v52  ;;  %v5210_v54 = vpop.f32.mrb[30].mxu1  ;;  %v1634_v55 = vpop.f32.mrb[31].mxu0 }
 0x121   : > { %v2700_v56 = vmax.f32 %v2152_v46, 0.0  ;;  %v2570_v57 = vmax.f32 %v1632_v47, 0.0  ;;  %v2155_v58 = vadd.f32 %v5210_v54, %v5726_v52  ;;  %v1635_v59 = vadd.f32 %v5726_v52, %v1634_v55  ;;  %v2146_v60 = vpop.f32.mrb[31].mxu1 }
 0x122   : > { %v4691_v61 = vpack.c.bf16 %v2572_v50, %v2572_v50  ;;  %v2698_v62 = vmax.f32 %v2144_v51, 0.0  ;;  %v2573_v63 = vmax.f32 %v1643_v53, 0.0  ;;  %v2147_v0 = vadd.f32 %v5726_v52, %v2146_v60 }
 0x123   : > { %v4819_v1 = vpack.c.bf16 %v2700_v56, %v2700_v56  ;;  %v4689_v2 = vpack.c.bf16 %v2570_v57, %v2570_v57  ;;  %v2701_v3 = vmax.f32 %v2155_v58, 0.0  ;;  %v2571_v4 = vmax.f32 %v1635_v59, 0.0 }
 0x124   : > { %3853 = vst.msk [vmem:[%s5744_s27 + $0x78] sm:$0xf] %vm3822_vm3, %v4691_v61  ;;  %v4817_v5 = vpack.c.bf16 %v2698_v62, %v2698_v62  ;;  %v4692_v6 = vpack.c.bf16 %v2573_v63, %v2573_v63  ;;  %v2699_v7 = vmax.f32 %v2147_v0, 0.0 }
 0x125   : > { %3981 = vst.msk [vmem:[%s5744_s27 + $0x278] sm:$0xf] %vm3822_vm3, %v4819_v1  ;;  %3851 = vst.msk [vmem:[%s5744_s27 + $0x70] sm:$0xf] %vm3822_vm3, %v4689_v2  ;;  %v4820_v8 = vpack.c.bf16 %v2701_v3, %v2701_v3  ;;  %v4690_v9 = vpack.c.bf16 %v2571_v4, %v2571_v4  ;;  %v5085_v10 = vpop.f32.mrb[32].mxu0 }
 0x126   : > { %3979 = vst.msk [vmem:[%s5744_s27 + $0x270] sm:$0xf] %vm3822_vm3, %v4817_v5  ;;  %3854 = vst.msk [vmem:[%s5744_s27 + $0x7c] sm:$0xf] %vm3822_vm3, %v4692_v6  ;;  %v4818_v11 = vpack.c.bf16 %v2699_v7, %v2699_v7  ;;  %v1656_v12 = vadd.f32 %v5085_v10, %v5726_v52  ;;  %v5213_v13 = vpop.f32.mrb[32].mxu1  ;;  %v1647_v14 = vpop.f32.mrb[33].mxu0 }
 0x127   : > { %3982 = vst.msk [vmem:[%s5744_s27 + $0x27c] sm:$0xf] %vm3822_vm3, %v4820_v8  ;;  %3852 = vst.msk [vmem:[%s5744_s27 + $0x74] sm:$0xf] %vm3822_vm3, %v4690_v9  ;;  %v2168_v15 = vadd.f32 %v5213_v13, %v5726_v52  ;;  %v1648_v16 = vadd.f32 %v5726_v52, %v1647_v14  ;;  %v2159_v17 = vpop.f32.mrb[33].mxu1  ;;  %v5086_v18 = vpop.f32.mrb[34].mxu0 }
 0x128   : > { %3980 = vst.msk [vmem:[%s5744_s27 + $0x274] sm:$0xf] %vm3822_vm3, %v4818_v11  ;;  %v2576_v19 = vmax.f32 %v1656_v12, 0.0  ;;  %v2160_v20 = vadd.f32 %v5726_v52, %v2159_v17  ;;  %v1659_v21 = vadd.f32 %v5086_v18, %v5726_v52  ;;  %v5214_v22 = vpop.f32.mrb[34].mxu1  ;;  %v1650_v23 = vpop.f32.mrb[35].mxu0 }
 0x129   : > { %v2704_v24 = vmax.f32 %v2168_v15, 0.0  ;;  %v2574_v25 = vmax.f32 %v1648_v16, 0.0  ;;  %v2171_v26 = vadd.f32 %v5214_v22, %v5726_v52  ;;  %v1651_v27 = vadd.f32 %v5726_v52, %v1650_v23  ;;  %v2162_v28 = vpop.f32.mrb[35].mxu1 }
 0x12a   : > { %v4695_v29 = vpack.c.bf16 %v2576_v19, %v2576_v19  ;;  %v2702_v30 = vmax.f32 %v2160_v20, 0.0  ;;  %v2577_v31 = vmax.f32 %v1659_v21, 0.0  ;;  %v2163_v32 = vadd.f32 %v5726_v52, %v2162_v28 }
 0x12b   : > { %v4823_v33 = vpack.c.bf16 %v2704_v24, %v2704_v24  ;;  %v4693_v34 = vpack.c.bf16 %v2574_v25, %v2574_v25  ;;  %v2705_v35 = vmax.f32 %v2171_v26, 0.0  ;;  %v2575_v36 = vmax.f32 %v1651_v27, 0.0 }
 0x12c   : > { %3857 = vst.msk [vmem:[%s5744_s27 + $0x88] sm:$0xf] %vm3822_vm3, %v4695_v29  ;;  %v4821_v37 = vpack.c.bf16 %v2702_v30, %v2702_v30  ;;  %v4696_v38 = vpack.c.bf16 %v2577_v31, %v2577_v31  ;;  %v2703_v39 = vmax.f32 %v2163_v32, 0.0 }
 0x12d   : > { %3985 = vst.msk [vmem:[%s5744_s27 + $0x288] sm:$0xf] %vm3822_vm3, %v4823_v33  ;;  %3855 = vst.msk [vmem:[%s5744_s27 + $0x80] sm:$0xf] %vm3822_vm3, %v4693_v34  ;;  %v4824_v40 = vpack.c.bf16 %v2705_v35, %v2705_v35  ;;  %v4694_v41 = vpack.c.bf16 %v2575_v36, %v2575_v36  ;;  %v5089_v42 = vpop.f32.mrb[36].mxu0 }
 0x12e   : > { %3983 = vst.msk [vmem:[%s5744_s27 + $0x280] sm:$0xf] %vm3822_vm3, %v4821_v37  ;;  %3858 = vst.msk [vmem:[%s5744_s27 + $0x8c] sm:$0xf] %vm3822_vm3, %v4696_v38  ;;  %v4822_v43 = vpack.c.bf16 %v2703_v39, %v2703_v39  ;;  %v1672_v44 = vadd.f32 %v5089_v42, %v5726_v52  ;;  %v5217_v45 = vpop.f32.mrb[36].mxu1  ;;  %v1663_v46 = vpop.f32.mrb[37].mxu0 }
 0x12f   : > { %3986 = vst.msk [vmem:[%s5744_s27 + $0x28c] sm:$0xf] %vm3822_vm3, %v4824_v40  ;;  %3856 = vst.msk [vmem:[%s5744_s27 + $0x84] sm:$0xf] %vm3822_vm3, %v4694_v41  ;;  %v2184_v47 = vadd.f32 %v5217_v45, %v5726_v52  ;;  %v1664_v48 = vadd.f32 %v5726_v52, %v1663_v46  ;;  %v2175_v49 = vpop.f32.mrb[37].mxu1  ;;  %v5090_v50 = vpop.f32.mrb[38].mxu0 }
 0x130   : > { %3984 = vst.msk [vmem:[%s5744_s27 + $0x284] sm:$0xf] %vm3822_vm3, %v4822_v43  ;;  %v2580_v51 = vmax.f32 %v1672_v44, 0.0  ;;  %v2176_v53 = vadd.f32 %v5726_v52, %v2175_v49  ;;  %v1675_v54 = vadd.f32 %v5090_v50, %v5726_v52  ;;  %v5218_v55 = vpop.f32.mrb[38].mxu1  ;;  %v1666_v56 = vpop.f32.mrb[39].mxu0 }
 0x131   : > { %v2708_v57 = vmax.f32 %v2184_v47, 0.0  ;;  %v2578_v58 = vmax.f32 %v1664_v48, 0.0  ;;  %v2187_v59 = vadd.f32 %v5218_v55, %v5726_v52  ;;  %v1667_v60 = vadd.f32 %v5726_v52, %v1666_v56  ;;  %v2178_v61 = vpop.f32.mrb[39].mxu1 }
 0x132   : > { %v4699_v62 = vpack.c.bf16 %v2580_v51, %v2580_v51  ;;  %v2706_v63 = vmax.f32 %v2176_v53, 0.0  ;;  %v2581_v0 = vmax.f32 %v1675_v54, 0.0  ;;  %v2179_v1 = vadd.f32 %v5726_v52, %v2178_v61 }
 0x133   : > { %v4827_v2 = vpack.c.bf16 %v2708_v57, %v2708_v57  ;;  %v4697_v3 = vpack.c.bf16 %v2578_v58, %v2578_v58  ;;  %v2709_v4 = vmax.f32 %v2187_v59, 0.0  ;;  %v2579_v5 = vmax.f32 %v1667_v60, 0.0 }
 0x134   : > { %3861 = vst.msk [vmem:[%s5744_s27 + $0x98] sm:$0xf] %vm3822_vm3, %v4699_v62  ;;  %v4825_v6 = vpack.c.bf16 %v2706_v63, %v2706_v63  ;;  %v4700_v7 = vpack.c.bf16 %v2581_v0, %v2581_v0  ;;  %v2707_v8 = vmax.f32 %v2179_v1, 0.0 }
 0x135   : > { %3989 = vst.msk [vmem:[%s5744_s27 + $0x298] sm:$0xf] %vm3822_vm3, %v4827_v2  ;;  %3859 = vst.msk [vmem:[%s5744_s27 + $0x90] sm:$0xf] %vm3822_vm3, %v4697_v3  ;;  %v4828_v9 = vpack.c.bf16 %v2709_v4, %v2709_v4  ;;  %v4698_v10 = vpack.c.bf16 %v2579_v5, %v2579_v5  ;;  %v5093_v11 = vpop.f32.mrb[40].mxu0 }
 0x136   : > { %3987 = vst.msk [vmem:[%s5744_s27 + $0x290] sm:$0xf] %vm3822_vm3, %v4825_v6  ;;  %3862 = vst.msk [vmem:[%s5744_s27 + $0x9c] sm:$0xf] %vm3822_vm3, %v4700_v7  ;;  %v4826_v12 = vpack.c.bf16 %v2707_v8, %v2707_v8  ;;  %v1688_v13 = vadd.f32 %v5093_v11, %v5726_v52  ;;  %v5221_v14 = vpop.f32.mrb[40].mxu1  ;;  %v1679_v15 = vpop.f32.mrb[41].mxu0 }
 0x137   : > { %3990 = vst.msk [vmem:[%s5744_s27 + $0x29c] sm:$0xf] %vm3822_vm3, %v4828_v9  ;;  %3860 = vst.msk [vmem:[%s5744_s27 + $0x94] sm:$0xf] %vm3822_vm3, %v4698_v10  ;;  %v2200_v16 = vadd.f32 %v5221_v14, %v5726_v52  ;;  %v1680_v17 = vadd.f32 %v5726_v52, %v1679_v15  ;;  %v2191_v18 = vpop.f32.mrb[41].mxu1  ;;  %v5094_v19 = vpop.f32.mrb[42].mxu0 }
 0x138   : > { %3988 = vst.msk [vmem:[%s5744_s27 + $0x294] sm:$0xf] %vm3822_vm3, %v4826_v12  ;;  %v2584_v20 = vmax.f32 %v1688_v13, 0.0  ;;  %v2192_v21 = vadd.f32 %v5726_v52, %v2191_v18  ;;  %v1691_v22 = vadd.f32 %v5094_v19, %v5726_v52  ;;  %v5222_v23 = vpop.f32.mrb[42].mxu1  ;;  %v1682_v24 = vpop.f32.mrb[43].mxu0 }
 0x139   : > { %v2712_v25 = vmax.f32 %v2200_v16, 0.0  ;;  %v2582_v26 = vmax.f32 %v1680_v17, 0.0  ;;  %v2203_v27 = vadd.f32 %v5222_v23, %v5726_v52  ;;  %v1683_v28 = vadd.f32 %v5726_v52, %v1682_v24  ;;  %v2194_v29 = vpop.f32.mrb[43].mxu1  ;;  %v6058_v13 = vld [vmem:[%s6556_s2] ss:$0 sm:$0xff] }
 0x13a   : > { %v4703_v30 = vpack.c.bf16 %v2584_v20, %v2584_v20  ;;  %v2710_v31 = vmax.f32 %v2192_v21, 0.0  ;;  %v2585_v32 = vmax.f32 %v1691_v22, 0.0  ;;  %v2195_v33 = vadd.f32 %v5726_v52, %v2194_v29 }
 0x13b   : > { %v4831_v34 = vpack.c.bf16 %v2712_v25, %v2712_v25  ;;  %v4701_v35 = vpack.c.bf16 %v2582_v26, %v2582_v26  ;;  %v2713_v36 = vmax.f32 %v2203_v27, 0.0  ;;  %v2583_v37 = vmax.f32 %v1683_v28, 0.0 }
 0x13c   : > { %3865 = vst.msk [vmem:[%s5744_s27 + $0xa8] sm:$0xf] %vm3822_vm3, %v4703_v30  ;;  %v4829_v38 = vpack.c.bf16 %v2710_v31, %v2710_v31  ;;  %v4704_v39 = vpack.c.bf16 %v2585_v32, %v2585_v32  ;;  %v2711_v40 = vmax.f32 %v2195_v33, 0.0 }
 0x13d   : > { %3993 = vst.msk [vmem:[%s5744_s27 + $0x2a8] sm:$0xf] %vm3822_vm3, %v4831_v34  ;;  %3863 = vst.msk [vmem:[%s5744_s27 + $0xa0] sm:$0xf] %vm3822_vm3, %v4701_v35  ;;  %v4832_v41 = vpack.c.bf16 %v2713_v36, %v2713_v36  ;;  %v4702_v42 = vpack.c.bf16 %v2583_v37, %v2583_v37  ;;  %v5097_v43 = vpop.f32.mrb[44].mxu0 }
 0x13e   : > { %3991 = vst.msk [vmem:[%s5744_s27 + $0x2a0] sm:$0xf] %vm3822_vm3, %v4829_v38  ;;  %3866 = vst.msk [vmem:[%s5744_s27 + $0xac] sm:$0xf] %vm3822_vm3, %v4704_v39  ;;  %v4830_v44 = vpack.c.bf16 %v2711_v40, %v2711_v40  ;;  %v1704_v45 = vadd.f32 %v5097_v43, %v5726_v52  ;;  %v5225_v46 = vpop.f32.mrb[44].mxu1  ;;  %v1695_v47 = vpop.f32.mrb[45].mxu0 }
 0x13f   : > { %3994 = vst.msk [vmem:[%s5744_s27 + $0x2ac] sm:$0xf] %vm3822_vm3, %v4832_v41  ;;  %3864 = vst.msk [vmem:[%s5744_s27 + $0xa4] sm:$0xf] %vm3822_vm3, %v4702_v42  ;;  %v2216_v48 = vadd.f32 %v5225_v46, %v5726_v52  ;;  %v1696_v49 = vadd.f32 %v5726_v52, %v1695_v47  ;;  %v2207_v50 = vpop.f32.mrb[45].mxu1  ;;  %v5098_v51 = vpop.f32.mrb[46].mxu0 }
 0x140   : > { %3992 = vst.msk [vmem:[%s5744_s27 + $0x2a4] sm:$0xf] %vm3822_vm3, %v4830_v44  ;;  %v2588_v53 = vmax.f32 %v1704_v45, 0.0  ;;  %v2208_v54 = vadd.f32 %v5726_v52, %v2207_v50  ;;  %v1707_v55 = vadd.f32 %v5098_v51, %v5726_v52  ;;  %v5226_v56 = vpop.f32.mrb[46].mxu1  ;;  %v1698_v57 = vpop.f32.mrb[47].mxu0 }
 0x141   : > { %v2716_v58 = vmax.f32 %v2216_v48, 0.0  ;;  %v2586_v59 = vmax.f32 %v1696_v49, 0.0  ;;  %v2219_v60 = vadd.f32 %v5226_v56, %v5726_v52  ;;  %v1699_v61 = vadd.f32 %v5726_v52, %v1698_v57  ;;  %v2210_v62 = vpop.f32.mrb[47].mxu1 }
 0x142   : > { %v4707_v63 = vpack.c.bf16 %v2588_v53, %v2588_v53  ;;  %v2714_v0 = vmax.f32 %v2208_v54, 0.0  ;;  %v2589_v1 = vmax.f32 %v1707_v55, 0.0  ;;  %v2211_v2 = vadd.f32 %v5726_v52, %v2210_v62 }
 0x143   : > { %v4835_v3 = vpack.c.bf16 %v2716_v58, %v2716_v58  ;;  %v4705_v4 = vpack.c.bf16 %v2586_v59, %v2586_v59  ;;  %v2717_v5 = vmax.f32 %v2219_v60, 0.0  ;;  %v2587_v6 = vmax.f32 %v1699_v61, 0.0 }
 0x144   : > { %3869 = vst.msk [vmem:[%s5744_s27 + $0xb8] sm:$0xf] %vm3822_vm3, %v4707_v63  ;;  %v4833_v7 = vpack.c.bf16 %v2714_v0, %v2714_v0  ;;  %v4708_v8 = vpack.c.bf16 %v2589_v1, %v2589_v1  ;;  %v2715_v9 = vmax.f32 %v2211_v2, 0.0 }
 0x145   : > { %3997 = vst.msk [vmem:[%s5744_s27 + $0x2b8] sm:$0xf] %vm3822_vm3, %v4835_v3  ;;  %3867 = vst.msk [vmem:[%s5744_s27 + $0xb0] sm:$0xf] %vm3822_vm3, %v4705_v4  ;;  %v4836_v10 = vpack.c.bf16 %v2717_v5, %v2717_v5  ;;  %v4706_v11 = vpack.c.bf16 %v2587_v6, %v2587_v6  ;;  %v5101_v12 = vpop.f32.mrb[48].mxu0 }
 0x146   : > { %3995 = vst.msk [vmem:[%s5744_s27 + $0x2b0] sm:$0xf] %vm3822_vm3, %v4833_v7  ;;  %3870 = vst.msk [vmem:[%s5744_s27 + $0xbc] sm:$0xf] %vm3822_vm3, %v4708_v8  ;;  %v4834_v52 = vpack.c.bf16 %v2715_v9, %v2715_v9  ;;  %v1720_v14 = vadd.f32 %v6058_v13, %v5101_v12  ;;  %v5229_v15 = vpop.f32.mrb[48].mxu1  ;;  %v1711_v16 = vpop.f32.mrb[49].mxu0 }
 0x147   : > { %3998 = vst.msk [vmem:[%s5744_s27 + $0x2bc] sm:$0xf] %vm3822_vm3, %v4836_v10  ;;  %3868 = vst.msk [vmem:[%s5744_s27 + $0xb4] sm:$0xf] %vm3822_vm3, %v4706_v11  ;;  %v2232_v17 = vadd.f32 %v6058_v13, %v5229_v15  ;;  %v1712_v18 = vadd.f32 %v6058_v13, %v1711_v16  ;;  %v2223_v19 = vpop.f32.mrb[49].mxu1  ;;  %v5102_v20 = vpop.f32.mrb[50].mxu0 }
 0x148   : > { %3996 = vst.msk [vmem:[%s5744_s27 + $0x2b4] sm:$0xf] %vm3822_vm3, %v4834_v52  ;;  %v2592_v21 = vmax.f32 %v1720_v14, 0.0  ;;  %v2224_v22 = vadd.f32 %v6058_v13, %v2223_v19  ;;  %v1723_v23 = vadd.f32 %v6058_v13, %v5102_v20  ;;  %v5230_v24 = vpop.f32.mrb[50].mxu1  ;;  %v1714_v25 = vpop.f32.mrb[51].mxu0 }
 0x149   : > { %v2720_v26 = vmax.f32 %v2232_v17, 0.0  ;;  %v2590_v27 = vmax.f32 %v1712_v18, 0.0  ;;  %v2235_v28 = vadd.f32 %v6058_v13, %v5230_v24  ;;  %v1715_v29 = vadd.f32 %v6058_v13, %v1714_v25  ;;  %v2226_v30 = vpop.f32.mrb[51].mxu1 }
 0x14a   : > { %v4711_v31 = vpack.c.bf16 %v2592_v21, %v2592_v21  ;;  %v2718_v32 = vmax.f32 %v2224_v22, 0.0  ;;  %v2593_v33 = vmax.f32 %v1723_v23, 0.0  ;;  %v2227_v34 = vadd.f32 %v6058_v13, %v2226_v30 }
 0x14b   : > { %v4839_v35 = vpack.c.bf16 %v2720_v26, %v2720_v26  ;;  %v4709_v36 = vpack.c.bf16 %v2590_v27, %v2590_v27  ;;  %v2721_v37 = vmax.f32 %v2235_v28, 0.0  ;;  %v2591_v38 = vmax.f32 %v1715_v29, 0.0 }
 0x14c   : > { %3873 = vst.msk [vmem:[%s5744_s27 + $0xc8] sm:$0xf] %vm3822_vm3, %v4711_v31  ;;  %v4837_v39 = vpack.c.bf16 %v2718_v32, %v2718_v32  ;;  %v4712_v40 = vpack.c.bf16 %v2593_v33, %v2593_v33  ;;  %v2719_v41 = vmax.f32 %v2227_v34, 0.0 }
 0x14d   : > { %4001 = vst.msk [vmem:[%s5744_s27 + $0x2c8] sm:$0xf] %vm3822_vm3, %v4839_v35  ;;  %3871 = vst.msk [vmem:[%s5744_s27 + $0xc0] sm:$0xf] %vm3822_vm3, %v4709_v36  ;;  %v4840_v42 = vpack.c.bf16 %v2721_v37, %v2721_v37  ;;  %v4710_v43 = vpack.c.bf16 %v2591_v38, %v2591_v38  ;;  %v5105_v44 = vpop.f32.mrb[52].mxu0 }
 0x14e   : > { %3999 = vst.msk [vmem:[%s5744_s27 + $0x2c0] sm:$0xf] %vm3822_vm3, %v4837_v39  ;;  %3874 = vst.msk [vmem:[%s5744_s27 + $0xcc] sm:$0xf] %vm3822_vm3, %v4712_v40  ;;  %v4838_v45 = vpack.c.bf16 %v2719_v41, %v2719_v41  ;;  %v1736_v46 = vadd.f32 %v6058_v13, %v5105_v44  ;;  %v5233_v47 = vpop.f32.mrb[52].mxu1  ;;  %v1727_v48 = vpop.f32.mrb[53].mxu0 }
 0x14f   : > { %4002 = vst.msk [vmem:[%s5744_s27 + $0x2cc] sm:$0xf] %vm3822_vm3, %v4840_v42  ;;  %3872 = vst.msk [vmem:[%s5744_s27 + $0xc4] sm:$0xf] %vm3822_vm3, %v4710_v43  ;;  %v2248_v49 = vadd.f32 %v6058_v13, %v5233_v47  ;;  %v1728_v50 = vadd.f32 %v6058_v13, %v1727_v48  ;;  %v2239_v51 = vpop.f32.mrb[53].mxu1  ;;  %v5106_v53 = vpop.f32.mrb[54].mxu0 }
 0x150   : > { %4000 = vst.msk [vmem:[%s5744_s27 + $0x2c4] sm:$0xf] %vm3822_vm3, %v4838_v45  ;;  %v2596_v54 = vmax.f32 %v1736_v46, 0.0  ;;  %v2240_v55 = vadd.f32 %v6058_v13, %v2239_v51  ;;  %v1739_v56 = vadd.f32 %v6058_v13, %v5106_v53  ;;  %v5234_v57 = vpop.f32.mrb[54].mxu1  ;;  %v1730_v58 = vpop.f32.mrb[55].mxu0 }
 0x151   : > { %v2724_v59 = vmax.f32 %v2248_v49, 0.0  ;;  %v2594_v60 = vmax.f32 %v1728_v50, 0.0  ;;  %v2251_v61 = vadd.f32 %v6058_v13, %v5234_v57  ;;  %v1731_v62 = vadd.f32 %v6058_v13, %v1730_v58  ;;  %v2242_v63 = vpop.f32.mrb[55].mxu1 }
 0x152   : > { %v4715_v0 = vpack.c.bf16 %v2596_v54, %v2596_v54  ;;  %v2722_v1 = vmax.f32 %v2240_v55, 0.0  ;;  %v2597_v2 = vmax.f32 %v1739_v56, 0.0  ;;  %v2243_v3 = vadd.f32 %v6058_v13, %v2242_v63 }
 0x153   : > { %v4843_v4 = vpack.c.bf16 %v2724_v59, %v2724_v59  ;;  %v4713_v5 = vpack.c.bf16 %v2594_v60, %v2594_v60  ;;  %v2725_v6 = vmax.f32 %v2251_v61, 0.0  ;;  %v2595_v7 = vmax.f32 %v1731_v62, 0.0 }
 0x154   : > { %3877 = vst.msk [vmem:[%s5744_s27 + $0xd8] sm:$0xf] %vm3822_vm3, %v4715_v0  ;;  %v4841_v8 = vpack.c.bf16 %v2722_v1, %v2722_v1  ;;  %v4716_v9 = vpack.c.bf16 %v2597_v2, %v2597_v2  ;;  %v2723_v10 = vmax.f32 %v2243_v3, 0.0 }
 0x155   : > { %4005 = vst.msk [vmem:[%s5744_s27 + $0x2d8] sm:$0xf] %vm3822_vm3, %v4843_v4  ;;  %3875 = vst.msk [vmem:[%s5744_s27 + $0xd0] sm:$0xf] %vm3822_vm3, %v4713_v5  ;;  %v4844_v11 = vpack.c.bf16 %v2725_v6, %v2725_v6  ;;  %v4714_v12 = vpack.c.bf16 %v2595_v7, %v2595_v7  ;;  %v5109_v52 = vpop.f32.mrb[56].mxu0 }
 0x156   : > { %4003 = vst.msk [vmem:[%s5744_s27 + $0x2d0] sm:$0xf] %vm3822_vm3, %v4841_v8  ;;  %3878 = vst.msk [vmem:[%s5744_s27 + $0xdc] sm:$0xf] %vm3822_vm3, %v4716_v9  ;;  %v4842_v14 = vpack.c.bf16 %v2723_v10, %v2723_v10  ;;  %v1752_v15 = vadd.f32 %v6058_v13, %v5109_v52  ;;  %v5237_v16 = vpop.f32.mrb[56].mxu1  ;;  %v1743_v17 = vpop.f32.mrb[57].mxu0 }
 0x157   : > { %4006 = vst.msk [vmem:[%s5744_s27 + $0x2dc] sm:$0xf] %vm3822_vm3, %v4844_v11  ;;  %3876 = vst.msk [vmem:[%s5744_s27 + $0xd4] sm:$0xf] %vm3822_vm3, %v4714_v12  ;;  %v2264_v18 = vadd.f32 %v6058_v13, %v5237_v16  ;;  %v1744_v19 = vadd.f32 %v6058_v13, %v1743_v17  ;;  %v2255_v20 = vpop.f32.mrb[57].mxu1  ;;  %v5110_v21 = vpop.f32.mrb[58].mxu0 }
 0x158   : > { %4004 = vst.msk [vmem:[%s5744_s27 + $0x2d4] sm:$0xf] %vm3822_vm3, %v4842_v14  ;;  %v2600_v22 = vmax.f32 %v1752_v15, 0.0  ;;  %v2256_v23 = vadd.f32 %v6058_v13, %v2255_v20  ;;  %v1755_v24 = vadd.f32 %v6058_v13, %v5110_v21  ;;  %v5238_v25 = vpop.f32.mrb[58].mxu1  ;;  %v1746_v26 = vpop.f32.mrb[59].mxu0 }
 0x159   : > { %v2728_v27 = vmax.f32 %v2264_v18, 0.0  ;;  %v2598_v28 = vmax.f32 %v1744_v19, 0.0  ;;  %v2267_v29 = vadd.f32 %v6058_v13, %v5238_v25  ;;  %v1747_v30 = vadd.f32 %v6058_v13, %v1746_v26  ;;  %v2258_v31 = vpop.f32.mrb[59].mxu1 }
 0x15a   : > { %v4719_v32 = vpack.c.bf16 %v2600_v22, %v2600_v22  ;;  %v2726_v33 = vmax.f32 %v2256_v23, 0.0  ;;  %v2601_v34 = vmax.f32 %v1755_v24, 0.0  ;;  %v2259_v35 = vadd.f32 %v6058_v13, %v2258_v31 }
 0x15b   : > { %v4847_v36 = vpack.c.bf16 %v2728_v27, %v2728_v27  ;;  %v4717_v37 = vpack.c.bf16 %v2598_v28, %v2598_v28  ;;  %v2729_v38 = vmax.f32 %v2267_v29, 0.0  ;;  %v2599_v39 = vmax.f32 %v1747_v30, 0.0 }
 0x15c   : > { %3881 = vst.msk [vmem:[%s5744_s27 + $0xe8] sm:$0xf] %vm3822_vm3, %v4719_v32  ;;  %v4845_v40 = vpack.c.bf16 %v2726_v33, %v2726_v33  ;;  %v4720_v41 = vpack.c.bf16 %v2601_v34, %v2601_v34  ;;  %v2727_v42 = vmax.f32 %v2259_v35, 0.0 }
 0x15d   : > { %4009 = vst.msk [vmem:[%s5744_s27 + $0x2e8] sm:$0xf] %vm3822_vm3, %v4847_v36  ;;  %3879 = vst.msk [vmem:[%s5744_s27 + $0xe0] sm:$0xf] %vm3822_vm3, %v4717_v37  ;;  %v4848_v43 = vpack.c.bf16 %v2729_v38, %v2729_v38  ;;  %v4718_v44 = vpack.c.bf16 %v2599_v39, %v2599_v39  ;;  %v5113_v45 = vpop.f32.mrb[60].mxu0 }
 0x15e   : > { %4007 = vst.msk [vmem:[%s5744_s27 + $0x2e0] sm:$0xf] %vm3822_vm3, %v4845_v40  ;;  %3882 = vst.msk [vmem:[%s5744_s27 + $0xec] sm:$0xf] %vm3822_vm3, %v4720_v41  ;;  %v4846_v46 = vpack.c.bf16 %v2727_v42, %v2727_v42  ;;  %v1768_v47 = vadd.f32 %v6058_v13, %v5113_v45  ;;  %v5241_v48 = vpop.f32.mrb[60].mxu1  ;;  %v1759_v49 = vpop.f32.mrb[61].mxu0 }
 0x15f   : > { %4010 = vst.msk [vmem:[%s5744_s27 + $0x2ec] sm:$0xf] %vm3822_vm3, %v4848_v43  ;;  %3880 = vst.msk [vmem:[%s5744_s27 + $0xe4] sm:$0xf] %vm3822_vm3, %v4718_v44  ;;  %v2280_v50 = vadd.f32 %v6058_v13, %v5241_v48  ;;  %v1760_v51 = vadd.f32 %v6058_v13, %v1759_v49  ;;  %v2271_v53 = vpop.f32.mrb[61].mxu1  ;;  %v5114_v54 = vpop.f32.mrb[62].mxu0 }
 0x160   : > { %4008 = vst.msk [vmem:[%s5744_s27 + $0x2e4] sm:$0xf] %vm3822_vm3, %v4846_v46  ;;  %v2604_v55 = vmax.f32 %v1768_v47, 0.0  ;;  %v2272_v56 = vadd.f32 %v6058_v13, %v2271_v53  ;;  %v1771_v57 = vadd.f32 %v6058_v13, %v5114_v54  ;;  %v5242_v58 = vpop.f32.mrb[62].mxu1  ;;  %v1762_v59 = vpop.f32.mrb[63].mxu0 }
 0x161   : > { %v2732_v60 = vmax.f32 %v2280_v50, 0.0  ;;  %v2602_v61 = vmax.f32 %v1760_v51, 0.0  ;;  %v2283_v62 = vadd.f32 %v6058_v13, %v5242_v58  ;;  %v1763_v63 = vadd.f32 %v6058_v13, %v1762_v59  ;;  %v2274_v0 = vpop.f32.mrb[63].mxu1 }
 0x162   : > { %v4723_v1 = vpack.c.bf16 %v2604_v55, %v2604_v55  ;;  %v2730_v2 = vmax.f32 %v2272_v56, 0.0  ;;  %v2605_v3 = vmax.f32 %v1771_v57, 0.0  ;;  %v2275_v4 = vadd.f32 %v6058_v13, %v2274_v0 }
 0x163   : > { %v4851_v5 = vpack.c.bf16 %v2732_v60, %v2732_v60  ;;  %v4721_v6 = vpack.c.bf16 %v2602_v61, %v2602_v61  ;;  %v2733_v7 = vmax.f32 %v2283_v62, 0.0  ;;  %v2603_v8 = vmax.f32 %v1763_v63, 0.0 }
 0x164   : > { %3885 = vst.msk [vmem:[%s5744_s27 + $0xf8] sm:$0xf] %vm3822_vm3, %v4723_v1  ;;  %v4849_v9 = vpack.c.bf16 %v2730_v2, %v2730_v2  ;;  %v4724_v10 = vpack.c.bf16 %v2605_v3, %v2605_v3  ;;  %v2731_v11 = vmax.f32 %v2275_v4, 0.0 }
 0x165   : > { %4013 = vst.msk [vmem:[%s5744_s27 + $0x2f8] sm:$0xf] %vm3822_vm3, %v4851_v5  ;;  %3883 = vst.msk [vmem:[%s5744_s27 + $0xf0] sm:$0xf] %vm3822_vm3, %v4721_v6  ;;  %v4852_v12 = vpack.c.bf16 %v2733_v7, %v2733_v7  ;;  %v4722_v52 = vpack.c.bf16 %v2603_v8, %v2603_v8  ;;  %v5117_v14 = vpop.f32.mrb[64].mxu0 }
 0x166   : > { %4011 = vst.msk [vmem:[%s5744_s27 + $0x2f0] sm:$0xf] %vm3822_vm3, %v4849_v9  ;;  %3886 = vst.msk [vmem:[%s5744_s27 + $0xfc] sm:$0xf] %vm3822_vm3, %v4724_v10  ;;  %v4850_v15 = vpack.c.bf16 %v2731_v11, %v2731_v11  ;;  %v1784_v16 = vadd.f32 %v6058_v13, %v5117_v14  ;;  %v5245_v17 = vpop.f32.mrb[64].mxu1  ;;  %v1775_v18 = vpop.f32.mrb[65].mxu0 }
 0x167   : > { %4014 = vst.msk [vmem:[%s5744_s27 + $0x2fc] sm:$0xf] %vm3822_vm3, %v4852_v12  ;;  %3884 = vst.msk [vmem:[%s5744_s27 + $0xf4] sm:$0xf] %vm3822_vm3, %v4722_v52  ;;  %v2296_v19 = vadd.f32 %v6058_v13, %v5245_v17  ;;  %v1776_v20 = vadd.f32 %v6058_v13, %v1775_v18  ;;  %v2287_v21 = vpop.f32.mrb[65].mxu1  ;;  %v5118_v22 = vpop.f32.mrb[66].mxu0 }
 0x168   : > { %4012 = vst.msk [vmem:[%s5744_s27 + $0x2f4] sm:$0xf] %vm3822_vm3, %v4850_v15  ;;  %v2608_v23 = vmax.f32 %v1784_v16, 0.0  ;;  %v2288_v24 = vadd.f32 %v6058_v13, %v2287_v21  ;;  %v1787_v25 = vadd.f32 %v6058_v13, %v5118_v22  ;;  %v5246_v26 = vpop.f32.mrb[66].mxu1  ;;  %v1778_v27 = vpop.f32.mrb[67].mxu0 }
 0x169   : > { %v2736_v28 = vmax.f32 %v2296_v19, 0.0  ;;  %v2606_v29 = vmax.f32 %v1776_v20, 0.0  ;;  %v2299_v30 = vadd.f32 %v6058_v13, %v5246_v26  ;;  %v1779_v31 = vadd.f32 %v6058_v13, %v1778_v27  ;;  %v2290_v32 = vpop.f32.mrb[67].mxu1 }
 0x16a   : > { %v4727_v33 = vpack.c.bf16 %v2608_v23, %v2608_v23  ;;  %v2734_v34 = vmax.f32 %v2288_v24, 0.0  ;;  %v2609_v35 = vmax.f32 %v1787_v25, 0.0  ;;  %v2291_v36 = vadd.f32 %v6058_v13, %v2290_v32 }
 0x16b   : > { %v4855_v37 = vpack.c.bf16 %v2736_v28, %v2736_v28  ;;  %v4725_v38 = vpack.c.bf16 %v2606_v29, %v2606_v29  ;;  %v2737_v39 = vmax.f32 %v2299_v30, 0.0  ;;  %v2607_v40 = vmax.f32 %v1779_v31, 0.0 }
 0x16c   : > { %3889 = vst.msk [vmem:[%s5744_s27 + $0x108] sm:$0xf] %vm3822_vm3, %v4727_v33  ;;  %v4853_v41 = vpack.c.bf16 %v2734_v34, %v2734_v34  ;;  %v4728_v42 = vpack.c.bf16 %v2609_v35, %v2609_v35  ;;  %v2735_v43 = vmax.f32 %v2291_v36, 0.0 }
 0x16d   : > { %4017 = vst.msk [vmem:[%s5744_s27 + $0x308] sm:$0xf] %vm3822_vm3, %v4855_v37  ;;  %3887 = vst.msk [vmem:[%s5744_s27 + $0x100] sm:$0xf] %vm3822_vm3, %v4725_v38  ;;  %v4856_v44 = vpack.c.bf16 %v2737_v39, %v2737_v39  ;;  %v4726_v45 = vpack.c.bf16 %v2607_v40, %v2607_v40  ;;  %v5121_v46 = vpop.f32.mrb[68].mxu0 }
 0x16e   : > { %4015 = vst.msk [vmem:[%s5744_s27 + $0x300] sm:$0xf] %vm3822_vm3, %v4853_v41  ;;  %3890 = vst.msk [vmem:[%s5744_s27 + $0x10c] sm:$0xf] %vm3822_vm3, %v4728_v42  ;;  %v4854_v47 = vpack.c.bf16 %v2735_v43, %v2735_v43  ;;  %v1800_v48 = vadd.f32 %v6058_v13, %v5121_v46  ;;  %v5249_v49 = vpop.f32.mrb[68].mxu1  ;;  %v1791_v50 = vpop.f32.mrb[69].mxu0 }
 0x16f   : > { %4018 = vst.msk [vmem:[%s5744_s27 + $0x30c] sm:$0xf] %vm3822_vm3, %v4856_v44  ;;  %3888 = vst.msk [vmem:[%s5744_s27 + $0x104] sm:$0xf] %vm3822_vm3, %v4726_v45  ;;  %v2312_v51 = vadd.f32 %v6058_v13, %v5249_v49  ;;  %v1792_v53 = vadd.f32 %v6058_v13, %v1791_v50  ;;  %v2303_v54 = vpop.f32.mrb[69].mxu1  ;;  %v5122_v55 = vpop.f32.mrb[70].mxu0 }
 0x170   : > { %4016 = vst.msk [vmem:[%s5744_s27 + $0x304] sm:$0xf] %vm3822_vm3, %v4854_v47  ;;  %v2612_v56 = vmax.f32 %v1800_v48, 0.0  ;;  %v2304_v57 = vadd.f32 %v6058_v13, %v2303_v54  ;;  %v1803_v58 = vadd.f32 %v6058_v13, %v5122_v55  ;;  %v5250_v59 = vpop.f32.mrb[70].mxu1  ;;  %v1794_v60 = vpop.f32.mrb[71].mxu0 }
 0x171   : > { %v2740_v61 = vmax.f32 %v2312_v51, 0.0  ;;  %v2610_v62 = vmax.f32 %v1792_v53, 0.0  ;;  %v2315_v63 = vadd.f32 %v6058_v13, %v5250_v59  ;;  %v1795_v0 = vadd.f32 %v6058_v13, %v1794_v60  ;;  %v2306_v1 = vpop.f32.mrb[71].mxu1 }
 0x172   : > { %v4731_v2 = vpack.c.bf16 %v2612_v56, %v2612_v56  ;;  %v2738_v3 = vmax.f32 %v2304_v57, 0.0  ;;  %v2613_v4 = vmax.f32 %v1803_v58, 0.0  ;;  %v2307_v5 = vadd.f32 %v6058_v13, %v2306_v1 }
 0x173   : > { %v4859_v6 = vpack.c.bf16 %v2740_v61, %v2740_v61  ;;  %v4729_v7 = vpack.c.bf16 %v2610_v62, %v2610_v62  ;;  %v2741_v8 = vmax.f32 %v2315_v63, 0.0  ;;  %v2611_v9 = vmax.f32 %v1795_v0, 0.0 }
 0x174   : > { %3893 = vst.msk [vmem:[%s5744_s27 + $0x118] sm:$0xf] %vm3822_vm3, %v4731_v2  ;;  %v4857_v10 = vpack.c.bf16 %v2738_v3, %v2738_v3  ;;  %v4732_v11 = vpack.c.bf16 %v2613_v4, %v2613_v4  ;;  %v2739_v12 = vmax.f32 %v2307_v5, 0.0 }
 0x175   : > { %4021 = vst.msk [vmem:[%s5744_s27 + $0x318] sm:$0xf] %vm3822_vm3, %v4859_v6  ;;  %3891 = vst.msk [vmem:[%s5744_s27 + $0x110] sm:$0xf] %vm3822_vm3, %v4729_v7  ;;  %v4860_v52 = vpack.c.bf16 %v2741_v8, %v2741_v8  ;;  %v4730_v14 = vpack.c.bf16 %v2611_v9, %v2611_v9  ;;  %v5125_v15 = vpop.f32.mrb[72].mxu0 }
 0x176   : > { %4019 = vst.msk [vmem:[%s5744_s27 + $0x310] sm:$0xf] %vm3822_vm3, %v4857_v10  ;;  %3894 = vst.msk [vmem:[%s5744_s27 + $0x11c] sm:$0xf] %vm3822_vm3, %v4732_v11  ;;  %v4858_v16 = vpack.c.bf16 %v2739_v12, %v2739_v12  ;;  %v1816_v17 = vadd.f32 %v6058_v13, %v5125_v15  ;;  %v5253_v18 = vpop.f32.mrb[72].mxu1  ;;  %v1807_v19 = vpop.f32.mrb[73].mxu0 }
 0x177   : > { %4022 = vst.msk [vmem:[%s5744_s27 + $0x31c] sm:$0xf] %vm3822_vm3, %v4860_v52  ;;  %3892 = vst.msk [vmem:[%s5744_s27 + $0x114] sm:$0xf] %vm3822_vm3, %v4730_v14  ;;  %v2328_v20 = vadd.f32 %v6058_v13, %v5253_v18  ;;  %v1808_v21 = vadd.f32 %v6058_v13, %v1807_v19  ;;  %v2319_v22 = vpop.f32.mrb[73].mxu1  ;;  %v5126_v23 = vpop.f32.mrb[74].mxu0 }
 0x178   : > { %4020 = vst.msk [vmem:[%s5744_s27 + $0x314] sm:$0xf] %vm3822_vm3, %v4858_v16  ;;  %v2616_v24 = vmax.f32 %v1816_v17, 0.0  ;;  %v2320_v25 = vadd.f32 %v6058_v13, %v2319_v22  ;;  %v1819_v26 = vadd.f32 %v6058_v13, %v5126_v23  ;;  %v5254_v27 = vpop.f32.mrb[74].mxu1  ;;  %v1810_v28 = vpop.f32.mrb[75].mxu0 }
 0x179   : > { %v2744_v29 = vmax.f32 %v2328_v20, 0.0  ;;  %v2614_v30 = vmax.f32 %v1808_v21, 0.0  ;;  %v2331_v31 = vadd.f32 %v6058_v13, %v5254_v27  ;;  %v1811_v32 = vadd.f32 %v6058_v13, %v1810_v28  ;;  %v2322_v33 = vpop.f32.mrb[75].mxu1 }
 0x17a   : > { %v4735_v34 = vpack.c.bf16 %v2616_v24, %v2616_v24  ;;  %v2742_v35 = vmax.f32 %v2320_v25, 0.0  ;;  %v2617_v36 = vmax.f32 %v1819_v26, 0.0  ;;  %v2323_v37 = vadd.f32 %v6058_v13, %v2322_v33 }
 0x17b   : > { %v4863_v38 = vpack.c.bf16 %v2744_v29, %v2744_v29  ;;  %v4733_v39 = vpack.c.bf16 %v2614_v30, %v2614_v30  ;;  %v2745_v40 = vmax.f32 %v2331_v31, 0.0  ;;  %v2615_v41 = vmax.f32 %v1811_v32, 0.0 }
 0x17c   : > { %3897 = vst.msk [vmem:[%s5744_s27 + $0x128] sm:$0xf] %vm3822_vm3, %v4735_v34  ;;  %v4861_v42 = vpack.c.bf16 %v2742_v35, %v2742_v35  ;;  %v4736_v43 = vpack.c.bf16 %v2617_v36, %v2617_v36  ;;  %v2743_v44 = vmax.f32 %v2323_v37, 0.0 }
 0x17d   : > { %4025 = vst.msk [vmem:[%s5744_s27 + $0x328] sm:$0xf] %vm3822_vm3, %v4863_v38  ;;  %3895 = vst.msk [vmem:[%s5744_s27 + $0x120] sm:$0xf] %vm3822_vm3, %v4733_v39  ;;  %v4864_v45 = vpack.c.bf16 %v2745_v40, %v2745_v40  ;;  %v4734_v46 = vpack.c.bf16 %v2615_v41, %v2615_v41  ;;  %v5129_v47 = vpop.f32.mrb[76].mxu0 }
 0x17e   : > { %4023 = vst.msk [vmem:[%s5744_s27 + $0x320] sm:$0xf] %vm3822_vm3, %v4861_v42  ;;  %3898 = vst.msk [vmem:[%s5744_s27 + $0x12c] sm:$0xf] %vm3822_vm3, %v4736_v43  ;;  %v4862_v48 = vpack.c.bf16 %v2743_v44, %v2743_v44  ;;  %v1832_v49 = vadd.f32 %v6058_v13, %v5129_v47  ;;  %v5257_v50 = vpop.f32.mrb[76].mxu1  ;;  %v1823_v51 = vpop.f32.mrb[77].mxu0 }
 0x17f   : > { %4026 = vst.msk [vmem:[%s5744_s27 + $0x32c] sm:$0xf] %vm3822_vm3, %v4864_v45  ;;  %3896 = vst.msk [vmem:[%s5744_s27 + $0x124] sm:$0xf] %vm3822_vm3, %v4734_v46  ;;  %v2344_v53 = vadd.f32 %v6058_v13, %v5257_v50  ;;  %v1824_v54 = vadd.f32 %v6058_v13, %v1823_v51  ;;  %v2335_v55 = vpop.f32.mrb[77].mxu1  ;;  %v5130_v56 = vpop.f32.mrb[78].mxu0 }
 0x180   : > { %4024 = vst.msk [vmem:[%s5744_s27 + $0x324] sm:$0xf] %vm3822_vm3, %v4862_v48  ;;  %v2620_v57 = vmax.f32 %v1832_v49, 0.0  ;;  %v2336_v58 = vadd.f32 %v6058_v13, %v2335_v55  ;;  %v1835_v59 = vadd.f32 %v6058_v13, %v5130_v56  ;;  %v5258_v60 = vpop.f32.mrb[78].mxu1  ;;  %v1826_v61 = vpop.f32.mrb[79].mxu0 }
 0x181   : > { %v2748_v62 = vmax.f32 %v2344_v53, 0.0  ;;  %v2618_v63 = vmax.f32 %v1824_v54, 0.0  ;;  %v2347_v0 = vadd.f32 %v6058_v13, %v5258_v60  ;;  %v1827_v1 = vadd.f32 %v6058_v13, %v1826_v61  ;;  %v2338_v2 = vpop.f32.mrb[79].mxu1 }
 0x182   : > { %v4739_v3 = vpack.c.bf16 %v2620_v57, %v2620_v57  ;;  %v2746_v4 = vmax.f32 %v2336_v58, 0.0  ;;  %v2621_v5 = vmax.f32 %v1835_v59, 0.0  ;;  %v2339_v6 = vadd.f32 %v6058_v13, %v2338_v2 }
 0x183   : > { %v4867_v7 = vpack.c.bf16 %v2748_v62, %v2748_v62  ;;  %v4737_v8 = vpack.c.bf16 %v2618_v63, %v2618_v63  ;;  %v2749_v9 = vmax.f32 %v2347_v0, 0.0  ;;  %v2619_v10 = vmax.f32 %v1827_v1, 0.0 }
 0x184   : > { %3901 = vst.msk [vmem:[%s5744_s27 + $0x138] sm:$0xf] %vm3822_vm3, %v4739_v3  ;;  %v4865_v11 = vpack.c.bf16 %v2746_v4, %v2746_v4  ;;  %v4740_v12 = vpack.c.bf16 %v2621_v5, %v2621_v5  ;;  %v2747_v52 = vmax.f32 %v2339_v6, 0.0 }
 0x185   : > { %4029 = vst.msk [vmem:[%s5744_s27 + $0x338] sm:$0xf] %vm3822_vm3, %v4867_v7  ;;  %3899 = vst.msk [vmem:[%s5744_s27 + $0x130] sm:$0xf] %vm3822_vm3, %v4737_v8  ;;  %v4868_v14 = vpack.c.bf16 %v2749_v9, %v2749_v9  ;;  %v4738_v15 = vpack.c.bf16 %v2619_v10, %v2619_v10  ;;  %v5133_v16 = vpop.f32.mrb[80].mxu0 }
 0x186   : > { %4027 = vst.msk [vmem:[%s5744_s27 + $0x330] sm:$0xf] %vm3822_vm3, %v4865_v11  ;;  %3902 = vst.msk [vmem:[%s5744_s27 + $0x13c] sm:$0xf] %vm3822_vm3, %v4740_v12  ;;  %v4866_v17 = vpack.c.bf16 %v2747_v52, %v2747_v52  ;;  %v1848_v18 = vadd.f32 %v6058_v13, %v5133_v16  ;;  %v5261_v19 = vpop.f32.mrb[80].mxu1  ;;  %v1839_v20 = vpop.f32.mrb[81].mxu0 }
 0x187   : > { %4030 = vst.msk [vmem:[%s5744_s27 + $0x33c] sm:$0xf] %vm3822_vm3, %v4868_v14  ;;  %3900 = vst.msk [vmem:[%s5744_s27 + $0x134] sm:$0xf] %vm3822_vm3, %v4738_v15  ;;  %v2360_v21 = vadd.f32 %v6058_v13, %v5261_v19  ;;  %v1840_v22 = vadd.f32 %v6058_v13, %v1839_v20  ;;  %v2351_v23 = vpop.f32.mrb[81].mxu1  ;;  %v5134_v24 = vpop.f32.mrb[82].mxu0 }
 0x188   : > { %4028 = vst.msk [vmem:[%s5744_s27 + $0x334] sm:$0xf] %vm3822_vm3, %v4866_v17  ;;  %v2624_v25 = vmax.f32 %v1848_v18, 0.0  ;;  %v2352_v26 = vadd.f32 %v6058_v13, %v2351_v23  ;;  %v1851_v27 = vadd.f32 %v6058_v13, %v5134_v24  ;;  %v5262_v28 = vpop.f32.mrb[82].mxu1  ;;  %v1842_v29 = vpop.f32.mrb[83].mxu0 }
 0x189   : > { %v2752_v30 = vmax.f32 %v2360_v21, 0.0  ;;  %v2622_v31 = vmax.f32 %v1840_v22, 0.0  ;;  %v2363_v32 = vadd.f32 %v6058_v13, %v5262_v28  ;;  %v1843_v33 = vadd.f32 %v6058_v13, %v1842_v29  ;;  %v2354_v34 = vpop.f32.mrb[83].mxu1 }
 0x18a   : > { %v4743_v35 = vpack.c.bf16 %v2624_v25, %v2624_v25  ;;  %v2750_v36 = vmax.f32 %v2352_v26, 0.0  ;;  %v2625_v37 = vmax.f32 %v1851_v27, 0.0  ;;  %v2355_v38 = vadd.f32 %v6058_v13, %v2354_v34 }
 0x18b   : > { %v4871_v39 = vpack.c.bf16 %v2752_v30, %v2752_v30  ;;  %v4741_v40 = vpack.c.bf16 %v2622_v31, %v2622_v31  ;;  %v2753_v41 = vmax.f32 %v2363_v32, 0.0  ;;  %v2623_v42 = vmax.f32 %v1843_v33, 0.0 }
 0x18c   : > { %3905 = vst.msk [vmem:[%s5744_s27 + $0x148] sm:$0xf] %vm3822_vm3, %v4743_v35  ;;  %v4869_v43 = vpack.c.bf16 %v2750_v36, %v2750_v36  ;;  %v4744_v44 = vpack.c.bf16 %v2625_v37, %v2625_v37  ;;  %v2751_v45 = vmax.f32 %v2355_v38, 0.0 }
 0x18d   : > { %4033 = vst.msk [vmem:[%s5744_s27 + $0x348] sm:$0xf] %vm3822_vm3, %v4871_v39  ;;  %3903 = vst.msk [vmem:[%s5744_s27 + $0x140] sm:$0xf] %vm3822_vm3, %v4741_v40  ;;  %v4872_v46 = vpack.c.bf16 %v2753_v41, %v2753_v41  ;;  %v4742_v47 = vpack.c.bf16 %v2623_v42, %v2623_v42  ;;  %v5137_v48 = vpop.f32.mrb[84].mxu0 }
 0x18e   : > { %4031 = vst.msk [vmem:[%s5744_s27 + $0x340] sm:$0xf] %vm3822_vm3, %v4869_v43  ;;  %3906 = vst.msk [vmem:[%s5744_s27 + $0x14c] sm:$0xf] %vm3822_vm3, %v4744_v44  ;;  %v4870_v49 = vpack.c.bf16 %v2751_v45, %v2751_v45  ;;  %v1864_v50 = vadd.f32 %v6058_v13, %v5137_v48  ;;  %v5265_v51 = vpop.f32.mrb[84].mxu1  ;;  %v1855_v53 = vpop.f32.mrb[85].mxu0 }
 0x18f   : > { %4034 = vst.msk [vmem:[%s5744_s27 + $0x34c] sm:$0xf] %vm3822_vm3, %v4872_v46  ;;  %3904 = vst.msk [vmem:[%s5744_s27 + $0x144] sm:$0xf] %vm3822_vm3, %v4742_v47  ;;  %v2376_v54 = vadd.f32 %v6058_v13, %v5265_v51  ;;  %v1856_v55 = vadd.f32 %v6058_v13, %v1855_v53  ;;  %v2367_v56 = vpop.f32.mrb[85].mxu1  ;;  %v5138_v57 = vpop.f32.mrb[86].mxu0 }
 0x190   : > { %4032 = vst.msk [vmem:[%s5744_s27 + $0x344] sm:$0xf] %vm3822_vm3, %v4870_v49  ;;  %v2628_v58 = vmax.f32 %v1864_v50, 0.0  ;;  %v2368_v59 = vadd.f32 %v6058_v13, %v2367_v56  ;;  %v1867_v60 = vadd.f32 %v6058_v13, %v5138_v57  ;;  %v5266_v61 = vpop.f32.mrb[86].mxu1  ;;  %v1858_v62 = vpop.f32.mrb[87].mxu0 }
 0x191   : > { %v2756_v63 = vmax.f32 %v2376_v54, 0.0  ;;  %v2626_v0 = vmax.f32 %v1856_v55, 0.0  ;;  %v2379_v1 = vadd.f32 %v6058_v13, %v5266_v61  ;;  %v1859_v2 = vadd.f32 %v6058_v13, %v1858_v62  ;;  %v2370_v3 = vpop.f32.mrb[87].mxu1 }
 0x192   : > { %v4747_v4 = vpack.c.bf16 %v2628_v58, %v2628_v58  ;;  %v2754_v5 = vmax.f32 %v2368_v59, 0.0  ;;  %v2629_v6 = vmax.f32 %v1867_v60, 0.0  ;;  %v2371_v7 = vadd.f32 %v6058_v13, %v2370_v3 }
 0x193   : > { %v4875_v8 = vpack.c.bf16 %v2756_v63, %v2756_v63  ;;  %v4745_v9 = vpack.c.bf16 %v2626_v0, %v2626_v0  ;;  %v2757_v10 = vmax.f32 %v2379_v1, 0.0  ;;  %v2627_v11 = vmax.f32 %v1859_v2, 0.0 }
 0x194   : > { %3909 = vst.msk [vmem:[%s5744_s27 + $0x158] sm:$0xf] %vm3822_vm3, %v4747_v4  ;;  %v4873_v12 = vpack.c.bf16 %v2754_v5, %v2754_v5  ;;  %v4748_v52 = vpack.c.bf16 %v2629_v6, %v2629_v6  ;;  %v2755_v14 = vmax.f32 %v2371_v7, 0.0 }
 0x195   : > { %4037 = vst.msk [vmem:[%s5744_s27 + $0x358] sm:$0xf] %vm3822_vm3, %v4875_v8  ;;  %3907 = vst.msk [vmem:[%s5744_s27 + $0x150] sm:$0xf] %vm3822_vm3, %v4745_v9  ;;  %v4876_v15 = vpack.c.bf16 %v2757_v10, %v2757_v10  ;;  %v4746_v16 = vpack.c.bf16 %v2627_v11, %v2627_v11  ;;  %v5141_v17 = vpop.f32.mrb[88].mxu0 }
 0x196   : > { %4035 = vst.msk [vmem:[%s5744_s27 + $0x350] sm:$0xf] %vm3822_vm3, %v4873_v12  ;;  %3910 = vst.msk [vmem:[%s5744_s27 + $0x15c] sm:$0xf] %vm3822_vm3, %v4748_v52  ;;  %v4874_v18 = vpack.c.bf16 %v2755_v14, %v2755_v14  ;;  %v1880_v19 = vadd.f32 %v6058_v13, %v5141_v17  ;;  %v5269_v20 = vpop.f32.mrb[88].mxu1  ;;  %v1871_v21 = vpop.f32.mrb[89].mxu0 }
 0x197   : > { %4038 = vst.msk [vmem:[%s5744_s27 + $0x35c] sm:$0xf] %vm3822_vm3, %v4876_v15  ;;  %3908 = vst.msk [vmem:[%s5744_s27 + $0x154] sm:$0xf] %vm3822_vm3, %v4746_v16  ;;  %v2392_v22 = vadd.f32 %v6058_v13, %v5269_v20  ;;  %v1872_v23 = vadd.f32 %v6058_v13, %v1871_v21  ;;  %v2383_v24 = vpop.f32.mrb[89].mxu1  ;;  %v5142_v25 = vpop.f32.mrb[90].mxu0 }
 0x198   : > { %4036 = vst.msk [vmem:[%s5744_s27 + $0x354] sm:$0xf] %vm3822_vm3, %v4874_v18  ;;  %v2632_v26 = vmax.f32 %v1880_v19, 0.0  ;;  %v2384_v27 = vadd.f32 %v6058_v13, %v2383_v24  ;;  %v1883_v28 = vadd.f32 %v6058_v13, %v5142_v25  ;;  %v5270_v29 = vpop.f32.mrb[90].mxu1  ;;  %v1874_v30 = vpop.f32.mrb[91].mxu0 }
 0x199   : > { %v2760_v31 = vmax.f32 %v2392_v22, 0.0  ;;  %v2630_v32 = vmax.f32 %v1872_v23, 0.0  ;;  %v2395_v33 = vadd.f32 %v6058_v13, %v5270_v29  ;;  %v1875_v34 = vadd.f32 %v6058_v13, %v1874_v30  ;;  %v2386_v35 = vpop.f32.mrb[91].mxu1 }
 0x19a   : > { %v4751_v36 = vpack.c.bf16 %v2632_v26, %v2632_v26  ;;  %v2758_v37 = vmax.f32 %v2384_v27, 0.0  ;;  %v2633_v38 = vmax.f32 %v1883_v28, 0.0  ;;  %v2387_v39 = vadd.f32 %v6058_v13, %v2386_v35 }
 0x19b   : > { %v4879_v40 = vpack.c.bf16 %v2760_v31, %v2760_v31  ;;  %v4749_v41 = vpack.c.bf16 %v2630_v32, %v2630_v32  ;;  %v2761_v42 = vmax.f32 %v2395_v33, 0.0  ;;  %v2631_v43 = vmax.f32 %v1875_v34, 0.0 }
 0x19c   : > { %3913 = vst.msk [vmem:[%s5744_s27 + $0x168] sm:$0xf] %vm3822_vm3, %v4751_v36  ;;  %v4877_v44 = vpack.c.bf16 %v2758_v37, %v2758_v37  ;;  %v4752_v45 = vpack.c.bf16 %v2633_v38, %v2633_v38  ;;  %v2759_v46 = vmax.f32 %v2387_v39, 0.0 }
 0x19d   : > { %4041 = vst.msk [vmem:[%s5744_s27 + $0x368] sm:$0xf] %vm3822_vm3, %v4879_v40  ;;  %3911 = vst.msk [vmem:[%s5744_s27 + $0x160] sm:$0xf] %vm3822_vm3, %v4749_v41  ;;  %v4880_v47 = vpack.c.bf16 %v2761_v42, %v2761_v42  ;;  %v4750_v48 = vpack.c.bf16 %v2631_v43, %v2631_v43  ;;  %v5145_v49 = vpop.f32.mrb[92].mxu0 }
 0x19e   : > { %4039 = vst.msk [vmem:[%s5744_s27 + $0x360] sm:$0xf] %vm3822_vm3, %v4877_v44  ;;  %3914 = vst.msk [vmem:[%s5744_s27 + $0x16c] sm:$0xf] %vm3822_vm3, %v4752_v45  ;;  %v4878_v50 = vpack.c.bf16 %v2759_v46, %v2759_v46  ;;  %v1896_v51 = vadd.f32 %v6058_v13, %v5145_v49  ;;  %v5273_v53 = vpop.f32.mrb[92].mxu1  ;;  %v1887_v54 = vpop.f32.mrb[93].mxu0 }
 0x19f   : > { %4042 = vst.msk [vmem:[%s5744_s27 + $0x36c] sm:$0xf] %vm3822_vm3, %v4880_v47  ;;  %3912 = vst.msk [vmem:[%s5744_s27 + $0x164] sm:$0xf] %vm3822_vm3, %v4750_v48  ;;  %v2408_v55 = vadd.f32 %v6058_v13, %v5273_v53  ;;  %v1888_v56 = vadd.f32 %v6058_v13, %v1887_v54  ;;  %v2399_v57 = vpop.f32.mrb[93].mxu1  ;;  %v5146_v58 = vpop.f32.mrb[94].mxu0 }
 0x1a0   : > { %4040 = vst.msk [vmem:[%s5744_s27 + $0x364] sm:$0xf] %vm3822_vm3, %v4878_v50  ;;  %v2636_v59 = vmax.f32 %v1896_v51, 0.0  ;;  %v2400_v60 = vadd.f32 %v6058_v13, %v2399_v57  ;;  %v1899_v61 = vadd.f32 %v6058_v13, %v5146_v58  ;;  %v5274_v62 = vpop.f32.mrb[94].mxu1  ;;  %v1890_v63 = vpop.f32.mrb[95].mxu0 }
 0x1a1   : > { %v2764_v0 = vmax.f32 %v2408_v55, 0.0  ;;  %v2634_v1 = vmax.f32 %v1888_v56, 0.0  ;;  %v2411_v2 = vadd.f32 %v6058_v13, %v5274_v62  ;;  %v1891_v3 = vadd.f32 %v6058_v13, %v1890_v63  ;;  %v2402_v4 = vpop.f32.mrb[95].mxu1  ;;  %v6375_v51 = vld [vmem:[%s6556_s2] ss:$0 sm:$0xff] }
 0x1a2   : > { %v4755_v5 = vpack.c.bf16 %v2636_v59, %v2636_v59  ;;  %v2762_v6 = vmax.f32 %v2400_v60, 0.0  ;;  %v2637_v7 = vmax.f32 %v1899_v61, 0.0  ;;  %v2403_v8 = vadd.f32 %v6058_v13, %v2402_v4 }
 0x1a3   : > { %v4883_v9 = vpack.c.bf16 %v2764_v0, %v2764_v0  ;;  %v4753_v10 = vpack.c.bf16 %v2634_v1, %v2634_v1  ;;  %v2765_v11 = vmax.f32 %v2411_v2, 0.0  ;;  %v2635_v12 = vmax.f32 %v1891_v3, 0.0 }
 0x1a4   : > { %3917 = vst.msk [vmem:[%s5744_s27 + $0x178] sm:$0xf] %vm3822_vm3, %v4755_v5  ;;  %v4881_v52 = vpack.c.bf16 %v2762_v6, %v2762_v6  ;;  %v4756_v14 = vpack.c.bf16 %v2637_v7, %v2637_v7  ;;  %v2763_v15 = vmax.f32 %v2403_v8, 0.0 }
 0x1a5   : > { %4045 = vst.msk [vmem:[%s5744_s27 + $0x378] sm:$0xf] %vm3822_vm3, %v4883_v9  ;;  %3915 = vst.msk [vmem:[%s5744_s27 + $0x170] sm:$0xf] %vm3822_vm3, %v4753_v10  ;;  %v4884_v16 = vpack.c.bf16 %v2765_v11, %v2765_v11  ;;  %v4754_v17 = vpack.c.bf16 %v2635_v12, %v2635_v12  ;;  %v5149_v18 = vpop.f32.mrb[96].mxu0 }
 0x1a6   : > { %4043 = vst.msk [vmem:[%s5744_s27 + $0x370] sm:$0xf] %vm3822_vm3, %v4881_v52  ;;  %3918 = vst.msk [vmem:[%s5744_s27 + $0x17c] sm:$0xf] %vm3822_vm3, %v4756_v14  ;;  %v4882_v19 = vpack.c.bf16 %v2763_v15, %v2763_v15  ;;  %v1912_v20 = vadd.f32 %v6058_v13, %v5149_v18  ;;  %v5277_v21 = vpop.f32.mrb[96].mxu1  ;;  %v1903_v22 = vpop.f32.mrb[97].mxu0 }
 0x1a7   : > { %4046 = vst.msk [vmem:[%s5744_s27 + $0x37c] sm:$0xf] %vm3822_vm3, %v4884_v16  ;;  %3916 = vst.msk [vmem:[%s5744_s27 + $0x174] sm:$0xf] %vm3822_vm3, %v4754_v17  ;;  %v2424_v23 = vadd.f32 %v6058_v13, %v5277_v21  ;;  %v1904_v24 = vadd.f32 %v6058_v13, %v1903_v22  ;;  %v2415_v25 = vpop.f32.mrb[97].mxu1  ;;  %v5150_v26 = vpop.f32.mrb[98].mxu0 }
 0x1a8   : > { %4044 = vst.msk [vmem:[%s5744_s27 + $0x374] sm:$0xf] %vm3822_vm3, %v4882_v19  ;;  %v2640_v27 = vmax.f32 %v1912_v20, 0.0  ;;  %v2416_v28 = vadd.f32 %v6058_v13, %v2415_v25  ;;  %v1915_v29 = vadd.f32 %v6058_v13, %v5150_v26  ;;  %v5278_v30 = vpop.f32.mrb[98].mxu1  ;;  %v1906_v31 = vpop.f32.mrb[99].mxu0 }
 0x1a9   : > { %v2768_v32 = vmax.f32 %v2424_v23, 0.0  ;;  %v2638_v33 = vmax.f32 %v1904_v24, 0.0  ;;  %v2427_v34 = vadd.f32 %v6058_v13, %v5278_v30  ;;  %v1907_v35 = vadd.f32 %v6058_v13, %v1906_v31  ;;  %v2418_v36 = vpop.f32.mrb[99].mxu1 }
 0x1aa   : > { %v4759_v37 = vpack.c.bf16 %v2640_v27, %v2640_v27  ;;  %v2766_v38 = vmax.f32 %v2416_v28, 0.0  ;;  %v2641_v39 = vmax.f32 %v1915_v29, 0.0  ;;  %v2419_v40 = vadd.f32 %v6058_v13, %v2418_v36 }
 0x1ab   : > { %v4887_v41 = vpack.c.bf16 %v2768_v32, %v2768_v32  ;;  %v4757_v42 = vpack.c.bf16 %v2638_v33, %v2638_v33  ;;  %v2769_v43 = vmax.f32 %v2427_v34, 0.0  ;;  %v2639_v44 = vmax.f32 %v1907_v35, 0.0 }
 0x1ac   : > { %3921 = vst.msk [vmem:[%s5744_s27 + $0x188] sm:$0xf] %vm3822_vm3, %v4759_v37  ;;  %v4885_v45 = vpack.c.bf16 %v2766_v38, %v2766_v38  ;;  %v4760_v46 = vpack.c.bf16 %v2641_v39, %v2641_v39  ;;  %v2767_v47 = vmax.f32 %v2419_v40, 0.0 }
 0x1ad   : > { %4049 = vst.msk [vmem:[%s5744_s27 + $0x388] sm:$0xf] %vm3822_vm3, %v4887_v41  ;;  %3919 = vst.msk [vmem:[%s5744_s27 + $0x180] sm:$0xf] %vm3822_vm3, %v4757_v42  ;;  %v4888_v48 = vpack.c.bf16 %v2769_v43, %v2769_v43  ;;  %v4758_v49 = vpack.c.bf16 %v2639_v44, %v2639_v44  ;;  %v5153_v50 = vpop.f32.mrb[100].mxu0 }
 0x1ae   : > { %4047 = vst.msk [vmem:[%s5744_s27 + $0x380] sm:$0xf] %vm3822_vm3, %v4885_v45  ;;  %3922 = vst.msk [vmem:[%s5744_s27 + $0x18c] sm:$0xf] %vm3822_vm3, %v4760_v46  ;;  %v4886_v13 = vpack.c.bf16 %v2767_v47, %v2767_v47  ;;  %v1928_v53 = vadd.f32 %v6375_v51, %v5153_v50  ;;  %v5281_v54 = vpop.f32.mrb[100].mxu1  ;;  %v1919_v55 = vpop.f32.mrb[101].mxu0 }
 0x1af   : > { %4050 = vst.msk [vmem:[%s5744_s27 + $0x38c] sm:$0xf] %vm3822_vm3, %v4888_v48  ;;  %3920 = vst.msk [vmem:[%s5744_s27 + $0x184] sm:$0xf] %vm3822_vm3, %v4758_v49  ;;  %v2440_v56 = vadd.f32 %v6375_v51, %v5281_v54  ;;  %v1920_v57 = vadd.f32 %v6375_v51, %v1919_v55  ;;  %v2431_v58 = vpop.f32.mrb[101].mxu1  ;;  %v5154_v59 = vpop.f32.mrb[102].mxu0 }
 0x1b0   : > { %4048 = vst.msk [vmem:[%s5744_s27 + $0x384] sm:$0xf] %vm3822_vm3, %v4886_v13  ;;  %v2644_v60 = vmax.f32 %v1928_v53, 0.0  ;;  %v2432_v61 = vadd.f32 %v6375_v51, %v2431_v58  ;;  %v1931_v62 = vadd.f32 %v6375_v51, %v5154_v59  ;;  %v5282_v63 = vpop.f32.mrb[102].mxu1  ;;  %v1922_v0 = vpop.f32.mrb[103].mxu0 }
 0x1b1   : > { %v2772_v1 = vmax.f32 %v2440_v56, 0.0  ;;  %v2642_v2 = vmax.f32 %v1920_v57, 0.0  ;;  %v2443_v3 = vadd.f32 %v6375_v51, %v5282_v63  ;;  %v1923_v4 = vadd.f32 %v6375_v51, %v1922_v0  ;;  %v2434_v5 = vpop.f32.mrb[103].mxu1 }
 0x1b2   : > { %v4763_v6 = vpack.c.bf16 %v2644_v60, %v2644_v60  ;;  %v2770_v7 = vmax.f32 %v2432_v61, 0.0  ;;  %v2645_v8 = vmax.f32 %v1931_v62, 0.0  ;;  %v2435_v9 = vadd.f32 %v6375_v51, %v2434_v5 }
 0x1b3   : > { %v4891_v10 = vpack.c.bf16 %v2772_v1, %v2772_v1  ;;  %v4761_v11 = vpack.c.bf16 %v2642_v2, %v2642_v2  ;;  %v2773_v12 = vmax.f32 %v2443_v3, 0.0  ;;  %v2643_v52 = vmax.f32 %v1923_v4, 0.0 }
 0x1b4   : > { %3925 = vst.msk [vmem:[%s5744_s27 + $0x198] sm:$0xf] %vm3822_vm3, %v4763_v6  ;;  %v4889_v14 = vpack.c.bf16 %v2770_v7, %v2770_v7  ;;  %v4764_v15 = vpack.c.bf16 %v2645_v8, %v2645_v8  ;;  %v2771_v16 = vmax.f32 %v2435_v9, 0.0 }
 0x1b5   : > { %4053 = vst.msk [vmem:[%s5744_s27 + $0x398] sm:$0xf] %vm3822_vm3, %v4891_v10  ;;  %3923 = vst.msk [vmem:[%s5744_s27 + $0x190] sm:$0xf] %vm3822_vm3, %v4761_v11  ;;  %v4892_v17 = vpack.c.bf16 %v2773_v12, %v2773_v12  ;;  %v4762_v18 = vpack.c.bf16 %v2643_v52, %v2643_v52  ;;  %v5157_v19 = vpop.f32.mrb[104].mxu0 }
 0x1b6   : > { %4051 = vst.msk [vmem:[%s5744_s27 + $0x390] sm:$0xf] %vm3822_vm3, %v4889_v14  ;;  %3926 = vst.msk [vmem:[%s5744_s27 + $0x19c] sm:$0xf] %vm3822_vm3, %v4764_v15  ;;  %v4890_v20 = vpack.c.bf16 %v2771_v16, %v2771_v16  ;;  %v1944_v21 = vadd.f32 %v6375_v51, %v5157_v19  ;;  %v5285_v22 = vpop.f32.mrb[104].mxu1  ;;  %v1935_v23 = vpop.f32.mrb[105].mxu0 }
 0x1b7   : > { %4054 = vst.msk [vmem:[%s5744_s27 + $0x39c] sm:$0xf] %vm3822_vm3, %v4892_v17  ;;  %3924 = vst.msk [vmem:[%s5744_s27 + $0x194] sm:$0xf] %vm3822_vm3, %v4762_v18  ;;  %v2456_v24 = vadd.f32 %v6375_v51, %v5285_v22  ;;  %v1936_v25 = vadd.f32 %v6375_v51, %v1935_v23  ;;  %v2447_v26 = vpop.f32.mrb[105].mxu1  ;;  %v5158_v27 = vpop.f32.mrb[106].mxu0 }
 0x1b8   : > { %4052 = vst.msk [vmem:[%s5744_s27 + $0x394] sm:$0xf] %vm3822_vm3, %v4890_v20  ;;  %v2648_v28 = vmax.f32 %v1944_v21, 0.0  ;;  %v2448_v29 = vadd.f32 %v6375_v51, %v2447_v26  ;;  %v1947_v30 = vadd.f32 %v6375_v51, %v5158_v27  ;;  %v5286_v31 = vpop.f32.mrb[106].mxu1  ;;  %v1938_v32 = vpop.f32.mrb[107].mxu0 }
 0x1b9   : > { %v2776_v33 = vmax.f32 %v2456_v24, 0.0  ;;  %v2646_v34 = vmax.f32 %v1936_v25, 0.0  ;;  %v2459_v35 = vadd.f32 %v6375_v51, %v5286_v31  ;;  %v1939_v36 = vadd.f32 %v6375_v51, %v1938_v32  ;;  %v2450_v37 = vpop.f32.mrb[107].mxu1 }
 0x1ba   : > { %v4767_v38 = vpack.c.bf16 %v2648_v28, %v2648_v28  ;;  %v2774_v39 = vmax.f32 %v2448_v29, 0.0  ;;  %v2649_v40 = vmax.f32 %v1947_v30, 0.0  ;;  %v2451_v41 = vadd.f32 %v6375_v51, %v2450_v37 }
 0x1bb   : > { %v4895_v42 = vpack.c.bf16 %v2776_v33, %v2776_v33  ;;  %v4765_v43 = vpack.c.bf16 %v2646_v34, %v2646_v34  ;;  %v2777_v44 = vmax.f32 %v2459_v35, 0.0  ;;  %v2647_v45 = vmax.f32 %v1939_v36, 0.0 }
 0x1bc   : > { %3929 = vst.msk [vmem:[%s5744_s27 + $0x1a8] sm:$0xf] %vm3822_vm3, %v4767_v38  ;;  %v4893_v46 = vpack.c.bf16 %v2774_v39, %v2774_v39  ;;  %v4768_v47 = vpack.c.bf16 %v2649_v40, %v2649_v40  ;;  %v2775_v48 = vmax.f32 %v2451_v41, 0.0 }
 0x1bd   : > { %4057 = vst.msk [vmem:[%s5744_s27 + $0x3a8] sm:$0xf] %vm3822_vm3, %v4895_v42  ;;  %3927 = vst.msk [vmem:[%s5744_s27 + $0x1a0] sm:$0xf] %vm3822_vm3, %v4765_v43  ;;  %v4896_v49 = vpack.c.bf16 %v2777_v44, %v2777_v44  ;;  %v4766_v50 = vpack.c.bf16 %v2647_v45, %v2647_v45  ;;  %v5161_v13 = vpop.f32.mrb[108].mxu0 }
 0x1be   : > { %4055 = vst.msk [vmem:[%s5744_s27 + $0x3a0] sm:$0xf] %vm3822_vm3, %v4893_v46  ;;  %3930 = vst.msk [vmem:[%s5744_s27 + $0x1ac] sm:$0xf] %vm3822_vm3, %v4768_v47  ;;  %v4894_v53 = vpack.c.bf16 %v2775_v48, %v2775_v48  ;;  %v1960_v54 = vadd.f32 %v6375_v51, %v5161_v13  ;;  %v5289_v55 = vpop.f32.mrb[108].mxu1  ;;  %v1951_v56 = vpop.f32.mrb[109].mxu0 }
 0x1bf   : > { %4058 = vst.msk [vmem:[%s5744_s27 + $0x3ac] sm:$0xf] %vm3822_vm3, %v4896_v49  ;;  %3928 = vst.msk [vmem:[%s5744_s27 + $0x1a4] sm:$0xf] %vm3822_vm3, %v4766_v50  ;;  %v2472_v57 = vadd.f32 %v6375_v51, %v5289_v55  ;;  %v1952_v58 = vadd.f32 %v6375_v51, %v1951_v56  ;;  %v2463_v59 = vpop.f32.mrb[109].mxu1  ;;  %v5162_v60 = vpop.f32.mrb[110].mxu0 }
 0x1c0   : > { %4056 = vst.msk [vmem:[%s5744_s27 + $0x3a4] sm:$0xf] %vm3822_vm3, %v4894_v53  ;;  %v2652_v61 = vmax.f32 %v1960_v54, 0.0  ;;  %v2464_v62 = vadd.f32 %v6375_v51, %v2463_v59  ;;  %v1963_v63 = vadd.f32 %v6375_v51, %v5162_v60  ;;  %v5290_v0 = vpop.f32.mrb[110].mxu1  ;;  %v1954_v1 = vpop.f32.mrb[111].mxu0 }
 0x1c1   : > { %v2780_v2 = vmax.f32 %v2472_v57, 0.0  ;;  %v2650_v3 = vmax.f32 %v1952_v58, 0.0  ;;  %v2475_v4 = vadd.f32 %v6375_v51, %v5290_v0  ;;  %v1955_v5 = vadd.f32 %v6375_v51, %v1954_v1  ;;  %v2466_v6 = vpop.f32.mrb[111].mxu1 }
 0x1c2   : > { %v4771_v7 = vpack.c.bf16 %v2652_v61, %v2652_v61  ;;  %v2778_v8 = vmax.f32 %v2464_v62, 0.0  ;;  %v2653_v9 = vmax.f32 %v1963_v63, 0.0  ;;  %v2467_v10 = vadd.f32 %v6375_v51, %v2466_v6 }
 0x1c3   : > { %v4899_v11 = vpack.c.bf16 %v2780_v2, %v2780_v2  ;;  %v4769_v12 = vpack.c.bf16 %v2650_v3, %v2650_v3  ;;  %v2781_v52 = vmax.f32 %v2475_v4, 0.0  ;;  %v2651_v14 = vmax.f32 %v1955_v5, 0.0 }
 0x1c4   : > { %3933 = vst.msk [vmem:[%s5744_s27 + $0x1b8] sm:$0xf] %vm3822_vm3, %v4771_v7  ;;  %v4897_v15 = vpack.c.bf16 %v2778_v8, %v2778_v8  ;;  %v4772_v16 = vpack.c.bf16 %v2653_v9, %v2653_v9  ;;  %v2779_v17 = vmax.f32 %v2467_v10, 0.0 }
 0x1c5   : > { %4061 = vst.msk [vmem:[%s5744_s27 + $0x3b8] sm:$0xf] %vm3822_vm3, %v4899_v11  ;;  %3931 = vst.msk [vmem:[%s5744_s27 + $0x1b0] sm:$0xf] %vm3822_vm3, %v4769_v12  ;;  %v4900_v18 = vpack.c.bf16 %v2781_v52, %v2781_v52  ;;  %v4770_v19 = vpack.c.bf16 %v2651_v14, %v2651_v14  ;;  %v5165_v20 = vpop.f32.mrb[112].mxu0 }
 0x1c6   : > { %4059 = vst.msk [vmem:[%s5744_s27 + $0x3b0] sm:$0xf] %vm3822_vm3, %v4897_v15  ;;  %3934 = vst.msk [vmem:[%s5744_s27 + $0x1bc] sm:$0xf] %vm3822_vm3, %v4772_v16  ;;  %v4898_v21 = vpack.c.bf16 %v2779_v17, %v2779_v17  ;;  %v1976_v22 = vadd.f32 %v6375_v51, %v5165_v20  ;;  %v5293_v23 = vpop.f32.mrb[112].mxu1  ;;  %v1967_v24 = vpop.f32.mrb[113].mxu0 }
 0x1c7   : > { %4062 = vst.msk [vmem:[%s5744_s27 + $0x3bc] sm:$0xf] %vm3822_vm3, %v4900_v18  ;;  %3932 = vst.msk [vmem:[%s5744_s27 + $0x1b4] sm:$0xf] %vm3822_vm3, %v4770_v19  ;;  %v2488_v25 = vadd.f32 %v6375_v51, %v5293_v23  ;;  %v1968_v26 = vadd.f32 %v6375_v51, %v1967_v24  ;;  %v2479_v27 = vpop.f32.mrb[113].mxu1  ;;  %v5166_v28 = vpop.f32.mrb[114].mxu0 }
 0x1c8   : > { %4060 = vst.msk [vmem:[%s5744_s27 + $0x3b4] sm:$0xf] %vm3822_vm3, %v4898_v21  ;;  %v2656_v29 = vmax.f32 %v1976_v22, 0.0  ;;  %v2480_v30 = vadd.f32 %v6375_v51, %v2479_v27  ;;  %v1979_v31 = vadd.f32 %v6375_v51, %v5166_v28  ;;  %v5294_v32 = vpop.f32.mrb[114].mxu1  ;;  %v1970_v33 = vpop.f32.mrb[115].mxu0 }
 0x1c9   : > { %v2784_v34 = vmax.f32 %v2488_v25, 0.0  ;;  %v2654_v35 = vmax.f32 %v1968_v26, 0.0  ;;  %v2491_v36 = vadd.f32 %v6375_v51, %v5294_v32  ;;  %v1971_v37 = vadd.f32 %v6375_v51, %v1970_v33  ;;  %v2482_v38 = vpop.f32.mrb[115].mxu1 }
 0x1ca   : > { %v4775_v39 = vpack.c.bf16 %v2656_v29, %v2656_v29  ;;  %v2782_v40 = vmax.f32 %v2480_v30, 0.0  ;;  %v2657_v41 = vmax.f32 %v1979_v31, 0.0  ;;  %v2483_v42 = vadd.f32 %v6375_v51, %v2482_v38 }
 0x1cb   : > { %v4903_v43 = vpack.c.bf16 %v2784_v34, %v2784_v34  ;;  %v4773_v44 = vpack.c.bf16 %v2654_v35, %v2654_v35  ;;  %v2785_v45 = vmax.f32 %v2491_v36, 0.0  ;;  %v2655_v46 = vmax.f32 %v1971_v37, 0.0 }
 0x1cc   : > { %3937 = vst.msk [vmem:[%s5744_s27 + $0x1c8] sm:$0xf] %vm3822_vm3, %v4775_v39  ;;  %v4901_v47 = vpack.c.bf16 %v2782_v40, %v2782_v40  ;;  %v4776_v48 = vpack.c.bf16 %v2657_v41, %v2657_v41  ;;  %v2783_v49 = vmax.f32 %v2483_v42, 0.0 }
 0x1cd   : > { %4065 = vst.msk [vmem:[%s5744_s27 + $0x3c8] sm:$0xf] %vm3822_vm3, %v4903_v43  ;;  %3935 = vst.msk [vmem:[%s5744_s27 + $0x1c0] sm:$0xf] %vm3822_vm3, %v4773_v44  ;;  %v4904_v50 = vpack.c.bf16 %v2785_v45, %v2785_v45  ;;  %v4774_v13 = vpack.c.bf16 %v2655_v46, %v2655_v46  ;;  %v5169_v53 = vpop.f32.mrb[116].mxu0 }
 0x1ce   : > { %4063 = vst.msk [vmem:[%s5744_s27 + $0x3c0] sm:$0xf] %vm3822_vm3, %v4901_v47  ;;  %3938 = vst.msk [vmem:[%s5744_s27 + $0x1cc] sm:$0xf] %vm3822_vm3, %v4776_v48  ;;  %v4902_v54 = vpack.c.bf16 %v2783_v49, %v2783_v49  ;;  %v1992_v55 = vadd.f32 %v6375_v51, %v5169_v53  ;;  %v5297_v56 = vpop.f32.mrb[116].mxu1  ;;  %v1983_v57 = vpop.f32.mrb[117].mxu0 }
 0x1cf   : > { %4066 = vst.msk [vmem:[%s5744_s27 + $0x3cc] sm:$0xf] %vm3822_vm3, %v4904_v50  ;;  %3936 = vst.msk [vmem:[%s5744_s27 + $0x1c4] sm:$0xf] %vm3822_vm3, %v4774_v13  ;;  %v2504_v58 = vadd.f32 %v6375_v51, %v5297_v56  ;;  %v1984_v59 = vadd.f32 %v6375_v51, %v1983_v57  ;;  %v2495_v60 = vpop.f32.mrb[117].mxu1  ;;  %v5170_v61 = vpop.f32.mrb[118].mxu0 }
 0x1d0   : > { %4064 = vst.msk [vmem:[%s5744_s27 + $0x3c4] sm:$0xf] %vm3822_vm3, %v4902_v54  ;;  %v2660_v62 = vmax.f32 %v1992_v55, 0.0  ;;  %v2496_v63 = vadd.f32 %v6375_v51, %v2495_v60  ;;  %v1995_v0 = vadd.f32 %v6375_v51, %v5170_v61  ;;  %v5298_v1 = vpop.f32.mrb[118].mxu1  ;;  %v1986_v2 = vpop.f32.mrb[119].mxu0 }
 0x1d1   : > { %v2788_v3 = vmax.f32 %v2504_v58, 0.0  ;;  %v2658_v4 = vmax.f32 %v1984_v59, 0.0  ;;  %v2507_v5 = vadd.f32 %v6375_v51, %v5298_v1  ;;  %v1987_v6 = vadd.f32 %v6375_v51, %v1986_v2  ;;  %v2498_v7 = vpop.f32.mrb[119].mxu1 }
 0x1d2   : > { %v4779_v8 = vpack.c.bf16 %v2660_v62, %v2660_v62  ;;  %v2786_v9 = vmax.f32 %v2496_v63, 0.0  ;;  %v2661_v10 = vmax.f32 %v1995_v0, 0.0  ;;  %v2499_v11 = vadd.f32 %v6375_v51, %v2498_v7 }
 0x1d3   : > { %v4907_v12 = vpack.c.bf16 %v2788_v3, %v2788_v3  ;;  %v4777_v52 = vpack.c.bf16 %v2658_v4, %v2658_v4  ;;  %v2789_v14 = vmax.f32 %v2507_v5, 0.0  ;;  %v2659_v15 = vmax.f32 %v1987_v6, 0.0 }
 0x1d4   : > { %3941 = vst.msk [vmem:[%s5744_s27 + $0x1d8] sm:$0xf] %vm3822_vm3, %v4779_v8  ;;  %v4905_v16 = vpack.c.bf16 %v2786_v9, %v2786_v9  ;;  %v4780_v17 = vpack.c.bf16 %v2661_v10, %v2661_v10  ;;  %v2787_v18 = vmax.f32 %v2499_v11, 0.0 }
 0x1d5   : > { %4069 = vst.msk [vmem:[%s5744_s27 + $0x3d8] sm:$0xf] %vm3822_vm3, %v4907_v12  ;;  %3939 = vst.msk [vmem:[%s5744_s27 + $0x1d0] sm:$0xf] %vm3822_vm3, %v4777_v52  ;;  %v4908_v19 = vpack.c.bf16 %v2789_v14, %v2789_v14  ;;  %v4778_v20 = vpack.c.bf16 %v2659_v15, %v2659_v15  ;;  %v5173_v21 = vpop.f32.mrb[120].mxu0 }
 0x1d6   : > { %4067 = vst.msk [vmem:[%s5744_s27 + $0x3d0] sm:$0xf] %vm3822_vm3, %v4905_v16  ;;  %3942 = vst.msk [vmem:[%s5744_s27 + $0x1dc] sm:$0xf] %vm3822_vm3, %v4780_v17  ;;  %v4906_v22 = vpack.c.bf16 %v2787_v18, %v2787_v18  ;;  %v2008_v23 = vadd.f32 %v6375_v51, %v5173_v21  ;;  %v5301_v24 = vpop.f32.mrb[120].mxu1  ;;  %v1999_v25 = vpop.f32.mrb[121].mxu0 }
 0x1d7   : > { %4070 = vst.msk [vmem:[%s5744_s27 + $0x3dc] sm:$0xf] %vm3822_vm3, %v4908_v19  ;;  %3940 = vst.msk [vmem:[%s5744_s27 + $0x1d4] sm:$0xf] %vm3822_vm3, %v4778_v20  ;;  %v2520_v26 = vadd.f32 %v6375_v51, %v5301_v24  ;;  %v2000_v27 = vadd.f32 %v6375_v51, %v1999_v25  ;;  %v2511_v28 = vpop.f32.mrb[121].mxu1  ;;  %v5174_v29 = vpop.f32.mrb[122].mxu0 }
 0x1d8   : > { %4068 = vst.msk [vmem:[%s5744_s27 + $0x3d4] sm:$0xf] %vm3822_vm3, %v4906_v22  ;;  %v2664_v30 = vmax.f32 %v2008_v23, 0.0  ;;  %v2512_v31 = vadd.f32 %v6375_v51, %v2511_v28  ;;  %v2011_v32 = vadd.f32 %v6375_v51, %v5174_v29  ;;  %v5302_v33 = vpop.f32.mrb[122].mxu1  ;;  %v2002_v34 = vpop.f32.mrb[123].mxu0 }
 0x1d9   : > { %v2792_v35 = vmax.f32 %v2520_v26, 0.0  ;;  %v2662_v36 = vmax.f32 %v2000_v27, 0.0  ;;  %v2523_v37 = vadd.f32 %v6375_v51, %v5302_v33  ;;  %v2003_v38 = vadd.f32 %v6375_v51, %v2002_v34  ;;  %v2514_v39 = vpop.f32.mrb[123].mxu1 }
 0x1da   : > { %v4783_v40 = vpack.c.bf16 %v2664_v30, %v2664_v30  ;;  %v2790_v41 = vmax.f32 %v2512_v31, 0.0  ;;  %v2665_v42 = vmax.f32 %v2011_v32, 0.0  ;;  %v2515_v43 = vadd.f32 %v6375_v51, %v2514_v39 }
 0x1db   : > { %v4911_v44 = vpack.c.bf16 %v2792_v35, %v2792_v35  ;;  %v4781_v45 = vpack.c.bf16 %v2662_v36, %v2662_v36  ;;  %v2793_v46 = vmax.f32 %v2523_v37, 0.0  ;;  %v2663_v47 = vmax.f32 %v2003_v38, 0.0 }
 0x1dc   : > { %3945 = vst.msk [vmem:[%s5744_s27 + $0x1e8] sm:$0xf] %vm3822_vm3, %v4783_v40  ;;  %v4909_v48 = vpack.c.bf16 %v2790_v41, %v2790_v41  ;;  %v4784_v49 = vpack.c.bf16 %v2665_v42, %v2665_v42  ;;  %v2791_v50 = vmax.f32 %v2515_v43, 0.0 }
 0x1dd   : > { %4073 = vst.msk [vmem:[%s5744_s27 + $0x3e8] sm:$0xf] %vm3822_vm3, %v4911_v44  ;;  %3943 = vst.msk [vmem:[%s5744_s27 + $0x1e0] sm:$0xf] %vm3822_vm3, %v4781_v45  ;;  %v4912_v13 = vpack.c.bf16 %v2793_v46, %v2793_v46  ;;  %v4782_v53 = vpack.c.bf16 %v2663_v47, %v2663_v47  ;;  %v5177_v54 = vpop.f32.mrb[124].mxu0 }
 0x1de   : > { %4071 = vst.msk [vmem:[%s5744_s27 + $0x3e0] sm:$0xf] %vm3822_vm3, %v4909_v48  ;;  %3946 = vst.msk [vmem:[%s5744_s27 + $0x1ec] sm:$0xf] %vm3822_vm3, %v4784_v49  ;;  %v4910_v55 = vpack.c.bf16 %v2791_v50, %v2791_v50  ;;  %v2024_v56 = vadd.f32 %v6375_v51, %v5177_v54  ;;  %v5305_v57 = vpop.f32.mrb[124].mxu1  ;;  %v2015_v58 = vpop.f32.mrb[125].mxu0 }
 0x1df   : > { %4074 = vst.msk [vmem:[%s5744_s27 + $0x3ec] sm:$0xf] %vm3822_vm3, %v4912_v13  ;;  %3944 = vst.msk [vmem:[%s5744_s27 + $0x1e4] sm:$0xf] %vm3822_vm3, %v4782_v53  ;;  %v2536_v59 = vadd.f32 %v6375_v51, %v5305_v57  ;;  %v2016_v60 = vadd.f32 %v6375_v51, %v2015_v58  ;;  %v2527_v61 = vpop.f32.mrb[125].mxu1  ;;  %v5178_v62 = vpop.f32.mrb[126].mxu0 }
 0x1e0   : > { %4072 = vst.msk [vmem:[%s5744_s27 + $0x3e4] sm:$0xf] %vm3822_vm3, %v4910_v55  ;;  %v2668_v63 = vmax.f32 %v2024_v56, 0.0  ;;  %v2528_v0 = vadd.f32 %v6375_v51, %v2527_v61  ;;  %v2027_v1 = vadd.f32 %v6375_v51, %v5178_v62  ;;  %v5306_v2 = vpop.f32.mrb[126].mxu1  ;;  %v2018_v3 = vpop.f32.mrb[127].mxu0 }
 0x1e1   : > { %v2796_v4 = vmax.f32 %v2536_v59, 0.0  ;;  %v2666_v5 = vmax.f32 %v2016_v60, 0.0  ;;  %v2539_v6 = vadd.f32 %v6375_v51, %v5306_v2  ;;  %v2019_v7 = vadd.f32 %v6375_v51, %v2018_v3  ;;  %v2530_v8 = vpop.f32.mrb[127].mxu1 }
 0x1e2   : > { %v4787_v9 = vpack.c.bf16 %v2668_v63, %v2668_v63  ;;  %v2794_v10 = vmax.f32 %v2528_v0, 0.0  ;;  %v2669_v11 = vmax.f32 %v2027_v1, 0.0  ;;  %v2531_v12 = vadd.f32 %v6375_v51, %v2530_v8 }
 0x1e3   : > { %v4915_v52 = vpack.c.bf16 %v2796_v4, %v2796_v4  ;;  %v4785_v14 = vpack.c.bf16 %v2666_v5, %v2666_v5  ;;  %v2797_v15 = vmax.f32 %v2539_v6, 0.0  ;;  %v2667_v16 = vmax.f32 %v2019_v7, 0.0 }
 0x1e4   : > { %3949 = vst.msk [vmem:[%s5744_s27 + $0x1f8] sm:$0xf] %vm3822_vm3, %v4787_v9  ;;  %v4913_v17 = vpack.c.bf16 %v2794_v10, %v2794_v10  ;;  %v4788_v18 = vpack.c.bf16 %v2669_v11, %v2669_v11  ;;  %v2795_v19 = vmax.f32 %v2531_v12, 0.0 }
 0x1e5   : > { %4077 = vst.msk [vmem:[%s5744_s27 + $0x3f8] sm:$0xf] %vm3822_vm3, %v4915_v52  ;;  %3947 = vst.msk [vmem:[%s5744_s27 + $0x1f0] sm:$0xf] %vm3822_vm3, %v4785_v14  ;;  %v4916_v20 = vpack.c.bf16 %v2797_v15, %v2797_v15  ;;  %v4786_v21 = vpack.c.bf16 %v2667_v16, %v2667_v16 }
 0x1e6   : > { %4075 = vst.msk [vmem:[%s5744_s27 + $0x3f0] sm:$0xf] %vm3822_vm3, %v4913_v17  ;;  %3950 = vst.msk [vmem:[%s5744_s27 + $0x1fc] sm:$0xf] %vm3822_vm3, %v4788_v18  ;;  %v4914_v51 = vpack.c.bf16 %v2795_v19, %v2795_v19 }
 0x1e7   : > { %4078 = vst.msk [vmem:[%s5744_s27 + $0x3fc] sm:$0xf] %vm3822_vm3, %v4916_v20  ;;  %3948 = vst.msk [vmem:[%s5744_s27 + $0x1f4] sm:$0xf] %vm3822_vm3, %v4786_v21 }
 0x1e8   : > { %4076 = vst.msk [vmem:[%s5744_s27 + $0x3f4] sm:$0xf] %vm3822_vm3, %v4914_v51 }
 0x1e9 PF: > { %s13_s12 = sadd.s32 1, %s5458_s12  }
 0x1ea   : > { %p10_p4 = scmp.ge.s32.totalorder %s13_s12, 6  }
 0x1ec   :  { %12 = sbr.rel (!%p10_p4) target bundleno = 1 (0x1), region = 62 }

// kernel: custom_model_forward.5
= control target key start
LH: loop header
LB: loop body
LE: loop exit
PB: predicated region body
PF: predicated region fallthrough
CT: control target
= control target key end

     0   :  { %s4739_s12 = smov 0   ;;  %s5815_s0 = inlined_call_operand.vmem [shape: bf16[2048,288], index: 0, kind: input, shape index: {}]   ;;  %s5816_s1 = inlined_call_operand.vmem [shape: bf16[288,64], index: 1, kind: input, shape index: {}]   ;;  %s5817_s2 = inlined_call_operand.vmem [shape: f32[1,64], index: 2, kind: input, shape index: {}]   ;;  %s5818_s3 = inlined_call_operand.vmem [shape: bf16[2048,64], index: 3, kind: output, shape index: {}]  }
   0x1 LB: > { %s3653_s13 = sadd.s32 4294967295, %s4716_s12   ;;  %p3657_p0 = scmp.ge.s32.totalorder %s4716_s12, 1  ;;  %s4716_s12 = sphi %s4739_s12, %s13_s12  }
   0x2   : > { %p139_p1 = scmp.lt.s32.totalorder %s4716_s12, 3 }
   0x4   : > { %p140_p2 = pnand %p3657_p0, %p139_p1 }
   0x6   : > { %143 = sbr.rel (%p140_p2) target bundleno = 677 (0x2a5), region = 32 }
   0xd   : > { %v4435_v0 = vld [vmem:[%s5816_s1] sm:$0xff]   ;;  %v4718_v1 = vmov 0   ;;  %s3658_s16 = sshll.u32 %s3653_s13, 7  ;;  %v4436_v2 = vld [vmem:[%s5816_s1 + $0x8] sm:$0xff]   ;;  %v4437_v3 = vld [vmem:[%s5816_s1 + $0x10] sm:$0xff]   ;;  %vm1545_vm0 = vcmask 261120  }
   0xe   : > { %1738 = vmatprep.subr.bf16.mxu0 %v4718_v1  ;;  %4393 = vmatprep.subr.bf16.mxu1 %v4718_v1  ;;  %p165_p3 = scmp.lt.s32.totalorder %s3658_s16, 255  ;;  %v4438_v4 = vld [vmem:[%s5816_s1 + $0x18] sm:$0xff]   ;;  %v4439_v5 = vld [vmem:[%s5816_s1 + $0x20] sm:$0xff]   ;;  %v4440_v7 = vld [vmem:[%s5816_s1 + $0x28] sm:$0xff]   ;;  %vm3468_vm1 = vcmask 519168  }
   0xf   : > { %1739 = vmatpush1.bf16.msra.mxu0 %v4435_v0  ;;  %4409 = vmatpush1.bf16.msra.mxu1 %v4435_v0  ;;  %v4441_v9 = vld [vmem:[%s5816_s1 + $0x30] sm:$0xff]   ;;  %v4442_v10 = vld [vmem:[%s5816_s1 + $0x38] sm:$0xff]   ;;  %v4443_v11 = vld [vmem:[%s5816_s1 + $0x40] sm:$0xff]  }
  0x10   : > { %1740 = vmatprep.subr.bf16.mxu0 %v4718_v1  ;;  %4394 = vmatprep.subr.bf16.mxu1 %v4718_v1  ;;  %s5858_s16 = smov (!%p165_p3, %s3658_s16), 255  ;;  %v4444_v12 = vld [vmem:[%s5816_s1 + $0x48] sm:$0xff]   ;;  %v4445_v13 = vld [vmem:[%s5816_s1 + $0x50] sm:$0xff]   ;;  %v4446_v14 = vld [vmem:[%s5816_s1 + $0x58] sm:$0xff]  }
  0x11   : > { %s4425_s23 = smul.u32 12, %s5858_s16  ;;  %v4447_v15 = vld [vmem:[%s5816_s1 + $0x60] sm:$0xff]   ;;  %v4448_v16 = vld [vmem:[%s5816_s1 + $0x68] sm:$0xff]   ;;  %v4449_v17 = vld [vmem:[%s5816_s1 + $0x70] sm:$0xff]   ;;  %s3661_s6 = sshll.u32 %s5858_s16, 2 }
  0x12   : > { %v4450_v18 = vld [vmem:[%s5816_s1 + $0x78] sm:$0xff]   ;;  %v4457_v19 = vld [vmem:[%s5816_s1 + $0x80] sm:$0xff]   ;;  %v4506_v24 = vld [vmem:[%s5816_s1 + $0x88] sm:$0xff]   ;;  %s5223_s8 = scalar_lea.vmem %s5818_s3, %s3661_s6 }
  0x13   : > { %1741 = vmatpush1.bf16.msra.mxu0 %v4436_v2  ;;  %4410 = vmatpush1.bf16.msra.mxu1 %v4436_v2  ;;  %s4776_s28 = scalar_lea.vmem %s5815_s0, %s4425_s23 }
  0x14   : > { %1742 = vmatprep.subr.bf16.mxu0 %v4718_v1  ;;  %4395 = vmatprep.subr.bf16.mxu1 %v4718_v1  ;;  %v4453_v6 = vld [vmem:[%s4776_s28 + $0x4] ss:$12 sps:$4 sm:$0xff]   ;;  %v4451_v20 = vld [vmem:[%s4776_s28] ss:$12 sps:$4 sm:$0xff]   ;;  %v4458_v22 = vld [vmem:[%s4776_s28 + $0x1c] ss:$12 sps:$4 sm:$0xff]  }
  0x15   : > { %v4456_v8 = vld [vmem:[%s4776_s28 + $0x484] ss:$12 sps:$4 sm:$0xff]   ;;  %1770 = vmatprep.mubr.bf16.mxu0 %v4453_v6  ;;  %v4454_v21 = vld [vmem:[%s4776_s28 + $0x480] ss:$12 sps:$4 sm:$0xff]   ;;  %v4460_v23 = vld [vmem:[%s4776_s28 + $0x49c] ss:$12 sps:$4 sm:$0xff]  }
  0x16   : > { %2154 = vmatprep.mubr.bf16.mxu1 %v4456_v8  ;;  %v4462_v25 = vld [vmem:[%s4776_s28 + $0x18] ss:$12 sps:$4 sm:$0xff]   ;;  %v4464_v27 = vld [vmem:[%s4776_s28 + $0x34] ss:$12 sps:$4 sm:$0xff]   ;;  %v4468_v29 = vld [vmem:[%s4776_s28 + $0x30] ss:$12 sps:$4 sm:$0xff]  }
  0x17   : > { %1743 = vmatpush1.bf16.msra.mxu0 %v4437_v3  ;;  %4411 = vmatpush1.bf16.msra.mxu1 %v4437_v3  ;;  %v4463_v26 = vld [vmem:[%s4776_s28 + $0x498] ss:$12 sps:$4 sm:$0xff]   ;;  %v4466_v28 = vld [vmem:[%s4776_s28 + $0x4b4] ss:$12 sps:$4 sm:$0xff]   ;;  %v4469_v30 = vld [vmem:[%s4776_s28 + $0x4b0] ss:$12 sps:$4 sm:$0xff]  }
  0x18   : > { %1744 = vmatprep.subr.bf16.mxu0 %v4718_v1  ;;  %4396 = vmatprep.subr.bf16.mxu1 %v4718_v1  ;;  %v4470_v31 = vld [vmem:[%s4776_s28 + $0x4c] ss:$12 sps:$4 sm:$0xff]   ;;  %v4474_v33 = vld [vmem:[%s4776_s28 + $0x48] ss:$12 sps:$4 sm:$0xff]   ;;  %v4476_v35 = vld [vmem:[%s4776_s28 + $0x64] ss:$12 sps:$4 sm:$0xff]  }
  0x19   : > { %v4472_v32 = vld [vmem:[%s4776_s28 + $0x4cc] ss:$12 sps:$4 sm:$0xff]   ;;  %v4475_v34 = vld [vmem:[%s4776_s28 + $0x4c8] ss:$12 sps:$4 sm:$0xff]   ;;  %v4478_v36 = vld [vmem:[%s4776_s28 + $0x4e4] ss:$12 sps:$4 sm:$0xff]  }
  0x1a   : > { %v4480_v37 = vld [vmem:[%s4776_s28 + $0x60] ss:$12 sps:$4 sm:$0xff]   ;;  %v4482_v39 = vld [vmem:[%s4776_s28 + $0x7c] ss:$12 sps:$4 sm:$0xff]   ;;  %v4486_v41 = vld [vmem:[%s4776_s28 + $0x78] ss:$12 sps:$4 sm:$0xff]  }
  0x1b   : > { %1745 = vmatpush1.bf16.msra.mxu0 %v4438_v4  ;;  %4412 = vmatpush1.bf16.msra.mxu1 %v4438_v4  ;;  %v4481_v38 = vld [vmem:[%s4776_s28 + $0x4e0] ss:$12 sps:$4 sm:$0xff]   ;;  %v4484_v40 = vld [vmem:[%s4776_s28 + $0x4fc] ss:$12 sps:$4 sm:$0xff]   ;;  %v4487_v42 = vld [vmem:[%s4776_s28 + $0x4f8] ss:$12 sps:$4 sm:$0xff]  }
  0x1c   : > { %1746 = vmatprep.subr.bf16.mxu0 %v4718_v1  ;;  %4397 = vmatprep.subr.bf16.mxu1 %v4718_v1  ;;  %v4488_v43 = vld [vmem:[%s4776_s28 + $0x94] ss:$12 sps:$4 sm:$0xff]   ;;  %v4492_v45 = vld [vmem:[%s4776_s28 + $0x90] ss:$12 sps:$4 sm:$0xff]   ;;  %v4494_v47 = vld [vmem:[%s4776_s28 + $0xac] ss:$12 sps:$4 sm:$0xff]  }
  0x1d   : > { %v4490_v44 = vld [vmem:[%s4776_s28 + $0x514] ss:$12 sps:$4 sm:$0xff]   ;;  %v4493_v46 = vld [vmem:[%s4776_s28 + $0x510] ss:$12 sps:$4 sm:$0xff]   ;;  %v4496_v48 = vld [vmem:[%s4776_s28 + $0x52c] ss:$12 sps:$4 sm:$0xff]  }
  0x1e   : > { %v4498_v49 = vld [vmem:[%s4776_s28 + $0xa8] ss:$12 sps:$4 sm:$0xff]   ;;  %v4500_v51 = vld [vmem:[%s4776_s28 + $0xc4] ss:$12 sps:$4 sm:$0xff]   ;;  %v4504_v53 = vld [vmem:[%s4776_s28 + $0xc0] ss:$12 sps:$4 sm:$0xff]  }
  0x1f   : > { %1747 = vmatpush1.bf16.msra.mxu0 %v4439_v5  ;;  %4413 = vmatpush1.bf16.msra.mxu1 %v4439_v5  ;;  %v4499_v50 = vld [vmem:[%s4776_s28 + $0x528] ss:$12 sps:$4 sm:$0xff]   ;;  %v4502_v52 = vld [vmem:[%s4776_s28 + $0x544] ss:$12 sps:$4 sm:$0xff]   ;;  %v4505_v54 = vld [vmem:[%s4776_s28 + $0x540] ss:$12 sps:$4 sm:$0xff]  }
  0x20   : > { %1748 = vmatprep.subr.bf16.mxu0 %v4718_v1  ;;  %4398 = vmatprep.subr.bf16.mxu1 %v4718_v1  ;;  %v4507_v55 = vld [vmem:[%s4776_s28 + $0xdc] ss:$12 sps:$4 sm:$0xff]   ;;  %v4511_v57 = vld [vmem:[%s4776_s28 + $0xd8] ss:$12 sps:$4 sm:$0xff]   ;;  %v4513_v59 = vld [vmem:[%s4776_s28 + $0xf4] ss:$12 sps:$4 sm:$0xff]  }
  0x21   : > { %v4509_v56 = vld [vmem:[%s4776_s28 + $0x55c] ss:$12 sps:$4 sm:$0xff]   ;;  %v4512_v58 = vld [vmem:[%s4776_s28 + $0x558] ss:$12 sps:$4 sm:$0xff]   ;;  %v4515_v60 = vld [vmem:[%s4776_s28 + $0x574] ss:$12 sps:$4 sm:$0xff]  }
  0x22   : > { %v4517_v61 = vld [vmem:[%s4776_s28 + $0xf0] ss:$12 sps:$4 sm:$0xff]   ;;  %v4519_v63 = vld [vmem:[%s4776_s28 + $0x10c] ss:$12 sps:$4 sm:$0xff]   ;;  %v4524_v2 = vld [vmem:[%s4776_s28 + $0x588] ss:$12 sps:$4 sm:$0xff]  }
  0x23   : > { %1749 = vmatpush1.bf16.msra.mxu0 %v4440_v7  ;;  %4414 = vmatpush1.bf16.msra.mxu1 %v4440_v7  ;;  %v4518_v62 = vld [vmem:[%s4776_s28 + $0x570] ss:$12 sps:$4 sm:$0xff]   ;;  %v4521_v0 = vld [vmem:[%s4776_s28 + $0x58c] ss:$12 sps:$4 sm:$0xff]  }
  0x24   : > { %1750 = vmatprep.subr.bf16.mxu0 %v4718_v1  ;;  %4399 = vmatprep.subr.bf16.mxu1 %v4718_v1  ;;  %v4525_v3 = vld [vmem:[%s4776_s28 + $0x124] ss:$12 sps:$4 sm:$0xff]   ;;  %v4529_v5 = vld [vmem:[%s4776_s28 + $0x120] ss:$12 sps:$4 sm:$0xff]   ;;  %v4531_v7 = vld [vmem:[%s4776_s28 + $0x13c] ss:$12 sps:$4 sm:$0xff]  }
  0x25   : > { %v4527_v4 = vld [vmem:[%s4776_s28 + $0x5a4] ss:$12 sps:$4 sm:$0xff]   ;;  %v4530_v6 = vld [vmem:[%s4776_s28 + $0x5a0] ss:$12 sps:$4 sm:$0xff]   ;;  %v4533_v8 = vld [vmem:[%s4776_s28 + $0x5bc] ss:$12 sps:$4 sm:$0xff]  }
  0x27   : > { %1751 = vmatpush1.bf16.msra.mxu0 %v4441_v9  ;;  %4415 = vmatpush1.bf16.msra.mxu1 %v4441_v9  ;;  %v4535_v9 = vld [vmem:[%s4776_s28 + $0x138] ss:$12 sps:$4 sm:$0xff]  }
  0x28   : > { %1752 = vmatprep.subr.bf16.mxu0 %v4718_v1  ;;  %4400 = vmatprep.subr.bf16.mxu1 %v4718_v1 }
  0x2b   : > { %1753 = vmatpush1.bf16.msra.mxu0 %v4442_v10  ;;  %4416 = vmatpush1.bf16.msra.mxu1 %v4442_v10  ;;  %v4536_v10 = vld [vmem:[%s4776_s28 + $0x5b8] ss:$12 sps:$4 sm:$0xff]  }
  0x2c   : > { %1754 = vmatprep.subr.bf16.mxu0 %v4718_v1  ;;  %4401 = vmatprep.subr.bf16.mxu1 %v4718_v1 }
  0x2f   : > { %1755 = vmatpush1.bf16.msra.mxu0 %v4443_v11  ;;  %4417 = vmatpush1.bf16.msra.mxu1 %v4443_v11  ;;  %v4537_v11 = vld [vmem:[%s4776_s28 + $0x154] ss:$12 sps:$4 sm:$0xff]  }
  0x30   : > { %1756 = vmatprep.subr.bf16.mxu0 %v4718_v1  ;;  %4402 = vmatprep.subr.bf16.mxu1 %v4718_v1 }
  0x33   : > { %1757 = vmatpush1.bf16.msra.mxu0 %v4444_v12  ;;  %4418 = vmatpush1.bf16.msra.mxu1 %v4444_v12  ;;  %v4539_v12 = vld [vmem:[%s4776_s28 + $0x5d4] ss:$12 sps:$4 sm:$0xff]  }
  0x34   : > { %1758 = vmatprep.subr.bf16.mxu0 %v4718_v1  ;;  %4403 = vmatprep.subr.bf16.mxu1 %v4718_v1 }
  0x37   : > { %1759 = vmatpush1.bf16.msra.mxu0 %v4445_v13  ;;  %4419 = vmatpush1.bf16.msra.mxu1 %v4445_v13  ;;  %v4541_v13 = vld [vmem:[%s4776_s28 + $0x150] ss:$12 sps:$4 sm:$0xff]  }
  0x38   : > { %1760 = vmatprep.subr.bf16.mxu0 %v4718_v1  ;;  %4404 = vmatprep.subr.bf16.mxu1 %v4718_v1 }
  0x3b   : > { %1761 = vmatpush1.bf16.msra.mxu0 %v4446_v14  ;;  %4420 = vmatpush1.bf16.msra.mxu1 %v4446_v14  ;;  %v4542_v14 = vld [vmem:[%s4776_s28 + $0x5d0] ss:$12 sps:$4 sm:$0xff]  }
  0x3c   : > { %1762 = vmatprep.subr.bf16.mxu0 %v4718_v1  ;;  %4405 = vmatprep.subr.bf16.mxu1 %v4718_v1 }
  0x3f   : > { %1763 = vmatpush1.bf16.msra.mxu0 %v4447_v15  ;;  %4421 = vmatpush1.bf16.msra.mxu1 %v4447_v15  ;;  %v4543_v15 = vld [vmem:[%s4776_s28 + $0x16c] ss:$12 sps:$4 sm:$0xff]  }
  0x40   : > { %1764 = vmatprep.subr.bf16.mxu0 %v4718_v1  ;;  %4406 = vmatprep.subr.bf16.mxu1 %v4718_v1 }
  0x43   : > { %1765 = vmatpush1.bf16.msra.mxu0 %v4448_v16  ;;  %4422 = vmatpush1.bf16.msra.mxu1 %v4448_v16  ;;  %v4545_v16 = vld [vmem:[%s4776_s28 + $0x5ec] ss:$12 sps:$4 sm:$0xff]  }
  0x44   : > { %1766 = vmatprep.subr.bf16.mxu0 %v4718_v1  ;;  %4407 = vmatprep.subr.bf16.mxu1 %v4718_v1 }
  0x47   : > { %1767 = vmatpush1.bf16.msra.mxu0 %v4449_v17  ;;  %4423 = vmatpush1.bf16.msra.mxu1 %v4449_v17  ;;  %v4547_v17 = vld [vmem:[%s4776_s28 + $0x168] ss:$12 sps:$4 sm:$0xff]  }
  0x48   : > { %1768 = vmatprep.subr.bf16.mxu0 %v4718_v1  ;;  %4408 = vmatprep.subr.bf16.mxu1 %v4718_v1  ;;  %v4523_v1 = vld [vmem:[%s4776_s28 + $0x108] ss:$12 sps:$4 sm:$0xff]  }
  0x4b   : > { %1769 = vmatpush1.bf16.msra.mxu0 %v4450_v18  ;;  %4424 = vmatpush1.bf16.msra.mxu1 %v4450_v18  ;;  %v4548_v18 = vld [vmem:[%s4776_s28 + $0x5e8] ss:$12 sps:$4 sm:$0xff]  }
  0x4c   : > { %4261 = vmatprep.subr.bf16.mxu1 %v4457_v19 }
  0x4e   : > { %1771 = vmatmul.mubr.bf16.vlgmr.msra.gmra.mrb[0].mxu0 %v4451_v20  ;;  %2155 = vmatmul.mubr.bf16.vlgmr.msra.gmra.mrb[0].mxu1 %v4454_v21  ;;  %v4551_v20 = vld [vmem:[%s4776_s28 + $0x8] ss:$12 sps:$4 sm:$0xff]   ;;  %v4552_v21 = vld [vmem:[%s4776_s28 + $0x180] ss:$12 sps:$4 sm:$0xff]  }
  0x4f   : > { %4262 = vmatpush3.bf16.msra.mxu1 %v4457_v19  ;;  %1778 = vmatprep.mubr.bf16.mxu0 %v4458_v22  ;;  %v4549_v19 = vld [vmem:[%s4776_s28 + $0x184] ss:$12 sps:$4 sm:$0xff]   ;;  %v4553_v22 = vld [vmem:[%s4776_s28 + $0x20] ss:$12 sps:$4 sm:$0xff]  }
  0x50   : > { %2162 = vmatprep.mubr.bf16.mxu1 %v4460_v23  ;;  %4263 = vmatprep.subr.bf16.mxu1 %v4506_v24  ;;  %v4554_v23 = vld [vmem:[%s4776_s28 + $0x19c] ss:$12 sps:$4 sm:$0xff]  }
  0x53   : > { %4264 = vmatpush3.bf16.msra.mxu1 %v4506_v24  ;;  %v4556_v24 = vld [vmem:[%s4776_s28 + $0x38] ss:$12 sps:$4 sm:$0xff]  }
  0x56   : > { %1779 = vmatmul.mubr.bf16.gmra.mrb[4].mxu0 %v4462_v25  ;;  %2163 = vmatmul.mubr.bf16.gmra.mrb[4].mxu1 %v4463_v26  ;;  %v4557_v25 = vld [vmem:[%s4776_s28 + $0x198] ss:$12 sps:$4 sm:$0xff]   ;;  %v4558_v26 = vld [vmem:[%s4776_s28 + $0x50] ss:$12 sps:$4 sm:$0xff]  }
  0x57   : > { %1786 = vmatprep.mubr.bf16.mxu0 %v4464_v27  ;;  %2170 = vmatprep.mubr.bf16.mxu1 %v4466_v28  ;;  %v4559_v27 = vld [vmem:[%s4776_s28 + $0x1b4] ss:$12 sps:$4 sm:$0xff]  }
  0x58   : > { %v4561_v28 = vld [vmem:[%s4776_s28 + $0x68] ss:$12 sps:$4 sm:$0xff]  }
  0x5e   : > { %1787 = vmatmul.mubr.bf16.gmra.mrb[8].mxu0 %v4468_v29  ;;  %2171 = vmatmul.mubr.bf16.gmra.mrb[8].mxu1 %v4469_v30  ;;  %v4562_v29 = vld [vmem:[%s4776_s28 + $0x1b0] ss:$12 sps:$4 sm:$0xff]   ;;  %v4563_v30 = vld [vmem:[%s4776_s28 + $0x80] ss:$12 sps:$4 sm:$0xff]  }
  0x5f   : > { %1794 = vmatprep.mubr.bf16.mxu0 %v4470_v31  ;;  %2178 = vmatprep.mubr.bf16.mxu1 %v4472_v32  ;;  %v4564_v31 = vld [vmem:[%s4776_s28 + $0x1cc] ss:$12 sps:$4 sm:$0xff]  }
  0x60   : > { %v4566_v32 = vld [vmem:[%s4776_s28 + $0x98] ss:$12 sps:$4 sm:$0xff]  }
  0x66   : > { %1795 = vmatmul.mubr.bf16.gmra.mrb[12].mxu0 %v4474_v33  ;;  %2179 = vmatmul.mubr.bf16.gmra.mrb[12].mxu1 %v4475_v34  ;;  %v4567_v33 = vld [vmem:[%s4776_s28 + $0x1c8] ss:$12 sps:$4 sm:$0xff]   ;;  %v4568_v34 = vld [vmem:[%s4776_s28 + $0xb0] ss:$12 sps:$4 sm:$0xff]  }
  0x67   : > { %1802 = vmatprep.mubr.bf16.mxu0 %v4476_v35  ;;  %2186 = vmatprep.mubr.bf16.mxu1 %v4478_v36  ;;  %v4569_v35 = vld [vmem:[%s4776_s28 + $0x1e4] ss:$12 sps:$4 sm:$0xff]   ;;  %v4571_v36 = vld [vmem:[%s4776_s28 + $0xc8] ss:$12 sps:$4 sm:$0xff]  }
  0x6e   : > { %1803 = vmatmul.mubr.bf16.gmra.mrb[16].mxu0 %v4480_v37  ;;  %2187 = vmatmul.mubr.bf16.gmra.mrb[16].mxu1 %v4481_v38  ;;  %v4572_v37 = vld [vmem:[%s4776_s28 + $0x1e0] ss:$12 sps:$4 sm:$0xff]  }
  0x6f   : > { %1810 = vmatprep.mubr.bf16.mxu0 %v4482_v39  ;;  %2194 = vmatprep.mubr.bf16.mxu1 %v4484_v40  ;;  %v4573_v38 = vld [vmem:[%s4776_s28 + $0xe0] ss:$12 sps:$4 sm:$0xff]   ;;  %v4574_v39 = vld [vmem:[%s4776_s28 + $0x1fc] ss:$12 sps:$4 sm:$0xff]   ;;  %v4576_v40 = vld [vmem:[%s4776_s28 + $0xf8] ss:$12 sps:$4 sm:$0xff]  }
  0x76   : > { %1811 = vmatmul.mubr.bf16.gmra.mrb[20].mxu0 %v4486_v41  ;;  %2195 = vmatmul.mubr.bf16.gmra.mrb[20].mxu1 %v4487_v42  ;;  %v4577_v41 = vld [vmem:[%s4776_s28 + $0x1f8] ss:$12 sps:$4 sm:$0xff]   ;;  %v4578_v42 = vld [vmem:[%s4776_s28 + $0x110] ss:$12 sps:$4 sm:$0xff]  }
  0x77   : > { %1818 = vmatprep.mubr.bf16.mxu0 %v4488_v43  ;;  %2202 = vmatprep.mubr.bf16.mxu1 %v4490_v44  ;;  %v4579_v43 = vld [vmem:[%s4776_s28 + $0x214] ss:$12 sps:$4 sm:$0xff]  }
  0x78   : > { %v4581_v44 = vld [vmem:[%s4776_s28 + $0x128] ss:$12 sps:$4 sm:$0xff]  }
  0x7e   : > { %1819 = vmatmul.mubr.bf16.gmra.mrb[24].mxu0 %v4492_v45  ;;  %2203 = vmatmul.mubr.bf16.gmra.mrb[24].mxu1 %v4493_v46  ;;  %v4582_v45 = vld [vmem:[%s4776_s28 + $0x210] ss:$12 sps:$4 sm:$0xff]   ;;  %v4583_v46 = vld [vmem:[%s4776_s28 + $0x140] ss:$12 sps:$4 sm:$0xff]  }
  0x7f   : > { %1826 = vmatprep.mubr.bf16.mxu0 %v4494_v47  ;;  %2210 = vmatprep.mubr.bf16.mxu1 %v4496_v48  ;;  %v4584_v47 = vld [vmem:[%s4776_s28 + $0x22c] ss:$12 sps:$4 sm:$0xff]  }
  0x80   : > { %v4586_v48 = vld [vmem:[%s4776_s28 + $0x158] ss:$12 sps:$4 sm:$0xff]  }
  0x86   : > { %1827 = vmatmul.mubr.bf16.gmra.mrb[28].mxu0 %v4498_v49  ;;  %2211 = vmatmul.mubr.bf16.gmra.mrb[28].mxu1 %v4499_v50  ;;  %v4587_v49 = vld [vmem:[%s4776_s28 + $0x228] ss:$12 sps:$4 sm:$0xff]   ;;  %v4588_v50 = vld [vmem:[%s4776_s28 + $0x170] ss:$12 sps:$4 sm:$0xff]  }
  0x87   : > { %1834 = vmatprep.mubr.bf16.mxu0 %v4500_v51  ;;  %2218 = vmatprep.mubr.bf16.mxu1 %v4502_v52  ;;  %v4589_v51 = vld [vmem:[%s4776_s28 + $0x244] ss:$12 sps:$4 sm:$0xff]   ;;  %v4591_v52 = vld [vmem:[%s4776_s28 + $0x188] ss:$12 sps:$4 sm:$0xff]  }
  0x8e   : > { %1835 = vmatmul.mubr.bf16.gmra.mrb[32].mxu0 %v4504_v53  ;;  %2219 = vmatmul.mubr.bf16.gmra.mrb[32].mxu1 %v4505_v54  ;;  %v4592_v53 = vld [vmem:[%s4776_s28 + $0x240] ss:$12 sps:$4 sm:$0xff]  }
  0x8f   : > { %1842 = vmatprep.mubr.bf16.mxu0 %v4507_v55  ;;  %2226 = vmatprep.mubr.bf16.mxu1 %v4509_v56  ;;  %v4593_v54 = vld [vmem:[%s4776_s28 + $0x1a0] ss:$12 sps:$4 sm:$0xff]   ;;  %v4594_v55 = vld [vmem:[%s4776_s28 + $0x25c] ss:$12 sps:$4 sm:$0xff]   ;;  %v4596_v56 = vld [vmem:[%s4776_s28 + $0x1b8] ss:$12 sps:$4 sm:$0xff]  }
  0x96   : > { %1843 = vmatmul.mubr.bf16.gmra.mrb[36].mxu0 %v4511_v57  ;;  %2227 = vmatmul.mubr.bf16.gmra.mrb[36].mxu1 %v4512_v58  ;;  %v4597_v57 = vld [vmem:[%s4776_s28 + $0x258] ss:$12 sps:$4 sm:$0xff]   ;;  %v4598_v58 = vld [vmem:[%s4776_s28 + $0x1d0] ss:$12 sps:$4 sm:$0xff]  }
  0x97   : > { %1850 = vmatprep.mubr.bf16.mxu0 %v4513_v59  ;;  %2234 = vmatprep.mubr.bf16.mxu1 %v4515_v60  ;;  %v4599_v59 = vld [vmem:[%s4776_s28 + $0x274] ss:$12 sps:$4 sm:$0xff]  }
  0x98   : > { %v4601_v60 = vld [vmem:[%s4776_s28 + $0x1e8] ss:$12 sps:$4 sm:$0xff]  }
  0x9e   : > { %1851 = vmatmul.mubr.bf16.gmra.mrb[40].mxu0 %v4517_v61  ;;  %2235 = vmatmul.mubr.bf16.gmra.mrb[40].mxu1 %v4518_v62  ;;  %v4602_v61 = vld [vmem:[%s4776_s28 + $0x270] ss:$12 sps:$4 sm:$0xff]   ;;  %v4603_v62 = vld [vmem:[%s4776_s28 + $0x200] ss:$12 sps:$4 sm:$0xff]  }
  0x9f   : > { %1858 = vmatprep.mubr.bf16.mxu0 %v4519_v63  ;;  %2242 = vmatprep.mubr.bf16.mxu1 %v4521_v0  ;;  %v4604_v63 = vld [vmem:[%s4776_s28 + $0x28c] ss:$12 sps:$4 sm:$0xff]  }
  0xa0   : > { %v4606_v0 = vld [vmem:[%s4776_s28 + $0x218] ss:$12 sps:$4 sm:$0xff]  }
  0xa6   : > { %1859 = vmatmul.mubr.bf16.gmra.mrb[44].mxu0 %v4523_v1  ;;  %2243 = vmatmul.mubr.bf16.gmra.mrb[44].mxu1 %v4524_v2 }
  0xa7   : > { %1866 = vmatprep.mubr.bf16.mxu0 %v4525_v3  ;;  %2250 = vmatprep.mubr.bf16.mxu1 %v4527_v4 }
  0xae   : > { %1867 = vmatmul.mubr.bf16.gmra.mrb[48].mxu0 %v4529_v5  ;;  %2251 = vmatmul.mubr.bf16.gmra.mrb[48].mxu1 %v4530_v6  ;;  %v4607_v5 = vld [vmem:[%s4776_s28 + $0x288] ss:$12 sps:$4 sm:$0xff]   ;;  %v4608_v6 = vld [vmem:[%s4776_s28 + $0x230] ss:$12 sps:$4 sm:$0xff]  }
  0xaf   : > { %1874 = vmatprep.mubr.bf16.mxu0 %v4531_v7  ;;  %2258 = vmatprep.mubr.bf16.mxu1 %v4533_v8 }
  0xb6   : > { %1875 = vmatmul.mubr.bf16.gmra.mrb[52].mxu0 %v4535_v9  ;;  %2259 = vmatmul.mubr.bf16.gmra.mrb[52].mxu1 %v4536_v10  ;;  %v4609_v9 = vld [vmem:[%s4776_s28 + $0x2a4] ss:$12 sps:$4 sm:$0xff]   ;;  %v4611_v10 = vld [vmem:[%s4776_s28 + $0x248] ss:$12 sps:$4 sm:$0xff]  }
  0xb7   : > { %1882 = vmatprep.mubr.bf16.mxu0 %v4537_v11  ;;  %2266 = vmatprep.mubr.bf16.mxu1 %v4539_v12 }
  0xbe   : > { %1883 = vmatmul.mubr.bf16.gmra.mrb[56].mxu0 %v4541_v13  ;;  %2267 = vmatmul.mubr.bf16.gmra.mrb[56].mxu1 %v4542_v14 }
  0xbf   : > { %1890 = vmatprep.mubr.bf16.mxu0 %v4543_v15  ;;  %2274 = vmatprep.mubr.bf16.mxu1 %v4545_v16 }
  0xc6   : > { %1891 = vmatmul.mubr.bf16.gmra.mrb[60].mxu0 %v4547_v17  ;;  %2275 = vmatmul.mubr.bf16.gmra.mrb[60].mxu1 %v4548_v18  ;;  %v4612_v17 = vld [vmem:[%s4776_s28 + $0x2a0] ss:$12 sps:$4 sm:$0xff]  }
  0xc7   : > { %1898 = vmatprep.mubr.bf16.mxu0 %v4549_v19  ;;  %4265 = vmatprep.mubr.msk.bf16.mxu1 %vm1545_vm0, %v4551_v20  ;;  %v4613_v18 = vld [vmem:[%s4776_s28 + $0x260] ss:$12 sps:$4 sm:$0xff]  }
  0xce   : > { %1899 = vmatmul.mubr.bf16.gmra.mrb[64].mxu0 %v4552_v21  ;;  %4266 = vmatmul.mubr.msk.bf16.vlgmr.msra.gmra.mrb[64].mxu1 %vm1545_vm0, %v4553_v22  ;;  %v4614_v21 = vld [vmem:[%s4776_s28 + $0x2bc] ss:$12 sps:$4 sm:$0xff]   ;;  %v4616_v22 = vld [vmem:[%s4776_s28 + $0x278] ss:$12 sps:$4 sm:$0xff]  }
  0xcf   : > { %1906 = vmatprep.mubr.bf16.mxu0 %v4554_v23  ;;  %4269 = vmatprep.mubr.msk.bf16.mxu1 %vm1545_vm0, %v4556_v24 }
  0xd6   : > { %1907 = vmatmul.mubr.bf16.gmra.mrb[68].mxu0 %v4557_v25  ;;  %4270 = vmatmul.mubr.msk.bf16.gmra.mrb[68].mxu1 %vm1545_vm0, %v4558_v26 }
  0xd7   : > { %1914 = vmatprep.mubr.bf16.mxu0 %v4559_v27  ;;  %4273 = vmatprep.mubr.msk.bf16.mxu1 %vm1545_vm0, %v4561_v28 }
  0xde   : > { %1915 = vmatmul.mubr.bf16.gmra.mrb[72].mxu0 %v4562_v29  ;;  %4274 = vmatmul.mubr.msk.bf16.gmra.mrb[72].mxu1 %vm1545_vm0, %v4563_v30  ;;  %v4617_v29 = vld [vmem:[%s4776_s28 + $0x2b8] ss:$12 sps:$4 sm:$0xff]   ;;  %v4618_v30 = vld [vmem:[%s4776_s28 + $0x290] ss:$12 sps:$4 sm:$0xff]  }
  0xdf   : > { %1922 = vmatprep.mubr.bf16.mxu0 %v4564_v31  ;;  %4277 = vmatprep.mubr.msk.bf16.mxu1 %vm1545_vm0, %v4566_v32 }
  0xe6   : > { %1923 = vmatmul.mubr.bf16.gmra.mrb[76].mxu0 %v4567_v33  ;;  %4278 = vmatmul.mubr.msk.bf16.gmra.mrb[76].mxu1 %vm1545_vm0, %v4568_v34  ;;  %v4619_v33 = vld [vmem:[%s4776_s28 + $0x2d4] ss:$12 sps:$4 sm:$0xff]  }
  0xe7   : > { %1930 = vmatprep.mubr.bf16.mxu0 %v4569_v35  ;;  %4281 = vmatprep.mubr.msk.bf16.mxu1 %vm1545_vm0, %v4571_v36  ;;  %v4621_v34 = vld [vmem:[%s4776_s28 + $0x2a8] ss:$12 sps:$4 sm:$0xff]  }
  0xee   : > { %1931 = vmatmul.mubr.bf16.gmra.mrb[80].mxu0 %v4572_v37  ;;  %4282 = vmatmul.mubr.msk.bf16.gmra.mrb[80].mxu1 %vm1545_vm0, %v4573_v38 }
  0xef   : > { %1938 = vmatprep.mubr.bf16.mxu0 %v4574_v39  ;;  %4285 = vmatprep.mubr.msk.bf16.mxu1 %vm1545_vm0, %v4576_v40 }
  0xf6   : > { %1939 = vmatmul.mubr.bf16.gmra.mrb[84].mxu0 %v4577_v41  ;;  %4286 = vmatmul.mubr.msk.bf16.gmra.mrb[84].mxu1 %vm1545_vm0, %v4578_v42  ;;  %v4622_v41 = vld [vmem:[%s4776_s28 + $0x2d0] ss:$12 sps:$4 sm:$0xff]   ;;  %v4623_v42 = vld [vmem:[%s4776_s28 + $0x2c0] ss:$12 sps:$4 sm:$0xff]  }
  0xf7   : > { %1946 = vmatprep.mubr.bf16.mxu0 %v4579_v43  ;;  %4289 = vmatprep.mubr.msk.bf16.mxu1 %vm1545_vm0, %v4581_v44 }
  0xfe   : > { %1947 = vmatmul.mubr.bf16.gmra.mrb[88].mxu0 %v4582_v45  ;;  %4290 = vmatmul.mubr.msk.bf16.gmra.mrb[88].mxu1 %vm1545_vm0, %v4583_v46  ;;  %v4624_v45 = vld [vmem:[%s4776_s28 + $0x2ec] ss:$12 sps:$4 sm:$0xff]  }
  0xff   : > { %1954 = vmatprep.mubr.bf16.mxu0 %v4584_v47  ;;  %4293 = vmatprep.mubr.msk.bf16.mxu1 %vm1545_vm0, %v4586_v48  ;;  %v4626_v46 = vld [vmem:[%s4776_s28 + $0x2d8] ss:$12 sps:$4 sm:$0xff]  }
 0x106   : > { %1955 = vmatmul.mubr.bf16.gmra.mrb[92].mxu0 %v4587_v49  ;;  %4294 = vmatmul.mubr.msk.bf16.gmra.mrb[92].mxu1 %vm1545_vm0, %v4588_v50 }
 0x107   : > { %1962 = vmatprep.mubr.bf16.mxu0 %v4589_v51  ;;  %4297 = vmatprep.mubr.msk.bf16.mxu1 %vm1545_vm0, %v4591_v52 }
 0x10e   : > { %1963 = vmatmul.mubr.bf16.gmra.mrb[96].mxu0 %v4592_v53  ;;  %4298 = vmatmul.mubr.msk.bf16.gmra.mrb[96].mxu1 %vm1545_vm0, %v4593_v54  ;;  %v4627_v53 = vld [vmem:[%s4776_s28 + $0x2e8] ss:$12 sps:$4 sm:$0xff]   ;;  %v4628_v54 = vld [vmem:[%s4776_s28 + $0x2f0] ss:$12 sps:$4 sm:$0xff]  }
 0x10f   : > { %1970 = vmatprep.mubr.bf16.mxu0 %v4594_v55  ;;  %4301 = vmatprep.mubr.msk.bf16.mxu1 %vm1545_vm0, %v4596_v56 }
 0x116   : > { %1971 = vmatmul.mubr.bf16.gmra.mrb[100].mxu0 %v4597_v57  ;;  %4302 = vmatmul.mubr.msk.bf16.gmra.mrb[100].mxu1 %vm1545_vm0, %v4598_v58  ;;  %v4629_v57 = vld [vmem:[%s4776_s28 + $0x304] ss:$12 sps:$4 sm:$0xff]   ;;  %v4631_v58 = vld [vmem:[%s4776_s28 + $0x308] ss:$12 sps:$4 sm:$0xff]  }
 0x117   : > { %1978 = vmatprep.mubr.bf16.mxu0 %v4599_v59  ;;  %4305 = vmatprep.mubr.msk.bf16.mxu1 %vm1545_vm0, %v4601_v60 }
 0x11e   : > { %1979 = vmatmul.mubr.bf16.gmra.mrb[104].mxu0 %v4602_v61  ;;  %4306 = vmatmul.mubr.msk.bf16.gmra.mrb[104].mxu1 %vm1545_vm0, %v4603_v62 }
 0x11f   : > { %1986 = vmatprep.mubr.bf16.mxu0 %v4604_v63  ;;  %4309 = vmatprep.mubr.msk.bf16.mxu1 %vm1545_vm0, %v4606_v0 }
 0x121   : > { %v4974_v1 = vpop.f32.mrb[0].mxu0  ;;  %v4976_v2 = vpop.f32.mrb[0].mxu1 }
 0x122   : > { %v1774_v3 = vpop.f32.mrb[1].mxu0  ;;  %v2158_v4 = vpop.f32.mrb[1].mxu1 }
 0x123   : > { %v4980_v7 = vpop.f32.mrb[2].mxu0  ;;  %v4982_v8 = vpop.f32.mrb[2].mxu1  ;;  %v4632_v3 = vld [vmem:[%s4776_s28 + $0x300] ss:$12 sps:$4 sm:$0xff]  }
 0x124   : > { %v1777_v11 = vpop.f32.mrb[3].mxu0  ;;  %v2161_v12 = vpop.f32.mrb[3].mxu1  ;;  %v4633_v4 = vld [vmem:[%s4776_s28 + $0x320] ss:$12 sps:$4 sm:$0xff]  }
 0x126   : > { %1987 = vmatmul.mubr.bf16.gmra.mrb[108].mxu0 %v4607_v5  ;;  %4310 = vmatmul.mubr.msk.bf16.gmra.mrb[108].mxu1 %vm1545_vm0, %v4608_v6 }
 0x127   : > { %1994 = vmatprep.mubr.bf16.mxu0 %v4609_v9  ;;  %4313 = vmatprep.mubr.msk.bf16.mxu1 %vm1545_vm0, %v4611_v10  ;;  %v4634_v9 = vld [vmem:[%s4776_s28 + $0x31c] ss:$12 sps:$4 sm:$0xff]   ;;  %v4636_v10 = vld [vmem:[%s4776_s28 + $0x338] ss:$12 sps:$4 sm:$0xff]  }
 0x129   : > { %v4988_v13 = vpop.f32.mrb[4].mxu0  ;;  %v4990_v14 = vpop.f32.mrb[4].mxu1 }
 0x12a   : > { %v1782_v15 = vpop.f32.mrb[5].mxu0  ;;  %v2166_v16 = vpop.f32.mrb[5].mxu1 }
 0x12b   : > { %v4994_v19 = vpop.f32.mrb[6].mxu0  ;;  %v4996_v20 = vpop.f32.mrb[6].mxu1 }
 0x12c   : > { %v1785_v23 = vpop.f32.mrb[7].mxu0  ;;  %v2169_v24 = vpop.f32.mrb[7].mxu1 }
 0x12e   : > { %1995 = vmatmul.mubr.bf16.gmra.mrb[112].mxu0 %v4612_v17  ;;  %4314 = vmatmul.mubr.msk.bf16.gmra.mrb[112].mxu1 %vm1545_vm0, %v4613_v18 }
 0x12f   : > { %2002 = vmatprep.mubr.bf16.mxu0 %v4614_v21  ;;  %4317 = vmatprep.mubr.msk.bf16.mxu1 %vm1545_vm0, %v4616_v22  ;;  %v4637_v21 = vld [vmem:[%s4776_s28 + $0x318] ss:$12 sps:$4 sm:$0xff]   ;;  %v4638_v22 = vld [vmem:[%s4776_s28 + $0x350] ss:$12 sps:$4 sm:$0xff]  }
 0x131   : > { %v5002_v25 = vpop.f32.mrb[8].mxu0  ;;  %v5004_v26 = vpop.f32.mrb[8].mxu1 }
 0x132   : > { %v1790_v27 = vpop.f32.mrb[9].mxu0  ;;  %v2174_v28 = vpop.f32.mrb[9].mxu1 }
 0x133   : > { %v5008_v31 = vpop.f32.mrb[10].mxu0  ;;  %v5010_v32 = vpop.f32.mrb[10].mxu1  ;;  %v4639_v27 = vld [vmem:[%s4776_s28 + $0x334] ss:$12 sps:$4 sm:$0xff]  }
 0x134   : > { %v1793_v35 = vpop.f32.mrb[11].mxu0  ;;  %v2177_v36 = vpop.f32.mrb[11].mxu1  ;;  %v4641_v28 = vld [vmem:[%s4776_s28 + $0x368] ss:$12 sps:$4 sm:$0xff]  }
 0x136   : > { %2003 = vmatmul.mubr.bf16.gmra.mrb[116].mxu0 %v4617_v29  ;;  %4318 = vmatmul.mubr.msk.bf16.gmra.mrb[116].mxu1 %vm1545_vm0, %v4618_v30 }
 0x137   : > { %2010 = vmatprep.mubr.bf16.mxu0 %v4619_v33  ;;  %4321 = vmatprep.mubr.msk.bf16.mxu1 %vm1545_vm0, %v4621_v34 }
 0x139   : > { %v5016_v37 = vpop.f32.mrb[12].mxu0  ;;  %v5018_v38 = vpop.f32.mrb[12].mxu1 }
 0x13a   : > { %v1798_v39 = vpop.f32.mrb[13].mxu0  ;;  %v2182_v40 = vpop.f32.mrb[13].mxu1 }
 0x13b   : > { %v5022_v43 = vpop.f32.mrb[14].mxu0  ;;  %v5024_v44 = vpop.f32.mrb[14].mxu1  ;;  %v4642_v39 = vld [vmem:[%s4776_s28 + $0x330] ss:$12 sps:$4 sm:$0xff]   ;;  %v4643_v40 = vld [vmem:[%s4776_s28 + $0x380] ss:$12 sps:$4 sm:$0xff]  }
 0x13c   : > { %v1801_v47 = vpop.f32.mrb[15].mxu0  ;;  %v2185_v48 = vpop.f32.mrb[15].mxu1 }
 0x13e   : > { %2011 = vmatmul.mubr.bf16.gmra.mrb[120].mxu0 %v4622_v41  ;;  %4322 = vmatmul.mubr.msk.bf16.gmra.mrb[120].mxu1 %vm1545_vm0, %v4623_v42 }
 0x13f   : > { %2018 = vmatprep.mubr.bf16.mxu0 %v4624_v45  ;;  %4325 = vmatprep.mubr.msk.bf16.mxu1 %vm1545_vm0, %v4626_v46  ;;  %v4644_v45 = vld [vmem:[%s4776_s28 + $0x34c] ss:$12 sps:$4 sm:$0xff]  }
 0x140   : > { %v4646_v46 = vld [vmem:[%s4776_s28 + $0x398] ss:$12 sps:$4 sm:$0xff]  }
 0x141   : > { %v5030_v49 = vpop.f32.mrb[16].mxu0  ;;  %v5032_v50 = vpop.f32.mrb[16].mxu1 }
 0x142   : > { %v1806_v51 = vpop.f32.mrb[17].mxu0  ;;  %v2190_v52 = vpop.f32.mrb[17].mxu1 }
 0x143   : > { %v5036_v55 = vpop.f32.mrb[18].mxu0  ;;  %v5038_v56 = vpop.f32.mrb[18].mxu1 }
 0x144   : > { %v1809_v59 = vpop.f32.mrb[19].mxu0  ;;  %v2193_v60 = vpop.f32.mrb[19].mxu1 }
 0x146   : > { %2019 = vmatmul.mubr.bf16.gmra.mrb[124].mxu0 %v4627_v53  ;;  %4326 = vmatmul.mubr.msk.bf16.gmra.mrb[124].mxu1 %vm1545_vm0, %v4628_v54 }
 0x147   : > { %2026 = vmatprep.mubr.bf16.mxu0 %v4629_v57  ;;  %4329 = vmatprep.mubr.msk.bf16.mxu1 %vm1545_vm0, %v4631_v58  ;;  %v4647_v57 = vld [vmem:[%s4776_s28 + $0x348] ss:$12 sps:$4 sm:$0xff]   ;;  %v4648_v58 = vld [vmem:[%s4776_s28 + $0x3b0] ss:$12 sps:$4 sm:$0xff]  }
 0x149   : > { %v5044_v61 = vpop.f32.mrb[20].mxu0  ;;  %v5046_v62 = vpop.f32.mrb[20].mxu1 }
 0x14a   : > { %v1814_v63 = vpop.f32.mrb[21].mxu0  ;;  %v2198_v0 = vpop.f32.mrb[21].mxu1 }
 0x14b   : > { %v5050_v5 = vpop.f32.mrb[22].mxu0  ;;  %v5052_v6 = vpop.f32.mrb[22].mxu1  ;;  %v4649_v63 = vld [vmem:[%s4776_s28 + $0x364] ss:$12 sps:$4 sm:$0xff]   ;;  %v4651_v0 = vld [vmem:[%s4776_s28 + $0x3c8] ss:$12 sps:$4 sm:$0xff]  }
 0x14c   : > { %v1817_v11 = vpop.f32.mrb[23].mxu0  ;;  %v2201_v12 = vpop.f32.mrb[23].mxu1 }
 0x14e   : > { %2027 = vmatmul.mubr.bf16.gmra.mrb[128].mxu0 %v4632_v3  ;;  %4330 = vmatmul.mubr.msk.bf16.gmra.mrb[128].mxu1 %vm1545_vm0, %v4633_v4 }
 0x14f   : > { %2034 = vmatprep.mubr.bf16.mxu0 %v4634_v9  ;;  %4333 = vmatprep.mubr.msk.bf16.mxu1 %vm1545_vm0, %v4636_v10 }
 0x151   : > { %v5058_v15 = vpop.f32.mrb[24].mxu0  ;;  %v5060_v16 = vpop.f32.mrb[24].mxu1 }
 0x152   : > { %5819 = vst [vmem:[#allocation2_spill] sm:$0xff] %v5060_v16  ;;  %v1822_v17 = vpop.f32.mrb[25].mxu0  ;;  %v2206_v18 = vpop.f32.mrb[25].mxu1 }
 0x153   : > { %v5064_v23 = vpop.f32.mrb[26].mxu0  ;;  %v5066_v24 = vpop.f32.mrb[26].mxu1  ;;  %v4652_v17 = vld [vmem:[%s4776_s28 + $0x360] ss:$12 sps:$4 sm:$0xff]  }
 0x154   : > { %5820 = vst [vmem:[#allocation3_spill] sm:$0xff] %v5066_v24  ;;  %v1825_v29 = vpop.f32.mrb[27].mxu0  ;;  %v2209_v30 = vpop.f32.mrb[27].mxu1  ;;  %v4653_v18 = vld [vmem:[%s4776_s28 + $0x3e0] ss:$12 sps:$4 sm:$0xff]  }
 0x156   : > { %2035 = vmatmul.mubr.bf16.gmra.mrb[132].mxu0 %v4637_v21  ;;  %4334 = vmatmul.mubr.msk.bf16.gmra.mrb[132].mxu1 %vm1545_vm0, %v4638_v22 }
 0x157   : > { %2042 = vmatprep.mubr.bf16.mxu0 %v4639_v27  ;;  %4337 = vmatprep.mubr.msk.bf16.mxu1 %vm1545_vm0, %v4641_v28  ;;  %v4654_v27 = vld [vmem:[%s4776_s28 + $0x37c] ss:$12 sps:$4 sm:$0xff]   ;;  %v4656_v28 = vld [vmem:[%s4776_s28 + $0x3f8] ss:$12 sps:$4 sm:$0xff]  }
 0x159   : > { %v5072_v33 = vpop.f32.mrb[28].mxu0  ;;  %v5074_v34 = vpop.f32.mrb[28].mxu1 }
 0x15a   : > { %v1830_v35 = vpop.f32.mrb[29].mxu0  ;;  %v2214_v36 = vpop.f32.mrb[29].mxu1 }
 0x15b   : > { %v5078_v41 = vpop.f32.mrb[30].mxu0  ;;  %v5080_v42 = vpop.f32.mrb[30].mxu1 }
 0x15c   : > { %5821 = vst [vmem:[#allocation4_spill] sm:$0xff] %v5080_v42  ;;  %v1833_v47 = vpop.f32.mrb[31].mxu0  ;;  %v2217_v48 = vpop.f32.mrb[31].mxu1 }
 0x15e   : > { %2043 = vmatmul.mubr.bf16.gmra.mrb[136].mxu0 %v4642_v39  ;;  %4338 = vmatmul.mubr.msk.bf16.gmra.mrb[136].mxu1 %vm1545_vm0, %v4643_v40 }
 0x15f   : > { %2050 = vmatprep.mubr.bf16.mxu0 %v4644_v45  ;;  %4341 = vmatprep.mubr.msk.bf16.mxu1 %vm1545_vm0, %v4646_v46  ;;  %v4657_v45 = vld [vmem:[%s4776_s28 + $0x378] ss:$12 sps:$4 sm:$0xff]   ;;  %v4658_v46 = vld [vmem:[%s4776_s28 + $0x410] ss:$12 sps:$4 sm:$0xff]  }
 0x161   : > { %v5086_v51 = vpop.f32.mrb[32].mxu0  ;;  %v5088_v52 = vpop.f32.mrb[32].mxu1 }
 0x162   : > { %5822 = vst [vmem:[#allocation5_spill] sm:$0xff] %v5088_v52  ;;  %v1838_v53 = vpop.f32.mrb[33].mxu0  ;;  %v2222_v54 = vpop.f32.mrb[33].mxu1  ;;  %v4691_v52 = vld [vmem:[%s4776_s28 + $0x548] ss:$12 sps:$4 sm:$0xff]  }
 0x163   : > { %v5092_v59 = vpop.f32.mrb[34].mxu0  ;;  %v5094_v60 = vpop.f32.mrb[34].mxu1  ;;  %v4659_v53 = vld [vmem:[%s4776_s28 + $0x394] ss:$12 sps:$4 sm:$0xff]  }
 0x164   : > { %5823 = vst [vmem:[#allocation6_spill] sm:$0xff] %v5094_v60  ;;  %v1841_v3 = vpop.f32.mrb[35].mxu0  ;;  %v2225_v4 = vpop.f32.mrb[35].mxu1  ;;  %v4661_v54 = vld [vmem:[%s4776_s28 + $0x428] ss:$12 sps:$4 sm:$0xff]  }
 0x166   : > { %2051 = vmatmul.mubr.bf16.gmra.mrb[140].mxu0 %v4647_v57  ;;  %4342 = vmatmul.mubr.msk.bf16.gmra.mrb[140].mxu1 %vm1545_vm0, %v4648_v58 }
 0x167   : > { %2058 = vmatprep.mubr.bf16.mxu0 %v4649_v63  ;;  %4345 = vmatprep.mubr.msk.bf16.mxu1 %vm1545_vm0, %v4651_v0 }
 0x169   : > { %v5100_v9 = vpop.f32.mrb[36].mxu0  ;;  %v5102_v10 = vpop.f32.mrb[36].mxu1 }
 0x16a   : > { %5824 = vst [vmem:[#allocation7_spill] sm:$0xff] %v5102_v10  ;;  %v1846_v11 = vpop.f32.mrb[37].mxu0  ;;  %v2230_v12 = vpop.f32.mrb[37].mxu1 }
 0x16b   : > { %v5106_v21 = vpop.f32.mrb[38].mxu0  ;;  %v5108_v22 = vpop.f32.mrb[38].mxu1  ;;  %v4662_v11 = vld [vmem:[%s4776_s28 + $0x390] ss:$12 sps:$4 sm:$0xff]   ;;  %v4663_v12 = vld [vmem:[%s4776_s28 + $0x440] ss:$12 sps:$4 sm:$0xff]  }
 0x16c   : > { %5825 = vst [vmem:[#allocation8_spill] sm:$0xff] %v5108_v22  ;;  %v1849_v29 = vpop.f32.mrb[39].mxu0  ;;  %v2233_v30 = vpop.f32.mrb[39].mxu1 }
 0x16e   : > { %2059 = vmatmul.mubr.bf16.gmra.mrb[144].mxu0 %v4652_v17  ;;  %4346 = vmatmul.mubr.msk.bf16.gmra.mrb[144].mxu1 %vm1545_vm0, %v4653_v18 }
 0x16f   : > { %2066 = vmatprep.mubr.bf16.mxu0 %v4654_v27  ;;  %4349 = vmatprep.mubr.msk.bf16.mxu1 %vm1545_vm0, %v4656_v28  ;;  %v4664_v27 = vld [vmem:[%s4776_s28 + $0x3ac] ss:$12 sps:$4 sm:$0xff]  }
 0x170   : > { %v4666_v28 = vld [vmem:[%s4776_s28 + $0x458] ss:$12 sps:$4 sm:$0xff]  }
 0x171   : > { %v5114_v35 = vpop.f32.mrb[40].mxu0  ;;  %v5116_v36 = vpop.f32.mrb[40].mxu1 }
 0x172   : > { %5826 = vst [vmem:[#allocation9_spill] sm:$0xff] %v5116_v36  ;;  %v1854_v39 = vpop.f32.mrb[41].mxu0  ;;  %v2238_v40 = vpop.f32.mrb[41].mxu1 }
 0x173   : > { %v5120_v47 = vpop.f32.mrb[42].mxu0  ;;  %v5122_v48 = vpop.f32.mrb[42].mxu1 }
 0x174   : > { %5827 = vst [vmem:[#allocation10_spill] sm:$0xff] %v5122_v48  ;;  %v1857_v57 = vpop.f32.mrb[43].mxu0  ;;  %v2241_v58 = vpop.f32.mrb[43].mxu1 }
 0x176   : > { %2067 = vmatmul.mubr.bf16.gmra.mrb[148].mxu0 %v4657_v45  ;;  %4350 = vmatmul.mubr.msk.bf16.gmra.mrb[148].mxu1 %vm1545_vm0, %v4658_v46 }
 0x177   : > { %2074 = vmatprep.mubr.bf16.mxu0 %v4659_v53  ;;  %4353 = vmatprep.mubr.msk.bf16.mxu1 %vm1545_vm0, %v4661_v54  ;;  %v4667_v53 = vld [vmem:[%s4776_s28 + $0x3a8] ss:$12 sps:$4 sm:$0xff]   ;;  %v4668_v54 = vld [vmem:[%s4776_s28 + $0x470] ss:$12 sps:$4 sm:$0xff]  }
 0x179   : > { %v5128_v63 = vpop.f32.mrb[44].mxu0  ;;  %v5130_v0 = vpop.f32.mrb[44].mxu1 }
 0x17a   : > { %5828 = vst [vmem:[#allocation11_spill] sm:$0xff] %v5130_v0  ;;  %v1862_v3 = vpop.f32.mrb[45].mxu0  ;;  %v2246_v4 = vpop.f32.mrb[45].mxu1 }
 0x17b   : > { %v5134_v17 = vpop.f32.mrb[46].mxu0  ;;  %v5136_v18 = vpop.f32.mrb[46].mxu1  ;;  %v4669_v3 = vld [vmem:[%s4776_s28 + $0x3c4] ss:$12 sps:$4 sm:$0xff]   ;;  %v4671_v4 = vld [vmem:[%s4776_s28 + $0x488] ss:$12 sps:$4 sm:$0xff]  }
 0x17c   : > { %5829 = vst [vmem:[#allocation12_spill] sm:$0xff] %v5136_v18  ;;  %v1865_v29 = vpop.f32.mrb[47].mxu0  ;;  %v2249_v30 = vpop.f32.mrb[47].mxu1  ;;  %v4682_v18 = vld [vmem:[%s4776_s28 + $0x3f0] ss:$12 sps:$4 sm:$0xff]  }
 0x17e   : > { %2075 = vmatmul.mubr.bf16.gmra.mrb[152].mxu0 %v4662_v11  ;;  %4354 = vmatmul.mubr.msk.bf16.gmra.mrb[152].mxu1 %vm1545_vm0, %v4663_v12 }
 0x17f   : > { %2082 = vmatprep.mubr.bf16.mxu0 %v4664_v27  ;;  %4357 = vmatprep.mubr.msk.bf16.mxu1 %vm1545_vm0, %v4666_v28 }
 0x181   : > { %v5142_v39 = vpop.f32.mrb[48].mxu0  ;;  %v5144_v40 = vpop.f32.mrb[48].mxu1 }
 0x182   : > { %5830 = vst [vmem:[#allocation13_spill] sm:$0xff] %v5144_v40  ;;  %v1870_v45 = vpop.f32.mrb[49].mxu0  ;;  %v2254_v46 = vpop.f32.mrb[49].mxu1 }
 0x183   : > { %v5148_v57 = vpop.f32.mrb[50].mxu0  ;;  %v5150_v58 = vpop.f32.mrb[50].mxu1  ;;  %v4672_v45 = vld [vmem:[%s4776_s28 + $0x3c0] ss:$12 sps:$4 sm:$0xff]  }
 0x184   : > { %5831 = vst [vmem:[#allocation14_spill] sm:$0xff] %v5150_v58  ;;  %v1873_v11 = vpop.f32.mrb[51].mxu0  ;;  %v2257_v12 = vpop.f32.mrb[51].mxu1  ;;  %v4673_v46 = vld [vmem:[%s4776_s28 + $0x4a0] ss:$12 sps:$4 sm:$0xff]  }
 0x186   : > { %2083 = vmatmul.mubr.bf16.gmra.mrb[156].mxu0 %v4667_v53  ;;  %4358 = vmatmul.mubr.msk.bf16.gmra.mrb[156].mxu1 %vm1545_vm0, %v4668_v54  ;;  %v4674_v53 = vld [vmem:[%s4776_s28 + $0x3dc] ss:$12 sps:$4 sm:$0xff]   ;;  %v4676_v54 = vld [vmem:[%s4776_s28 + $0x4b8] ss:$12 sps:$4 sm:$0xff]  }
 0x187   : > { %2090 = vmatprep.mubr.bf16.mxu0 %v4669_v3  ;;  %4361 = vmatprep.mubr.msk.bf16.mxu1 %vm1545_vm0, %v4671_v4 }
 0x189   : > { %v5156_v27 = vpop.f32.mrb[52].mxu0  ;;  %v5158_v28 = vpop.f32.mrb[52].mxu1 }
 0x18a   : > { %5832 = vst [vmem:[#allocation15_spill] sm:$0xff] %v5158_v28  ;;  %v1878_v29 = vpop.f32.mrb[53].mxu0  ;;  %v2262_v30 = vpop.f32.mrb[53].mxu1  ;;  %v4677_v28 = vld [vmem:[%s4776_s28 + $0x3d8] ss:$12 sps:$4 sm:$0xff]  }
 0x18b   : > { %v5162_v58 = vpop.f32.mrb[54].mxu0  ;;  %v5164_v11 = vpop.f32.mrb[54].mxu1 }
 0x18c   : > { %5833 = vst [vmem:[#allocation16_spill] sm:$0xff] %v5164_v11  ;;  %v1881_v3 = vpop.f32.mrb[55].mxu0  ;;  %v2265_v4 = vpop.f32.mrb[55].mxu1  ;;  %v4678_v11 = vld [vmem:[%s4776_s28 + $0x4d0] ss:$12 sps:$4 sm:$0xff]  }
 0x18e   : > { %2091 = vmatmul.mubr.bf16.gmra.mrb[160].mxu0 %v4672_v45  ;;  %4362 = vmatmul.mubr.msk.bf16.gmra.mrb[160].mxu1 %vm1545_vm0, %v4673_v46  ;;  %v4679_v45 = vld [vmem:[%s4776_s28 + $0x3f4] ss:$12 sps:$4 sm:$0xff]  }
 0x18f   : > { %2098 = vmatprep.mubr.bf16.mxu0 %v4674_v53  ;;  %4365 = vmatprep.mubr.msk.bf16.mxu1 %vm1545_vm0, %v4676_v54  ;;  %v4681_v46 = vld [vmem:[%s4776_s28 + $0x4e8] ss:$12 sps:$4 sm:$0xff]  }
 0x191   : > { %v5170_v12 = vpop.f32.mrb[56].mxu0  ;;  %v5172_v29 = vpop.f32.mrb[56].mxu1 }
 0x192   : > { %5834 = vst [vmem:[#allocation17_spill] sm:$0xff] %v5172_v29  ;;  %v1886_v30 = vpop.f32.mrb[57].mxu0  ;;  %v2270_v40 = vpop.f32.mrb[57].mxu1 }
 0x193   : > { %v5176_v48 = vpop.f32.mrb[58].mxu0  ;;  %v5178_v3 = vpop.f32.mrb[58].mxu1 }
 0x194   : > { %5835 = vst [vmem:[#allocation18_spill] sm:$0xff] %v5178_v3  ;;  %v1889_v53 = vpop.f32.mrb[59].mxu0  ;;  %v2273_v54 = vpop.f32.mrb[59].mxu1  ;;  %v4683_v3 = vld [vmem:[%s4776_s28 + $0x500] ss:$12 sps:$4 sm:$0xff]  }
 0x195   : > { %v4684_v53 = vld [vmem:[%s4776_s28 + $0x40c] ss:$12 sps:$4 sm:$0xff]  }
 0x196   : > { %2099 = vmatmul.mubr.bf16.gmra.mrb[164].mxu0 %v4677_v28  ;;  %4366 = vmatmul.mubr.msk.bf16.gmra.mrb[164].mxu1 %vm1545_vm0, %v4678_v11  ;;  %v4686_v28 = vld [vmem:[%s4776_s28 + $0x518] ss:$12 sps:$4 sm:$0xff]  }
 0x197   : > { %2106 = vmatprep.mubr.bf16.mxu0 %v4679_v45  ;;  %4369 = vmatprep.mubr.msk.bf16.mxu1 %vm1545_vm0, %v4681_v46  ;;  %v5199_v45 = vld [vmem:[%s5817_s2] ss:$0 sm:$0xff] }
 0x198   : > { %v1773_v46 = vadd.f32 %v5199_v45, %v4974_v1  ;;  %v4689_v1 = vld [vmem:[%s4776_s28 + $0x424] ss:$12 sps:$4 sm:$0xff]  }
 0x199   : > { %v5184_v40 = vpop.f32.mrb[60].mxu0  ;;  %v5186_v4 = vpop.f32.mrb[60].mxu1 }
 0x19a   : > { %5836 = vst [vmem:[#allocation19_spill] sm:$0xff] %v5186_v4  ;;  %v1894_v30 = vpop.f32.mrb[61].mxu0  ;;  %v2278_v29 = vpop.f32.mrb[61].mxu1  ;;  %v1776_v4 = vadd.f32 %v5199_v45, %v4980_v7 }
 0x19b   : > { %v5190_v36 = vpop.f32.mrb[62].mxu0  ;;  %v5192_v0 = vpop.f32.mrb[62].mxu1  ;;  %v1781_v29 = vadd.f32 %v5199_v45, %v4988_v13 }
 0x19c   : > { %5837 = vst [vmem:[#allocation20_spill] sm:$0xff] %v5192_v0  ;;  %v1897_v54 = vpop.f32.mrb[63].mxu0  ;;  %v2281_v11 = vpop.f32.mrb[63].mxu1  ;;  %v4687_v0 = vld [vmem:[%s4776_s28 + $0x408] ss:$12 sps:$4 sm:$0xff]  }
 0x19e   : > { %2107 = vmatmul.mubr.bf16.gmra.mrb[168].mxu0 %v4682_v18  ;;  %4370 = vmatmul.mubr.msk.bf16.gmra.mrb[168].mxu1 %vm1545_vm0, %v4683_v3  ;;  %v1784_v18 = vadd.f32 %v5199_v45, %v4994_v19 }
 0x19f   : > { %2114 = vmatprep.mubr.bf16.mxu0 %v4684_v53  ;;  %4373 = vmatprep.mubr.msk.bf16.mxu1 %vm1545_vm0, %v4686_v28  ;;  %v4688_v28 = vld [vmem:[%s4776_s28 + $0x530] ss:$12 sps:$4 sm:$0xff]  }
 0x1a1   : > { %v5207_v30 = vpop.f32.mrb[64].mxu0  ;;  %v4267_v54 = vpop.f32.mrb[64].mxu1 }
 0x1a2   : > { %v2326_v11 = vadd.f32 %v4267_v54, %v1781_v29  ;;  %v1902_v3 = vpop.f32.mrb[65].mxu0  ;;  %v2317_v53 = vpop.f32.mrb[65].mxu1 }
 0x1a3   : > { %v2318_v13 = vadd.f32 %v2317_v53, %v1773_v46  ;;  %v5216_v60 = vpop.f32.mrb[66].mxu0  ;;  %v4268_v22 = vpop.f32.mrb[66].mxu1  ;;  %v4692_v3 = vld [vmem:[%s4776_s28 + $0x420] ss:$12 sps:$4 sm:$0xff]  }
 0x1a4   : > { %v2830_v10 = vmax.f32 %v2326_v11, 0.0  ;;  %v2329_v24 = vadd.f32 %v4268_v22, %v1784_v18  ;;  %v1905_v42 = vpop.f32.mrb[67].mxu0  ;;  %v2320_v16 = vpop.f32.mrb[67].mxu1  ;;  %v4693_v53 = vld [vmem:[%s4776_s28 + $0x560] ss:$12 sps:$4 sm:$0xff]  }
 0x1a5   : > { %v2828_v19 = vmax.f32 %v2318_v13, 0.0  ;;  %v2321_v7 = vadd.f32 %v2320_v16, %v1776_v4  ;;  %v1797_v42 = vadd.f32 %v5199_v45, %v5016_v37 }
 0x1a6   : > { %v4069_v29 = vpack.c.bf16 %v2830_v10, %v2830_v10  ;;  %v2831_v46 = vmax.f32 %v2329_v24, 0.0  ;;  %2115 = vmatmul.mubr.bf16.gmra.mrb[172].mxu0 %v4687_v0  ;;  %4374 = vmatmul.mubr.msk.bf16.gmra.mrb[172].mxu1 %vm1545_vm0, %v4688_v28  ;;  %v1789_v24 = vadd.f32 %v5199_v45, %v5002_v25  ;;  %v1792_v25 = vadd.f32 %v5199_v45, %v5008_v31 }
 0x1a7   : > { %v4067_v54 = vpack.c.bf16 %v2828_v19, %v2828_v19  ;;  %v2829_v22 = vmax.f32 %v2321_v7, 0.0  ;;  %2122 = vmatprep.mubr.bf16.mxu0 %v4689_v1  ;;  %4377 = vmatprep.mubr.msk.bf16.mxu1 %vm1545_vm0, %v4691_v52  ;;  %v1800_v52 = vadd.f32 %v5199_v45, %v5022_v43  ;;  %v4694_v19 = vld [vmem:[%s4776_s28 + $0x43c] ss:$12 sps:$4 sm:$0xff]   ;;  %v4696_v7 = vld [vmem:[%s4776_s28 + $0x578] ss:$12 sps:$4 sm:$0xff]  }
 0x1a8   : > { %3471 = vst.msk [vmem:[%s5223_s8 + $0x8] sm:$0xf] %vm3468_vm1, %v4069_v29  ;;  %v4070_v16 = vpack.c.bf16 %v2831_v46, %v2831_v46 }
 0x1a9   : > { %3469 = vst.msk [vmem:[%s5223_s8] sm:$0xf] %vm3468_vm1, %v4067_v54  ;;  %v4068_v10 = vpack.c.bf16 %v2829_v22, %v2829_v22  ;;  %v5235_v0 = vpop.f32.mrb[68].mxu0  ;;  %v4271_v4 = vpop.f32.mrb[68].mxu1 }
 0x1aa   : > { %3472 = vst.msk [vmem:[%s5223_s8 + $0xc] sm:$0xf] %vm3468_vm1, %v4070_v16  ;;  %v2342_v37 = vadd.f32 %v4271_v4, %v1797_v42  ;;  %v1910_v18 = vpop.f32.mrb[69].mxu0  ;;  %v2333_v11 = vpop.f32.mrb[69].mxu1 }
 0x1ab   : > { %3470 = vst.msk [vmem:[%s5223_s8 + $0x4] sm:$0xf] %vm3468_vm1, %v4068_v10  ;;  %v2334_v28 = vadd.f32 %v2333_v11, %v1789_v24  ;;  %v5247_v13 = vpop.f32.mrb[70].mxu0  ;;  %v4272_v1 = vpop.f32.mrb[70].mxu1  ;;  %v1813_v10 = vadd.f32 %v5199_v45, %v5044_v61 }
 0x1ac   : > { %v2834_v43 = vmax.f32 %v2342_v37, 0.0  ;;  %v2345_v29 = vadd.f32 %v4272_v1, %v1800_v52  ;;  %v1913_v46 = vpop.f32.mrb[71].mxu0  ;;  %v2336_v54 = vpop.f32.mrb[71].mxu1  ;;  %v1805_v37 = vadd.f32 %v5199_v45, %v5030_v49  ;;  %v4697_v1 = vld [vmem:[%s4776_s28 + $0x438] ss:$12 sps:$4 sm:$0xff]   ;;  %v1808_v49 = vadd.f32 %v5199_v45, %v5036_v55 }
 0x1ad   : > { %v2832_v22 = vmax.f32 %v2334_v28, 0.0  ;;  %v2337_v42 = vadd.f32 %v2336_v54, %v1792_v25  ;;  %v4699_v46 = vld [vmem:[%s4776_s28 + $0x454] ss:$12 sps:$4 sm:$0xff]  }
 0x1ae   : > { %v4073_v16 = vpack.c.bf16 %v2834_v43, %v2834_v43  ;;  %v2835_v4 = vmax.f32 %v2345_v29, 0.0  ;;  %2123 = vmatmul.mubr.bf16.gmra.mrb[176].mxu0 %v4692_v3  ;;  %4378 = vmatmul.mubr.msk.bf16.gmra.mrb[176].mxu1 %vm1545_vm0, %v4693_v53  ;;  %v1816_v53 = vadd.f32 %v5199_v45, %v5050_v5  ;;  %v4701_v54 = vld [vmem:[%s4776_s28 + $0x5a8] ss:$12 sps:$4 sm:$0xff]  }
 0x1af   : > { %v4071_v31 = vpack.c.bf16 %v2832_v22, %v2832_v22  ;;  %v2833_v24 = vmax.f32 %v2337_v42, 0.0  ;;  %2130 = vmatprep.mubr.bf16.mxu0 %v4694_v19  ;;  %4381 = vmatprep.mubr.msk.bf16.mxu1 %vm1545_vm0, %v4696_v7  ;;  %v4698_v19 = vld [vmem:[%s4776_s28 + $0x590] ss:$12 sps:$4 sm:$0xff]  }
 0x1b0   : > { %3475 = vst.msk [vmem:[%s5223_s8 + $0x18] sm:$0xf] %vm3468_vm1, %v4073_v16  ;;  %v4074_v52 = vpack.c.bf16 %v2835_v4, %v2835_v4 }
 0x1b1   : > { %3473 = vst.msk [vmem:[%s5223_s8 + $0x10] sm:$0xf] %vm3468_vm1, %v4071_v31  ;;  %v4072_v18 = vpack.c.bf16 %v2833_v24, %v2833_v24  ;;  %v5261_v11 = vpop.f32.mrb[72].mxu0  ;;  %v4275_v3 = vpop.f32.mrb[72].mxu1 }
 0x1b2   : > { %3476 = vst.msk [vmem:[%s5223_s8 + $0x1c] sm:$0xf] %vm3468_vm1, %v4074_v52  ;;  %v2358_v61 = vadd.f32 %v4275_v3, %v1813_v10  ;;  %v1918_v25 = vpop.f32.mrb[73].mxu0  ;;  %v2349_v28 = vpop.f32.mrb[73].mxu1  ;;  %v1821_v3 = vadd.f32 %v5199_v45, %v5058_v15  ;;  %v1824_v15 = vadd.f32 %v5199_v45, %v5064_v23 }
 0x1b3   : > { %3474 = vst.msk [vmem:[%s5223_s8 + $0x14] sm:$0xf] %vm3468_vm1, %v4072_v18  ;;  %v2350_v7 = vadd.f32 %v2349_v28, %v1805_v37  ;;  %v5273_v43 = vpop.f32.mrb[74].mxu0  ;;  %v4276_v29 = vpop.f32.mrb[74].mxu1  ;;  %v1829_v37 = vadd.f32 %v5199_v45, %v5072_v33  ;;  %v1832_v28 = vadd.f32 %v5199_v45, %v5078_v41 }
 0x1b4   : > { %v2838_v5 = vmax.f32 %v2358_v61, 0.0  ;;  %v2361_v22 = vadd.f32 %v4276_v29, %v1816_v53  ;;  %v1921_v42 = vpop.f32.mrb[75].mxu0  ;;  %v2352_v16 = vpop.f32.mrb[75].mxu1 }
 0x1b5   : > { %v2836_v4 = vmax.f32 %v2350_v7, 0.0  ;;  %v2353_v31 = vadd.f32 %v2352_v16, %v1808_v49  ;;  %v4702_v49 = vld [vmem:[%s4776_s28 + $0x450] ss:$12 sps:$4 sm:$0xff]   ;;  %v4703_v7 = vld [vmem:[%s4776_s28 + $0x5c0] ss:$12 sps:$4 sm:$0xff]  }
 0x1b6   : > { %v4077_v24 = vpack.c.bf16 %v2838_v5, %v2838_v5  ;;  %v2839_v10 = vmax.f32 %v2361_v22, 0.0  ;;  %2131 = vmatmul.mubr.bf16.gmra.mrb[180].mxu0 %v4697_v1  ;;  %4382 = vmatmul.mubr.msk.bf16.gmra.mrb[180].mxu1 %vm1545_vm0, %v4698_v19  ;;  %v4704_v5 = vld [vmem:[%s4776_s28 + $0x46c] ss:$12 sps:$4 sm:$0xff]  }
 0x1b7   : > { %v4075_v55 = vpack.c.bf16 %v2836_v4, %v2836_v4  ;;  %v2837_v52 = vmax.f32 %v2353_v31, 0.0  ;;  %2138 = vmatprep.mubr.bf16.mxu0 %v4699_v46  ;;  %4385 = vmatprep.mubr.msk.bf16.mxu1 %vm1545_vm0, %v4701_v54  ;;  %v4706_v22 = vld [vmem:[%s4776_s28 + $0x5d8] ss:$12 sps:$4 sm:$0xff]  }
 0x1b8   : > { %3479 = vst.msk [vmem:[%s5223_s8 + $0x28] sm:$0xf] %vm3468_vm1, %v4077_v24  ;;  %v4078_v18 = vpack.c.bf16 %v2839_v10, %v2839_v10 }
 0x1b9   : > { %3477 = vst.msk [vmem:[%s5223_s8 + $0x20] sm:$0xf] %vm3468_vm1, %v4075_v55  ;;  %v4076_v53 = vpack.c.bf16 %v2837_v52, %v2837_v52  ;;  %v5287_v61 = vpop.f32.mrb[76].mxu0  ;;  %v4279_v25 = vpop.f32.mrb[76].mxu1 }
 0x1ba   : > { %3480 = vst.msk [vmem:[%s5223_s8 + $0x2c] sm:$0xf] %vm3468_vm1, %v4078_v18  ;;  %v2374_v33 = vadd.f32 %v4279_v25, %v1829_v37  ;;  %v1926_v1 = vpop.f32.mrb[77].mxu0  ;;  %v2365_v19 = vpop.f32.mrb[77].mxu1  ;;  %v1845_v37 = vadd.f32 %v5199_v45, %v5100_v9 }
 0x1bb   : > { %3478 = vst.msk [vmem:[%s5223_s8 + $0x24] sm:$0xf] %vm3468_vm1, %v4076_v53  ;;  %v2366_v29 = vadd.f32 %v2365_v19, %v1821_v3  ;;  %v5299_v46 = vpop.f32.mrb[78].mxu0  ;;  %v4280_v54 = vpop.f32.mrb[78].mxu1  ;;  %v1837_v3 = vadd.f32 %v5199_v45, %v5086_v51 }
 0x1bc   : > { %v2842_v41 = vmax.f32 %v2374_v33, 0.0  ;;  %v2377_v42 = vadd.f32 %v4280_v54, %v1832_v28  ;;  %v1929_v16 = vpop.f32.mrb[79].mxu0  ;;  %v2368_v4 = vpop.f32.mrb[79].mxu1  ;;  %v1848_v33 = vadd.f32 %v5199_v45, %v5106_v21 }
 0x1bd   : > { %v2840_v31 = vmax.f32 %v2366_v29, 0.0  ;;  %v2369_v24 = vadd.f32 %v2368_v4, %v1824_v15  ;;  %v1840_v15 = vadd.f32 %v5199_v45, %v5092_v59 }
 0x1be   : > { %v4081_v10 = vpack.c.bf16 %v2842_v41, %v2842_v41  ;;  %v2843_v55 = vmax.f32 %v2377_v42, 0.0  ;;  %2139 = vmatmul.mubr.bf16.gmra.mrb[184].mxu0 %v4702_v49  ;;  %4386 = vmatmul.mubr.msk.bf16.gmra.mrb[184].mxu1 %vm1545_vm0, %v4703_v7  ;;  %v4707_v49 = vld [vmem:[%s4776_s28 + $0x468] ss:$12 sps:$4 sm:$0xff]   ;;  %v4708_v7 = vld [vmem:[%s4776_s28 + $0x5f0] ss:$12 sps:$4 sm:$0xff]  }
 0x1bf   : > { %v4079_v23 = vpack.c.bf16 %v2840_v31, %v2840_v31  ;;  %v2841_v52 = vmax.f32 %v2369_v24, 0.0  ;;  %2146 = vmatprep.mubr.bf16.mxu0 %v4704_v5  ;;  %4389 = vmatprep.mubr.msk.bf16.mxu1 %vm1545_vm0, %v4706_v22 }
 0x1c0   : > { %3483 = vst.msk [vmem:[%s5223_s8 + $0x38] sm:$0xf] %vm3468_vm1, %v4081_v10  ;;  %v4082_v18 = vpack.c.bf16 %v2843_v55, %v2843_v55  ;;  %v1861_v10 = vadd.f32 %v5199_v45, %v5128_v63 }
 0x1c1   : > { %3481 = vst.msk [vmem:[%s5223_s8 + $0x30] sm:$0xf] %vm3468_vm1, %v4079_v23  ;;  %v4080_v53 = vpack.c.bf16 %v2841_v52, %v2841_v52  ;;  %v5313_v25 = vpop.f32.mrb[80].mxu0  ;;  %v4283_v28 = vpop.f32.mrb[80].mxu1  ;;  %v1853_v23 = vadd.f32 %v5199_v45, %v5114_v35 }
 0x1c2   : > { %3484 = vst.msk [vmem:[%s5223_s8 + $0x3c] sm:$0xf] %vm3468_vm1, %v4082_v18  ;;  %v2390_v1 = vadd.f32 %v4283_v28, %v1845_v37  ;;  %v1934_v9 = vpop.f32.mrb[81].mxu0  ;;  %v2381_v19 = vpop.f32.mrb[81].mxu1 }
 0x1c3   : > { %3482 = vst.msk [vmem:[%s5223_s8 + $0x34] sm:$0xf] %vm3468_vm1, %v4080_v53  ;;  %v2382_v51 = vadd.f32 %v2381_v19, %v1837_v3  ;;  %v5325_v29 = vpop.f32.mrb[82].mxu0  ;;  %v4284_v54 = vpop.f32.mrb[82].mxu1  ;;  %v1864_v3 = vadd.f32 %v5199_v45, %v5134_v17 }
 0x1c4   : > { %v2846_v5 = vmax.f32 %v2390_v1, 0.0  ;;  %v2393_v21 = vadd.f32 %v4284_v54, %v1848_v33  ;;  %v1937_v22 = vpop.f32.mrb[83].mxu0  ;;  %v2384_v41 = vpop.f32.mrb[83].mxu1  ;;  %v1856_v33 = vadd.f32 %v5199_v45, %v5120_v47 }
 0x1c5   : > { %v2844_v42 = vmax.f32 %v2382_v51, 0.0  ;;  %v2385_v16 = vadd.f32 %v2384_v41, %v1840_v15  ;;  %v1877_v22 = vadd.f32 %v5199_v45, %v5156_v27 }
 0x1c6   : > { %v4085_v4 = vpack.c.bf16 %v2846_v5, %v2846_v5  ;;  %v2847_v31 = vmax.f32 %v2393_v21, 0.0  ;;  %2147 = vmatmul.mubr.bf16.gmra.mrb[188].mxu0 %v4707_v49  ;;  %4390 = vmatmul.mubr.msk.bf16.gmra.mrb[188].mxu1 %vm1545_vm0, %v4708_v7 }
 0x1c7   : > { %v4083_v59 = vpack.c.bf16 %v2844_v42, %v2844_v42  ;;  %v2845_v24 = vmax.f32 %v2385_v16, 0.0  ;;  %v1869_v42 = vadd.f32 %v5199_v45, %v5142_v39 }
 0x1c8   : > { %3487 = vst.msk [vmem:[%s5223_s8 + $0x48] sm:$0xf] %vm3468_vm1, %v4085_v4  ;;  %v4086_v55 = vpack.c.bf16 %v2847_v31, %v2847_v31 }
 0x1c9   : > { %3485 = vst.msk [vmem:[%s5223_s8 + $0x40] sm:$0xf] %vm3468_vm1, %v4083_v59  ;;  %v4084_v52 = vpack.c.bf16 %v2845_v24, %v2845_v24  ;;  %v5336_v37 = vpop.f32.mrb[84].mxu0  ;;  %v4287_v18 = vpop.f32.mrb[84].mxu1  ;;  %v1880_v59 = vadd.f32 %v5199_v45, %v5162_v58 }
 0x1ca   : > { %3488 = vst.msk [vmem:[%s5223_s8 + $0x4c] sm:$0xf] %vm3468_vm1, %v4086_v55  ;;  %v2406_v53 = vadd.f32 %v4287_v18, %v1861_v10  ;;  %v1942_v28 = vpop.f32.mrb[85].mxu0  ;;  %v2397_v63 = vpop.f32.mrb[85].mxu1  ;;  %v1872_v55 = vadd.f32 %v5199_v45, %v5148_v57 }
 0x1cb   : > { %3486 = vst.msk [vmem:[%s5223_s8 + $0x44] sm:$0xf] %vm3468_vm1, %v4084_v52  ;;  %v2398_v35 = vadd.f32 %v2397_v63, %v1853_v23  ;;  %v5346_v1 = vpop.f32.mrb[86].mxu0  ;;  %v4288_v9 = vpop.f32.mrb[86].mxu1 }
 0x1cc   : > { %v2850_v19 = vmax.f32 %v2406_v53, 0.0  ;;  %v2409_v49 = vadd.f32 %v4288_v9, %v1864_v3  ;;  %v1945_v7 = vpop.f32.mrb[87].mxu0  ;;  %v2400_v17 = vpop.f32.mrb[87].mxu1 }
 0x1cd   : > { %v2848_v15 = vmax.f32 %v2398_v35, 0.0  ;;  %v2401_v51 = vadd.f32 %v2400_v17, %v1856_v33  ;;  %v1885_v7 = vadd.f32 %v5199_v45, %v5170_v12 }
 0x1ce   : > { %v4089_v54 = vpack.c.bf16 %v2850_v19, %v2850_v19  ;;  %v2851_v5 = vmax.f32 %v2409_v49, 0.0  ;;  %v1893_v19 = vadd.f32 %v5199_v45, %v5184_v40 }
 0x1cf   : > { %v4087_v21 = vpack.c.bf16 %v2848_v15, %v2848_v15  ;;  %v2849_v47 = vmax.f32 %v2401_v51, 0.0 }
 0x1d0   : > { %3491 = vst.msk [vmem:[%s5223_s8 + $0x58] sm:$0xf] %vm3468_vm1, %v4089_v54  ;;  %v4090_v41 = vpack.c.bf16 %v2851_v5, %v2851_v5  ;;  %v1896_v54 = vadd.f32 %v5199_v45, %v5190_v36 }
 0x1d1   : > { %3489 = vst.msk [vmem:[%s5223_s8 + $0x50] sm:$0xf] %vm3468_vm1, %v4087_v21  ;;  %v4088_v16 = vpack.c.bf16 %v2849_v47, %v2849_v47  ;;  %v5356_v4 = vpop.f32.mrb[88].mxu0  ;;  %v4291_v31 = vpop.f32.mrb[88].mxu1  ;;  %v1888_v47 = vadd.f32 %v5199_v45, %v5176_v48 }
 0x1d2   : > { %3492 = vst.msk [vmem:[%s5223_s8 + $0x5c] sm:$0xf] %vm3468_vm1, %v4090_v41  ;;  %v2422_v24 = vadd.f32 %v4291_v31, %v1877_v22  ;;  %v1950_v10 = vpop.f32.mrb[89].mxu0  ;;  %v2413_v27 = vpop.f32.mrb[89].mxu1 }
 0x1d3   : > { %3490 = vst.msk [vmem:[%s5223_s8 + $0x54] sm:$0xf] %vm3468_vm1, %v4088_v16  ;;  %v2414_v39 = vadd.f32 %v2413_v27, %v1869_v42  ;;  %v5366_v23 = vpop.f32.mrb[90].mxu0  ;;  %v4292_v52 = vpop.f32.mrb[90].mxu1 }
 0x1d4   : > { %v2854_v18 = vmax.f32 %v2422_v24, 0.0  ;;  %v2425_v3 = vadd.f32 %v4292_v52, %v1880_v59  ;;  %v1953_v53 = vpop.f32.mrb[91].mxu0  ;;  %v2416_v58 = vpop.f32.mrb[91].mxu1 }
 0x1d5   : > { %v2852_v28 = vmax.f32 %v2414_v39, 0.0  ;;  %v2417_v63 = vadd.f32 %v2416_v58, %v1872_v55  ;;  %v1909_v39 = vadd.f32 %v5199_v45, %v5235_v0 }
 0x1d6   : > { %v4093_v33 = vpack.c.bf16 %v2854_v18, %v2854_v18  ;;  %v2855_v35 = vmax.f32 %v2425_v3, 0.0  ;;  %v1901_v18 = vadd.f32 %v5199_v45, %v5207_v30 }
 0x1d7   : > { %v4091_v9 = vpack.c.bf16 %v2852_v28, %v2852_v28  ;;  %v2853_v57 = vmax.f32 %v2417_v63, 0.0  ;;  %v1912_v28 = vadd.f32 %v5199_v45, %v5247_v13 }
 0x1d8   : > { %3495 = vst.msk [vmem:[%s5223_s8 + $0x68] sm:$0xf] %vm3468_vm1, %v4093_v33  ;;  %v4094_v49 = vpack.c.bf16 %v2855_v35, %v2855_v35  ;;  %v1904_v35 = vadd.f32 %v5199_v45, %v5216_v60 }
 0x1d9   : > { %3493 = vst.msk [vmem:[%s5223_s8 + $0x60] sm:$0xf] %vm3468_vm1, %v4091_v9  ;;  %v4092_v17 = vpack.c.bf16 %v2853_v57, %v2853_v57  ;;  %v5376_v15 = vpop.f32.mrb[92].mxu0  ;;  %v4295_v51 = vpop.f32.mrb[92].mxu1 }
 0x1da   : > { %3496 = vst.msk [vmem:[%s5223_s8 + $0x6c] sm:$0xf] %vm3468_vm1, %v4094_v49  ;;  %v2438_v5 = vadd.f32 %v4295_v51, %v1893_v19  ;;  %v1958_v21 = vpop.f32.mrb[93].mxu0  ;;  %v2429_v40 = vpop.f32.mrb[93].mxu1 }
 0x1db   : > { %3494 = vst.msk [vmem:[%s5223_s8 + $0x64] sm:$0xf] %vm3468_vm1, %v4092_v17  ;;  %v2430_v12 = vadd.f32 %v2429_v40, %v1885_v7  ;;  %v5386_v22 = vpop.f32.mrb[94].mxu0  ;;  %v4296_v41 = vpop.f32.mrb[94].mxu1  ;;  %v1925_v40 = vadd.f32 %v5199_v45, %v5287_v61 }
 0x1dc   : > { %v2858_v42 = vmax.f32 %v2438_v5, 0.0  ;;  %v2441_v16 = vadd.f32 %v4296_v41, %v1896_v54  ;;  %v1961_v31 = vpop.f32.mrb[95].mxu0  ;;  %v2432_v36 = vpop.f32.mrb[95].mxu1 }
 0x1dd   : > { %v2856_v59 = vmax.f32 %v2430_v12, 0.0  ;;  %v2433_v24 = vadd.f32 %v2432_v36, %v1888_v47  ;;  %v1917_v12 = vadd.f32 %v5199_v45, %v5261_v11  ;;  %v1928_v31 = vadd.f32 %v5199_v45, %v5299_v46 }
 0x1de   : > { %v4097_v10 = vpack.c.bf16 %v2858_v42, %v2858_v42  ;;  %v2859_v27 = vmax.f32 %v2441_v16, 0.0 }
 0x1df   : > { %v4095_v55 = vpack.c.bf16 %v2856_v59, %v2856_v59  ;;  %v2857_v48 = vmax.f32 %v2433_v24, 0.0  ;;  %v1920_v24 = vadd.f32 %v5199_v45, %v5273_v43 }
 0x1e0   : > { %3499 = vst.msk [vmem:[%s5223_s8 + $0x78] sm:$0xf] %vm3468_vm1, %v4097_v10  ;;  %v4098_v52 = vpack.c.bf16 %v2859_v27, %v2859_v27 }
 0x1e1   : > { %3497 = vst.msk [vmem:[%s5223_s8 + $0x70] sm:$0xf] %vm3468_vm1, %v4095_v55  ;;  %v4096_v3 = vpack.c.bf16 %v2857_v48, %v2857_v48  ;;  %v5396_v53 = vpop.f32.mrb[96].mxu0  ;;  %v4299_v58 = vpop.f32.mrb[96].mxu1 }
 0x1e2   : > { %3500 = vst.msk [vmem:[%s5223_s8 + $0x7c] sm:$0xf] %vm3468_vm1, %v4098_v52  ;;  %v2454_v63 = vadd.f32 %v4299_v58, %v1909_v39  ;;  %v1966_v33 = vpop.f32.mrb[97].mxu0  ;;  %v2445_v0 = vpop.f32.mrb[97].mxu1 }
 0x1e3   : > { %3498 = vst.msk [vmem:[%s5223_s8 + $0x74] sm:$0xf] %vm3468_vm1, %v4096_v3  ;;  %v2446_v30 = vadd.f32 %v2445_v0, %v1901_v18  ;;  %v5406_v9 = vpop.f32.mrb[98].mxu0  ;;  %v4300_v57 = vpop.f32.mrb[98].mxu1  ;;  %v1933_v0 = vadd.f32 %v5199_v45, %v5313_v25 }
 0x1e4   : > { %v2862_v19 = vmax.f32 %v2454_v63, 0.0  ;;  %v2457_v49 = vadd.f32 %v4300_v57, %v1912_v28  ;;  %v1969_v7 = vpop.f32.mrb[99].mxu0  ;;  %v2448_v13 = vpop.f32.mrb[99].mxu1  ;;  %v1941_v63 = vadd.f32 %v5199_v45, %v5336_v37 }
 0x1e5   : > { %v2860_v17 = vmax.f32 %v2446_v30, 0.0  ;;  %v2449_v51 = vadd.f32 %v2448_v13, %v1904_v35  ;;  %v1936_v13 = vadd.f32 %v5199_v45, %v5325_v29 }
 0x1e6   : > { %v4101_v54 = vpack.c.bf16 %v2862_v19, %v2862_v19  ;;  %v2863_v5 = vmax.f32 %v2457_v49, 0.0  ;;  %v1944_v19 = vadd.f32 %v5199_v45, %v5346_v1 }
 0x1e7   : > { %v4099_v21 = vpack.c.bf16 %v2860_v17, %v2860_v17  ;;  %v2861_v60 = vmax.f32 %v2449_v51, 0.0 }
 0x1e8   : > { %3503 = vst.msk [vmem:[%s5223_s8 + $0x88] sm:$0xf] %vm3468_vm1, %v4101_v54  ;;  %v4102_v47 = vpack.c.bf16 %v2863_v5, %v2863_v5 }
 0x1e9   : > { %3501 = vst.msk [vmem:[%s5223_s8 + $0x80] sm:$0xf] %vm3468_vm1, %v4099_v21  ;;  %v4100_v41 = vpack.c.bf16 %v2861_v60, %v2861_v60  ;;  %v5416_v42 = vpop.f32.mrb[100].mxu0  ;;  %v4303_v16 = vpop.f32.mrb[100].mxu1 }
 0x1ea   : > { %3504 = vst.msk [vmem:[%s5223_s8 + $0x8c] sm:$0xf] %vm3468_vm1, %v4102_v47  ;;  %v2470_v36 = vadd.f32 %v4303_v16, %v1925_v40  ;;  %v1974_v59 = vpop.f32.mrb[101].mxu0  ;;  %v2461_v61 = vpop.f32.mrb[101].mxu1  ;;  %v1957_v16 = vadd.f32 %v5199_v45, %v5376_v15  ;;  %v1952_v15 = vadd.f32 %v5199_v45, %v5366_v23  ;;  %v1973_v23 = vadd.f32 %v5199_v45, %v5416_v42 }
 0x1eb   : > { %3502 = vst.msk [vmem:[%s5223_s8 + $0x84] sm:$0xf] %vm3468_vm1, %v4100_v41  ;;  %v2462_v11 = vadd.f32 %v2461_v61, %v1917_v12  ;;  %v5426_v10 = vpop.f32.mrb[102].mxu0  ;;  %v4304_v27 = vpop.f32.mrb[102].mxu1  ;;  %v1968_v42 = vadd.f32 %v5199_v45, %v5406_v9 }
 0x1ec   : > { %v2866_v55 = vmax.f32 %v2470_v36, 0.0  ;;  %v2473_v48 = vadd.f32 %v4304_v27, %v1928_v31  ;;  %v1977_v39 = vpop.f32.mrb[103].mxu0  ;;  %v2464_v46 = vpop.f32.mrb[103].mxu1  ;;  %v1949_v36 = vadd.f32 %v5199_v45, %v5356_v4 }
 0x1ed   : > { %v2864_v52 = vmax.f32 %v2462_v11, 0.0  ;;  %v2465_v18 = vadd.f32 %v2464_v46, %v1920_v24  ;;  %v1960_v11 = vadd.f32 %v5199_v45, %v5386_v22 }
 0x1ee   : > { %v4105_v3 = vpack.c.bf16 %v2866_v55, %v2866_v55  ;;  %v2867_v58 = vmax.f32 %v2473_v48, 0.0 }
 0x1ef   : > { %v4103_v28 = vpack.c.bf16 %v2864_v52, %v2864_v52  ;;  %v2865_v43 = vmax.f32 %v2465_v18, 0.0 }
 0x1f0   : > { %3507 = vst.msk [vmem:[%s5223_s8 + $0x98] sm:$0xf] %vm3468_vm1, %v4105_v3  ;;  %v4106_v33 = vpack.c.bf16 %v2867_v58, %v2867_v58 }
 0x1f1   : > { %3505 = vst.msk [vmem:[%s5223_s8 + $0x90] sm:$0xf] %vm3468_vm1, %v4103_v28  ;;  %v4104_v35 = vpack.c.bf16 %v2865_v43, %v2865_v43  ;;  %v5436_v30 = vpop.f32.mrb[104].mxu0  ;;  %v4307_v57 = vpop.f32.mrb[104].mxu1 }
 0x1f2   : > { %3508 = vst.msk [vmem:[%s5223_s8 + $0x9c] sm:$0xf] %vm3468_vm1, %v4106_v33  ;;  %v2486_v49 = vadd.f32 %v4307_v57, %v1941_v63  ;;  %v1982_v7 = vpop.f32.mrb[105].mxu0  ;;  %v2477_v37 = vpop.f32.mrb[105].mxu1  ;;  %v1965_v57 = vadd.f32 %v5199_v45, %v5396_v53 }
 0x1f3   : > { %3506 = vst.msk [vmem:[%s5223_s8 + $0x94] sm:$0xf] %vm3468_vm1, %v4104_v35  ;;  %v2478_v25 = vadd.f32 %v2477_v37, %v1933_v0  ;;  %v5446_v17 = vpop.f32.mrb[106].mxu0  ;;  %v4308_v51 = vpop.f32.mrb[106].mxu1  ;;  %v1976_v37 = vadd.f32 %v5199_v45, %v5426_v10 }
 0x1f4   : > { %v2870_v54 = vmax.f32 %v2486_v49, 0.0  ;;  %v2489_v5 = vadd.f32 %v4308_v51, %v1944_v19  ;;  %v1985_v21 = vpop.f32.mrb[107].mxu0  ;;  %v2480_v1 = vpop.f32.mrb[107].mxu1 }
 0x1f5   : > { %v2868_v60 = vmax.f32 %v2478_v25, 0.0  ;;  %v2481_v40 = vadd.f32 %v2480_v1, %v1936_v13 }
 0x1f6   : > { %v4109_v47 = vpack.c.bf16 %v2870_v54, %v2870_v54  ;;  %v2871_v12 = vmax.f32 %v2489_v5, 0.0 }
 0x1f7   : > { %v4107_v41 = vpack.c.bf16 %v2868_v60, %v2868_v60  ;;  %v2869_v29 = vmax.f32 %v2481_v40, 0.0 }
 0x1f8   : > { %3511 = vst.msk [vmem:[%s5223_s8 + $0xa8] sm:$0xf] %vm3468_vm1, %v4109_v47  ;;  %v4110_v31 = vpack.c.bf16 %v2871_v12, %v2871_v12 }
 0x1f9   : > { %3509 = vst.msk [vmem:[%s5223_s8 + $0xa0] sm:$0xf] %vm3468_vm1, %v4107_v41  ;;  %v4108_v59 = vpack.c.bf16 %v2869_v29, %v2869_v29  ;;  %v1988_v61 = vpop.f32.mrb[108].mxu0  ;;  %v4311_v24 = vpop.f32.mrb[108].mxu1 }
 0x1fa   : > { %3512 = vst.msk [vmem:[%s5223_s8 + $0xac] sm:$0xf] %vm3468_vm1, %v4110_v31  ;;  %v2502_v27 = vadd.f32 %v4311_v24, %v1957_v16  ;;  %v1990_v55 = vpop.f32.mrb[109].mxu0  ;;  %v2493_v48 = vpop.f32.mrb[109].mxu1  ;;  %v1989_v9 = vadd.f32 %v5199_v45, %v1988_v61  ;;  %v1984_v61 = vadd.f32 %v5199_v45, %v5446_v17 }
 0x1fb   : > { %3510 = vst.msk [vmem:[%s5223_s8 + $0xa4] sm:$0xf] %vm3468_vm1, %v4108_v59  ;;  %v2494_v4 = vadd.f32 %v2493_v48, %v1949_v36  ;;  %v1991_v39 = vpop.f32.mrb[110].mxu0  ;;  %v4312_v46 = vpop.f32.mrb[110].mxu1  ;;  %v1981_v36 = vadd.f32 %v5199_v45, %v5436_v30 }
 0x1fc   : > { %v2874_v52 = vmax.f32 %v2502_v27, 0.0  ;;  %v2505_v18 = vadd.f32 %v4312_v46, %v1960_v11  ;;  %v1993_v3 = vpop.f32.mrb[111].mxu0  ;;  %v2496_v58 = vpop.f32.mrb[111].mxu1  ;;  %v1992_v27 = vadd.f32 %v5199_v45, %v1991_v39 }
 0x1fd   : > { %v2872_v22 = vmax.f32 %v2494_v4, 0.0  ;;  %v2497_v28 = vadd.f32 %v2496_v58, %v1952_v15 }
 0x1fe   : > { %v4113_v43 = vpack.c.bf16 %v2874_v52, %v2874_v52  ;;  %v2875_v63 = vmax.f32 %v2505_v18, 0.0 }
 0x1ff   : > { %v4111_v33 = vpack.c.bf16 %v2872_v22, %v2872_v22  ;;  %v2873_v0 = vmax.f32 %v2497_v28, 0.0 }
 0x200   : > { %3515 = vst.msk [vmem:[%s5223_s8 + $0xb8] sm:$0xf] %vm3468_vm1, %v4113_v43  ;;  %v4114_v35 = vpack.c.bf16 %v2875_v63, %v2875_v63 }
 0x201   : > { %3513 = vst.msk [vmem:[%s5223_s8 + $0xb0] sm:$0xf] %vm3468_vm1, %v4111_v33  ;;  %v4112_v19 = vpack.c.bf16 %v2873_v0, %v2873_v0  ;;  %v1996_v49 = vpop.f32.mrb[112].mxu0  ;;  %v4315_v7 = vpop.f32.mrb[112].mxu1 }
 0x202   : > { %3516 = vst.msk [vmem:[%s5223_s8 + $0xbc] sm:$0xf] %vm3468_vm1, %v4114_v35  ;;  %v2518_v13 = vadd.f32 %v4315_v7, %v1973_v23  ;;  %v1998_v25 = vpop.f32.mrb[113].mxu0  ;;  %v2509_v51 = vpop.f32.mrb[113].mxu1  ;;  %v1997_v23 = vadd.f32 %v5199_v45, %v1996_v49 }
 0x203   : > { %3514 = vst.msk [vmem:[%s5223_s8 + $0xb4] sm:$0xf] %vm3468_vm1, %v4112_v19  ;;  %v2510_v53 = vadd.f32 %v2509_v51, %v1965_v57  ;;  %v1999_v54 = vpop.f32.mrb[114].mxu0  ;;  %v4316_v5 = vpop.f32.mrb[114].mxu1 }
 0x204   : > { %v2878_v21 = vmax.f32 %v2518_v13, 0.0  ;;  %v2521_v1 = vadd.f32 %v4316_v5, %v1976_v37  ;;  %v2001_v60 = vpop.f32.mrb[115].mxu0  ;;  %v2512_v40 = vpop.f32.mrb[115].mxu1  ;;  %v2000_v51 = vadd.f32 %v5199_v45, %v1999_v54 }
 0x205   : > { %v2876_v10 = vmax.f32 %v2510_v53, 0.0  ;;  %v2513_v47 = vadd.f32 %v2512_v40, %v1968_v42 }
 0x206   : > { %v4117_v12 = vpack.c.bf16 %v2878_v21, %v2878_v21  ;;  %v2879_v41 = vmax.f32 %v2521_v1, 0.0 }
 0x207   : > { %v4115_v29 = vpack.c.bf16 %v2876_v10, %v2876_v10  ;;  %v2877_v16 = vmax.f32 %v2513_v47, 0.0 }
 0x208   : > { %3519 = vst.msk [vmem:[%s5223_s8 + $0xc8] sm:$0xf] %vm3468_vm1, %v4117_v12  ;;  %v4118_v31 = vpack.c.bf16 %v2879_v41, %v2879_v41 }
 0x209   : > { %3517 = vst.msk [vmem:[%s5223_s8 + $0xc0] sm:$0xf] %vm3468_vm1, %v4115_v29  ;;  %v4116_v59 = vpack.c.bf16 %v2877_v16, %v2877_v16  ;;  %v2004_v24 = vpop.f32.mrb[116].mxu0  ;;  %v4319_v11 = vpop.f32.mrb[116].mxu1 }
 0x20a   : > { %3520 = vst.msk [vmem:[%s5223_s8 + $0xcc] sm:$0xf] %vm3468_vm1, %v4118_v31  ;;  %v2534_v55 = vadd.f32 %v4319_v11, %v1989_v9  ;;  %v2006_v48 = vpop.f32.mrb[117].mxu0  ;;  %v2525_v15 = vpop.f32.mrb[117].mxu1  ;;  %v2005_v17 = vadd.f32 %v5199_v45, %v2004_v24 }
 0x20b   : > { %3518 = vst.msk [vmem:[%s5223_s8 + $0xc4] sm:$0xf] %vm3468_vm1, %v4116_v59  ;;  %v2526_v4 = vadd.f32 %v2525_v15, %v1981_v36  ;;  %v2007_v30 = vpop.f32.mrb[118].mxu0  ;;  %v4320_v46 = vpop.f32.mrb[118].mxu1 }
 0x20c   : > { %v2882_v52 = vmax.f32 %v2534_v55, 0.0  ;;  %v2537_v18 = vadd.f32 %v4320_v46, %v1992_v27  ;;  %v2009_v3 = vpop.f32.mrb[119].mxu0  ;;  %v2528_v58 = vpop.f32.mrb[119].mxu1  ;;  %v2008_v7 = vadd.f32 %v5199_v45, %v2007_v30 }
 0x20d   : > { %v2880_v39 = vmax.f32 %v2526_v4, 0.0  ;;  %v2529_v22 = vadd.f32 %v2528_v58, %v1984_v61 }
 0x20e   : > { %v4121_v28 = vpack.c.bf16 %v2882_v52, %v2882_v52  ;;  %v2883_v43 = vmax.f32 %v2537_v18, 0.0 }
 0x20f   : > { %v4119_v63 = vpack.c.bf16 %v2880_v39, %v2880_v39  ;;  %v2881_v33 = vmax.f32 %v2529_v22, 0.0 }
 0x210   : > { %3523 = vst.msk [vmem:[%s5223_s8 + $0xd8] sm:$0xf] %vm3468_vm1, %v4121_v28  ;;  %v4122_v0 = vpack.c.bf16 %v2883_v43, %v2883_v43 }
 0x211   : > { %3521 = vst.msk [vmem:[%s5223_s8 + $0xd0] sm:$0xf] %vm3468_vm1, %v4119_v63  ;;  %v4120_v35 = vpack.c.bf16 %v2881_v33, %v2881_v33  ;;  %v2012_v57 = vpop.f32.mrb[120].mxu0  ;;  %v4323_v19 = vpop.f32.mrb[120].mxu1 }
 0x212   : > { %3524 = vst.msk [vmem:[%s5223_s8 + $0xdc] sm:$0xf] %vm3468_vm1, %v4122_v0  ;;  %v2550_v37 = vadd.f32 %v4323_v19, %v2005_v17  ;;  %v2014_v13 = vpop.f32.mrb[121].mxu0  ;;  %v2541_v25 = vpop.f32.mrb[121].mxu1  ;;  %v2013_v16 = vadd.f32 %v5199_v45, %v2012_v57 }
 0x213   : > { %3522 = vst.msk [vmem:[%s5223_s8 + $0xd4] sm:$0xf] %vm3468_vm1, %v4120_v35  ;;  %v2542_v42 = vadd.f32 %v2541_v25, %v1997_v23  ;;  %v2015_v49 = vpop.f32.mrb[122].mxu0  ;;  %v4324_v53 = vpop.f32.mrb[122].mxu1 }
 0x214   : > { %v2886_v5 = vmax.f32 %v2550_v37, 0.0  ;;  %v2553_v21 = vadd.f32 %v4324_v53, %v2008_v7  ;;  %v2017_v1 = vpop.f32.mrb[123].mxu0  ;;  %v2544_v60 = vpop.f32.mrb[123].mxu1  ;;  %v2016_v27 = vadd.f32 %v5199_v45, %v2015_v49 }
 0x215   : > { %v2884_v40 = vmax.f32 %v2542_v42, 0.0  ;;  %v2545_v10 = vadd.f32 %v2544_v60, %v2000_v51 }
 0x216   : > { %v4125_v47 = vpack.c.bf16 %v2886_v5, %v2886_v5  ;;  %v2887_v12 = vmax.f32 %v2553_v21, 0.0 }
 0x217   : > { %v4123_v41 = vpack.c.bf16 %v2884_v40, %v2884_v40  ;;  %v2885_v29 = vmax.f32 %v2545_v10, 0.0 }
 0x218   : > { %3527 = vst.msk [vmem:[%s5223_s8 + $0xe8] sm:$0xf] %vm3468_vm1, %v4125_v47  ;;  %v4126_v54 = vpack.c.bf16 %v2887_v12, %v2887_v12 }
 0x219   : > { %3525 = vst.msk [vmem:[%s5223_s8 + $0xe0] sm:$0xf] %vm3468_vm1, %v4123_v41  ;;  %v4124_v9 = vpack.c.bf16 %v2885_v29, %v2885_v29  ;;  %v2020_v31 = vpop.f32.mrb[124].mxu0  ;;  %v4327_v36 = vpop.f32.mrb[124].mxu1 }
 0x21a   : > { %3528 = vst.msk [vmem:[%s5223_s8 + $0xec] sm:$0xf] %vm3468_vm1, %v4126_v54  ;;  %v2021_v59 = vadd.f32 %v5199_v45, %v2020_v31  ;;  %v2022_v24 = vpop.f32.mrb[125].mxu0  ;;  %v2557_v11 = vpop.f32.mrb[125].mxu1  ;;  %v5536_v54 = vld [vmem:[%s5817_s2] ss:$0 sm:$0xff] }
 0x21b   : > { %3526 = vst.msk [vmem:[%s5223_s8 + $0xe4] sm:$0xf] %vm3468_vm1, %v4124_v9  ;;  %v2558_v55 = vadd.f32 %v2557_v11, %v2013_v16  ;;  %v2023_v48 = vpop.f32.mrb[126].mxu0  ;;  %v4328_v15 = vpop.f32.mrb[126].mxu1 }
 0x21c   : > { %v2566_v61 = vadd.f32 %v4327_v36, %v2021_v59  ;;  %v2024_v4 = vadd.f32 %v5199_v45, %v2023_v48  ;;  %v2025_v30 = vpop.f32.mrb[127].mxu0  ;;  %v2560_v46 = vpop.f32.mrb[127].mxu1 }
 0x21d   : > { %v2888_v52 = vmax.f32 %v2558_v55, 0.0  ;;  %v2561_v18 = vadd.f32 %v2560_v46, %v2016_v27 }
 0x21e   : > { %v2890_v3 = vmax.f32 %v2566_v61, 0.0  ;;  %v2569_v58 = vadd.f32 %v4328_v15, %v2024_v4 }
 0x21f   : > { %v4127_v39 = vpack.c.bf16 %v2888_v52, %v2888_v52  ;;  %v2889_v22 = vmax.f32 %v2561_v18, 0.0 }
 0x220   : > { %v4129_v28 = vpack.c.bf16 %v2890_v3, %v2890_v3  ;;  %v2891_v43 = vmax.f32 %v2569_v58, 0.0 }
 0x221   : > { %3529 = vst.msk [vmem:[%s5223_s8 + $0xf0] sm:$0xf] %vm3468_vm1, %v4127_v39  ;;  %v4128_v63 = vpack.c.bf16 %v2889_v22, %v2889_v22  ;;  %v2028_v33 = vpop.f32.mrb[128].mxu0  ;;  %v4331_v17 = vpop.f32.mrb[128].mxu1 }
 0x222   : > { %3531 = vst.msk [vmem:[%s5223_s8 + $0xf8] sm:$0xf] %vm3468_vm1, %v4129_v28  ;;  %v4130_v0 = vpack.c.bf16 %v2891_v43, %v2891_v43  ;;  %v2029_v23 = vadd.f32 %v5199_v45, %v2028_v33  ;;  %v2030_v35 = vpop.f32.mrb[129].mxu0  ;;  %v2573_v57 = vpop.f32.mrb[129].mxu1 }
 0x223   : > { %3530 = vst.msk [vmem:[%s5223_s8 + $0xf4] sm:$0xf] %vm3468_vm1, %v4128_v63  ;;  %v2031_v19 = vpop.f32.mrb[130].mxu0  ;;  %v4332_v7 = vpop.f32.mrb[130].mxu1 }
 0x224   : > { %3532 = vst.msk [vmem:[%s5223_s8 + $0xfc] sm:$0xf] %vm3468_vm1, %v4130_v0  ;;  %v2574_v37 = vadd.f32 %v2573_v57, %v2029_v23  ;;  %v2032_v13 = vadd.f32 %v5199_v45, %v2031_v19  ;;  %v2033_v25 = vpop.f32.mrb[131].mxu0  ;;  %v2576_v51 = vpop.f32.mrb[131].mxu1 }
 0x226   : > { %v2892_v42 = vmax.f32 %v2574_v37, 0.0  ;;  %v2577_v49 = vadd.f32 %v2576_v51, %v2032_v13 }
 0x228   : > { %v4131_v53 = vpack.c.bf16 %v2892_v42, %v2892_v42  ;;  %v2893_v5 = vmax.f32 %v2577_v49, 0.0 }
 0x229   : > { %v2036_v21 = vpop.f32.mrb[132].mxu0  ;;  %v4335_v1 = vpop.f32.mrb[132].mxu1 }
 0x22a   : > { %3533 = vst.msk [vmem:[%s5223_s8 + $0x100] sm:$0xf] %vm3468_vm1, %v4131_v53  ;;  %v4132_v60 = vpack.c.bf16 %v2893_v5, %v2893_v5  ;;  %v2037_v40 = vadd.f32 %v5199_v45, %v2036_v21  ;;  %v2038_v10 = vpop.f32.mrb[133].mxu0  ;;  %v2589_v47 = vpop.f32.mrb[133].mxu1 }
 0x22b   : > { %v2039_v12 = vpop.f32.mrb[134].mxu0  ;;  %v4336_v41 = vpop.f32.mrb[134].mxu1 }
 0x22c   : > { %3534 = vst.msk [vmem:[%s5223_s8 + $0x104] sm:$0xf] %vm3468_vm1, %v4132_v60  ;;  %v2582_v29 = vadd.f32 %v4331_v17, %v2037_v40  ;;  %v2040_v16 = vadd.f32 %v5536_v54, %v2039_v12  ;;  %v2041_v9 = vpop.f32.mrb[135].mxu0  ;;  %v2592_v31 = vpop.f32.mrb[135].mxu1 }
 0x22e   : > { %v2894_v36 = vmax.f32 %v2582_v29, 0.0  ;;  %v2585_v45 = vadd.f32 %v4332_v7, %v2040_v16 }
 0x230   : > { %v4133_v59 = vpack.c.bf16 %v2894_v36, %v2894_v36  ;;  %v2895_v24 = vmax.f32 %v2585_v45, 0.0 }
 0x231   : > { %v2044_v11 = vpop.f32.mrb[136].mxu0  ;;  %v5539_v27 = vpop.f32.mrb[136].mxu1 }
 0x232   : > { %3535 = vst.msk [vmem:[%s5223_s8 + $0x108] sm:$0xf] %vm3468_vm1, %v4133_v59  ;;  %v4134_v55 = vpack.c.bf16 %v2895_v24, %v2895_v24  ;;  %v2045_v48 = vadd.f32 %v5536_v54, %v2044_v11  ;;  %v2046_v15 = vpop.f32.mrb[137].mxu0  ;;  %v2605_v61 = vpop.f32.mrb[137].mxu1 }
 0x233   : > { %v2047_v4 = vpop.f32.mrb[138].mxu0  ;;  %v4340_v30 = vpop.f32.mrb[138].mxu1 }
 0x234   : > { %3536 = vst.msk [vmem:[%s5223_s8 + $0x10c] sm:$0xf] %vm3468_vm1, %v4134_v55  ;;  %v2590_v46 = vadd.f32 %v2589_v47, %v2045_v48  ;;  %v2048_v52 = vadd.f32 %v5536_v54, %v2047_v4  ;;  %v2049_v18 = vpop.f32.mrb[139].mxu0  ;;  %v2608_v3 = vpop.f32.mrb[139].mxu1 }
 0x236   : > { %v2896_v58 = vmax.f32 %v2590_v46, 0.0  ;;  %v2593_v39 = vadd.f32 %v2592_v31, %v2048_v52 }
 0x238   : > { %v4135_v22 = vpack.c.bf16 %v2896_v58, %v2896_v58  ;;  %v2897_v28 = vmax.f32 %v2593_v39, 0.0 }
 0x239   : > { %v2052_v43 = vpop.f32.mrb[140].mxu0  ;;  %v5547_v63 = vpop.f32.mrb[140].mxu1 }
 0x23a   : > { %3537 = vst.msk [vmem:[%s5223_s8 + $0x110] sm:$0xf] %vm3468_vm1, %v4135_v22  ;;  %v4136_v33 = vpack.c.bf16 %v2897_v28, %v2897_v28  ;;  %v2053_v17 = vadd.f32 %v5536_v54, %v2052_v43  ;;  %v2054_v0 = vpop.f32.mrb[141].mxu0  ;;  %v2621_v23 = vpop.f32.mrb[141].mxu1 }
 0x23b   : > { %v2055_v35 = vpop.f32.mrb[142].mxu0  ;;  %v5552_v57 = vpop.f32.mrb[142].mxu1 }
 0x23c   : > { %3538 = vst.msk [vmem:[%s5223_s8 + $0x114] sm:$0xf] %vm3468_vm1, %v4136_v33  ;;  %v2598_v19 = vadd.f32 %v4335_v1, %v2053_v17  ;;  %v2056_v7 = vadd.f32 %v5536_v54, %v2055_v35  ;;  %v2057_v37 = vpop.f32.mrb[143].mxu0  ;;  %v2624_v13 = vpop.f32.mrb[143].mxu1 }
 0x23e   : > { %v2898_v25 = vmax.f32 %v2598_v19, 0.0  ;;  %v2601_v51 = vadd.f32 %v4336_v41, %v2056_v7 }
 0x240   : > { %v4137_v42 = vpack.c.bf16 %v2898_v25, %v2898_v25  ;;  %v2899_v49 = vmax.f32 %v2601_v51, 0.0 }
 0x241   : > { %v2060_v53 = vpop.f32.mrb[144].mxu0  ;;  %v5557_v5 = vpop.f32.mrb[144].mxu1 }
 0x242   : > { %3539 = vst.msk [vmem:[%s5223_s8 + $0x118] sm:$0xf] %vm3468_vm1, %v4137_v42  ;;  %v4138_v21 = vpack.c.bf16 %v2899_v49, %v2899_v49  ;;  %v2061_v60 = vadd.f32 %v5536_v54, %v2060_v53  ;;  %v2062_v40 = vpop.f32.mrb[145].mxu0  ;;  %v5562_v1 = vpop.f32.mrb[145].mxu1 }
 0x243   : > { %v2063_v10 = vpop.f32.mrb[146].mxu0  ;;  %v5564_v47 = vpop.f32.mrb[146].mxu1 }
 0x244   : > { %3540 = vst.msk [vmem:[%s5223_s8 + $0x11c] sm:$0xf] %vm3468_vm1, %v4138_v21  ;;  %v2606_v12 = vadd.f32 %v2605_v61, %v2061_v60  ;;  %v2064_v41 = vadd.f32 %v5536_v54, %v2063_v10  ;;  %v2065_v29 = vpop.f32.mrb[147].mxu0  ;;  %v5569_v16 = vpop.f32.mrb[147].mxu1 }
 0x246   : > { %v2900_v9 = vmax.f32 %v2606_v12, 0.0  ;;  %v2609_v31 = vadd.f32 %v2608_v3, %v2064_v41 }
 0x248   : > { %v4139_v36 = vpack.c.bf16 %v2900_v9, %v2900_v9  ;;  %v2901_v45 = vmax.f32 %v2609_v31, 0.0 }
 0x249   : > { %v2068_v59 = vpop.f32.mrb[148].mxu0  ;;  %v5571_v24 = vpop.f32.mrb[148].mxu1 }
 0x24a   : > { %3541 = vst.msk [vmem:[%s5223_s8 + $0x120] sm:$0xf] %vm3468_vm1, %v4139_v36  ;;  %v4140_v11 = vpack.c.bf16 %v2901_v45, %v2901_v45  ;;  %v2069_v55 = vadd.f32 %v5536_v54, %v2068_v59  ;;  %v2070_v48 = vpop.f32.mrb[149].mxu0  ;;  %v5576_v15 = vpop.f32.mrb[149].mxu1 }
 0x24b   : > { %v2071_v61 = vpop.f32.mrb[150].mxu0  ;;  %v5578_v4 = vpop.f32.mrb[150].mxu1 }
 0x24c   : > { %3542 = vst.msk [vmem:[%s5223_s8 + $0x124] sm:$0xf] %vm3468_vm1, %v4140_v11  ;;  %v2614_v46 = vadd.f32 %v5539_v27, %v2069_v55  ;;  %v2072_v52 = vadd.f32 %v5536_v54, %v2071_v61  ;;  %v2073_v18 = vpop.f32.mrb[151].mxu0  ;;  %v5584_v3 = vpop.f32.mrb[151].mxu1  ;;  %v2165_v55 = vadd.f32 %v5536_v54, %v4990_v14  ;;  %v2160_v14 = vadd.f32 %v5536_v54, %v4982_v8 }
 0x24e   : > { %v2902_v58 = vmax.f32 %v2614_v46, 0.0  ;;  %v2617_v39 = vadd.f32 %v4340_v30, %v2072_v52  ;;  %v2157_v46 = vadd.f32 %v5536_v54, %v4976_v2 }
 0x250   : > { %v4141_v22 = vpack.c.bf16 %v2902_v58, %v2902_v58  ;;  %v2903_v28 = vmax.f32 %v2617_v39, 0.0 }
 0x251   : > { %v2076_v43 = vpop.f32.mrb[152].mxu0  ;;  %v5586_v33 = vpop.f32.mrb[152].mxu1 }
 0x252   : > { %3543 = vst.msk [vmem:[%s5223_s8 + $0x128] sm:$0xf] %vm3468_vm1, %v4141_v22  ;;  %v4142_v17 = vpack.c.bf16 %v2903_v28, %v2903_v28  ;;  %v2077_v0 = vadd.f32 %v5536_v54, %v2076_v43  ;;  %v2078_v27 = vpop.f32.mrb[153].mxu0  ;;  %v5591_v35 = vpop.f32.mrb[153].mxu1 }
 0x253   : > { %v2079_v19 = vpop.f32.mrb[154].mxu0  ;;  %v5593_v7 = vpop.f32.mrb[154].mxu1 }
 0x254   : > { %3544 = vst.msk [vmem:[%s5223_s8 + $0x12c] sm:$0xf] %vm3468_vm1, %v4142_v17  ;;  %v2622_v30 = vadd.f32 %v2621_v23, %v2077_v0  ;;  %v2080_v37 = vadd.f32 %v5536_v54, %v2079_v19  ;;  %v2081_v25 = vpop.f32.mrb[155].mxu0  ;;  %v5598_v51 = vpop.f32.mrb[155].mxu1 }
 0x256   : > { %v2904_v42 = vmax.f32 %v2622_v30, 0.0  ;;  %v2625_v49 = vadd.f32 %v2624_v13, %v2080_v37 }
 0x258   : > { %v4143_v53 = vpack.c.bf16 %v2904_v42, %v2904_v42  ;;  %v2905_v21 = vmax.f32 %v2625_v49, 0.0 }
 0x259   : > { %v2084_v60 = vpop.f32.mrb[156].mxu0  ;;  %v5600_v40 = vpop.f32.mrb[156].mxu1 }
 0x25a   : > { %3545 = vst.msk [vmem:[%s5223_s8 + $0x130] sm:$0xf] %vm3468_vm1, %v4143_v53  ;;  %v4144_v10 = vpack.c.bf16 %v2905_v21, %v2905_v21  ;;  %v2085_v12 = vadd.f32 %v5536_v54, %v2084_v60  ;;  %v2086_v41 = vpop.f32.mrb[157].mxu0  ;;  %v5605_v23 = vpop.f32.mrb[157].mxu1 }
 0x25b   : > { %v2087_v29 = vpop.f32.mrb[158].mxu0  ;;  %v5607_v9 = vpop.f32.mrb[158].mxu1 }
 0x25c   : > { %3546 = vst.msk [vmem:[%s5223_s8 + $0x134] sm:$0xf] %vm3468_vm1, %v4144_v10  ;;  %v2630_v13 = vadd.f32 %v5547_v63, %v2085_v12  ;;  %v2088_v31 = vadd.f32 %v5536_v54, %v2087_v29  ;;  %v2089_v36 = vpop.f32.mrb[159].mxu0  ;;  %v5613_v45 = vpop.f32.mrb[159].mxu1  ;;  %v2168_v63 = vadd.f32 %v5536_v54, %v4996_v20 }
 0x25e   : > { %v2906_v59 = vmax.f32 %v2630_v13, 0.0  ;;  %v2633_v11 = vadd.f32 %v5552_v57, %v2088_v31  ;;  %v2173_v13 = vadd.f32 %v5536_v54, %v5004_v26  ;;  %v2176_v26 = vadd.f32 %v5536_v54, %v5010_v32 }
 0x260   : > { %v4145_v48 = vpack.c.bf16 %v2906_v59, %v2906_v59  ;;  %v2907_v61 = vmax.f32 %v2633_v11, 0.0  ;;  %v2184_v59 = vadd.f32 %v5536_v54, %v5024_v44 }
 0x261   : > { %v2092_v52 = vpop.f32.mrb[160].mxu0  ;;  %v4363_v18 = vpop.f32.mrb[160].mxu1 }
 0x262   : > { %3547 = vst.msk [vmem:[%s5223_s8 + $0x138] sm:$0xf] %vm3468_vm1, %v4145_v48  ;;  %v4146_v58 = vpack.c.bf16 %v2907_v61, %v2907_v61  ;;  %v2093_v39 = vadd.f32 %v5536_v54, %v2092_v52  ;;  %v2710_v57 = vadd.f32 %v4363_v18, %v2165_v55  ;;  %v2094_v22 = vpop.f32.mrb[161].mxu0  ;;  %v2701_v28 = vpop.f32.mrb[161].mxu1 }
 0x263   : > { %v2702_v43 = vadd.f32 %v2701_v28, %v2157_v46  ;;  %v2095_v17 = vpop.f32.mrb[162].mxu0  ;;  %v4364_v0 = vpop.f32.mrb[162].mxu1 }
 0x264   : > { %3548 = vst.msk [vmem:[%s5223_s8 + $0x13c] sm:$0xf] %vm3468_vm1, %v4146_v58  ;;  %v2638_v2 = vadd.f32 %v5562_v1, %v2093_v39  ;;  %v2926_v20 = vmax.f32 %v2710_v57, 0.0  ;;  %v2096_v27 = vadd.f32 %v5536_v54, %v2095_v17  ;;  %v2713_v19 = vadd.f32 %v4364_v0, %v2168_v63  ;;  %v2097_v30 = vpop.f32.mrb[163].mxu0  ;;  %v2704_v37 = vpop.f32.mrb[163].mxu1 }
 0x265   : > { %v2924_v25 = vmax.f32 %v2702_v43, 0.0  ;;  %v2705_v42 = vadd.f32 %v2704_v37, %v2160_v14  ;;  %v2181_v1 = vadd.f32 %v5536_v54, %v5018_v38  ;;  %v2189_v37 = vadd.f32 %v5536_v54, %v5032_v50 }
 0x266   : > { %v2908_v49 = vmax.f32 %v2638_v2, 0.0  ;;  %v4165_v53 = vpack.c.bf16 %v2926_v20, %v2926_v20  ;;  %v2641_v8 = vadd.f32 %v5569_v16, %v2096_v27  ;;  %v2927_v21 = vmax.f32 %v2713_v19, 0.0 }
 0x267   : > { %v4163_v60 = vpack.c.bf16 %v2924_v25, %v2924_v25  ;;  %v2925_v10 = vmax.f32 %v2705_v42, 0.0  ;;  %v2192_v50 = vadd.f32 %v5536_v54, %v5038_v56 }
 0x268   : > { %v4147_v12 = vpack.c.bf16 %v2908_v49, %v2908_v49  ;;  %3567 = vst.msk [vmem:[%s5223_s8 + $0x188] sm:$0xf] %vm3468_vm1, %v4165_v53  ;;  %v2909_v41 = vmax.f32 %v2641_v8, 0.0  ;;  %v4166_v29 = vpack.c.bf16 %v2927_v21, %v2927_v21  ;;  %v2200_v49 = vadd.f32 %v5536_v54, %v5052_v6 }
 0x269   : > { %3565 = vst.msk [vmem:[%s5223_s8 + $0x180] sm:$0xf] %vm3468_vm1, %v4163_v60  ;;  %v4164_v31 = vpack.c.bf16 %v2925_v10, %v2925_v10  ;;  %v2100_v16 = vpop.f32.mrb[164].mxu0  ;;  %v4367_v36 = vpop.f32.mrb[164].mxu1 }
 0x26a   : > { %3549 = vst.msk [vmem:[%s5223_s8 + $0x140] sm:$0xf] %vm3468_vm1, %v4147_v12  ;;  %v4148_v38 = vpack.c.bf16 %v2909_v41, %v2909_v41  ;;  %3568 = vst.msk [vmem:[%s5223_s8 + $0x18c] sm:$0xf] %vm3468_vm1, %v4166_v29  ;;  %v2101_v11 = vadd.f32 %v5536_v54, %v2100_v16  ;;  %v2726_v55 = vadd.f32 %v4367_v36, %v2181_v1  ;;  %v2102_v48 = vpop.f32.mrb[165].mxu0  ;;  %v2717_v61 = vpop.f32.mrb[165].mxu1 }
 0x26b   : > { %3566 = vst.msk [vmem:[%s5223_s8 + $0x184] sm:$0xf] %vm3468_vm1, %v4164_v31  ;;  %v2718_v46 = vadd.f32 %v2717_v61, %v2173_v13  ;;  %v2103_v52 = vpop.f32.mrb[166].mxu0  ;;  %v4368_v18 = vpop.f32.mrb[166].mxu1 }
 0x26c   : > { %3550 = vst.msk [vmem:[%s5223_s8 + $0x144] sm:$0xf] %vm3468_vm1, %v4148_v38  ;;  %v2646_v44 = vadd.f32 %v5557_v5, %v2101_v11  ;;  %v2930_v63 = vmax.f32 %v2726_v55, 0.0  ;;  %v2104_v58 = vadd.f32 %v5536_v54, %v2103_v52  ;;  %v2729_v39 = vadd.f32 %v4368_v18, %v2184_v59  ;;  %v2105_v57 = vpop.f32.mrb[167].mxu0  ;;  %v2720_v22 = vpop.f32.mrb[167].mxu1  ;;  %v5838_v18 = vld [vmem:[#allocation2_spill] sm:$0xff] }
 0x26d   : > { %v2928_v28 = vmax.f32 %v2718_v46, 0.0  ;;  %v2721_v14 = vadd.f32 %v2720_v22, %v2176_v26  ;;  %v2197_v5 = vadd.f32 %v5536_v54, %v5046_v62 }
 0x26e   : > { %v2910_v32 = vmax.f32 %v2646_v44, 0.0  ;;  %v4169_v43 = vpack.c.bf16 %v2930_v63, %v2930_v63  ;;  %v2649_v17 = vadd.f32 %v5564_v47, %v2104_v58  ;;  %v2931_v0 = vmax.f32 %v2729_v39, 0.0  ;;  %v5839_v39 = vld [vmem:[#allocation4_spill] sm:$0xff] }
 0x26f   : > { %v4167_v2 = vpack.c.bf16 %v2928_v28, %v2928_v28  ;;  %v2929_v20 = vmax.f32 %v2721_v14, 0.0  ;;  %v2205_v44 = vadd.f32 %v5536_v54, %v5838_v18  ;;  %v2216_v57 = vadd.f32 %v5536_v54, %v5839_v39 }
 0x270   : > { %v4149_v27 = vpack.c.bf16 %v2910_v32, %v2910_v32  ;;  %3571 = vst.msk [vmem:[%s5223_s8 + $0x198] sm:$0xf] %vm3468_vm1, %v4169_v43  ;;  %v2911_v19 = vmax.f32 %v2649_v17, 0.0  ;;  %v4170_v30 = vpack.c.bf16 %v2931_v0, %v2931_v0  ;;  %v5840_v43 = vld [vmem:[#allocation3_spill] sm:$0xff] }
 0x271   : > { %3569 = vst.msk [vmem:[%s5223_s8 + $0x190] sm:$0xf] %vm3468_vm1, %v4167_v2  ;;  %v4168_v25 = vpack.c.bf16 %v2929_v20, %v2929_v20  ;;  %v2108_v47 = vpop.f32.mrb[168].mxu0  ;;  %v4371_v42 = vpop.f32.mrb[168].mxu1  ;;  %v2208_v17 = vadd.f32 %v5536_v54, %v5840_v43 }
 0x272   : > { %3551 = vst.msk [vmem:[%s5223_s8 + $0x148] sm:$0xf] %vm3468_vm1, %v4149_v27  ;;  %v4150_v62 = vpack.c.bf16 %v2911_v19, %v2911_v19  ;;  %3572 = vst.msk [vmem:[%s5223_s8 + $0x19c] sm:$0xf] %vm3468_vm1, %v4170_v30  ;;  %v2109_v53 = vadd.f32 %v5536_v54, %v2108_v47  ;;  %v2742_v8 = vadd.f32 %v4371_v42, %v2197_v5  ;;  %v2110_v21 = vpop.f32.mrb[169].mxu0  ;;  %v2733_v60 = vpop.f32.mrb[169].mxu1 }
 0x273   : > { %3570 = vst.msk [vmem:[%s5223_s8 + $0x194] sm:$0xf] %vm3468_vm1, %v4168_v25  ;;  %v2734_v10 = vadd.f32 %v2733_v60, %v2189_v37  ;;  %v2111_v1 = vpop.f32.mrb[170].mxu0  ;;  %v4372_v12 = vpop.f32.mrb[170].mxu1 }
 0x274   : > { %3552 = vst.msk [vmem:[%s5223_s8 + $0x14c] sm:$0xf] %vm3468_vm1, %v4150_v62  ;;  %v2654_v6 = vadd.f32 %v5576_v15, %v2109_v53  ;;  %v2934_v41 = vmax.f32 %v2742_v8, 0.0  ;;  %v2112_v29 = vadd.f32 %v5536_v54, %v2111_v1  ;;  %v2745_v13 = vadd.f32 %v4372_v12, %v2200_v49  ;;  %v2113_v31 = vpop.f32.mrb[171].mxu0  ;;  %v2736_v16 = vpop.f32.mrb[171].mxu1 }
 0x275   : > { %v2932_v36 = vmax.f32 %v2734_v10, 0.0  ;;  %v2737_v59 = vadd.f32 %v2736_v16, %v2192_v50  ;;  %v2213_v15 = vadd.f32 %v5536_v54, %v5074_v34  ;;  %v5843_v31 = vld [vmem:[#allocation8_spill] sm:$0xff] }
 0x276   : > { %v2912_v56 = vmax.f32 %v2654_v6, 0.0  ;;  %v4173_v38 = vpack.c.bf16 %v2934_v41, %v2934_v41  ;;  %v2657_v11 = vadd.f32 %v5584_v3, %v2112_v29  ;;  %v2935_v55 = vmax.f32 %v2745_v13, 0.0  ;;  %v5842_v6 = vld [vmem:[#allocation5_spill] sm:$0xff] }
 0x277   : > { %v4171_v48 = vpack.c.bf16 %v2932_v36, %v2932_v36  ;;  %v2933_v61 = vmax.f32 %v2737_v59, 0.0  ;;  %v2221_v41 = vadd.f32 %v5536_v54, %v5842_v6  ;;  %v2232_v16 = vadd.f32 %v5536_v54, %v5843_v31 }
 0x278   : > { %v4151_v26 = vpack.c.bf16 %v2912_v56, %v2912_v56  ;;  %3575 = vst.msk [vmem:[%s5223_s8 + $0x1a8] sm:$0xf] %vm3468_vm1, %v4173_v38  ;;  %v2913_v46 = vmax.f32 %v2657_v11, 0.0  ;;  %v4174_v52 = vpack.c.bf16 %v2935_v55, %v2935_v55  ;;  %v5844_v55 = vld [vmem:[#allocation6_spill] sm:$0xff] }
 0x279   : > { %3573 = vst.msk [vmem:[%s5223_s8 + $0x1a0] sm:$0xf] %vm3468_vm1, %v4171_v48  ;;  %v4172_v63 = vpack.c.bf16 %v2933_v61, %v2933_v61  ;;  %v2116_v3 = vpop.f32.mrb[172].mxu0  ;;  %v4375_v58 = vpop.f32.mrb[172].mxu1  ;;  %v2224_v48 = vadd.f32 %v5536_v54, %v5844_v55 }
 0x27a   : > { %3553 = vst.msk [vmem:[%s5223_s8 + $0x150] sm:$0xf] %vm3468_vm1, %v4151_v26  ;;  %v4152_v34 = vpack.c.bf16 %v2913_v46, %v2913_v46  ;;  %3576 = vst.msk [vmem:[%s5223_s8 + $0x1ac] sm:$0xf] %vm3468_vm1, %v4174_v52  ;;  %v2117_v22 = vadd.f32 %v5536_v54, %v2116_v3  ;;  %v2758_v28 = vadd.f32 %v4375_v58, %v2213_v15  ;;  %v2118_v14 = vpop.f32.mrb[173].mxu0  ;;  %v2749_v32 = vpop.f32.mrb[173].mxu1 }
 0x27b   : > { %3574 = vst.msk [vmem:[%s5223_s8 + $0x1a4] sm:$0xf] %vm3468_vm1, %v4172_v63  ;;  %v2750_v0 = vadd.f32 %v2749_v32, %v2205_v44  ;;  %v2119_v2 = vpop.f32.mrb[174].mxu0  ;;  %v4376_v20 = vpop.f32.mrb[174].mxu1 }
 0x27c   : > { %3554 = vst.msk [vmem:[%s5223_s8 + $0x154] sm:$0xf] %vm3468_vm1, %v4152_v34  ;;  %v2662_v5 = vadd.f32 %v5571_v24, %v2117_v22  ;;  %v2938_v27 = vmax.f32 %v2758_v28, 0.0  ;;  %v2120_v19 = vadd.f32 %v5536_v54, %v2119_v2  ;;  %v2761_v30 = vadd.f32 %v4376_v20, %v2216_v57  ;;  %v2121_v37 = vpop.f32.mrb[175].mxu0  ;;  %v2752_v25 = vpop.f32.mrb[175].mxu1  ;;  %v5841_v24 = vld [vmem:[#allocation7_spill] sm:$0xff] }
 0x27d   : > { %v2936_v47 = vmax.f32 %v2750_v0, 0.0  ;;  %v2753_v42 = vadd.f32 %v2752_v25, %v2208_v17  ;;  %v2229_v50 = vadd.f32 %v5536_v54, %v5841_v24  ;;  %v5846_v20 = vld [vmem:[#allocation9_spill] sm:$0xff] }
 0x27e   : > { %v2914_v49 = vmax.f32 %v2662_v5, 0.0  ;;  %v4177_v62 = vpack.c.bf16 %v2938_v27, %v2938_v27  ;;  %v2665_v53 = vadd.f32 %v5578_v4, %v2120_v19  ;;  %v2939_v8 = vmax.f32 %v2761_v30, 0.0  ;;  %v5847_v30 = vld [vmem:[#allocation12_spill] sm:$0xff] }
 0x27f   : > { %v4175_v21 = vpack.c.bf16 %v2936_v47, %v2936_v47  ;;  %v2937_v60 = vmax.f32 %v2753_v42, 0.0  ;;  %v2237_v5 = vadd.f32 %v5536_v54, %v5846_v20  ;;  %v2248_v37 = vadd.f32 %v5536_v54, %v5847_v30 }
 0x280   : > { %v4153_v10 = vpack.c.bf16 %v2914_v49, %v2914_v49  ;;  %3579 = vst.msk [vmem:[%s5223_s8 + $0x1b8] sm:$0xf] %vm3468_vm1, %v4177_v62  ;;  %v2915_v1 = vmax.f32 %v2665_v53, 0.0  ;;  %v4178_v12 = vpack.c.bf16 %v2939_v8, %v2939_v8  ;;  %v5848_v53 = vld [vmem:[#allocation10_spill] sm:$0xff] }
 0x281   : > { %3577 = vst.msk [vmem:[%s5223_s8 + $0x1b0] sm:$0xf] %vm3468_vm1, %v4175_v21  ;;  %v4176_v29 = vpack.c.bf16 %v2937_v60, %v2937_v60  ;;  %v2124_v4 = vpop.f32.mrb[176].mxu0  ;;  %v4379_v13 = vpop.f32.mrb[176].mxu1  ;;  %v2240_v8 = vadd.f32 %v5536_v54, %v5848_v53  ;;  %v5854_v53 = vld [vmem:[#allocation17_spill] sm:$0xff] }
 0x282   : > { %3555 = vst.msk [vmem:[%s5223_s8 + $0x158] sm:$0xf] %vm3468_vm1, %v4153_v10  ;;  %v4154_v36 = vpack.c.bf16 %v2915_v1, %v2915_v1  ;;  %3580 = vst.msk [vmem:[%s5223_s8 + $0x1bc] sm:$0xf] %vm3468_vm1, %v4178_v12  ;;  %v2125_v59 = vadd.f32 %v5536_v54, %v2124_v4  ;;  %v2774_v56 = vadd.f32 %v4379_v13, %v2229_v50  ;;  %v2126_v38 = vpop.f32.mrb[177].mxu0  ;;  %v2765_v11 = vpop.f32.mrb[177].mxu1 }
 0x283   : > { %3578 = vst.msk [vmem:[%s5223_s8 + $0x1b4] sm:$0xf] %vm3468_vm1, %v4176_v29  ;;  %v2766_v61 = vadd.f32 %v2765_v11, %v2221_v41  ;;  %v2127_v15 = vpop.f32.mrb[178].mxu0  ;;  %v4380_v26 = vpop.f32.mrb[178].mxu1 }
 0x284   : > { %3556 = vst.msk [vmem:[%s5223_s8 + $0x15c] sm:$0xf] %vm3468_vm1, %v4154_v36  ;;  %v2670_v46 = vadd.f32 %v5591_v35, %v2125_v59  ;;  %v2942_v52 = vmax.f32 %v2774_v56, 0.0  ;;  %v2128_v18 = vadd.f32 %v5536_v54, %v2127_v15  ;;  %v2777_v44 = vadd.f32 %v4380_v26, %v2232_v16  ;;  %v2129_v63 = vpop.f32.mrb[179].mxu0  ;;  %v2768_v3 = vpop.f32.mrb[179].mxu1  ;;  %v5845_v35 = vld [vmem:[#allocation11_spill] sm:$0xff] }
 0x285   : > { %v2940_v58 = vmax.f32 %v2766_v61, 0.0  ;;  %v2769_v39 = vadd.f32 %v2768_v3, %v2224_v48  ;;  %v2245_v43 = vadd.f32 %v5536_v54, %v5845_v35  ;;  %v5850_v61 = vld [vmem:[#allocation13_spill] sm:$0xff] }
 0x286   : > { %v2916_v57 = vmax.f32 %v2670_v46, 0.0  ;;  %v4181_v34 = vpack.c.bf16 %v2942_v52, %v2942_v52  ;;  %v2673_v22 = vadd.f32 %v5598_v51, %v2128_v18  ;;  %v2943_v28 = vmax.f32 %v2777_v44, 0.0  ;;  %v5851_v52 = vld [vmem:[#allocation16_spill] sm:$0xff] }
 0x287   : > { %v4179_v14 = vpack.c.bf16 %v2940_v58, %v2940_v58  ;;  %v2941_v32 = vmax.f32 %v2769_v39, 0.0  ;;  %v2253_v15 = vadd.f32 %v5536_v54, %v5850_v61  ;;  %v2264_v18 = vadd.f32 %v5536_v54, %v5851_v52 }
 0x288   : > { %v4155_v17 = vpack.c.bf16 %v2916_v57, %v2916_v57  ;;  %3583 = vst.msk [vmem:[%s5223_s8 + $0x1c8] sm:$0xf] %vm3468_vm1, %v4181_v34  ;;  %v2917_v0 = vmax.f32 %v2673_v22, 0.0  ;;  %v4182_v2 = vpack.c.bf16 %v2943_v28, %v2943_v28  ;;  %v5852_v57 = vld [vmem:[#allocation14_spill] sm:$0xff] }
 0x289   : > { %3581 = vst.msk [vmem:[%s5223_s8 + $0x1c0] sm:$0xf] %vm3468_vm1, %v4179_v14  ;;  %v4180_v27 = vpack.c.bf16 %v2941_v32, %v2941_v32  ;;  %v2132_v51 = vpop.f32.mrb[180].mxu0  ;;  %v4383_v19 = vpop.f32.mrb[180].mxu1  ;;  %v2256_v34 = vadd.f32 %v5536_v54, %v5852_v57 }
 0x28a   : > { %3557 = vst.msk [vmem:[%s5223_s8 + $0x160] sm:$0xf] %vm3468_vm1, %v4155_v17  ;;  %v4156_v25 = vpack.c.bf16 %v2917_v0, %v2917_v0  ;;  %3584 = vst.msk [vmem:[%s5223_s8 + $0x1cc] sm:$0xf] %vm3468_vm1, %v4182_v2  ;;  %v2133_v47 = vadd.f32 %v5536_v54, %v2132_v51  ;;  %v2790_v42 = vadd.f32 %v4383_v19, %v2245_v43  ;;  %v2134_v49 = vpop.f32.mrb[181].mxu0  ;;  %v2781_v62 = vpop.f32.mrb[181].mxu1 }
 0x28b   : > { %3582 = vst.msk [vmem:[%s5223_s8 + $0x1c4] sm:$0xf] %vm3468_vm1, %v4180_v27  ;;  %v2782_v21 = vadd.f32 %v2781_v62, %v2237_v5  ;;  %v2135_v60 = vpop.f32.mrb[182].mxu0  ;;  %v4384_v24 = vpop.f32.mrb[182].mxu1 }
 0x28c   : > { %3558 = vst.msk [vmem:[%s5223_s8 + $0x164] sm:$0xf] %vm3468_vm1, %v4156_v25  ;;  %v2678_v50 = vadd.f32 %v5586_v33, %v2133_v47  ;;  %v2946_v10 = vmax.f32 %v2790_v42, 0.0  ;;  %v2136_v1 = vadd.f32 %v5536_v54, %v2135_v60  ;;  %v2793_v12 = vadd.f32 %v4384_v24, %v2248_v37  ;;  %v2137_v6 = vpop.f32.mrb[183].mxu0  ;;  %v2784_v41 = vpop.f32.mrb[183].mxu1  ;;  %v5849_v33 = vld [vmem:[#allocation15_spill] sm:$0xff] }
 0x28d   : > { %v2944_v29 = vmax.f32 %v2782_v21, 0.0  ;;  %v2785_v4 = vadd.f32 %v2784_v41, %v2240_v8  ;;  %v2261_v38 = vadd.f32 %v5536_v54, %v5849_v33  ;;  %v2269_v8 = vadd.f32 %v5536_v54, %v5854_v53  ;;  %v5855_v24 = vld [vmem:[#allocation20_spill] sm:$0xff] }
 0x28e   : > { %v2918_v13 = vmax.f32 %v2678_v50, 0.0  ;;  %v4185_v31 = vpack.c.bf16 %v2946_v10, %v2946_v10  ;;  %v2681_v16 = vadd.f32 %v5593_v7, %v2136_v1  ;;  %v2947_v36 = vmax.f32 %v2793_v12, 0.0 }
 0x28f   : > { %v4183_v59 = vpack.c.bf16 %v2944_v29, %v2944_v29  ;;  %v2945_v56 = vmax.f32 %v2785_v4, 0.0  ;;  %v2280_v50 = vadd.f32 %v5536_v54, %v5855_v24  ;;  %v5856_v29 = vld [vmem:[#allocation18_spill] sm:$0xff] }
 0x290   : > { %v4157_v11 = vpack.c.bf16 %v2918_v13, %v2918_v13  ;;  %3587 = vst.msk [vmem:[%s5223_s8 + $0x1d8] sm:$0xf] %vm3468_vm1, %v4185_v31  ;;  %v2919_v55 = vmax.f32 %v2681_v16, 0.0  ;;  %v4186_v48 = vpack.c.bf16 %v2947_v36, %v2947_v36  ;;  %v2272_v4 = vadd.f32 %v5536_v54, %v5856_v29 }
 0x291   : > { %3585 = vst.msk [vmem:[%s5223_s8 + $0x1d0] sm:$0xf] %vm3468_vm1, %v4183_v59  ;;  %v4184_v26 = vpack.c.bf16 %v2945_v56, %v2945_v56  ;;  %v2140_v7 = vpop.f32.mrb[184].mxu0  ;;  %v4387_v46 = vpop.f32.mrb[184].mxu1 }
 0x292   : > { %3559 = vst.msk [vmem:[%s5223_s8 + $0x168] sm:$0xf] %vm3468_vm1, %v4157_v11  ;;  %v4158_v44 = vpack.c.bf16 %v2919_v55, %v2919_v55  ;;  %3588 = vst.msk [vmem:[%s5223_s8 + $0x1dc] sm:$0xf] %vm3468_vm1, %v4186_v48  ;;  %v2141_v63 = vadd.f32 %v5536_v54, %v2140_v7  ;;  %v2806_v3 = vadd.f32 %v4387_v46, %v2261_v38  ;;  %v2142_v58 = vpop.f32.mrb[185].mxu0  ;;  %v2797_v39 = vpop.f32.mrb[185].mxu1 }
 0x293   : > { %3586 = vst.msk [vmem:[%s5223_s8 + $0x1d4] sm:$0xf] %vm3468_vm1, %v4184_v26  ;;  %v2798_v22 = vadd.f32 %v2797_v39, %v2253_v15  ;;  %v2143_v28 = vpop.f32.mrb[186].mxu0  ;;  %v4388_v14 = vpop.f32.mrb[186].mxu1 }
 0x294   : > { %3560 = vst.msk [vmem:[%s5223_s8 + $0x16c] sm:$0xf] %vm3468_vm1, %v4158_v44  ;;  %v2686_v32 = vadd.f32 %v5605_v23, %v2141_v63  ;;  %v2950_v35 = vmax.f32 %v2806_v3, 0.0  ;;  %v2144_v43 = vadd.f32 %v5536_v54, %v2143_v28  ;;  %v2809_v17 = vadd.f32 %v4388_v14, %v2264_v18  ;;  %v2145_v0 = vpop.f32.mrb[187].mxu0  ;;  %v2800_v2 = vpop.f32.mrb[187].mxu1  ;;  %v5853_v23 = vld [vmem:[#allocation19_spill] sm:$0xff] }
 0x295   : > { %v2948_v20 = vmax.f32 %v2798_v22, 0.0  ;;  %v2801_v5 = vadd.f32 %v2800_v2, %v2256_v34  ;;  %v2277_v47 = vadd.f32 %v5536_v54, %v5853_v23 }
 0x296   : > { %v2920_v27 = vmax.f32 %v2686_v32, 0.0  ;;  %v4189_v51 = vpack.c.bf16 %v2950_v35, %v2950_v35  ;;  %v2689_v19 = vadd.f32 %v5613_v45, %v2144_v43  ;;  %v2951_v30 = vmax.f32 %v2809_v17, 0.0 }
 0x297   : > { %v4187_v37 = vpack.c.bf16 %v2948_v20, %v2948_v20  ;;  %v2949_v25 = vmax.f32 %v2801_v5, 0.0 }
 0x298   : > { %v4159_v42 = vpack.c.bf16 %v2920_v27, %v2920_v27  ;;  %3591 = vst.msk [vmem:[%s5223_s8 + $0x1e8] sm:$0xf] %vm3468_vm1, %v4189_v51  ;;  %v2921_v49 = vmax.f32 %v2689_v19, 0.0  ;;  %v4190_v62 = vpack.c.bf16 %v2951_v30, %v2951_v30 }
 0x299   : > { %3589 = vst.msk [vmem:[%s5223_s8 + $0x1e0] sm:$0xf] %vm3468_vm1, %v4187_v37  ;;  %v4188_v21 = vpack.c.bf16 %v2949_v25, %v2949_v25  ;;  %v2148_v45 = vpop.f32.mrb[188].mxu0  ;;  %v4391_v60 = vpop.f32.mrb[188].mxu1 }
 0x29a   : > { %3561 = vst.msk [vmem:[%s5223_s8 + $0x170] sm:$0xf] %vm3468_vm1, %v4159_v42  ;;  %v4160_v10 = vpack.c.bf16 %v2921_v49, %v2921_v49  ;;  %3592 = vst.msk [vmem:[%s5223_s8 + $0x1ec] sm:$0xf] %vm3468_vm1, %v4190_v62  ;;  %v2149_v1 = vadd.f32 %v5536_v54, %v2148_v45  ;;  %v2822_v12 = vadd.f32 %v4391_v60, %v2277_v47  ;;  %v2150_v6 = vpop.f32.mrb[189].mxu0  ;;  %v2813_v41 = vpop.f32.mrb[189].mxu1 }
 0x29b   : > { %3590 = vst.msk [vmem:[%s5223_s8 + $0x1e4] sm:$0xf] %vm3468_vm1, %v4188_v21  ;;  %v2814_v13 = vadd.f32 %v2813_v41, %v2269_v8  ;;  %v2151_v31 = vpop.f32.mrb[190].mxu0  ;;  %v4392_v16 = vpop.f32.mrb[190].mxu1 }
 0x29c   : > { %3562 = vst.msk [vmem:[%s5223_s8 + $0x174] sm:$0xf] %vm3468_vm1, %v4160_v10  ;;  %v2694_v36 = vadd.f32 %v5600_v40, %v2149_v1  ;;  %v2954_v59 = vmax.f32 %v2822_v12, 0.0  ;;  %v2152_v56 = vadd.f32 %v5536_v54, %v2151_v31  ;;  %v2825_v33 = vadd.f32 %v4392_v16, %v2280_v50  ;;  %v2153_v38 = vpop.f32.mrb[191].mxu0  ;;  %v2816_v11 = vpop.f32.mrb[191].mxu1 }
 0x29d   : > { %v2952_v55 = vmax.f32 %v2814_v13, 0.0  ;;  %v2817_v48 = vadd.f32 %v2816_v11, %v2272_v4 }
 0x29e   : > { %v2922_v61 = vmax.f32 %v2694_v36, 0.0  ;;  %v4193_v15 = vpack.c.bf16 %v2954_v59, %v2954_v59  ;;  %v2697_v26 = vadd.f32 %v5607_v9, %v2152_v56  ;;  %v2955_v7 = vmax.f32 %v2825_v33, 0.0 }
 0x29f   : > { %v4191_v46 = vpack.c.bf16 %v2952_v55, %v2952_v55  ;;  %v2953_v40 = vmax.f32 %v2817_v48, 0.0 }
 0x2a0   : > { %v4161_v52 = vpack.c.bf16 %v2922_v61, %v2922_v61  ;;  %3595 = vst.msk [vmem:[%s5223_s8 + $0x1f8] sm:$0xf] %vm3468_vm1, %v4193_v15  ;;  %v2923_v54 = vmax.f32 %v2697_v26, 0.0  ;;  %v4194_v18 = vpack.c.bf16 %v2955_v7, %v2955_v7 }
 0x2a1   : > { %3593 = vst.msk [vmem:[%s5223_s8 + $0x1f0] sm:$0xf] %vm3468_vm1, %v4191_v46  ;;  %v4192_v44 = vpack.c.bf16 %v2953_v40, %v2953_v40 }
 0x2a2   : > { %3563 = vst.msk [vmem:[%s5223_s8 + $0x178] sm:$0xf] %vm3468_vm1, %v4161_v52  ;;  %v4162_v63 = vpack.c.bf16 %v2923_v54, %v2923_v54  ;;  %3596 = vst.msk [vmem:[%s5223_s8 + $0x1fc] sm:$0xf] %vm3468_vm1, %v4194_v18 }
 0x2a3   : > { %3594 = vst.msk [vmem:[%s5223_s8 + $0x1f4] sm:$0xf] %vm3468_vm1, %v4192_v44 }
 0x2a4   : > { %3564 = vst.msk [vmem:[%s5223_s8 + $0x17c] sm:$0xf] %vm3468_vm1, %v4162_v63 }
 0x2a5 PF: > { %s13_s12 = sadd.s32 1, %s4716_s12  }
 0x2a6   : > { %p10_p4 = scmp.ge.s32.totalorder %s13_s12, 4  }
 0x2a8   :  { %12 = sbr.rel (!%p10_p4) target bundleno = 1 (0x1), region = 62 }

// kernel: custom_model_forward.6
= control target key start
LH: loop header
LB: loop body
LE: loop exit
PB: predicated region body
PF: predicated region fallthrough
CT: control target
= control target key end

     0   :  { %s2537_s12 = smov 0   ;;  %s2930_s0 = inlined_call_operand.vmem [shape: bf16[512,576], index: 0, kind: input, shape index: {}]   ;;  %s2931_s1 = inlined_call_operand.vmem [shape: bf16[576,128], index: 1, kind: input, shape index: {}]   ;;  %s2932_s2 = inlined_call_operand.vmem [shape: f32[1,128], index: 2, kind: input, shape index: {}]   ;;  %s2933_s3 = inlined_call_operand.vmem [shape: bf16[512,128], index: 3, kind: output, shape index: {}]  }
   0x1 LB: > { %s1749_s13 = sadd.s32 4294967295, %s2515_s12   ;;  %p1753_p0 = scmp.ge.s32.totalorder %s2515_s12, 1  ;;  %s2515_s12 = sphi %s2537_s12, %s13_s12  }
   0x2   : > { %p139_p1 = scmp.lt.s32.totalorder %s2515_s12, 3 }
   0x4   : > { %p140_p2 = pnand %p1753_p0, %p139_p1 }
   0x5   : > { %v2361_v0 = vld [vmem:[%s2931_s1 + $0x40] sm:$0xff] (!%p140_p2)   ;;  %s1754_s16 = sshll.u32 (!%p140_p2), %s1749_s13, 5  ;;  %v2363_v2 = vld [vmem:[%s2931_s1 + $0x48] sm:$0xff] (!%p140_p2)   ;;  %v2365_v4 = vld [vmem:[%s2931_s1 + $0x50] sm:$0xff] (!%p140_p2)   ;;  %vm969_vm0 = vcmask (!%p140_p2), 523264  }
   0x6   : > { %143 = sbr.rel (%p140_p2) target bundleno = 416 (0x1a0), region = 32  ;;  %v2362_v1 = vld [vmem:[%s2931_s1] sm:$0xff] (!%p140_p2)   ;;  %2052 = vmatprep.subr.bf16.mxu0 (!%p140_p2), %v2361_v0  ;;  %2336 = vmatprep.subr.bf16.mxu1 (!%p140_p2), %v2361_v0  ;;  %p165_p3 = scmp.lt.s32.totalorder (!%p140_p2), %s1754_s16, 63  ;;  %v2364_v3 = vld [vmem:[%s2931_s1 + $0x8] sm:$0xff] (!%p140_p2)   ;;  %v2366_v5 = vld [vmem:[%s2931_s1 + $0x10] sm:$0xff] (!%p140_p2)  }
   0x7   : > { %2053 = vmatpush3.bf16.msra.mxu0 (!%p140_p2), %v2362_v1  ;;  %2344 = vmatpush3.bf16.msra.mxu1 (!%p140_p2), %v2362_v1  ;;  %v2367_v6 = vld [vmem:[%s2931_s1 + $0x58] sm:$0xff] (!%p140_p2)   ;;  %v2369_v8 = vld [vmem:[%s2931_s1 + $0x60] sm:$0xff] (!%p140_p2)   ;;  %v2371_v10 = vld [vmem:[%s2931_s1 + $0x68] sm:$0xff] (!%p140_p2)  }
   0x8   : > { %2054 = vmatprep.subr.bf16.mxu0 (!%p140_p2), %v2363_v2  ;;  %2337 = vmatprep.subr.bf16.mxu1 (!%p140_p2), %v2363_v2  ;;  %v2368_v7 = vld [vmem:[%s2931_s1 + $0x18] sm:$0xff] (!%p140_p2)   ;;  %v2370_v9 = vld [vmem:[%s2931_s1 + $0x20] sm:$0xff] (!%p140_p2)   ;;  %v2372_v13 = vld [vmem:[%s2931_s1 + $0x28] sm:$0xff] (!%p140_p2)  }
   0x9   : > { %v2373_v14 = vld [vmem:[%s2931_s1 + $0x70] sm:$0xff] (!%p140_p2)   ;;  %v2375_v16 = vld [vmem:[%s2931_s1 + $0x78] sm:$0xff] (!%p140_p2)   ;;  %v2383_v18 = vld [vmem:[%s2931_s1 + $0xc0] sm:$0xff] (!%p140_p2)  }
   0xa   : > { %v2374_v15 = vld [vmem:[%s2931_s1 + $0x30] sm:$0xff] (!%p140_p2)   ;;  %v2376_v17 = vld [vmem:[%s2931_s1 + $0x38] sm:$0xff] (!%p140_p2)   ;;  %v2386_v19 = vld [vmem:[%s2931_s1 + $0x100] sm:$0xff] (!%p140_p2)  }
   0xb   : > { %2055 = vmatpush3.bf16.msra.mxu0 (!%p140_p2), %v2364_v3  ;;  %2345 = vmatpush3.bf16.msra.mxu1 (!%p140_p2), %v2364_v3  ;;  %v2384_v22 = vld [vmem:[%s2931_s1 + $0x80] sm:$0xff] (!%p140_p2)   ;;  %v2385_v23 = vld [vmem:[%s2931_s1 + $0xc8] sm:$0xff] (!%p140_p2)   ;;  %v2394_v28 = vld [vmem:[%s2931_s1 + $0xd0] sm:$0xff] (!%p140_p2)  }
   0xc   : > { %2056 = vmatprep.subr.bf16.mxu0 (!%p140_p2), %v2365_v4  ;;  %2338 = vmatprep.subr.bf16.mxu1 (!%p140_p2), %v2365_v4  ;;  %v2387_v26 = vld [vmem:[%s2931_s1 + $0x88] sm:$0xff] (!%p140_p2)   ;;  %v2395_v30 = vld [vmem:[%s2931_s1 + $0x90] sm:$0xff] (!%p140_p2)   ;;  %v2396_v31 = vld [vmem:[%s2931_s1 + $0xd8] sm:$0xff] (!%p140_p2)  }
   0xd   : > { %s2935_s16 = smov (!%p165_p3, %s1754_s16), 63  ;;  %v2397_v34 = vld [vmem:[%s2931_s1 + $0x98] sm:$0xff]   ;;  %v2417_v35 = vld [vmem:[%s2931_s1 + $0x108] sm:$0xff]   ;;  %v2404_v37 = vld [vmem:[%s2931_s1 + $0xe0] sm:$0xff]  }
   0xe   : > { %s2352_s29 = smul.u32 20, %s2935_s16  ;;  %v2405_v39 = vld [vmem:[%s2931_s1 + $0xa0] sm:$0xff]   ;;  %v2406_v40 = vld [vmem:[%s2931_s1 + $0xe8] sm:$0xff]   ;;  %v2414_v46 = vld [vmem:[%s2931_s1 + $0xf0] sm:$0xff]   ;;  %s1757_s19 = sshll.u32 %s2935_s16, 2 }
   0xf   : > { %2057 = vmatpush3.bf16.msra.mxu0 %v2366_v5  ;;  %2346 = vmatpush3.bf16.msra.mxu1 %v2366_v5  ;;  %v2407_v43 = vld [vmem:[%s2931_s1 + $0xa8] sm:$0xff]   ;;  %v2437_v47 = vld [vmem:[%s2931_s1 + $0x110] sm:$0xff]   ;;  %v2416_v49 = vld [vmem:[%s2931_s1 + $0xf8] sm:$0xff]   ;;  %s2853_s22 = scalar_lea.vmem %s2933_s3, %s1757_s19 }
  0x10   : > { %2058 = vmatprep.subr.bf16.mxu0 %v2367_v6  ;;  %2339 = vmatprep.subr.bf16.mxu1 %v2367_v6  ;;  %s2578_s9 = scalar_lea.vmem %s2930_s0, %s2352_s29  ;;  %v2415_v48 = vld [vmem:[%s2931_s1 + $0xb0] sm:$0xff]   ;;  %v2418_v52 = vld [vmem:[%s2931_s1 + $0xb8] sm:$0xff]  }
  0x11   : > { %v2379_v11 = vld [vmem:[%s2578_s9 + $0x4] ss:$20 sps:$4 sm:$0xff]   ;;  %v2377_v20 = vld [vmem:[%s2578_s9] ss:$20 sps:$4 sm:$0xff]   ;;  %v2392_v27 = vld [vmem:[%s2578_s9 + $0x28] ss:$20 sps:$4 sm:$0xff]  }
  0x12   : > { %v2382_v12 = vld [vmem:[%s2578_s9 + $0x1e4] ss:$20 sps:$4 sm:$0xff]   ;;  %1050 = vmatprep.mubr.bf16.mxu0 %v2379_v11  ;;  %v2380_v21 = vld [vmem:[%s2578_s9 + $0x1e0] ss:$20 sps:$4 sm:$0xff]   ;;  %v2393_v29 = vld [vmem:[%s2578_s9 + $0x208] ss:$20 sps:$4 sm:$0xff]  }
  0x13   : > { %2059 = vmatpush3.bf16.msra.mxu0 %v2368_v7  ;;  %2347 = vmatpush3.bf16.msra.mxu1 %v2368_v7  ;;  %v2388_v24 = vld [vmem:[%s2578_s9 + $0x2c] ss:$20 sps:$4 sm:$0xff]   ;;  %v2398_v32 = vld [vmem:[%s2578_s9 + $0x54] ss:$20 sps:$4 sm:$0xff]   ;;  %v2402_v36 = vld [vmem:[%s2578_s9 + $0x50] ss:$20 sps:$4 sm:$0xff]  }
  0x14   : > { %2060 = vmatprep.subr.bf16.mxu0 %v2369_v8  ;;  %2340 = vmatprep.subr.bf16.mxu1 %v2369_v8  ;;  %v2390_v25 = vld [vmem:[%s2578_s9 + $0x20c] ss:$20 sps:$4 sm:$0xff]   ;;  %v2400_v33 = vld [vmem:[%s2578_s9 + $0x234] ss:$20 sps:$4 sm:$0xff]   ;;  %v2403_v38 = vld [vmem:[%s2578_s9 + $0x230] ss:$20 sps:$4 sm:$0xff]  }
  0x15   : > { %1146 = vmatprep.mubr.bf16.mxu1 %v2382_v12  ;;  %v2408_v41 = vld [vmem:[%s2578_s9 + $0x7c] ss:$20 sps:$4 sm:$0xff]   ;;  %v2412_v44 = vld [vmem:[%s2578_s9 + $0x78] ss:$20 sps:$4 sm:$0xff]   ;;  %v2424_v54 = vld [vmem:[%s2578_s9 + $0xa0] ss:$20 sps:$4 sm:$0xff]  }
  0x16   : > { %v2410_v42 = vld [vmem:[%s2578_s9 + $0x25c] ss:$20 sps:$4 sm:$0xff]   ;;  %v2413_v45 = vld [vmem:[%s2578_s9 + $0x258] ss:$20 sps:$4 sm:$0xff]   ;;  %v2427_v57 = vld [vmem:[%s2578_s9 + $0x34] ss:$20 sps:$4 sm:$0xff]  }
  0x17   : > { %2061 = vmatpush3.bf16.msra.mxu0 %v2370_v9  ;;  %2348 = vmatpush3.bf16.msra.mxu1 %v2370_v9  ;;  %v2419_v50 = vld [vmem:[%s2578_s9 + $0xa4] ss:$20 sps:$4 sm:$0xff]   ;;  %v2423_v51 = vld [vmem:[%s2578_s9 + $0xc] ss:$20 sps:$4 sm:$0xff]   ;;  %v2421_v53 = vld [vmem:[%s2578_s9 + $0x8] ss:$20 sps:$4 sm:$0xff]  }
  0x18   : > { %2062 = vmatprep.subr.bf16.mxu0 %v2371_v10  ;;  %2341 = vmatprep.subr.bf16.mxu1 %v2371_v10  ;;  %v2425_v55 = vld [vmem:[%s2578_s9 + $0xcc] ss:$20 sps:$4 sm:$0xff]   ;;  %v2456_v56 = vld [vmem:[%s2931_s1 + $0x118] sm:$0xff]   ;;  %v2430_v59 = vld [vmem:[%s2578_s9 + $0x30] ss:$20 sps:$4 sm:$0xff]  }
  0x19   : > { %v2429_v58 = vld [vmem:[%s2578_s9 + $0xc8] ss:$20 sps:$4 sm:$0xff]   ;;  %v2435_v62 = vld [vmem:[%s2578_s9 + $0xf0] ss:$20 sps:$4 sm:$0xff]   ;;  %v2436_v63 = vld [vmem:[%s2578_s9 + $0x58] ss:$20 sps:$4 sm:$0xff]  }
  0x1a   : > { %v2431_v60 = vld [vmem:[%s2578_s9 + $0xf4] ss:$20 sps:$4 sm:$0xff]   ;;  %v2433_v61 = vld [vmem:[%s2578_s9 + $0x5c] ss:$20 sps:$4 sm:$0xff]   ;;  %v2440_v1 = vld [vmem:[%s2578_s9 + $0x84] ss:$20 sps:$4 sm:$0xff]  }
  0x1b   : > { %2063 = vmatpush3.bf16.msra.mxu0 %v2372_v13  ;;  %2349 = vmatpush3.bf16.msra.mxu1 %v2372_v13  ;;  %v2438_v0 = vld [vmem:[%s2578_s9 + $0x11c] ss:$20 sps:$4 sm:$0xff]   ;;  %v2442_v2 = vld [vmem:[%s2578_s9 + $0x118] ss:$20 sps:$4 sm:$0xff]   ;;  %v2443_v3 = vld [vmem:[%s2578_s9 + $0x80] ss:$20 sps:$4 sm:$0xff]  }
  0x1c   : > { %2064 = vmatprep.subr.bf16.mxu0 %v2373_v14  ;;  %2342 = vmatprep.subr.bf16.mxu1 %v2373_v14  ;;  %v2444_v4 = vld [vmem:[%s2578_s9 + $0x144] ss:$20 sps:$4 sm:$0xff]   ;;  %v2446_v5 = vld [vmem:[%s2578_s9 + $0xac] ss:$20 sps:$4 sm:$0xff]   ;;  %v2449_v7 = vld [vmem:[%s2578_s9 + $0xa8] ss:$20 sps:$4 sm:$0xff]  }
  0x1d   : > { %v2448_v6 = vld [vmem:[%s2578_s9 + $0x140] ss:$20 sps:$4 sm:$0xff]   ;;  %v2454_v10 = vld [vmem:[%s2578_s9 + $0x168] ss:$20 sps:$4 sm:$0xff]   ;;  %v2455_v11 = vld [vmem:[%s2578_s9 + $0xd0] ss:$20 sps:$4 sm:$0xff]  }
  0x1e   : > { %v2450_v8 = vld [vmem:[%s2578_s9 + $0x16c] ss:$20 sps:$4 sm:$0xff]   ;;  %v2452_v9 = vld [vmem:[%s2578_s9 + $0xd4] ss:$20 sps:$4 sm:$0xff]   ;;  %v2459_v13 = vld [vmem:[%s2578_s9 + $0xfc] ss:$20 sps:$4 sm:$0xff]  }
  0x1f   : > { %2065 = vmatpush3.bf16.msra.mxu0 %v2374_v15  ;;  %2350 = vmatpush3.bf16.msra.mxu1 %v2374_v15  ;;  %v2457_v12 = vld [vmem:[%s2578_s9 + $0x194] ss:$20 sps:$4 sm:$0xff]   ;;  %v2461_v14 = vld [vmem:[%s2578_s9 + $0x190] ss:$20 sps:$4 sm:$0xff]   ;;  %v2462_v15 = vld [vmem:[%s2578_s9 + $0xf8] ss:$20 sps:$4 sm:$0xff]  }
  0x20   : > { %2066 = vmatprep.subr.bf16.mxu0 %v2375_v16  ;;  %2343 = vmatprep.subr.bf16.mxu1 %v2375_v16  ;;  %v2463_v16 = vld [vmem:[%s2578_s9 + $0x1bc] ss:$20 sps:$4 sm:$0xff]  }
  0x23   : > { %2067 = vmatpush3.bf16.msra.mxu0 %v2376_v17  ;;  %2351 = vmatpush3.bf16.msra.mxu1 %v2376_v17  ;;  %v2465_v17 = vld [vmem:[%s2578_s9 + $0x124] ss:$20 sps:$4 sm:$0xff]  }
  0x24   : > { %2164 = vmatprep.subr.bf16.mxu1 %v2383_v18  ;;  %2296 = vmatprep.subr.bf16.mxu0 %v2386_v19  ;;  %v2467_v18 = vld [vmem:[%s2578_s9 + $0x1b8] ss:$20 sps:$4 sm:$0xff]  }
  0x26   : > { %1051 = vmatmul.mubr.bf16.vlgmr.msra.gmra.mrb[0].mxu0 %v2377_v20  ;;  %1147 = vmatmul.mubr.bf16.vlgmr.msra.gmra.mrb[0].mxu1 %v2380_v21  ;;  %v2469_v20 = vld [vmem:[%s2578_s9 + $0x14c] ss:$20 sps:$4 sm:$0xff]   ;;  %v2471_v21 = vld [vmem:[%s2578_s9 + $0x10] ss:$20 sps:$4 sm:$0xff]  }
  0x27   : > { %2165 = vmatpush3.bf16.msra.mxu1 %v2384_v22  ;;  %2297 = vmatpush3.bf16.msra.mxu0 %v2386_v19  ;;  %v2468_v19 = vld [vmem:[%s2578_s9 + $0x120] ss:$20 sps:$4 sm:$0xff]   ;;  %v2472_v22 = vld [vmem:[%s2578_s9 + $0x148] ss:$20 sps:$4 sm:$0xff]  }
  0x28   : > { %2166 = vmatprep.subr.bf16.mxu1 %v2385_v23  ;;  %1058 = vmatprep.mubr.bf16.mxu0 %v2388_v24  ;;  %v2473_v23 = vld [vmem:[%s2578_s9 + $0x38] ss:$20 sps:$4 sm:$0xff]   ;;  %v2474_v24 = vld [vmem:[%s2578_s9 + $0x174] ss:$20 sps:$4 sm:$0xff]  }
  0x29   : > { %1154 = vmatprep.mubr.bf16.mxu1 %v2390_v25  ;;  %2298 = vmatprep.subr.bf16.mxu0 %v2417_v35  ;;  %v2476_v25 = vld [vmem:[%s2578_s9 + $0x60] ss:$20 sps:$4 sm:$0xff]  }
  0x2b   : > { %2167 = vmatpush3.bf16.msra.mxu1 %v2387_v26  ;;  %2299 = vmatpush3.bf16.msra.mxu0 %v2417_v35  ;;  %v2477_v26 = vld [vmem:[%s2578_s9 + $0x170] ss:$20 sps:$4 sm:$0xff]   ;;  %v2488_v35 = vld [vmem:[%s2578_s9 + $0x128] ss:$20 sps:$4 sm:$0xff]  }
  0x2c   : > { %2168 = vmatprep.subr.bf16.mxu1 %v2394_v28  ;;  %2300 = vmatprep.subr.bf16.mxu0 %v2437_v47  ;;  %v2479_v28 = vld [vmem:[%s2578_s9 + $0x19c] ss:$20 sps:$4 sm:$0xff]  }
  0x2e   : > { %1059 = vmatmul.mubr.bf16.gmra.mrb[4].mxu0 %v2392_v27  ;;  %1155 = vmatmul.mubr.bf16.gmra.mrb[4].mxu1 %v2393_v29  ;;  %v2478_v27 = vld [vmem:[%s2578_s9 + $0x88] ss:$20 sps:$4 sm:$0xff]   ;;  %v2481_v29 = vld [vmem:[%s2578_s9 + $0xb0] ss:$20 sps:$4 sm:$0xff]  }
  0x2f   : > { %2169 = vmatpush3.bf16.msra.mxu1 %v2395_v30  ;;  %1066 = vmatprep.mubr.bf16.mxu0 %v2398_v32  ;;  %v2482_v30 = vld [vmem:[%s2578_s9 + $0x198] ss:$20 sps:$4 sm:$0xff]  }
  0x30   : > { %2170 = vmatprep.subr.bf16.mxu1 %v2396_v31  ;;  %1162 = vmatprep.mubr.bf16.mxu1 %v2400_v33  ;;  %v2483_v31 = vld [vmem:[%s2578_s9 + $0xd8] ss:$20 sps:$4 sm:$0xff]   ;;  %v2486_v33 = vld [vmem:[%s2578_s9 + $0x100] ss:$20 sps:$4 sm:$0xff]  }
  0x31   : > { %2301 = vmatpush3.bf16.msra.mxu0 %v2437_v47  ;;  %v2484_v32 = vld [vmem:[%s2578_s9 + $0x1c4] ss:$20 sps:$4 sm:$0xff]  }
  0x32   : > { %2302 = vmatprep.subr.bf16.mxu0 %v2456_v56  ;;  %v2503_v47 = vld [vmem:[%s2578_s9 + $0x218] ss:$20 sps:$4 sm:$0xff]  }
  0x33   : > { %2171 = vmatpush3.bf16.msra.mxu1 %v2397_v34  ;;  %v2487_v34 = vld [vmem:[%s2578_s9 + $0x1c0] ss:$20 sps:$4 sm:$0xff]  }
  0x34   : > { %2172 = vmatprep.subr.bf16.mxu1 %v2404_v37  ;;  %v2491_v37 = vld [vmem:[%s2578_s9 + $0x150] ss:$20 sps:$4 sm:$0xff]  }
  0x35   : > { %2303 = vmatpush3.bf16.msra.mxu0 %v2456_v56 }
  0x36   : > { %1067 = vmatmul.mubr.bf16.gmra.mrb[8].mxu0 %v2402_v36  ;;  %1163 = vmatmul.mubr.bf16.gmra.mrb[8].mxu1 %v2403_v38  ;;  %v2489_v36 = vld [vmem:[%s2578_s9 + $0x1ec] ss:$20 sps:$4 sm:$0xff]   ;;  %v2492_v38 = vld [vmem:[%s2578_s9 + $0x1e8] ss:$20 sps:$4 sm:$0xff]  }
  0x37   : > { %2173 = vmatpush3.bf16.msra.mxu1 %v2405_v39  ;;  %1074 = vmatprep.mubr.bf16.mxu0 %v2408_v41  ;;  %v2493_v39 = vld [vmem:[%s2578_s9 + $0x178] ss:$20 sps:$4 sm:$0xff]   ;;  %v2496_v41 = vld [vmem:[%s2578_s9 + $0x1a0] ss:$20 sps:$4 sm:$0xff]  }
  0x38   : > { %2174 = vmatprep.subr.bf16.mxu1 %v2406_v40  ;;  %1170 = vmatprep.mubr.bf16.mxu1 %v2410_v42  ;;  %v2494_v40 = vld [vmem:[%s2578_s9 + $0x214] ss:$20 sps:$4 sm:$0xff]   ;;  %v2497_v42 = vld [vmem:[%s2578_s9 + $0x210] ss:$20 sps:$4 sm:$0xff]  }
  0x3b   : > { %2175 = vmatpush3.bf16.msra.mxu1 %v2407_v43  ;;  %v2498_v43 = vld [vmem:[%s2578_s9 + $0x1c8] ss:$20 sps:$4 sm:$0xff]  }
  0x3c   : > { %2176 = vmatprep.subr.bf16.mxu1 %v2414_v46  ;;  %v2502_v46 = vld [vmem:[%s2578_s9 + $0x238] ss:$20 sps:$4 sm:$0xff]  }
  0x3e   : > { %1075 = vmatmul.mubr.bf16.gmra.mrb[12].mxu0 %v2412_v44  ;;  %1171 = vmatmul.mubr.bf16.gmra.mrb[12].mxu1 %v2413_v45  ;;  %v2499_v44 = vld [vmem:[%s2578_s9 + $0x23c] ss:$20 sps:$4 sm:$0xff]  }
  0x3f   : > { %2177 = vmatpush3.bf16.msra.mxu1 %v2415_v48  ;;  %1082 = vmatprep.mubr.bf16.mxu0 %v2419_v50  ;;  %v2501_v45 = vld [vmem:[%s2578_s9 + $0x1f0] ss:$20 sps:$4 sm:$0xff]   ;;  %v2507_v50 = vld [vmem:[%s2578_s9 + $0x260] ss:$20 sps:$4 sm:$0xff]  }
  0x40   : > { %2178 = vmatprep.subr.bf16.mxu1 %v2416_v49  ;;  %1211 = vmatprep.mubr.bf16.mxu1 %v2423_v51  ;;  %v2504_v48 = vld [vmem:[%s2578_s9 + $0x264] ss:$20 sps:$4 sm:$0xff]   ;;  %v2506_v49 = vld [vmem:[%s2578_s9 + $0x240] ss:$20 sps:$4 sm:$0xff]   ;;  %v2508_v51 = vld [vmem:[%s2578_s9 + $0x268] ss:$20 sps:$4 sm:$0xff]  }
  0x43   : > { %2179 = vmatpush3.bf16.msra.mxu1 %v2418_v52 }
  0x46   : > { %1083 = vmatmul.mubr.bf16.gmra.mrb[16].mxu0 %v2424_v54  ;;  %1212 = vmatmul.mubr.bf16.vlgmr.msra.gmra.mrb[16].mxu1 %v2421_v53 }
  0x47   : > { %1090 = vmatprep.mubr.bf16.mxu0 %v2425_v55  ;;  %1219 = vmatprep.mubr.bf16.mxu1 %v2427_v57 }
  0x4e   : > { %1091 = vmatmul.mubr.bf16.gmra.mrb[20].mxu0 %v2429_v58  ;;  %1220 = vmatmul.mubr.bf16.gmra.mrb[20].mxu1 %v2430_v59 }
  0x4f   : > { %1098 = vmatprep.mubr.bf16.mxu0 %v2431_v60  ;;  %1227 = vmatprep.mubr.bf16.mxu1 %v2433_v61 }
  0x56   : > { %1099 = vmatmul.mubr.bf16.gmra.mrb[24].mxu0 %v2435_v62  ;;  %1228 = vmatmul.mubr.bf16.gmra.mrb[24].mxu1 %v2436_v63 }
  0x57   : > { %1106 = vmatprep.mubr.bf16.mxu0 %v2438_v0  ;;  %1235 = vmatprep.mubr.bf16.mxu1 %v2440_v1 }
  0x5e   : > { %1107 = vmatmul.mubr.bf16.gmra.mrb[28].mxu0 %v2442_v2  ;;  %1236 = vmatmul.mubr.bf16.gmra.mrb[28].mxu1 %v2443_v3 }
  0x5f   : > { %1114 = vmatprep.mubr.bf16.mxu0 %v2444_v4  ;;  %1243 = vmatprep.mubr.bf16.mxu1 %v2446_v5 }
  0x66   : > { %1115 = vmatmul.mubr.bf16.gmra.mrb[32].mxu0 %v2448_v6  ;;  %1244 = vmatmul.mubr.bf16.gmra.mrb[32].mxu1 %v2449_v7 }
  0x67   : > { %1122 = vmatprep.mubr.bf16.mxu0 %v2450_v8  ;;  %1251 = vmatprep.mubr.bf16.mxu1 %v2452_v9 }
  0x6e   : > { %1123 = vmatmul.mubr.bf16.gmra.mrb[36].mxu0 %v2454_v10  ;;  %1252 = vmatmul.mubr.bf16.gmra.mrb[36].mxu1 %v2455_v11 }
  0x6f   : > { %1130 = vmatprep.mubr.bf16.mxu0 %v2457_v12  ;;  %1259 = vmatprep.mubr.bf16.mxu1 %v2459_v13 }
  0x76   : > { %1131 = vmatmul.mubr.bf16.gmra.mrb[40].mxu0 %v2461_v14  ;;  %1260 = vmatmul.mubr.bf16.gmra.mrb[40].mxu1 %v2462_v15 }
  0x77   : > { %1138 = vmatprep.mubr.bf16.mxu0 %v2463_v16  ;;  %1267 = vmatprep.mubr.bf16.mxu1 %v2465_v17 }
  0x7e   : > { %1139 = vmatmul.mubr.bf16.gmra.mrb[44].mxu0 %v2467_v18  ;;  %1268 = vmatmul.mubr.bf16.gmra.mrb[44].mxu1 %v2468_v19 }
  0x7f   : > { %1275 = vmatprep.mubr.bf16.mxu1 %v2469_v20  ;;  %2304 = vmatprep.mubr.msk.bf16.mxu0 %vm969_vm0, %v2471_v21 }
  0x86   : > { %1276 = vmatmul.mubr.bf16.gmra.mrb[48].mxu1 %v2472_v22  ;;  %2305 = vmatmul.mubr.msk.bf16.vlgmr.msra.gmra.mrb[48].mxu0 %vm969_vm0, %v2473_v23 }
  0x87   : > { %1283 = vmatprep.mubr.bf16.mxu1 %v2474_v24  ;;  %2308 = vmatprep.mubr.msk.bf16.mxu0 %vm969_vm0, %v2476_v25 }
  0x8e   : > { %1284 = vmatmul.mubr.bf16.gmra.mrb[52].mxu1 %v2477_v26  ;;  %2309 = vmatmul.mubr.msk.bf16.gmra.mrb[52].mxu0 %vm969_vm0, %v2478_v27 }
  0x8f   : > { %1291 = vmatprep.mubr.bf16.mxu1 %v2479_v28  ;;  %2312 = vmatprep.mubr.msk.bf16.mxu0 %vm969_vm0, %v2481_v29 }
  0x96   : > { %1292 = vmatmul.mubr.bf16.gmra.mrb[56].mxu1 %v2482_v30  ;;  %2313 = vmatmul.mubr.msk.bf16.gmra.mrb[56].mxu0 %vm969_vm0, %v2483_v31 }
  0x97   : > { %1299 = vmatprep.mubr.bf16.mxu1 %v2484_v32  ;;  %2316 = vmatprep.mubr.msk.bf16.mxu0 %vm969_vm0, %v2486_v33 }
  0x9e   : > { %1300 = vmatmul.mubr.bf16.gmra.mrb[60].mxu1 %v2487_v34  ;;  %2317 = vmatmul.mubr.msk.bf16.gmra.mrb[60].mxu0 %vm969_vm0, %v2488_v35 }
  0x9f   : > { %1307 = vmatprep.mubr.bf16.mxu1 %v2489_v36  ;;  %2320 = vmatprep.mubr.msk.bf16.mxu0 %vm969_vm0, %v2491_v37 }
  0xa6   : > { %1308 = vmatmul.mubr.bf16.gmra.mrb[64].mxu1 %v2492_v38  ;;  %2321 = vmatmul.mubr.msk.bf16.gmra.mrb[64].mxu0 %vm969_vm0, %v2493_v39  ;;  %v2776_v38 = vld [vmem:[%s2932_s2] ss:$0 sm:$0xff] }
  0xa7   : > { %1315 = vmatprep.mubr.bf16.mxu1 %v2494_v40  ;;  %2324 = vmatprep.mubr.msk.bf16.mxu0 %vm969_vm0, %v2496_v41 }
  0xae   : > { %1316 = vmatmul.mubr.bf16.gmra.mrb[68].mxu1 %v2497_v42  ;;  %2325 = vmatmul.mubr.msk.bf16.gmra.mrb[68].mxu0 %vm969_vm0, %v2498_v43 }
  0xaf   : > { %1323 = vmatprep.mubr.bf16.mxu1 %v2499_v44  ;;  %2328 = vmatprep.mubr.msk.bf16.mxu0 %vm969_vm0, %v2501_v45 }
  0xb6   : > { %1324 = vmatmul.mubr.bf16.gmra.mrb[72].mxu1 %v2502_v46  ;;  %2329 = vmatmul.mubr.msk.bf16.gmra.mrb[72].mxu0 %vm969_vm0, %v2503_v47 }
  0xb7   : > { %1331 = vmatprep.mubr.bf16.mxu1 %v2504_v48  ;;  %2332 = vmatprep.mubr.msk.bf16.mxu0 %vm969_vm0, %v2506_v49 }
  0xbe   : > { %1332 = vmatmul.mubr.bf16.gmra.mrb[76].mxu1 %v2507_v50  ;;  %2333 = vmatmul.mubr.msk.bf16.gmra.mrb[76].mxu0 %vm969_vm0, %v2508_v51 }
  0xf9   : > { %v2140_v52 = vpop.f32.mrb[0].mxu1  ;;  %v2068_v53 = vpop.f32.mrb[0].mxu0 }
  0xfa   : > { %v2141_v54 = vpop.f32.mrb[1].mxu1  ;;  %v2069_v55 = vpop.f32.mrb[1].mxu0 }
  0xfb   : > { %v2757_v56 = vadd.f32 %v2141_v54, %v2140_v52  ;;  %v2143_v57 = vpop.f32.mrb[2].mxu1  ;;  %v2070_v58 = vadd.f32 %v2069_v55, %v2068_v53  ;;  %v2071_v59 = vpop.f32.mrb[2].mxu0 }
  0xfc   : > { %v2144_v60 = vpop.f32.mrb[3].mxu1  ;;  %v2072_v61 = vpop.f32.mrb[3].mxu0 }
  0xfd   : > { %v2759_v62 = vadd.f32 %v2144_v60, %v2143_v57  ;;  %v2073_v63 = vadd.f32 %v2072_v61, %v2071_v59  ;;  %v1053_v41 = vadd.f32 %v2070_v58, %v2776_v38 }
  0xff   : > { %v1056_v48 = vadd.f32 %v2073_v63, %v2776_v38 }
 0x101   : > { %v2146_v0 = vpop.f32.mrb[4].mxu1  ;;  %v2074_v1 = vpop.f32.mrb[4].mxu0 }
 0x102   : > { %v2147_v2 = vpop.f32.mrb[5].mxu1  ;;  %v2075_v3 = vpop.f32.mrb[5].mxu0 }
 0x103   : > { %v2761_v4 = vadd.f32 %v2147_v2, %v2146_v0  ;;  %v2149_v5 = vpop.f32.mrb[6].mxu1  ;;  %v2076_v6 = vadd.f32 %v2075_v3, %v2074_v1  ;;  %v2077_v7 = vpop.f32.mrb[6].mxu0 }
 0x104   : > { %v2150_v8 = vpop.f32.mrb[7].mxu1  ;;  %v2078_v9 = vpop.f32.mrb[7].mxu0 }
 0x105   : > { %v2763_v10 = vadd.f32 %v2150_v8, %v2149_v5  ;;  %v2079_v11 = vadd.f32 %v2078_v9, %v2077_v7  ;;  %v1061_v58 = vadd.f32 %v2076_v6, %v2776_v38 }
 0x107   : > { %v1064_v63 = vadd.f32 %v2079_v11, %v2776_v38 }
 0x109   : > { %v2152_v12 = vpop.f32.mrb[8].mxu1  ;;  %v2080_v13 = vpop.f32.mrb[8].mxu0 }
 0x10a   : > { %v2153_v14 = vpop.f32.mrb[9].mxu1  ;;  %v2081_v15 = vpop.f32.mrb[9].mxu0 }
 0x10b   : > { %v2765_v16 = vadd.f32 %v2153_v14, %v2152_v12  ;;  %v2155_v17 = vpop.f32.mrb[10].mxu1  ;;  %v2082_v18 = vadd.f32 %v2081_v15, %v2080_v13  ;;  %v2083_v19 = vpop.f32.mrb[10].mxu0 }
 0x10c   : > { %v2156_v20 = vpop.f32.mrb[11].mxu1  ;;  %v2084_v21 = vpop.f32.mrb[11].mxu0 }
 0x10d   : > { %v2767_v22 = vadd.f32 %v2156_v20, %v2155_v17  ;;  %v2085_v23 = vadd.f32 %v2084_v21, %v2083_v19  ;;  %v1069_v6 = vadd.f32 %v2082_v18, %v2776_v38 }
 0x10f   : > { %v1072_v11 = vadd.f32 %v2085_v23, %v2776_v38 }
 0x111   : > { %v2158_v24 = vpop.f32.mrb[12].mxu1  ;;  %v2086_v25 = vpop.f32.mrb[12].mxu0 }
 0x112   : > { %v2159_v26 = vpop.f32.mrb[13].mxu1  ;;  %v2087_v27 = vpop.f32.mrb[13].mxu0 }
 0x113   : > { %v2769_v28 = vadd.f32 %v2159_v26, %v2158_v24  ;;  %v2161_v29 = vpop.f32.mrb[14].mxu1  ;;  %v2088_v30 = vadd.f32 %v2087_v27, %v2086_v25  ;;  %v2089_v31 = vpop.f32.mrb[14].mxu0 }
 0x114   : > { %v2162_v32 = vpop.f32.mrb[15].mxu1  ;;  %v2090_v33 = vpop.f32.mrb[15].mxu0 }
 0x115   : > { %v2771_v34 = vadd.f32 %v2162_v32, %v2161_v29  ;;  %v2091_v35 = vadd.f32 %v2090_v33, %v2089_v31  ;;  %v1077_v18 = vadd.f32 %v2088_v30, %v2776_v38 }
 0x117   : > { %v1080_v23 = vadd.f32 %v2091_v35, %v2776_v38 }
 0x119   : > { %v2180_v36 = vpop.f32.mrb[16].mxu1  ;;  %v2092_v37 = vpop.f32.mrb[16].mxu0 }
 0x11a   : > { %v2181_v39 = vpop.f32.mrb[17].mxu1  ;;  %v2093_v40 = vpop.f32.mrb[17].mxu0 }
 0x11b   : > { %v2182_v42 = vadd.f32 %v2181_v39, %v2180_v36  ;;  %v2183_v43 = vpop.f32.mrb[18].mxu1  ;;  %v2094_v44 = vadd.f32 %v2093_v40, %v2092_v37  ;;  %v2095_v45 = vpop.f32.mrb[18].mxu0 }
 0x11c   : > { %v2184_v46 = vpop.f32.mrb[19].mxu1  ;;  %v2096_v47 = vpop.f32.mrb[19].mxu0 }
 0x11d   : > { %v2185_v49 = vadd.f32 %v2184_v46, %v2183_v43  ;;  %v2097_v50 = vadd.f32 %v2096_v47, %v2095_v45  ;;  %v2780_v51 = vadd.f32 %v2182_v42, %v1053_v41  ;;  %v1085_v30 = vadd.f32 %v2094_v44, %v2776_v38 }
 0x11f   : > { %v2782_v52 = vadd.f32 %v2185_v49, %v1056_v48  ;;  %v1088_v35 = vadd.f32 %v2097_v50, %v2776_v38 }
 0x121   : > { %v2186_v53 = vpop.f32.mrb[20].mxu1  ;;  %v2098_v54 = vpop.f32.mrb[20].mxu0 }
 0x122   : > { %v2187_v55 = vpop.f32.mrb[21].mxu1  ;;  %v2099_v57 = vpop.f32.mrb[21].mxu0 }
 0x123   : > { %v2188_v59 = vadd.f32 %v2187_v55, %v2186_v53  ;;  %v2189_v60 = vpop.f32.mrb[22].mxu1  ;;  %v2100_v61 = vadd.f32 %v2099_v57, %v2098_v54  ;;  %v2101_v0 = vpop.f32.mrb[22].mxu0 }
 0x124   : > { %v2190_v1 = vpop.f32.mrb[23].mxu1  ;;  %v2102_v2 = vpop.f32.mrb[23].mxu0 }
 0x125   : > { %v2191_v3 = vadd.f32 %v2190_v1, %v2189_v60  ;;  %v2103_v5 = vadd.f32 %v2102_v2, %v2101_v0  ;;  %v2786_v7 = vadd.f32 %v2188_v59, %v1061_v58  ;;  %v1093_v44 = vadd.f32 %v2100_v61, %v2776_v38 }
 0x127   : > { %v2788_v8 = vadd.f32 %v2191_v3, %v1064_v63 }
 0x129   : > { %v2192_v9 = vpop.f32.mrb[24].mxu1  ;;  %v2104_v12 = vpop.f32.mrb[24].mxu0 }
 0x12a   : > { %v2193_v13 = vpop.f32.mrb[25].mxu1  ;;  %v2105_v14 = vpop.f32.mrb[25].mxu0 }
 0x12b   : > { %v2194_v15 = vadd.f32 %v2193_v13, %v2192_v9  ;;  %v2195_v17 = vpop.f32.mrb[26].mxu1  ;;  %v2106_v19 = vadd.f32 %v2105_v14, %v2104_v12  ;;  %v2107_v20 = vpop.f32.mrb[26].mxu0 }
 0x12c   : > { %v2196_v21 = vpop.f32.mrb[27].mxu1  ;;  %v2108_v24 = vpop.f32.mrb[27].mxu0 }
 0x12d   : > { %v2197_v25 = vadd.f32 %v2196_v21, %v2195_v17  ;;  %v2109_v26 = vadd.f32 %v2108_v24, %v2107_v20  ;;  %v2792_v27 = vadd.f32 %v2194_v15, %v1069_v6 }
 0x12f   : > { %v2794_v29 = vadd.f32 %v2197_v25, %v1072_v11  ;;  %v1096_v11 = vadd.f32 %v2103_v5, %v2776_v38 }
 0x131   : > { %v2198_v31 = vpop.f32.mrb[28].mxu1  ;;  %v2110_v32 = vpop.f32.mrb[28].mxu0 }
 0x132   : > { %v2199_v33 = vpop.f32.mrb[29].mxu1  ;;  %v2111_v36 = vpop.f32.mrb[29].mxu0 }
 0x133   : > { %v2200_v37 = vadd.f32 %v2199_v33, %v2198_v31  ;;  %v2201_v39 = vpop.f32.mrb[30].mxu1  ;;  %v2112_v40 = vadd.f32 %v2111_v36, %v2110_v32  ;;  %v2113_v41 = vpop.f32.mrb[30].mxu0 }
 0x134   : > { %v2202_v42 = vpop.f32.mrb[31].mxu1  ;;  %v2114_v43 = vpop.f32.mrb[31].mxu0 }
 0x135   : > { %v2203_v45 = vadd.f32 %v2202_v42, %v2201_v39  ;;  %v2115_v46 = vadd.f32 %v2114_v43, %v2113_v41  ;;  %v2798_v47 = vadd.f32 %v2200_v37, %v1077_v18  ;;  %v1101_v39 = vadd.f32 %v2106_v19, %v2776_v38 }
 0x137   : > { %v2800_v48 = vadd.f32 %v2203_v45, %v1080_v23 }
 0x139   : > { %v2204_v49 = vpop.f32.mrb[32].mxu1  ;;  %v2116_v53 = vpop.f32.mrb[32].mxu0 }
 0x13a   : > { %v2205_v54 = vpop.f32.mrb[33].mxu1  ;;  %v2117_v55 = vpop.f32.mrb[33].mxu0 }
 0x13b   : > { %v2206_v57 = vadd.f32 %v2205_v54, %v2204_v49  ;;  %v2207_v58 = vpop.f32.mrb[34].mxu1  ;;  %v2118_v59 = vadd.f32 %v2117_v55, %v2116_v53  ;;  %v2119_v60 = vpop.f32.mrb[34].mxu0  ;;  %v1104_v49 = vadd.f32 %v2109_v26, %v2776_v38 }
 0x13c   : > { %v2208_v0 = vpop.f32.mrb[35].mxu1  ;;  %v2120_v1 = vpop.f32.mrb[35].mxu0 }
 0x13d   : > { %v2209_v2 = vadd.f32 %v2208_v0, %v2207_v58  ;;  %v2804_v63 = vadd.f32 %v2120_v1, %v2119_v60  ;;  %v2806_v3 = vadd.f32 %v2206_v57, %v1085_v30  ;;  %v1109_v0 = vadd.f32 %v2112_v40, %v2776_v38 }
 0x13f   : > { %v2808_v9 = vadd.f32 %v2209_v2, %v1088_v35 }
 0x141   : > { %v2210_v12 = vpop.f32.mrb[36].mxu1  ;;  %v2122_v13 = vpop.f32.mrb[36].mxu0 }
 0x142   : > { %v2211_v14 = vpop.f32.mrb[37].mxu1  ;;  %v2123_v6 = vpop.f32.mrb[37].mxu0 }
 0x143   : > { %v2212_v15 = vadd.f32 %v2211_v14, %v2210_v12  ;;  %v2213_v17 = vpop.f32.mrb[38].mxu1  ;;  %v2811_v20 = vadd.f32 %v2123_v6, %v2122_v13  ;;  %v2125_v21 = vpop.f32.mrb[38].mxu0  ;;  %v1112_v14 = vadd.f32 %v2115_v46, %v2776_v38 }
 0x144   : > { %v2214_v24 = vpop.f32.mrb[39].mxu1  ;;  %v2126_v50 = vpop.f32.mrb[39].mxu0 }
 0x145   : > { %v2215_v25 = vadd.f32 %v2214_v24, %v2213_v17  ;;  %v2814_v31 = vadd.f32 %v2126_v50, %v2125_v21  ;;  %v2816_v32 = vadd.f32 %v2212_v15, %v1093_v44 }
 0x147   : > { %v2818_v33 = vadd.f32 %v2215_v25, %v1096_v11  ;;  %v1117_v25 = vadd.f32 %v2118_v59, %v2776_v38 }
 0x149   : > { %v2216_v36 = vpop.f32.mrb[40].mxu1  ;;  %v2128_v18 = vpop.f32.mrb[40].mxu0 }
 0x14a   : > { %v2217_v37 = vpop.f32.mrb[41].mxu1  ;;  %v2129_v61 = vpop.f32.mrb[41].mxu0 }
 0x14b   : > { %v2218_v41 = vadd.f32 %v2217_v37, %v2216_v36  ;;  %v2219_v42 = vpop.f32.mrb[42].mxu1  ;;  %v2821_v43 = vadd.f32 %v2129_v61, %v2128_v18  ;;  %v2131_v23 = vpop.f32.mrb[42].mxu0 }
 0x14c   : > { %v2220_v45 = vpop.f32.mrb[43].mxu1  ;;  %v2132_v5 = vpop.f32.mrb[43].mxu0 }
 0x14d   : > { %v2221_v53 = vadd.f32 %v2220_v45, %v2219_v42  ;;  %v2824_v54 = vadd.f32 %v2132_v5, %v2131_v23  ;;  %v2826_v55 = vadd.f32 %v2218_v41, %v1101_v39  ;;  %v1120_v42 = vadd.f32 %v2804_v63, %v2776_v38 }
 0x14f   : > { %v2828_v30 = vadd.f32 %v2221_v53, %v1104_v49 }
 0x151   : > { %v2222_v57 = vpop.f32.mrb[44].mxu1  ;;  %v2134_v58 = vpop.f32.mrb[44].mxu0 }
 0x152   : > { %v2223_v60 = vpop.f32.mrb[45].mxu1  ;;  %v2135_v19 = vpop.f32.mrb[45].mxu0 }
 0x153   : > { %v2224_v1 = vadd.f32 %v2223_v60, %v2222_v57  ;;  %v2225_v35 = vpop.f32.mrb[46].mxu1  ;;  %v2831_v2 = vadd.f32 %v2135_v19, %v2134_v58  ;;  %v2137_v12 = vpop.f32.mrb[46].mxu0 }
 0x154   : > { %v2226_v13 = vpop.f32.mrb[47].mxu1  ;;  %v2138_v26 = vpop.f32.mrb[47].mxu0 }
 0x155   : > { %v2227_v6 = vadd.f32 %v2226_v13, %v2225_v35  ;;  %v2834_v44 = vadd.f32 %v2138_v26, %v2137_v12  ;;  %v2836_v15 = vadd.f32 %v2224_v1, %v1109_v0  ;;  %v1125_v0 = vadd.f32 %v2811_v20, %v2776_v38 }
 0x157   : > { %v2838_v17 = vadd.f32 %v2227_v6, %v1112_v14 }
 0x159   : > { %v2228_v21 = vpop.f32.mrb[48].mxu1  ;;  %v2306_v24 = vpop.f32.mrb[48].mxu0 }
 0x15a   : > { %v1383_v40 = vadd.f32 %v2306_v24, %v2786_v7  ;;  %v2229_v50 = vpop.f32.mrb[49].mxu1  ;;  %v1374_v11 = vpop.f32.mrb[49].mxu0 }
 0x15b   : > { %v2230_v36 = vadd.f32 %v2229_v50, %v2228_v21  ;;  %v1375_v18 = vadd.f32 %v1374_v11, %v2780_v51  ;;  %v2231_v37 = vpop.f32.mrb[50].mxu1  ;;  %v2307_v46 = vpop.f32.mrb[50].mxu0  ;;  %v1128_v21 = vadd.f32 %v2814_v31, %v2776_v38 }
 0x15c   : > { %v1386_v61 = vadd.f32 %v2307_v46, %v2788_v8  ;;  %v2232_v39 = vpop.f32.mrb[51].mxu1  ;;  %v1377_v41 = vpop.f32.mrb[51].mxu0  ;;  %v1503_v5 = vmax.f32 %v1383_v40, 0.0 }
 0x15d   : > { %v2233_v23 = vadd.f32 %v2232_v39, %v2231_v37  ;;  %v1378_v7 = vadd.f32 %v1377_v41, %v2782_v52  ;;  %v2848_v45 = vadd.f32 %v2230_v36, %v1117_v25  ;;  %v1501_v49 = vmax.f32 %v1375_v18, 0.0 }
 0x15e   : > { %v1504_v59 = vmax.f32 %v1386_v61, 0.0 }
 0x15f   : > { %v1502_v51 = vmax.f32 %v1378_v7, 0.0  ;;  %v2855_v8 = vadd.f32 %v2233_v23, %v1120_v42 }
 0x160   : > { %v1965_v53 = vpack.c.bf16 %v1504_v59, %v1503_v5 }
 0x161   : > { %v1960_v63 = vpack.c.bf16 %v1502_v51, %v1501_v49  ;;  %v2234_v57 = vpop.f32.mrb[52].mxu1  ;;  %v2310_v58 = vpop.f32.mrb[52].mxu0  ;;  %v1136_v49 = vadd.f32 %v2824_v54, %v2776_v38 }
 0x162   : > { %2037 = vst [vmem:[%s2853_s22 + $0x8] sm:$0xff] %v1965_v53   ;;  %v1399_v52 = vadd.f32 %v2310_v58, %v2798_v47  ;;  %v2235_v60 = vpop.f32.mrb[53].mxu1  ;;  %v1390_v19 = vpop.f32.mrb[53].mxu0 }
 0x163   : > { %1961 = vst [vmem:[%s2853_s22] sm:$0xff] %v1960_v63   ;;  %v2236_v1 = vadd.f32 %v2235_v60, %v2234_v57  ;;  %v1391_v35 = vadd.f32 %v1390_v19, %v2792_v27  ;;  %v2237_v12 = vpop.f32.mrb[54].mxu1  ;;  %v2311_v13 = vpop.f32.mrb[54].mxu0 }
 0x164   : > { %v1402_v26 = vadd.f32 %v2311_v13, %v2800_v48  ;;  %v2238_v14 = vpop.f32.mrb[55].mxu1  ;;  %v1393_v6 = vpop.f32.mrb[55].mxu0  ;;  %v1507_v20 = vmax.f32 %v1399_v52, 0.0 }
 0x165   : > { %v2239_v47 = vadd.f32 %v2238_v14, %v2237_v12  ;;  %v1394_v24 = vadd.f32 %v1393_v6, %v2794_v29  ;;  %v2867_v40 = vadd.f32 %v2236_v1, %v1125_v0  ;;  %v1505_v11 = vmax.f32 %v1391_v35, 0.0 }
 0x166   : > { %v1508_v50 = vmax.f32 %v1402_v26, 0.0  ;;  %v1133_v29 = vadd.f32 %v2821_v43, %v2776_v38 }
 0x167   : > { %v1506_v27 = vmax.f32 %v1394_v24, 0.0  ;;  %v2869_v25 = vadd.f32 %v2239_v47, %v1128_v21  ;;  %v1144_v47 = vadd.f32 %v2834_v44, %v2776_v38  ;;  %v1149_v44 = vadd.f32 %v2757_v56, %v2776_v38 }
 0x168   : > { %v1975_v36 = vpack.c.bf16 %v1508_v50, %v1507_v20 }
 0x169   : > { %v1970_v48 = vpack.c.bf16 %v1506_v27, %v1505_v11  ;;  %v2240_v18 = vpop.f32.mrb[56].mxu1  ;;  %v2314_v37 = vpop.f32.mrb[56].mxu0 }
 0x16a   : > { %2039 = vst [vmem:[%s2853_s22 + $0x18] sm:$0xff] %v1975_v36   ;;  %v1415_v46 = vadd.f32 %v2314_v37, %v2816_v32  ;;  %v2241_v31 = vpop.f32.mrb[57].mxu1  ;;  %v1406_v61 = vpop.f32.mrb[57].mxu0 }
 0x16b   : > { %2038 = vst [vmem:[%s2853_s22 + $0x10] sm:$0xff] %v1970_v48   ;;  %v2242_v39 = vadd.f32 %v2241_v31, %v2240_v18  ;;  %v1407_v41 = vadd.f32 %v1406_v61, %v2806_v3  ;;  %v2243_v42 = vpop.f32.mrb[58].mxu1  ;;  %v2315_v23 = vpop.f32.mrb[58].mxu0 }
 0x16c   : > { %v1418_v7 = vadd.f32 %v2315_v23, %v2818_v33  ;;  %v2244_v5 = vpop.f32.mrb[59].mxu1  ;;  %v1409_v59 = vpop.f32.mrb[59].mxu0  ;;  %v1511_v43 = vmax.f32 %v1415_v46, 0.0 }
 0x16d   : > { %v2245_v32 = vadd.f32 %v2244_v5, %v2243_v42  ;;  %v1410_v51 = vadd.f32 %v1409_v59, %v2808_v9  ;;  %v2881_v53 = vadd.f32 %v2242_v39, %v1133_v29  ;;  %v1509_v57 = vmax.f32 %v1407_v41, 0.0 }
 0x16e   : > { %v1512_v63 = vmax.f32 %v1418_v7, 0.0  ;;  %v1141_v9 = vadd.f32 %v2831_v2, %v2776_v38  ;;  %v1152_v7 = vadd.f32 %v2759_v62, %v2776_v38  ;;  %v1157_v62 = vadd.f32 %v2761_v4, %v2776_v38 }
 0x16f   : > { %v1510_v3 = vmax.f32 %v1410_v51, 0.0  ;;  %v2883_v58 = vadd.f32 %v2245_v32, %v1136_v49 }
 0x170   : > { %v1985_v52 = vpack.c.bf16 %v1512_v63, %v1511_v43 }
 0x171   : > { %v1980_v33 = vpack.c.bf16 %v1510_v3, %v1509_v57  ;;  %v2246_v60 = vpop.f32.mrb[60].mxu1  ;;  %v2318_v19 = vpop.f32.mrb[60].mxu0 }
 0x172   : > { %2041 = vst [vmem:[%s2853_s22 + $0x28] sm:$0xff] %v1985_v52   ;;  %v1431_v0 = vadd.f32 %v2318_v19, %v2836_v15  ;;  %v2247_v54 = vpop.f32.mrb[61].mxu1  ;;  %v1422_v1 = vpop.f32.mrb[61].mxu0 }
 0x173   : > { %2040 = vst [vmem:[%s2853_s22 + $0x20] sm:$0xff] %v1980_v33   ;;  %v2248_v35 = vadd.f32 %v2247_v54, %v2246_v60  ;;  %v1423_v12 = vadd.f32 %v1422_v1, %v2826_v55  ;;  %v2249_v13 = vpop.f32.mrb[62].mxu1  ;;  %v2319_v26 = vpop.f32.mrb[62].mxu0 }
 0x174   : > { %v1434_v14 = vadd.f32 %v2319_v26, %v2838_v17  ;;  %v2250_v6 = vpop.f32.mrb[63].mxu1  ;;  %v1425_v21 = vpop.f32.mrb[63].mxu0  ;;  %v1515_v2 = vmax.f32 %v1431_v0, 0.0 }
 0x175   : > { %v2251_v15 = vadd.f32 %v2250_v6, %v2249_v13  ;;  %v1426_v24 = vadd.f32 %v1425_v21, %v2828_v30  ;;  %v1302_v20 = vadd.f32 %v2248_v35, %v1141_v9  ;;  %v1513_v11 = vmax.f32 %v1423_v12, 0.0 }
 0x176   : > { %v1516_v50 = vmax.f32 %v1434_v14, 0.0  ;;  %v1160_v35 = vadd.f32 %v2763_v10, %v2776_v38  ;;  %v1165_v10 = vadd.f32 %v2765_v16, %v2776_v38 }
 0x177   : > { %v1514_v27 = vmax.f32 %v1426_v24, 0.0  ;;  %v1305_v55 = vadd.f32 %v2251_v15, %v1144_v47 }
 0x178   : > { %v1995_v36 = vpack.c.bf16 %v1516_v50, %v1515_v2 }
 0x179   : > { %v1990_v48 = vpack.c.bf16 %v1514_v27, %v1513_v11  ;;  %v2252_v18 = vpop.f32.mrb[64].mxu1  ;;  %v2322_v17 = vpop.f32.mrb[64].mxu0 }
 0x17a   : > { %2043 = vst [vmem:[%s2853_s22 + $0x38] sm:$0xff] %v1995_v36   ;;  %v1447_v37 = vadd.f32 %v2322_v17, %v2867_v40  ;;  %v2253_v46 = vpop.f32.mrb[65].mxu1  ;;  %v1438_v31 = vpop.f32.mrb[65].mxu0 }
 0x17b   : > { %2042 = vst [vmem:[%s2853_s22 + $0x30] sm:$0xff] %v1990_v48   ;;  %v2254_v30 = vadd.f32 %v2253_v46, %v2252_v18  ;;  %v1439_v61 = vadd.f32 %v1438_v31, %v2848_v45  ;;  %v2255_v29 = vpop.f32.mrb[66].mxu1  ;;  %v2323_v39 = vpop.f32.mrb[66].mxu0 }
 0x17c   : > { %v1450_v41 = vadd.f32 %v2323_v39, %v2869_v25  ;;  %v2256_v42 = vpop.f32.mrb[67].mxu1  ;;  %v1441_v23 = vpop.f32.mrb[67].mxu0  ;;  %v1519_v56 = vmax.f32 %v1447_v37, 0.0  ;;  %v1168_v37 = vadd.f32 %v2767_v22, %v2776_v38 }
 0x17d   : > { %v2257_v40 = vadd.f32 %v2256_v42, %v2255_v29  ;;  %v1442_v5 = vadd.f32 %v1441_v23, %v2855_v8  ;;  %v1310_v59 = vadd.f32 %v2254_v30, %v1149_v44  ;;  %v1517_v32 = vmax.f32 %v1439_v61, 0.0 }
 0x17e   : > { %v1520_v49 = vmax.f32 %v1450_v41, 0.0 }
 0x17f   : > { %v1518_v51 = vmax.f32 %v1442_v5, 0.0  ;;  %v1313_v45 = vadd.f32 %v2257_v40, %v1152_v7 }
 0x180   : > { %v2005_v43 = vpack.c.bf16 %v1520_v49, %v1519_v56 }
 0x181   : > { %v2000_v63 = vpack.c.bf16 %v1518_v51, %v1517_v32  ;;  %v2258_v57 = vpop.f32.mrb[68].mxu1  ;;  %v2326_v25 = vpop.f32.mrb[68].mxu0 }
 0x182   : > { %2045 = vst [vmem:[%s2853_s22 + $0x48] sm:$0xff] %v2005_v43   ;;  %v1463_v3 = vadd.f32 %v2326_v25, %v1302_v20  ;;  %v2259_v52 = vpop.f32.mrb[69].mxu1  ;;  %v1454_v33 = vpop.f32.mrb[69].mxu0  ;;  %v1176_v43 = vadd.f32 %v2771_v34, %v2776_v38 }
 0x183   : > { %2044 = vst [vmem:[%s2853_s22 + $0x40] sm:$0xff] %v2000_v63   ;;  %v2260_v8 = vadd.f32 %v2259_v52, %v2258_v57  ;;  %v1455_v60 = vadd.f32 %v1454_v33, %v2881_v53  ;;  %v2261_v19 = vpop.f32.mrb[70].mxu1  ;;  %v2327_v0 = vpop.f32.mrb[70].mxu0 }
 0x184   : > { %v1466_v54 = vadd.f32 %v2327_v0, %v1305_v55  ;;  %v2262_v1 = vpop.f32.mrb[71].mxu1  ;;  %v1457_v9 = vpop.f32.mrb[71].mxu0  ;;  %v1523_v14 = vmax.f32 %v1463_v3, 0.0 }
 0x185   : > { %v2263_v12 = vadd.f32 %v2262_v1, %v2261_v19  ;;  %v1458_v13 = vadd.f32 %v1457_v9, %v2883_v58  ;;  %v1318_v26 = vadd.f32 %v2260_v8, %v1157_v62  ;;  %v1521_v6 = vmax.f32 %v1455_v60, 0.0 }
 0x186   : > { %v1524_v4 = vmax.f32 %v1466_v54, 0.0 }
 0x187   : > { %v1522_v21 = vmax.f32 %v1458_v13, 0.0  ;;  %v1321_v47 = vadd.f32 %v2263_v12, %v1160_v35 }
 0x188   : > { %v2015_v53 = vpack.c.bf16 %v1524_v4, %v1523_v14 }
 0x189   : > { %v2010_v15 = vpack.c.bf16 %v1522_v21, %v1521_v6  ;;  %v2264_v24 = vpop.f32.mrb[72].mxu1  ;;  %v2330_v20 = vpop.f32.mrb[72].mxu0 }
 0x18a   : > { %2047 = vst [vmem:[%s2853_s22 + $0x58] sm:$0xff] %v2015_v53   ;;  %v1479_v2 = vadd.f32 %v2330_v20, %v1318_v26  ;;  %v2265_v50 = vpop.f32.mrb[73].mxu1  ;;  %v1470_v11 = vpop.f32.mrb[73].mxu0 }
 0x18b   : > { %2046 = vst [vmem:[%s2853_s22 + $0x50] sm:$0xff] %v2010_v15   ;;  %v2266_v58 = vadd.f32 %v2265_v50, %v2264_v24  ;;  %v1471_v27 = vadd.f32 %v1470_v11, %v1310_v59  ;;  %v2267_v55 = vpop.f32.mrb[74].mxu1  ;;  %v2331_v36 = vpop.f32.mrb[74].mxu0  ;;  %v1173_v59 = vadd.f32 %v2769_v28, %v2776_v38 }
 0x18c   : > { %v1482_v48 = vadd.f32 %v2331_v36, %v1321_v47  ;;  %v2268_v18 = vpop.f32.mrb[75].mxu1  ;;  %v1473_v17 = vpop.f32.mrb[75].mxu0  ;;  %v1527_v30 = vmax.f32 %v1479_v2, 0.0 }
 0x18d   : > { %v2269_v46 = vadd.f32 %v2268_v18, %v2267_v55  ;;  %v1474_v31 = vadd.f32 %v1473_v17, %v1313_v45  ;;  %v1326_v44 = vadd.f32 %v2266_v58, %v1165_v10  ;;  %v1525_v29 = vmax.f32 %v1471_v27, 0.0 }
 0x18e   : > { %v1528_v61 = vmax.f32 %v1482_v48, 0.0 }
 0x18f   : > { %v1526_v16 = vmax.f32 %v1474_v31, 0.0  ;;  %v1329_v39 = vadd.f32 %v2269_v46, %v1168_v37 }
 0x190   : > { %v2025_v41 = vpack.c.bf16 %v1528_v61, %v1527_v30 }
 0x191   : > { %v2020_v42 = vpack.c.bf16 %v1526_v16, %v1525_v29  ;;  %v2270_v23 = vpop.f32.mrb[76].mxu1  ;;  %v2334_v7 = vpop.f32.mrb[76].mxu0 }
 0x192   : > { %2049 = vst [vmem:[%s2853_s22 + $0x68] sm:$0xff] %v2025_v41   ;;  %v2271_v40 = vpop.f32.mrb[77].mxu1  ;;  %v1486_v5 = vpop.f32.mrb[77].mxu0 }
 0x193   : > { %2048 = vst [vmem:[%s2853_s22 + $0x60] sm:$0xff] %v2020_v42   ;;  %v2272_v22 = vadd.f32 %v2271_v40, %v2270_v23  ;;  %v1487_v56 = vadd.f32 %v1486_v5, %v1326_v44  ;;  %v2273_v49 = vpop.f32.mrb[78].mxu1  ;;  %v2335_v32 = vpop.f32.mrb[78].mxu0 }
 0x194   : > { %v2274_v51 = vpop.f32.mrb[79].mxu1  ;;  %v1489_v45 = vpop.f32.mrb[79].mxu0 }
 0x195   : > { %v1334_v63 = vadd.f32 %v2272_v22, %v1173_v59  ;;  %v2275_v57 = vadd.f32 %v2274_v51, %v2273_v49  ;;  %v1490_v25 = vadd.f32 %v1489_v45, %v1329_v39  ;;  %v1529_v52 = vmax.f32 %v1487_v56, 0.0 }
 0x197   : > { %v1495_v3 = vadd.f32 %v2334_v7, %v1334_v63  ;;  %v1337_v33 = vadd.f32 %v2275_v57, %v1176_v43  ;;  %v1530_v62 = vmax.f32 %v1490_v25, 0.0 }
 0x199   : > { %v1498_v28 = vadd.f32 %v2335_v32, %v1337_v33  ;;  %v2030_v8 = vpack.c.bf16 %v1530_v62, %v1529_v52  ;;  %v1531_v60 = vmax.f32 %v1495_v3, 0.0 }
 0x19b   : > { %v1532_v19 = vmax.f32 %v1498_v28, 0.0  ;;  %2050 = vst [vmem:[%s2853_s22 + $0x70] sm:$0xff] %v2030_v8  }
 0x19d   : > { %v2035_v0 = vpack.c.bf16 %v1532_v19, %v1531_v60 }
 0x19f   : > { %2051 = vst [vmem:[%s2853_s22 + $0x78] sm:$0xff] %v2035_v0  }
 0x1a0 PF: > { %s13_s12 = sadd.s32 1, %s2515_s12  }
 0x1a1   : > { %p10_p4 = scmp.ge.s32.totalorder %s13_s12, 4  }
 0x1a3   :  { %12 = sbr.rel (!%p10_p4) target bundleno = 1 (0x1), region = 62 }

// kernel: custom_model_forward.7
= control target key start
LH: loop header
LB: loop body
LE: loop exit
PB: predicated region body
PF: predicated region fallthrough
CT: control target
= control target key end

     0   :  { %v311_v1 = vlaneseq  ;;  %v8671_v5 = vmov 1966171168   ;;  %s9646_s0 = inlined_call_operand.vmem [shape: bf16[2,28800], index: 0, kind: input, shape index: {}]   ;;  %s9647_s1 = inlined_call_operand.vmem [shape: bf16[10,28800], index: 1, kind: input, shape index: {}]   ;;  %s9648_s2 = inlined_call_operand.vmem [shape: f32[1,10], index: 2, kind: input, shape index: {}]   ;;  %s9649_s3 = inlined_call_operand.hbm [shape: f32[2,10], index: 3, kind: output, shape index: {}]  }
   0x1   :  { %v8278_v0 = vld [vmem:[%s9647_s1 + $0x1c4] ss:$900 sps:$4 sm:$0x1f]   ;;  %v309_v6 = vunpack.c.l.s4 %v8671_v5  ;;  %v8288_v8 = vld [vmem:[%s9647_s1 + $0x1cc] ss:$900 sps:$4 sm:$0x1f]  }
   0x2   :  { %v8280_v2 = vld [vmem:[%s9647_s1 + $0x4] ss:$900 sps:$4 sm:$0x1f]   ;;  %5284 = vmatprep.subr.bf16.mxu0 %v8278_v0  ;;  %v312_v7 = vshrl.u32 %v311_v1, 7  ;;  %v30_v12 = vld [vmem:[%s9646_s0 + $0x70] sm:$0xff]  ;;  %v31_v51 = vld [vmem:[%s9646_s0 + $0x78] sm:$0xff] }
   0x3   :  { %v8282_v3 = vld [vmem:[%s9647_s1 + $0x1c0] ss:$900 sps:$4 sm:$0x1f]   ;;  %3044 = vmatprep.subr.bf16.mxu1 %v8280_v2  ;;  %v310_v10 = vunpack.c.0.s8 %v309_v6  ;;  %v8291_v11 = vld [vmem:[%s9647_s1 + $0xc] ss:$900 sps:$4 sm:$0x1f]   ;;  %v993_v25 = vcombine.high %v30_v12, %v30_v12 }
   0x4   :  { %v8283_v4 = vld [vmem:[%s9647_s1] ss:$900 sps:$4 sm:$0x1f]   ;;  %5285 = vmatpush1.bf16.xpose.msra.mxu0 %v8282_v3  ;;  %v8286_v18 = vld [vmem:[%s9647_s1 + $0x1c8] ss:$900 sps:$4 sm:$0x1f]  }
   0x5   :  { %3045 = vmatpush1.bf16.xpose.msra.mxu1 %v8283_v4  ;;  %v16_v9 = vld [vmem:[%s9646_s0] sm:$0xff]  ;;  %5324 = vmatprep.subr.bf16.mxu0 %v8288_v8  ;;  %v8719_v13 = vsub.s32 %v310_v10, %v312_v7  ;;  %v8289_v23 = vld [vmem:[%s9647_s1 + $0x8] ss:$900 sps:$4 sm:$0x1f]  }
   0x6   :  { %3084 = vmatprep.subr.bf16.mxu1 %v8291_v11  ;;  %v307_v24 = vcombine.high %v16_v9, %v16_v9  ;;  %v8294_v26 = vld [vmem:[%s9647_s1 + $0x1d4] ss:$900 sps:$4 sm:$0x1f]   ;;  %v8300_v40 = vld [vmem:[%s9647_s1 + $0x1dc] ss:$900 sps:$4 sm:$0x1f]  }
   0x7   :  { %v314_v14 = vrot.slane %v16_v9, %v8719_v13  ;;  %v1000_v15 = vrot.slane %v30_v12, %v8719_v13  ;;  %v8297_v29 = vld [vmem:[%s9647_s1 + $0x14] ss:$900 sps:$4 sm:$0x1f]   ;;  %v1007_v31 = vrot.slane %v993_v25, %v8719_v13  ;;  %v8303_v41 = vld [vmem:[%s9647_s1 + $0x1c] ss:$900 sps:$4 sm:$0x1f]   ;;  %v1049_v53 = vrot.slane %v31_v51, %v8719_v13 }
   0x8   :  { %v321_v30 = vrot.slane %v307_v24, %v8719_v13  ;;  %v8292_v36 = vld [vmem:[%s9647_s1 + $0x1d0] ss:$900 sps:$4 sm:$0x1f]   ;;  %v8298_v42 = vld [vmem:[%s9647_s1 + $0x1d8] ss:$900 sps:$4 sm:$0x1f]   ;;  %v1042_v9 = vcombine.high %v31_v51, %v31_v51 }
   0x9   :  { %v322_v16 = vcombine.high %v314_v14, %v314_v14  ;;  %v1008_v17 = vcombine.high %v1000_v15, %v1000_v15  ;;  %v330_v19 = vrot.slane %v314_v14, %v8719_v13  ;;  %v1016_v20 = vrot.slane %v1000_v15, %v8719_v13  ;;  %v8295_v37 = vld [vmem:[%s9647_s1 + $0x10] ss:$900 sps:$4 sm:$0x1f]   ;;  %v8301_v45 = vld [vmem:[%s9647_s1 + $0x18] ss:$900 sps:$4 sm:$0x1f]  }
   0xa   :  { %v323_v32 = vcombine.high %v321_v30, %v321_v30  ;;  %v1009_v33 = vcombine.high %v1007_v31, %v1007_v31  ;;  %v337_v43 = vrot.slane %v321_v30, %v8719_v13  ;;  %v1023_v44 = vrot.slane %v1007_v31, %v8719_v13  ;;  %v8306_v48 = vld [vmem:[%s9647_s1 + $0x1e4] ss:$900 sps:$4 sm:$0x1f]   ;;  %v8312_v60 = vld [vmem:[%s9647_s1 + $0x1ec] ss:$900 sps:$4 sm:$0x1f]  }
   0xb   :  { %v344_v21 = vrot.slane %v322_v16, %v8719_v13  ;;  %v1030_v22 = vrot.slane %v1008_v17, %v8719_v13  ;;  %v352_v34 = vcombine.high %v330_v19, %v330_v19  ;;  %v1038_v35 = vcombine.high %v1016_v20, %v1016_v20  ;;  %v8309_v49 = vld [vmem:[%s9647_s1 + $0x24] ss:$900 sps:$4 sm:$0x1f]   ;;  %v8315_v61 = vld [vmem:[%s9647_s1 + $0x2c] ss:$900 sps:$4 sm:$0x1f]  }
   0xc   :  { %v351_v38 = vrot.slane %v323_v32, %v8719_v13  ;;  %v1037_v39 = vrot.slane %v1009_v33, %v8719_v13  ;;  %v17_v50 = vld [vmem:[%s9646_s0 + $0x8] sm:$0xff]  ;;  %v1057_v55 = vcombine.high %v1049_v53, %v1049_v53  ;;  %v8304_v56 = vld [vmem:[%s9647_s1 + $0x1e0] ss:$900 sps:$4 sm:$0x1f]   ;;  %v353_v57 = vcombine.high %v337_v43, %v337_v43 }
   0xd   :  { %v354_v27 = vcombine.high %v344_v21, %v344_v21  ;;  %3076 = vmatprep.mubr.bf16.mxu1 %v344_v21  ;;  %v1040_v28 = vcombine.high %v1030_v22, %v1030_v22  ;;  %5316 = vmatprep.mubr.bf16.mxu0 %v1030_v22  ;;  %v363_v52 = vrot.slane %v17_v50, %v8719_v13  ;;  %v8307_v59 = vld [vmem:[%s9647_s1 + $0x20] ss:$900 sps:$4 sm:$0x1f]   ;;  %v8310_v0 = vld [vmem:[%s9647_s1 + $0x1e8] ss:$900 sps:$4 sm:$0x1f]  }
   0xe   :  { %3077 = vmatmul.mubr.bf16.vlgmr.msra.gmra.mrb[0].mxu1 %v330_v19  ;;  %5317 = vmatmul.mubr.bf16.vlgmr.msra.gmra.mrb[0].mxu0 %v1016_v20  ;;  %v355_v46 = vcombine.high %v351_v38, %v351_v38  ;;  %v1041_v47 = vcombine.high %v1037_v39, %v1037_v39  ;;  %v1039_v58 = vcombine.high %v1023_v44, %v1023_v44  ;;  %v8313_v1 = vld [vmem:[%s9647_s1 + $0x28] ss:$900 sps:$4 sm:$0x1f]   ;;  %v8318_v4 = vld [vmem:[%s9647_s1 + $0x1f4] ss:$900 sps:$4 sm:$0x1f]  }
   0xf   :  { %5325 = vmatpush1.bf16.xpose.msra.mxu0 %v8286_v18  ;;  %3085 = vmatpush1.bf16.xpose.msra.mxu1 %v8289_v23  ;;  %v371_v54 = vcombine.high %v363_v52, %v363_v52  ;;  %v1079_v63 = vrot.slane %v1057_v55, %v8719_v13  ;;  %v379_v2 = vrot.slane %v363_v52, %v8719_v13  ;;  %v8321_v5 = vld [vmem:[%s9647_s1 + $0x34] ss:$900 sps:$4 sm:$0x1f]   ;;  %v8326_v19 = vld [vmem:[%s9647_s1 + $0x1fc] ss:$900 sps:$4 sm:$0x1f]  }
  0x10   :  { %3116 = vmatprep.mubr.bf16.mxu1 %v354_v27  ;;  %5356 = vmatprep.mubr.bf16.mxu0 %v1040_v28  ;;  %v1065_v3 = vrot.slane %v1049_v53, %v8719_v13  ;;  %v356_v8 = vcombine.high %v17_v50, %v17_v50  ;;  %v1056_v11 = vrot.slane %v1042_v9, %v8719_v13  ;;  %v8316_v15 = vld [vmem:[%s9647_s1 + $0x1f0] ss:$900 sps:$4 sm:$0x1f]   ;;  %v8329_v20 = vld [vmem:[%s9647_s1 + $0x3c] ss:$900 sps:$4 sm:$0x1f]  }
  0x11   :  { %5364 = vmatprep.subr.bf16.mxu0 %v8294_v26  ;;  %3124 = vmatprep.subr.bf16.mxu1 %v8297_v29  ;;  %v393_v62 = vrot.slane %v371_v54, %v8719_v13  ;;  %v1089_v7 = vcombine.high %v1079_v63, %v1079_v63  ;;  %v8319_v16 = vld [vmem:[%s9647_s1 + $0x30] ss:$900 sps:$4 sm:$0x1f]   ;;  %v401_v17 = vcombine.high %v379_v2, %v379_v2  ;;  %v8324_v23 = vld [vmem:[%s9647_s1 + $0x1f8] ss:$900 sps:$4 sm:$0x1f]  }
  0x12   :  { %v370_v10 = vrot.slane %v356_v8, %v8719_v13  ;;  %v1058_v14 = vcombine.high %v1056_v11, %v1056_v11  ;;  %v1087_v18 = vcombine.high %v1065_v3, %v1065_v3  ;;  %v8327_v24 = vld [vmem:[%s9647_s1 + $0x38] ss:$900 sps:$4 sm:$0x1f]   ;;  %v1072_v26 = vrot.slane %v1056_v11, %v8719_v13  ;;  %v8332_v27 = vld [vmem:[%s9647_s1 + $0x204] ss:$900 sps:$4 sm:$0x1f]  }
  0x13   :  { %v403_v6 = vcombine.high %v393_v62, %v393_v62  ;;  %v8335_v28 = vld [vmem:[%s9647_s1 + $0x44] ss:$900 sps:$4 sm:$0x1f]   ;;  %v18_v29 = vld [vmem:[%s9646_s0 + $0x10] sm:$0xff] }
  0x14   :  { %v372_v12 = vcombine.high %v370_v10, %v370_v10  ;;  %v1086_v22 = vrot.slane %v1058_v14, %v8719_v13  ;;  %v386_v25 = vrot.slane %v370_v10, %v8719_v13  ;;  %v32_v30 = vld [vmem:[%s9646_s0 + $0x80] sm:$0xff]  ;;  %v412_v33 = vrot.slane %v18_v29, %v8719_v13  ;;  %v8347_v50 = vld [vmem:[%s9647_s1 + $0x54] ss:$900 sps:$4 sm:$0x1f]  }
  0x15   :  { %v405_v53 = vcombine.high %v18_v29, %v18_v29  ;;  %v1091_v54 = vcombine.high %v32_v30, %v32_v30 }
  0x16   :  { %v400_v21 = vrot.slane %v372_v12, %v8719_v13  ;;  %v1090_v32 = vcombine.high %v1086_v22, %v1086_v22 }
  0x18   :  { %v404_v31 = vcombine.high %v400_v21, %v400_v21 }
  0x1a   :  { %3117 = vmatmul.mubr.bf16.vlgmr.msra.gmra.mrb[0].mxu1 %v352_v34  ;;  %5357 = vmatmul.mubr.bf16.vlgmr.msra.gmra.mrb[0].mxu0 %v1038_v35  ;;  %v1098_v34 = vrot.slane %v32_v30, %v8719_v13  ;;  %v420_v35 = vcombine.high %v412_v33, %v412_v33 }
  0x1b   :  { %5365 = vmatpush1.bf16.xpose.msra.mxu0 %v8292_v36  ;;  %3125 = vmatpush1.bf16.xpose.msra.mxu1 %v8295_v37  ;;  %v8330_v37 = vld [vmem:[%s9647_s1 + $0x200] ss:$900 sps:$4 sm:$0x1f]  }
  0x1c   :  { %3156 = vmatprep.mubr.bf16.mxu1 %v351_v38  ;;  %5396 = vmatprep.mubr.bf16.mxu0 %v1037_v39  ;;  %v1106_v36 = vcombine.high %v1098_v34, %v1098_v34  ;;  %v8333_v38 = vld [vmem:[%s9647_s1 + $0x40] ss:$900 sps:$4 sm:$0x1f]   ;;  %v402_v39 = vcombine.high %v386_v25, %v386_v25 }
  0x1d   :  { %5404 = vmatprep.subr.bf16.mxu0 %v8300_v40  ;;  %3164 = vmatprep.subr.bf16.mxu1 %v8303_v41  ;;  %v1088_v40 = vcombine.high %v1072_v26, %v1072_v26  ;;  %v8338_v41 = vld [vmem:[%s9647_s1 + $0x20c] ss:$900 sps:$4 sm:$0x1f]  }
  0x26   :  { %3157 = vmatmul.mubr.bf16.vlgmr.msra.gmra.mrb[0].mxu1 %v337_v43  ;;  %5397 = vmatmul.mubr.bf16.vlgmr.msra.gmra.mrb[0].mxu0 %v1023_v44  ;;  %v442_v43 = vrot.slane %v420_v35, %v8719_v13  ;;  %v1128_v44 = vrot.slane %v1106_v36, %v8719_v13 }
  0x27   :  { %5405 = vmatpush1.bf16.xpose.msra.mxu0 %v8298_v42  ;;  %3165 = vmatpush1.bf16.xpose.msra.mxu1 %v8301_v45  ;;  %v8341_v42 = vld [vmem:[%s9647_s1 + $0x4c] ss:$900 sps:$4 sm:$0x1f]  }
  0x28   :  { %3196 = vmatprep.mubr.bf16.mxu1 %v355_v46  ;;  %5436 = vmatprep.mubr.bf16.mxu0 %v1041_v47  ;;  %v8336_v45 = vld [vmem:[%s9647_s1 + $0x208] ss:$900 sps:$4 sm:$0x1f]   ;;  %v428_v47 = vrot.slane %v412_v33, %v8719_v13  ;;  %v452_v51 = vcombine.high %v442_v43, %v442_v43  ;;  %v1138_v52 = vcombine.high %v1128_v44, %v1128_v44 }
  0x29   :  { %5444 = vmatprep.subr.bf16.mxu0 %v8306_v48  ;;  %3204 = vmatprep.subr.bf16.mxu1 %v8309_v49  ;;  %v8339_v46 = vld [vmem:[%s9647_s1 + $0x48] ss:$900 sps:$4 sm:$0x1f]   ;;  %v1114_v48 = vrot.slane %v1098_v34, %v8719_v13  ;;  %v8344_v49 = vld [vmem:[%s9647_s1 + $0x214] ss:$900 sps:$4 sm:$0x1f]  }
  0x32   :  { %3197 = vmatmul.mubr.bf16.vlgmr.msra.gmra.mrb[0].mxu1 %v353_v57  ;;  %5437 = vmatmul.mubr.bf16.vlgmr.msra.gmra.mrb[0].mxu0 %v1039_v58 }
  0x33   :  { %5445 = vmatpush1.bf16.xpose.msra.mxu0 %v8304_v56  ;;  %3205 = vmatpush1.bf16.xpose.msra.mxu1 %v8307_v59 }
  0x34   :  { %3236 = vmatprep.mubr.bf16.mxu1 %v393_v62  ;;  %5476 = vmatprep.mubr.bf16.mxu0 %v1079_v63 }
  0x35   :  { %5484 = vmatprep.subr.bf16.mxu0 %v8312_v60  ;;  %3244 = vmatprep.subr.bf16.mxu1 %v8315_v61 }
  0x3e   :  { %3237 = vmatmul.mubr.bf16.vlgmr.msra.gmra.mrb[0].mxu1 %v379_v2  ;;  %5477 = vmatmul.mubr.bf16.vlgmr.msra.gmra.mrb[0].mxu0 %v1065_v3 }
  0x3f   :  { %5485 = vmatpush1.bf16.xpose.msra.mxu0 %v8310_v0  ;;  %3245 = vmatpush1.bf16.xpose.msra.mxu1 %v8313_v1 }
  0x40   :  { %3276 = vmatprep.mubr.bf16.mxu1 %v403_v6  ;;  %5516 = vmatprep.mubr.bf16.mxu0 %v1089_v7 }
  0x41   :  { %5524 = vmatprep.subr.bf16.mxu0 %v8318_v4  ;;  %3284 = vmatprep.subr.bf16.mxu1 %v8321_v5 }
  0x4a   :  { %3277 = vmatmul.mubr.bf16.vlgmr.msra.gmra.mrb[0].mxu1 %v401_v17  ;;  %5517 = vmatmul.mubr.bf16.vlgmr.msra.gmra.mrb[0].mxu0 %v1087_v18 }
  0x4b   :  { %5525 = vmatpush1.bf16.xpose.msra.mxu0 %v8316_v15  ;;  %3285 = vmatpush1.bf16.xpose.msra.mxu1 %v8319_v16 }
  0x4c   :  { %3316 = vmatprep.mubr.bf16.mxu1 %v400_v21  ;;  %5556 = vmatprep.mubr.bf16.mxu0 %v1086_v22 }
  0x4d   :  { %5564 = vmatprep.subr.bf16.mxu0 %v8326_v19  ;;  %3324 = vmatprep.subr.bf16.mxu1 %v8329_v20 }
  0x56   :  { %3317 = vmatmul.mubr.bf16.vlgmr.msra.gmra.mrb[0].mxu1 %v386_v25  ;;  %5557 = vmatmul.mubr.bf16.vlgmr.msra.gmra.mrb[0].mxu0 %v1072_v26 }
  0x57   :  { %5565 = vmatpush1.bf16.xpose.msra.mxu0 %v8324_v23  ;;  %3325 = vmatpush1.bf16.xpose.msra.mxu1 %v8327_v24 }
  0x58   :  { %3356 = vmatprep.mubr.bf16.mxu1 %v404_v31  ;;  %5596 = vmatprep.mubr.bf16.mxu0 %v1090_v32 }
  0x59   :  { %5604 = vmatprep.subr.bf16.mxu0 %v8332_v27  ;;  %3364 = vmatprep.subr.bf16.mxu1 %v8335_v28 }
  0x62   :  { %3357 = vmatmul.mubr.bf16.vlgmr.msra.gmra.mrb[0].mxu1 %v402_v39  ;;  %5597 = vmatmul.mubr.bf16.vlgmr.msra.gmra.mrb[0].mxu0 %v1088_v40 }
  0x63   :  { %5605 = vmatpush1.bf16.xpose.msra.mxu0 %v8330_v37  ;;  %3365 = vmatpush1.bf16.xpose.msra.mxu1 %v8333_v38 }
  0x64   :  { %3396 = vmatprep.mubr.bf16.mxu1 %v442_v43  ;;  %5636 = vmatprep.mubr.bf16.mxu0 %v1128_v44 }
  0x65   :  { %5644 = vmatprep.subr.bf16.mxu0 %v8338_v41  ;;  %3404 = vmatprep.subr.bf16.mxu1 %v8341_v42 }
  0x6e   :  { %3397 = vmatmul.mubr.bf16.vlgmr.msra.gmra.mrb[0].mxu1 %v428_v47  ;;  %5637 = vmatmul.mubr.bf16.vlgmr.msra.gmra.mrb[0].mxu0 %v1114_v48 }
  0x6f   :  { %5645 = vmatpush1.bf16.xpose.msra.mxu0 %v8336_v45  ;;  %3405 = vmatpush1.bf16.xpose.msra.mxu1 %v8339_v46 }
  0x70   :  { %8 = vsyncpa [#allocation3], 0  ;;  %3436 = vmatprep.mubr.bf16.mxu1 %v452_v51  ;;  %5676 = vmatprep.mubr.bf16.mxu0 %v1138_v52  ;;  %v419_v55 = vrot.slane %v405_v53, %v8719_v13  ;;  %v1105_v56 = vrot.slane %v1091_v54, %v8719_v13  ;;  %v450_v59 = vcombine.high %v428_v47, %v428_v47  ;;  %v8342_v61 = vld [vmem:[%s9647_s1 + $0x210] ss:$900 sps:$4 sm:$0x1f]   ;;  %v19_v11 = vld [vmem:[%s9646_s0 + $0x18] sm:$0xff] }
  0x71   :  { %5684 = vmatprep.subr.bf16.mxu0 %v8344_v49  ;;  %3444 = vmatprep.subr.bf16.mxu1 %v8347_v50  ;;  %v1136_v60 = vcombine.high %v1114_v48, %v1114_v48  ;;  %v8345_v62 = vld [vmem:[%s9647_s1 + $0x50] ss:$900 sps:$4 sm:$0x1f]   ;;  %v8352_v1 = vld [vmem:[%s9647_s1 + $0x21c] ss:$900 sps:$4 sm:$0x1f]   ;;  %v461_v14 = vrot.slane %v19_v11, %v8719_v13  ;;  %v454_v32 = vcombine.high %v19_v11, %v19_v11 }
  0x72   :  { %v421_v57 = vcombine.high %v419_v55, %v419_v55  ;;  %v1107_v58 = vcombine.high %v1105_v56, %v1105_v56  ;;  %v8355_v2 = vld [vmem:[%s9647_s1 + $0x5c] ss:$900 sps:$4 sm:$0x1f]   ;;  %v435_v3 = vrot.slane %v419_v55, %v8719_v13  ;;  %v1121_v4 = vrot.slane %v1105_v56, %v8719_v13  ;;  %v8358_v9 = vld [vmem:[%s9647_s1 + $0x224] ss:$900 sps:$4 sm:$0x1f]  }
  0x73   :  { %v8350_v5 = vld [vmem:[%s9647_s1 + $0x218] ss:$900 sps:$4 sm:$0x1f]   ;;  %v8361_v10 = vld [vmem:[%s9647_s1 + $0x64] ss:$900 sps:$4 sm:$0x1f]   ;;  %v469_v16 = vcombine.high %v461_v14, %v461_v14  ;;  %v477_v26 = vrot.slane %v461_v14, %v8719_v13  ;;  %v468_v36 = vrot.slane %v454_v32, %v8719_v13 }
  0x74   :  { %v449_v63 = vrot.slane %v421_v57, %v8719_v13  ;;  %v1135_v0 = vrot.slane %v1107_v58, %v8719_v13  ;;  %v8353_v6 = vld [vmem:[%s9647_s1 + $0x58] ss:$900 sps:$4 sm:$0x1f]   ;;  %v33_v12 = vld [vmem:[%s9646_s0 + $0x88] sm:$0xff]  ;;  %v451_v18 = vcombine.high %v435_v3, %v435_v3  ;;  %v1137_v19 = vcombine.high %v1121_v4, %v1121_v4  ;;  %v20_v56 = vld [vmem:[%s9646_s0 + $0x20] sm:$0xff] }
  0x75   :  { %v1147_v15 = vrot.slane %v33_v12, %v8719_v13  ;;  %v8356_v20 = vld [vmem:[%s9647_s1 + $0x220] ss:$900 sps:$4 sm:$0x1f]   ;;  %v491_v22 = vrot.slane %v469_v16, %v8719_v13  ;;  %v8364_v24 = vld [vmem:[%s9647_s1 + $0x22c] ss:$900 sps:$4 sm:$0x1f]   ;;  %v1140_v33 = vcombine.high %v33_v12, %v33_v12  ;;  %v470_v38 = vcombine.high %v468_v36, %v468_v36 }
  0x76   :  { %v453_v7 = vcombine.high %v449_v63, %v449_v63  ;;  %v1139_v8 = vcombine.high %v1135_v0, %v1135_v0  ;;  %v8359_v21 = vld [vmem:[%s9647_s1 + $0x60] ss:$900 sps:$4 sm:$0x1f]   ;;  %v8367_v25 = vld [vmem:[%s9647_s1 + $0x6c] ss:$900 sps:$4 sm:$0x1f]   ;;  %v499_v40 = vcombine.high %v477_v26, %v477_v26  ;;  %v484_v48 = vrot.slane %v468_v36, %v8719_v13 }
  0x77   :  { %v1155_v17 = vcombine.high %v1147_v15, %v1147_v15  ;;  %v1163_v27 = vrot.slane %v1147_v15, %v8719_v13  ;;  %v8362_v28 = vld [vmem:[%s9647_s1 + $0x228] ss:$900 sps:$4 sm:$0x1f]   ;;  %v501_v30 = vcombine.high %v491_v22, %v491_v22  ;;  %v8370_v34 = vld [vmem:[%s9647_s1 + $0x234] ss:$900 sps:$4 sm:$0x1f]   ;;  %v1154_v37 = vrot.slane %v1140_v33, %v8719_v13 }
  0x78   :  { %v8365_v29 = vld [vmem:[%s9647_s1 + $0x68] ss:$900 sps:$4 sm:$0x1f]   ;;  %v8373_v35 = vld [vmem:[%s9647_s1 + $0x74] ss:$900 sps:$4 sm:$0x1f]   ;;  %v498_v44 = vrot.slane %v470_v38, %v8719_v13  ;;  %v510_v58 = vrot.slane %v20_v56, %v8719_v13  ;;  %v503_v12 = vcombine.high %v20_v56, %v20_v56 }
  0x79   :  { %v1177_v23 = vrot.slane %v1155_v17, %v8719_v13  ;;  %v1156_v39 = vcombine.high %v1154_v37, %v1154_v37  ;;  %v1185_v41 = vcombine.high %v1163_v27, %v1163_v27  ;;  %v8368_v42 = vld [vmem:[%s9647_s1 + $0x230] ss:$900 sps:$4 sm:$0x1f]   ;;  %v8378_v46 = vld [vmem:[%s9647_s1 + $0x23c] ss:$900 sps:$4 sm:$0x1f]   ;;  %v1170_v49 = vrot.slane %v1154_v37, %v8719_v13 }
  0x7a   :  { %3437 = vmatmul.mubr.bf16.vlgmr.msra.gmra.mrb[0].mxu1 %v450_v59  ;;  %5677 = vmatmul.mubr.bf16.vlgmr.msra.gmra.mrb[0].mxu0 %v1136_v60  ;;  %v8371_v43 = vld [vmem:[%s9647_s1 + $0x70] ss:$900 sps:$4 sm:$0x1f]   ;;  %v8381_v47 = vld [vmem:[%s9647_s1 + $0x7c] ss:$900 sps:$4 sm:$0x1f]   ;;  %v502_v52 = vcombine.high %v498_v44, %v498_v44  ;;  %v518_v60 = vcombine.high %v510_v58, %v510_v58  ;;  %v517_v17 = vrot.slane %v503_v12, %v8719_v13 }
  0x7b   :  { %5685 = vmatpush1.bf16.xpose.msra.mxu0 %v8342_v61  ;;  %3445 = vmatpush1.bf16.xpose.msra.mxu1 %v8345_v62  ;;  %v1187_v31 = vcombine.high %v1177_v23, %v1177_v23  ;;  %v1184_v45 = vrot.slane %v1156_v39, %v8719_v13  ;;  %v8376_v50 = vld [vmem:[%s9647_s1 + $0x238] ss:$900 sps:$4 sm:$0x1f]   ;;  %v8384_v54 = vld [vmem:[%s9647_s1 + $0x244] ss:$900 sps:$4 sm:$0x1f]   ;;  %v500_v62 = vcombine.high %v484_v48, %v484_v48 }
  0x7c   :  { %3476 = vmatprep.mubr.bf16.mxu1 %v449_v63  ;;  %5716 = vmatprep.mubr.bf16.mxu0 %v1135_v0  ;;  %v8379_v51 = vld [vmem:[%s9647_s1 + $0x78] ss:$900 sps:$4 sm:$0x1f]   ;;  %v8387_v55 = vld [vmem:[%s9647_s1 + $0x84] ss:$900 sps:$4 sm:$0x1f]   ;;  %v1186_v63 = vcombine.high %v1170_v49, %v1170_v49 }
  0x7d   :  { %5724 = vmatprep.subr.bf16.mxu0 %v8352_v1  ;;  %3484 = vmatprep.subr.bf16.mxu1 %v8355_v2  ;;  %v1188_v53 = vcombine.high %v1184_v45, %v1184_v45  ;;  %v34_v57 = vld [vmem:[%s9646_s0 + $0x90] sm:$0xff]  ;;  %v8382_v0 = vld [vmem:[%s9647_s1 + $0x240] ss:$900 sps:$4 sm:$0x1f]   ;;  %v540_v2 = vrot.slane %v518_v60, %v8719_v13  ;;  %v21_v37 = vld [vmem:[%s9646_s0 + $0x28] sm:$0xff]  ;;  %vm8673_vm0 = vmmov 0  }
  0x7e   :  { %v1196_v59 = vrot.slane %v34_v57, %v8719_v13  ;;  %v8385_v1 = vld [vmem:[%s9647_s1 + $0x80] ss:$900 sps:$4 sm:$0x1f]   ;;  %v1189_v14 = vcombine.high %v34_v57, %v34_v57  ;;  %v8396_v15 = vld [vmem:[%s9647_s1 + $0x254] ss:$900 sps:$4 sm:$0x1f]   ;;  %v559_v39 = vrot.slane %v21_v37, %v8719_v13  ;;  %v552_v57 = vcombine.high %v21_v37, %v21_v37 }
  0x7f   :  { %v8399_v16 = vld [vmem:[%s9647_s1 + $0x94] ss:$900 sps:$4 sm:$0x1f]   ;;  %v8413_v36 = vld [vmem:[%s9647_s1 + $0xa4] ss:$900 sps:$4 sm:$0x1f]  }
  0x80   :  { %v1204_v61 = vcombine.high %v1196_v59, %v1196_v59  ;;  %v8405_v32 = vld [vmem:[%s9647_s1 + $0x98] ss:$900 sps:$4 sm:$0x1f]   ;;  %vm7564_vm1 = vcmask 74752  }
  0x81   :  { %v35_v38 = vld [vmem:[%s9646_s0 + $0x98] sm:$0xff] }
  0x82   :  { %v8425_v60 = vld [vmem:[%s9647_s1 + $0xb4] ss:$900 sps:$4 sm:$0x1f]  }
  0x83   :  { %v8431_v12 = vld [vmem:[%s9647_s1 + $0xb8] ss:$900 sps:$4 sm:$0x1f]  }
  0x86   :  { %3477 = vmatmul.mubr.bf16.vlgmr.msra.gmra.mrb[0].mxu1 %v435_v3  ;;  %5717 = vmatmul.mubr.bf16.vlgmr.msra.gmra.mrb[0].mxu0 %v1121_v4  ;;  %v1226_v3 = vrot.slane %v1204_v61, %v8719_v13  ;;  %v8390_v4 = vld [vmem:[%s9647_s1 + $0x24c] ss:$900 sps:$4 sm:$0x1f]   ;;  %v566_v61 = vrot.slane %v552_v57, %v8719_v13  ;;  %v8457_v57 = vld [vmem:[%s9647_s1 + $0xd8] ss:$900 sps:$4 sm:$0x1f]  }
  0x87   :  { %5725 = vmatpush1.bf16.xpose.msra.mxu0 %v8350_v5  ;;  %3485 = vmatpush1.bf16.xpose.msra.mxu1 %v8353_v6  ;;  %v8393_v5 = vld [vmem:[%s9647_s1 + $0x8c] ss:$900 sps:$4 sm:$0x1f]   ;;  %v526_v6 = vrot.slane %v510_v58, %v8719_v13  ;;  %v1238_v58 = vcombine.high %v35_v38, %v35_v38 }
  0x88   :  { %3516 = vmatprep.mubr.bf16.mxu1 %v453_v7  ;;  %5756 = vmatprep.mubr.bf16.mxu0 %v1139_v8  ;;  %v1212_v7 = vrot.slane %v1196_v59, %v8719_v13  ;;  %v8388_v8 = vld [vmem:[%s9647_s1 + $0x248] ss:$900 sps:$4 sm:$0x1f]   ;;  %v1236_v11 = vcombine.high %v1226_v3, %v1226_v3  ;;  %v8422_v59 = vld [vmem:[%s9647_s1 + $0x274] ss:$900 sps:$4 sm:$0x1f]  }
  0x89   :  { %5764 = vmatprep.subr.bf16.mxu0 %v8358_v9  ;;  %3524 = vmatprep.subr.bf16.mxu1 %v8361_v10  ;;  %v8391_v9 = vld [vmem:[%s9647_s1 + $0x88] ss:$900 sps:$4 sm:$0x1f]   ;;  %v550_v10 = vcombine.high %v540_v2, %v540_v2 }
  0x92   :  { %3517 = vmatmul.mubr.bf16.vlgmr.msra.gmra.mrb[0].mxu1 %v451_v18  ;;  %5757 = vmatmul.mubr.bf16.vlgmr.msra.gmra.mrb[0].mxu0 %v1137_v19  ;;  %v1203_v18 = vrot.slane %v1189_v14, %v8719_v13  ;;  %v519_v19 = vcombine.high %v517_v17, %v517_v17 }
  0x93   :  { %5765 = vmatpush1.bf16.xpose.msra.mxu0 %v8356_v20  ;;  %3525 = vmatpush1.bf16.xpose.msra.mxu1 %v8359_v21  ;;  %v548_v21 = vcombine.high %v526_v6, %v526_v6 }
  0x94   :  { %3556 = vmatprep.mubr.bf16.mxu1 %v491_v22  ;;  %5796 = vmatprep.mubr.bf16.mxu0 %v1177_v23  ;;  %v1205_v20 = vcombine.high %v1203_v18, %v1203_v18  ;;  %v1234_v22 = vcombine.high %v1212_v7, %v1212_v7  ;;  %v8394_v23 = vld [vmem:[%s9647_s1 + $0x250] ss:$900 sps:$4 sm:$0x1f]  }
  0x95   :  { %5804 = vmatprep.subr.bf16.mxu0 %v8364_v24  ;;  %3564 = vmatprep.subr.bf16.mxu1 %v8367_v25  ;;  %v8397_v24 = vld [vmem:[%s9647_s1 + $0x90] ss:$900 sps:$4 sm:$0x1f]   ;;  %v547_v25 = vrot.slane %v519_v19, %v8719_v13  ;;  %v36_v19 = vld [vmem:[%s9646_s0 + $0xa0] sm:$0xff] }
  0x97   :  { %v551_v33 = vcombine.high %v547_v25, %v547_v25 }
  0x9e   :  { %3557 = vmatmul.mubr.bf16.vlgmr.msra.gmra.mrb[0].mxu1 %v477_v26  ;;  %5797 = vmatmul.mubr.bf16.vlgmr.msra.gmra.mrb[0].mxu0 %v1163_v27  ;;  %v1233_v26 = vrot.slane %v1205_v20, %v8719_v13  ;;  %v8404_v27 = vld [vmem:[%s9647_s1 + $0x25c] ss:$900 sps:$4 sm:$0x1f]  }
  0x9f   :  { %5805 = vmatpush1.bf16.xpose.msra.mxu0 %v8362_v28  ;;  %3565 = vmatpush1.bf16.xpose.msra.mxu1 %v8365_v29  ;;  %v8407_v28 = vld [vmem:[%s9647_s1 + $0x9c] ss:$900 sps:$4 sm:$0x1f]   ;;  %v533_v29 = vrot.slane %v517_v17, %v8719_v13  ;;  %v8439_v17 = vld [vmem:[%s9647_s1 + $0xc4] ss:$900 sps:$4 sm:$0x1f]  }
  0xa0   :  { %3596 = vmatprep.mubr.bf16.mxu1 %v501_v30  ;;  %5836 = vmatprep.mubr.bf16.mxu0 %v1187_v31  ;;  %v1219_v30 = vrot.slane %v1203_v18, %v8719_v13  ;;  %v8402_v31 = vld [vmem:[%s9647_s1 + $0x258] ss:$900 sps:$4 sm:$0x1f]   ;;  %v22_v18 = vld [vmem:[%s9646_s0 + $0x30] sm:$0xff] }
  0xa1   :  { %5844 = vmatprep.subr.bf16.mxu0 %v8370_v34  ;;  %3604 = vmatprep.subr.bf16.mxu1 %v8373_v35  ;;  %v1237_v34 = vcombine.high %v1233_v26, %v1233_v26  ;;  %v8410_v35 = vld [vmem:[%s9647_s1 + $0x264] ss:$900 sps:$4 sm:$0x1f]   ;;  %v608_v20 = vrot.slane %v22_v18, %v8719_v13 }
  0xaa   :  { %3597 = vmatmul.mubr.bf16.vlgmr.msra.gmra.mrb[0].mxu1 %v499_v40  ;;  %5837 = vmatmul.mubr.bf16.vlgmr.msra.gmra.mrb[0].mxu0 %v1185_v41  ;;  %v1245_v40 = vrot.slane %v35_v38, %v8719_v13  ;;  %v567_v41 = vcombine.high %v559_v39, %v559_v39  ;;  %v601_v38 = vcombine.high %v22_v18, %v22_v18 }
  0xab   :  { %5845 = vmatpush1.bf16.xpose.msra.mxu0 %v8368_v42  ;;  %3605 = vmatpush1.bf16.xpose.msra.mxu1 %v8371_v43  ;;  %v549_v43 = vcombine.high %v533_v29, %v533_v29 }
  0xac   :  { %3636 = vmatprep.mubr.bf16.mxu1 %v498_v44  ;;  %5876 = vmatprep.mubr.bf16.mxu0 %v1184_v45  ;;  %v1253_v42 = vcombine.high %v1245_v40, %v1245_v40  ;;  %v1235_v44 = vcombine.high %v1219_v30, %v1219_v30  ;;  %v8408_v45 = vld [vmem:[%s9647_s1 + $0x260] ss:$900 sps:$4 sm:$0x1f]  }
  0xad   :  { %5884 = vmatprep.subr.bf16.mxu0 %v8378_v46  ;;  %3644 = vmatprep.subr.bf16.mxu1 %v8381_v47  ;;  %v8411_v46 = vld [vmem:[%s9647_s1 + $0xa0] ss:$900 sps:$4 sm:$0x1f]   ;;  %v589_v47 = vrot.slane %v567_v41, %v8719_v13  ;;  %v8451_v41 = vld [vmem:[%s9647_s1 + $0xd4] ss:$900 sps:$4 sm:$0x1f]  }
  0xb6   :  { %3637 = vmatmul.mubr.bf16.vlgmr.msra.gmra.mrb[0].mxu1 %v484_v48  ;;  %5877 = vmatmul.mubr.bf16.vlgmr.msra.gmra.mrb[0].mxu0 %v1170_v49  ;;  %v1275_v48 = vrot.slane %v1253_v42, %v8719_v13  ;;  %v8416_v49 = vld [vmem:[%s9647_s1 + $0x26c] ss:$900 sps:$4 sm:$0x1f]   ;;  %v615_v42 = vrot.slane %v601_v38, %v8719_v13  ;;  %v8483_v38 = vld [vmem:[%s9647_s1 + $0xf8] ss:$900 sps:$4 sm:$0x1f]  }
  0xb7   :  { %5885 = vmatpush1.bf16.xpose.msra.mxu0 %v8376_v50  ;;  %3645 = vmatpush1.bf16.xpose.msra.mxu1 %v8379_v51  ;;  %v8419_v50 = vld [vmem:[%s9647_s1 + $0xac] ss:$900 sps:$4 sm:$0x1f]   ;;  %v575_v51 = vrot.slane %v559_v39, %v8719_v13  ;;  %v1287_v39 = vcombine.high %v36_v19, %v36_v19 }
  0xb8   :  { %3676 = vmatprep.mubr.bf16.mxu1 %v502_v52  ;;  %5916 = vmatprep.mubr.bf16.mxu0 %v1188_v53  ;;  %v1261_v52 = vrot.slane %v1245_v40, %v8719_v13  ;;  %v8414_v53 = vld [vmem:[%s9647_s1 + $0x268] ss:$900 sps:$4 sm:$0x1f]   ;;  %v1285_v56 = vcombine.high %v1275_v48, %v1275_v48  ;;  %v8448_v40 = vld [vmem:[%s9647_s1 + $0x294] ss:$900 sps:$4 sm:$0x1f]  }
  0xb9   :  { %5924 = vmatprep.subr.bf16.mxu0 %v8384_v54  ;;  %3684 = vmatprep.subr.bf16.mxu1 %v8387_v55  ;;  %v8417_v54 = vld [vmem:[%s9647_s1 + $0xa8] ss:$900 sps:$4 sm:$0x1f]   ;;  %v599_v55 = vcombine.high %v589_v47, %v589_v47 }
  0xc2   :  { %3677 = vmatmul.mubr.bf16.vlgmr.msra.gmra.mrb[0].mxu1 %v500_v62  ;;  %5917 = vmatmul.mubr.bf16.vlgmr.msra.gmra.mrb[0].mxu0 %v1186_v63  ;;  %v1252_v62 = vrot.slane %v1238_v58, %v8719_v13  ;;  %v568_v63 = vcombine.high %v566_v61, %v566_v61 }
  0xc3   :  { %5925 = vmatpush1.bf16.xpose.msra.mxu0 %v8382_v0  ;;  %3685 = vmatpush1.bf16.xpose.msra.mxu1 %v8385_v1  ;;  %v597_v1 = vcombine.high %v575_v51, %v575_v51 }
  0xc4   :  { %3716 = vmatprep.mubr.bf16.mxu1 %v540_v2  ;;  %5956 = vmatprep.mubr.bf16.mxu0 %v1226_v3  ;;  %v1254_v0 = vcombine.high %v1252_v62, %v1252_v62  ;;  %v1283_v2 = vcombine.high %v1261_v52, %v1261_v52  ;;  %v8420_v3 = vld [vmem:[%s9647_s1 + $0x270] ss:$900 sps:$4 sm:$0x1f]  }
  0xc5   :  { %5964 = vmatprep.subr.bf16.mxu0 %v8390_v4  ;;  %3724 = vmatprep.subr.bf16.mxu1 %v8393_v5  ;;  %v8423_v4 = vld [vmem:[%s9647_s1 + $0xb0] ss:$900 sps:$4 sm:$0x1f]   ;;  %v596_v5 = vrot.slane %v568_v63, %v8719_v13  ;;  %v37_v63 = vld [vmem:[%s9646_s0 + $0xa8] sm:$0xff] }
  0xc7   :  { %v600_v14 = vcombine.high %v596_v5, %v596_v5 }
  0xce   :  { %3717 = vmatmul.mubr.bf16.vlgmr.msra.gmra.mrb[0].mxu1 %v526_v6  ;;  %5957 = vmatmul.mubr.bf16.vlgmr.msra.gmra.mrb[0].mxu0 %v1212_v7  ;;  %v1282_v6 = vrot.slane %v1254_v0, %v8719_v13  ;;  %v8430_v7 = vld [vmem:[%s9647_s1 + $0x27c] ss:$900 sps:$4 sm:$0x1f]  }
  0xcf   :  { %5965 = vmatpush1.bf16.xpose.msra.mxu0 %v8388_v8  ;;  %3725 = vmatpush1.bf16.xpose.msra.mxu1 %v8391_v9  ;;  %v8433_v8 = vld [vmem:[%s9647_s1 + $0xbc] ss:$900 sps:$4 sm:$0x1f]   ;;  %v582_v9 = vrot.slane %v566_v61, %v8719_v13  ;;  %v8465_v61 = vld [vmem:[%s9647_s1 + $0xe4] ss:$900 sps:$4 sm:$0x1f]  }
  0xd0   :  { %3756 = vmatprep.mubr.bf16.mxu1 %v550_v10  ;;  %5996 = vmatprep.mubr.bf16.mxu0 %v1236_v11  ;;  %v1268_v10 = vrot.slane %v1252_v62, %v8719_v13  ;;  %v8428_v11 = vld [vmem:[%s9647_s1 + $0x278] ss:$900 sps:$4 sm:$0x1f]  }
  0xd1   :  { %6004 = vmatprep.subr.bf16.mxu0 %v8396_v15  ;;  %3764 = vmatprep.subr.bf16.mxu1 %v8399_v16  ;;  %v1286_v15 = vcombine.high %v1282_v6, %v1282_v6  ;;  %v8436_v16 = vld [vmem:[%s9647_s1 + $0x284] ss:$900 sps:$4 sm:$0x1f]   ;;  %v23_v62 = vld [vmem:[%s9646_s0 + $0x38] sm:$0xff] }
  0xd2   :  { %v657_v0 = vrot.slane %v23_v62, %v8719_v13 }
  0xda   :  { %3757 = vmatmul.mubr.bf16.vlgmr.msra.gmra.mrb[0].mxu1 %v548_v21  ;;  %5997 = vmatmul.mubr.bf16.vlgmr.msra.gmra.mrb[0].mxu0 %v1234_v22  ;;  %v1294_v21 = vrot.slane %v36_v19, %v8719_v13  ;;  %v616_v22 = vcombine.high %v608_v20, %v608_v20  ;;  %v650_v19 = vcombine.high %v23_v62, %v23_v62 }
  0xdb   :  { %6005 = vmatpush1.bf16.xpose.msra.mxu0 %v8394_v23  ;;  %3765 = vmatpush1.bf16.xpose.msra.mxu1 %v8397_v24  ;;  %v598_v24 = vcombine.high %v582_v9, %v582_v9 }
  0xdc   :  { %3796 = vmatprep.mubr.bf16.mxu1 %v547_v25  ;;  %6036 = vmatprep.mubr.bf16.mxu0 %v1233_v26  ;;  %v1302_v23 = vcombine.high %v1294_v21, %v1294_v21  ;;  %v1284_v25 = vcombine.high %v1268_v10, %v1268_v10  ;;  %v8434_v26 = vld [vmem:[%s9647_s1 + $0x280] ss:$900 sps:$4 sm:$0x1f]  }
  0xdd   :  { %6044 = vmatprep.subr.bf16.mxu0 %v8404_v27  ;;  %3804 = vmatprep.subr.bf16.mxu1 %v8407_v28  ;;  %v8437_v27 = vld [vmem:[%s9647_s1 + $0xc0] ss:$900 sps:$4 sm:$0x1f]   ;;  %v638_v28 = vrot.slane %v616_v22, %v8719_v13  ;;  %v8477_v22 = vld [vmem:[%s9647_s1 + $0xf4] ss:$900 sps:$4 sm:$0x1f]  }
  0xe6   :  { %3797 = vmatmul.mubr.bf16.vlgmr.msra.gmra.mrb[0].mxu1 %v533_v29  ;;  %6037 = vmatmul.mubr.bf16.vlgmr.msra.gmra.mrb[0].mxu0 %v1219_v30  ;;  %v1324_v29 = vrot.slane %v1302_v23, %v8719_v13  ;;  %v8442_v30 = vld [vmem:[%s9647_s1 + $0x28c] ss:$900 sps:$4 sm:$0x1f]   ;;  %v664_v23 = vrot.slane %v650_v19, %v8719_v13  ;;  %v8509_v19 = vld [vmem:[%s9647_s1 + $0x118] ss:$900 sps:$4 sm:$0x1f]  }
  0xe7   :  { %6045 = vmatpush1.bf16.xpose.msra.mxu0 %v8402_v31  ;;  %3805 = vmatpush1.bf16.xpose.msra.mxu1 %v8405_v32  ;;  %v8445_v31 = vld [vmem:[%s9647_s1 + $0xcc] ss:$900 sps:$4 sm:$0x1f]   ;;  %v624_v32 = vrot.slane %v608_v20, %v8719_v13  ;;  %v1336_v20 = vcombine.high %v37_v63, %v37_v63 }
  0xe8   :  { %3836 = vmatprep.mubr.bf16.mxu1 %v551_v33  ;;  %6076 = vmatprep.mubr.bf16.mxu0 %v1237_v34  ;;  %v1310_v33 = vrot.slane %v1294_v21, %v8719_v13  ;;  %v8440_v34 = vld [vmem:[%s9647_s1 + $0x288] ss:$900 sps:$4 sm:$0x1f]   ;;  %v1334_v37 = vcombine.high %v1324_v29, %v1324_v29  ;;  %v8474_v21 = vld [vmem:[%s9647_s1 + $0x2b4] ss:$900 sps:$4 sm:$0x1f]  }
  0xe9   :  { %6084 = vmatprep.subr.bf16.mxu0 %v8410_v35  ;;  %3844 = vmatprep.subr.bf16.mxu1 %v8413_v36  ;;  %v8443_v35 = vld [vmem:[%s9647_s1 + $0xc8] ss:$900 sps:$4 sm:$0x1f]   ;;  %v648_v36 = vcombine.high %v638_v28, %v638_v28 }
  0xf2   :  { %3837 = vmatmul.mubr.bf16.vlgmr.msra.gmra.mrb[0].mxu1 %v549_v43  ;;  %6077 = vmatmul.mubr.bf16.vlgmr.msra.gmra.mrb[0].mxu0 %v1235_v44  ;;  %v1301_v43 = vrot.slane %v1287_v39, %v8719_v13  ;;  %v617_v44 = vcombine.high %v615_v42, %v615_v42 }
  0xf3   :  { %6085 = vmatpush1.bf16.xpose.msra.mxu0 %v8408_v45  ;;  %3845 = vmatpush1.bf16.xpose.msra.mxu1 %v8411_v46  ;;  %v646_v46 = vcombine.high %v624_v32, %v624_v32 }
  0xf4   :  { %3876 = vmatprep.mubr.bf16.mxu1 %v589_v47  ;;  %6116 = vmatprep.mubr.bf16.mxu0 %v1275_v48  ;;  %v1303_v45 = vcombine.high %v1301_v43, %v1301_v43  ;;  %v1332_v47 = vcombine.high %v1310_v33, %v1310_v33  ;;  %v8446_v48 = vld [vmem:[%s9647_s1 + $0x290] ss:$900 sps:$4 sm:$0x1f]  }
  0xf5   :  { %6124 = vmatprep.subr.bf16.mxu0 %v8416_v49  ;;  %3884 = vmatprep.subr.bf16.mxu1 %v8419_v50  ;;  %v8449_v49 = vld [vmem:[%s9647_s1 + $0xd0] ss:$900 sps:$4 sm:$0x1f]   ;;  %v645_v50 = vrot.slane %v617_v44, %v8719_v13 }
  0xf6   :  { %v38_v44 = vld [vmem:[%s9646_s0 + $0xb0] sm:$0xff] }
  0xf7   :  { %v649_v58 = vcombine.high %v645_v50, %v645_v50 }
  0xfe   :  { %3877 = vmatmul.mubr.bf16.vlgmr.msra.gmra.mrb[0].mxu1 %v575_v51  ;;  %6117 = vmatmul.mubr.bf16.vlgmr.msra.gmra.mrb[0].mxu0 %v1261_v52  ;;  %v1331_v51 = vrot.slane %v1303_v45, %v8719_v13  ;;  %v8456_v52 = vld [vmem:[%s9647_s1 + $0x29c] ss:$900 sps:$4 sm:$0x1f]  }
  0xff   :  { %6125 = vmatpush1.bf16.xpose.msra.mxu0 %v8414_v53  ;;  %3885 = vmatpush1.bf16.xpose.msra.mxu1 %v8417_v54  ;;  %v8459_v53 = vld [vmem:[%s9647_s1 + $0xdc] ss:$900 sps:$4 sm:$0x1f]   ;;  %v631_v54 = vrot.slane %v615_v42, %v8719_v13  ;;  %v8491_v42 = vld [vmem:[%s9647_s1 + $0x104] ss:$900 sps:$4 sm:$0x1f]  }
 0x100   :  { %3916 = vmatprep.mubr.bf16.mxu1 %v599_v55  ;;  %6156 = vmatprep.mubr.bf16.mxu0 %v1285_v56  ;;  %v1317_v55 = vrot.slane %v1301_v43, %v8719_v13  ;;  %v8454_v56 = vld [vmem:[%s9647_s1 + $0x298] ss:$900 sps:$4 sm:$0x1f]   ;;  %v24_v43 = vld [vmem:[%s9646_s0 + $0x40] sm:$0xff] }
 0x101   :  { %6164 = vmatprep.subr.bf16.mxu0 %v8422_v59  ;;  %3924 = vmatprep.subr.bf16.mxu1 %v8425_v60  ;;  %v1335_v59 = vcombine.high %v1331_v51, %v1331_v51  ;;  %v8462_v60 = vld [vmem:[%s9647_s1 + $0x2a4] ss:$900 sps:$4 sm:$0x1f]   ;;  %v706_v45 = vrot.slane %v24_v43, %v8719_v13 }
 0x10a   :  { %3917 = vmatmul.mubr.bf16.vlgmr.msra.gmra.mrb[0].mxu1 %v597_v1  ;;  %6157 = vmatmul.mubr.bf16.vlgmr.msra.gmra.mrb[0].mxu0 %v1283_v2  ;;  %v1343_v1 = vrot.slane %v37_v63, %v8719_v13  ;;  %v665_v2 = vcombine.high %v657_v0, %v657_v0  ;;  %v699_v63 = vcombine.high %v24_v43, %v24_v43 }
 0x10b   :  { %6165 = vmatpush1.bf16.xpose.msra.mxu0 %v8420_v3  ;;  %3925 = vmatpush1.bf16.xpose.msra.mxu1 %v8423_v4  ;;  %v647_v4 = vcombine.high %v631_v54, %v631_v54 }
 0x10c   :  { %3956 = vmatprep.mubr.bf16.mxu1 %v596_v5  ;;  %6196 = vmatprep.mubr.bf16.mxu0 %v1282_v6  ;;  %v1351_v3 = vcombine.high %v1343_v1, %v1343_v1  ;;  %v1333_v5 = vcombine.high %v1317_v55, %v1317_v55  ;;  %v8460_v6 = vld [vmem:[%s9647_s1 + $0x2a0] ss:$900 sps:$4 sm:$0x1f]  }
 0x10d   :  { %6204 = vmatprep.subr.bf16.mxu0 %v8430_v7  ;;  %3964 = vmatprep.subr.bf16.mxu1 %v8433_v8  ;;  %v8463_v7 = vld [vmem:[%s9647_s1 + $0xe0] ss:$900 sps:$4 sm:$0x1f]   ;;  %v687_v8 = vrot.slane %v665_v2, %v8719_v13  ;;  %v8503_v2 = vld [vmem:[%s9647_s1 + $0x114] ss:$900 sps:$4 sm:$0x1f]  }
 0x116   :  { %3957 = vmatmul.mubr.bf16.vlgmr.msra.gmra.mrb[0].mxu1 %v582_v9  ;;  %6197 = vmatmul.mubr.bf16.vlgmr.msra.gmra.mrb[0].mxu0 %v1268_v10  ;;  %v1373_v9 = vrot.slane %v1351_v3, %v8719_v13  ;;  %v8468_v10 = vld [vmem:[%s9647_s1 + $0x2ac] ss:$900 sps:$4 sm:$0x1f]   ;;  %v713_v3 = vrot.slane %v699_v63, %v8719_v13  ;;  %v8535_v63 = vld [vmem:[%s9647_s1 + $0x138] ss:$900 sps:$4 sm:$0x1f]  }
 0x117   :  { %6205 = vmatpush1.bf16.xpose.msra.mxu0 %v8428_v11  ;;  %3965 = vmatpush1.bf16.xpose.msra.mxu1 %v8431_v12  ;;  %v8471_v11 = vld [vmem:[%s9647_s1 + $0xec] ss:$900 sps:$4 sm:$0x1f]   ;;  %v673_v12 = vrot.slane %v657_v0, %v8719_v13  ;;  %v1385_v0 = vcombine.high %v38_v44, %v38_v44 }
 0x118   :  { %3996 = vmatprep.mubr.bf16.mxu1 %v600_v14  ;;  %6236 = vmatprep.mubr.bf16.mxu0 %v1286_v15  ;;  %v1359_v14 = vrot.slane %v1343_v1, %v8719_v13  ;;  %v8466_v15 = vld [vmem:[%s9647_s1 + $0x2a8] ss:$900 sps:$4 sm:$0x1f]   ;;  %v1383_v18 = vcombine.high %v1373_v9, %v1373_v9  ;;  %v8500_v1 = vld [vmem:[%s9647_s1 + $0x2d4] ss:$900 sps:$4 sm:$0x1f]  }
 0x119   :  { %6244 = vmatprep.subr.bf16.mxu0 %v8436_v16  ;;  %4004 = vmatprep.subr.bf16.mxu1 %v8439_v17  ;;  %v8469_v16 = vld [vmem:[%s9647_s1 + $0xe8] ss:$900 sps:$4 sm:$0x1f]   ;;  %v697_v17 = vcombine.high %v687_v8, %v687_v8 }
 0x122   :  { %3997 = vmatmul.mubr.bf16.vlgmr.msra.gmra.mrb[0].mxu1 %v598_v24  ;;  %6237 = vmatmul.mubr.bf16.vlgmr.msra.gmra.mrb[0].mxu0 %v1284_v25  ;;  %v1350_v24 = vrot.slane %v1336_v20, %v8719_v13  ;;  %v666_v25 = vcombine.high %v664_v23, %v664_v23 }
 0x123   :  { %6245 = vmatpush1.bf16.xpose.msra.mxu0 %v8434_v26  ;;  %4005 = vmatpush1.bf16.xpose.msra.mxu1 %v8437_v27  ;;  %v695_v27 = vcombine.high %v673_v12, %v673_v12 }
 0x124   :  { %4036 = vmatprep.mubr.bf16.mxu1 %v638_v28  ;;  %6276 = vmatprep.mubr.bf16.mxu0 %v1324_v29  ;;  %v1352_v26 = vcombine.high %v1350_v24, %v1350_v24  ;;  %v1381_v28 = vcombine.high %v1359_v14, %v1359_v14  ;;  %v8472_v29 = vld [vmem:[%s9647_s1 + $0x2b0] ss:$900 sps:$4 sm:$0x1f]  }
 0x125   :  { %6284 = vmatprep.subr.bf16.mxu0 %v8442_v30  ;;  %4044 = vmatprep.subr.bf16.mxu1 %v8445_v31  ;;  %v8475_v30 = vld [vmem:[%s9647_s1 + $0xf0] ss:$900 sps:$4 sm:$0x1f]   ;;  %v694_v31 = vrot.slane %v666_v25, %v8719_v13  ;;  %v39_v25 = vld [vmem:[%s9646_s0 + $0xb8] sm:$0xff] }
 0x127   :  { %v698_v39 = vcombine.high %v694_v31, %v694_v31 }
 0x12e   :  { %4037 = vmatmul.mubr.bf16.vlgmr.msra.gmra.mrb[0].mxu1 %v624_v32  ;;  %6277 = vmatmul.mubr.bf16.vlgmr.msra.gmra.mrb[0].mxu0 %v1310_v33  ;;  %v1380_v32 = vrot.slane %v1352_v26, %v8719_v13  ;;  %v8482_v33 = vld [vmem:[%s9647_s1 + $0x2bc] ss:$900 sps:$4 sm:$0x1f]  }
 0x12f   :  { %6285 = vmatpush1.bf16.xpose.msra.mxu0 %v8440_v34  ;;  %4045 = vmatpush1.bf16.xpose.msra.mxu1 %v8443_v35  ;;  %v8485_v34 = vld [vmem:[%s9647_s1 + $0xfc] ss:$900 sps:$4 sm:$0x1f]   ;;  %v680_v35 = vrot.slane %v664_v23, %v8719_v13  ;;  %v8517_v23 = vld [vmem:[%s9647_s1 + $0x124] ss:$900 sps:$4 sm:$0x1f]  }
 0x130   :  { %4076 = vmatprep.mubr.bf16.mxu1 %v648_v36  ;;  %6316 = vmatprep.mubr.bf16.mxu0 %v1334_v37  ;;  %v1366_v36 = vrot.slane %v1350_v24, %v8719_v13  ;;  %v8480_v37 = vld [vmem:[%s9647_s1 + $0x2b8] ss:$900 sps:$4 sm:$0x1f]   ;;  %v25_v24 = vld [vmem:[%s9646_s0 + $0x48] sm:$0xff] }
 0x131   :  { %6324 = vmatprep.subr.bf16.mxu0 %v8448_v40  ;;  %4084 = vmatprep.subr.bf16.mxu1 %v8451_v41  ;;  %v1384_v40 = vcombine.high %v1380_v32, %v1380_v32  ;;  %v8488_v41 = vld [vmem:[%s9647_s1 + $0x2c4] ss:$900 sps:$4 sm:$0x1f]   ;;  %v755_v26 = vrot.slane %v25_v24, %v8719_v13 }
 0x13a   :  { %4077 = vmatmul.mubr.bf16.vlgmr.msra.gmra.mrb[0].mxu1 %v646_v46  ;;  %6317 = vmatmul.mubr.bf16.vlgmr.msra.gmra.mrb[0].mxu0 %v1332_v47  ;;  %v1392_v46 = vrot.slane %v38_v44, %v8719_v13  ;;  %v714_v47 = vcombine.high %v706_v45, %v706_v45  ;;  %v748_v44 = vcombine.high %v25_v24, %v25_v24 }
 0x13b   :  { %6325 = vmatpush1.bf16.xpose.msra.mxu0 %v8446_v48  ;;  %4085 = vmatpush1.bf16.xpose.msra.mxu1 %v8449_v49  ;;  %v696_v49 = vcombine.high %v680_v35, %v680_v35 }
 0x13c   :  { %4116 = vmatprep.mubr.bf16.mxu1 %v645_v50  ;;  %6356 = vmatprep.mubr.bf16.mxu0 %v1331_v51  ;;  %v1400_v48 = vcombine.high %v1392_v46, %v1392_v46  ;;  %v1382_v50 = vcombine.high %v1366_v36, %v1366_v36  ;;  %v8486_v51 = vld [vmem:[%s9647_s1 + $0x2c0] ss:$900 sps:$4 sm:$0x1f]  }
 0x13d   :  { %6364 = vmatprep.subr.bf16.mxu0 %v8456_v52  ;;  %4124 = vmatprep.subr.bf16.mxu1 %v8459_v53  ;;  %v8489_v52 = vld [vmem:[%s9647_s1 + $0x100] ss:$900 sps:$4 sm:$0x1f]   ;;  %v736_v53 = vrot.slane %v714_v47, %v8719_v13  ;;  %v8529_v47 = vld [vmem:[%s9647_s1 + $0x134] ss:$900 sps:$4 sm:$0x1f]  }
 0x146   :  { %4117 = vmatmul.mubr.bf16.vlgmr.msra.gmra.mrb[0].mxu1 %v631_v54  ;;  %6357 = vmatmul.mubr.bf16.vlgmr.msra.gmra.mrb[0].mxu0 %v1317_v55  ;;  %v1422_v54 = vrot.slane %v1400_v48, %v8719_v13  ;;  %v8494_v55 = vld [vmem:[%s9647_s1 + $0x2cc] ss:$900 sps:$4 sm:$0x1f]   ;;  %v762_v48 = vrot.slane %v748_v44, %v8719_v13  ;;  %v8561_v44 = vld [vmem:[%s9647_s1 + $0x158] ss:$900 sps:$4 sm:$0x1f]  }
 0x147   :  { %6365 = vmatpush1.bf16.xpose.msra.mxu0 %v8454_v56  ;;  %4125 = vmatpush1.bf16.xpose.msra.mxu1 %v8457_v57  ;;  %v8497_v56 = vld [vmem:[%s9647_s1 + $0x10c] ss:$900 sps:$4 sm:$0x1f]   ;;  %v722_v57 = vrot.slane %v706_v45, %v8719_v13  ;;  %v1434_v45 = vcombine.high %v39_v25, %v39_v25 }
 0x148   :  { %4156 = vmatprep.mubr.bf16.mxu1 %v649_v58  ;;  %6396 = vmatprep.mubr.bf16.mxu0 %v1335_v59  ;;  %v1408_v58 = vrot.slane %v1392_v46, %v8719_v13  ;;  %v8492_v59 = vld [vmem:[%s9647_s1 + $0x2c8] ss:$900 sps:$4 sm:$0x1f]   ;;  %v1432_v62 = vcombine.high %v1422_v54, %v1422_v54  ;;  %v8526_v46 = vld [vmem:[%s9647_s1 + $0x2f4] ss:$900 sps:$4 sm:$0x1f]  }
 0x149   :  { %6404 = vmatprep.subr.bf16.mxu0 %v8462_v60  ;;  %4164 = vmatprep.subr.bf16.mxu1 %v8465_v61  ;;  %v8495_v60 = vld [vmem:[%s9647_s1 + $0x108] ss:$900 sps:$4 sm:$0x1f]   ;;  %v746_v61 = vcombine.high %v736_v53, %v736_v53 }
 0x152   :  { %4157 = vmatmul.mubr.bf16.vlgmr.msra.gmra.mrb[0].mxu1 %v647_v4  ;;  %6397 = vmatmul.mubr.bf16.vlgmr.msra.gmra.mrb[0].mxu0 %v1333_v5  ;;  %v1399_v4 = vrot.slane %v1385_v0, %v8719_v13  ;;  %v715_v5 = vcombine.high %v713_v3, %v713_v3 }
 0x153   :  { %6405 = vmatpush1.bf16.xpose.msra.mxu0 %v8460_v6  ;;  %4165 = vmatpush1.bf16.xpose.msra.mxu1 %v8463_v7  ;;  %v744_v7 = vcombine.high %v722_v57, %v722_v57 }
 0x154   :  { %4196 = vmatprep.mubr.bf16.mxu1 %v687_v8  ;;  %6436 = vmatprep.mubr.bf16.mxu0 %v1373_v9  ;;  %v1401_v6 = vcombine.high %v1399_v4, %v1399_v4  ;;  %v1430_v8 = vcombine.high %v1408_v58, %v1408_v58  ;;  %v8498_v9 = vld [vmem:[%s9647_s1 + $0x2d0] ss:$900 sps:$4 sm:$0x1f]  }
 0x155   :  { %6444 = vmatprep.subr.bf16.mxu0 %v8468_v10  ;;  %4204 = vmatprep.subr.bf16.mxu1 %v8471_v11  ;;  %v8501_v10 = vld [vmem:[%s9647_s1 + $0x110] ss:$900 sps:$4 sm:$0x1f]   ;;  %v743_v11 = vrot.slane %v715_v5, %v8719_v13  ;;  %v40_v5 = vld [vmem:[%s9646_s0 + $0xc0] sm:$0xff] }
 0x157   :  { %v747_v20 = vcombine.high %v743_v11, %v743_v11 }
 0x15e   :  { %4197 = vmatmul.mubr.bf16.vlgmr.msra.gmra.mrb[0].mxu1 %v673_v12  ;;  %6437 = vmatmul.mubr.bf16.vlgmr.msra.gmra.mrb[0].mxu0 %v1359_v14  ;;  %v1429_v12 = vrot.slane %v1401_v6, %v8719_v13  ;;  %v8508_v14 = vld [vmem:[%s9647_s1 + $0x2dc] ss:$900 sps:$4 sm:$0x1f]  }
 0x15f   :  { %6445 = vmatpush1.bf16.xpose.msra.mxu0 %v8466_v15  ;;  %4205 = vmatpush1.bf16.xpose.msra.mxu1 %v8469_v16  ;;  %v8511_v15 = vld [vmem:[%s9647_s1 + $0x11c] ss:$900 sps:$4 sm:$0x1f]   ;;  %v729_v16 = vrot.slane %v713_v3, %v8719_v13  ;;  %v8543_v3 = vld [vmem:[%s9647_s1 + $0x144] ss:$900 sps:$4 sm:$0x1f]  }
 0x160   :  { %4236 = vmatprep.mubr.bf16.mxu1 %v697_v17  ;;  %6476 = vmatprep.mubr.bf16.mxu0 %v1383_v18  ;;  %v1415_v17 = vrot.slane %v1399_v4, %v8719_v13  ;;  %v8506_v18 = vld [vmem:[%s9647_s1 + $0x2d8] ss:$900 sps:$4 sm:$0x1f]   ;;  %v26_v4 = vld [vmem:[%s9646_s0 + $0x50] sm:$0xff] }
 0x161   :  { %6484 = vmatprep.subr.bf16.mxu0 %v8474_v21  ;;  %4244 = vmatprep.subr.bf16.mxu1 %v8477_v22  ;;  %v1433_v21 = vcombine.high %v1429_v12, %v1429_v12  ;;  %v8514_v22 = vld [vmem:[%s9647_s1 + $0x2e4] ss:$900 sps:$4 sm:$0x1f]   ;;  %v804_v6 = vrot.slane %v26_v4, %v8719_v13 }
 0x16a   :  { %4237 = vmatmul.mubr.bf16.vlgmr.msra.gmra.mrb[0].mxu1 %v695_v27  ;;  %6477 = vmatmul.mubr.bf16.vlgmr.msra.gmra.mrb[0].mxu0 %v1381_v28  ;;  %v1441_v27 = vrot.slane %v39_v25, %v8719_v13  ;;  %v763_v28 = vcombine.high %v755_v26, %v755_v26  ;;  %v797_v25 = vcombine.high %v26_v4, %v26_v4 }
 0x16b   :  { %6485 = vmatpush1.bf16.xpose.msra.mxu0 %v8472_v29  ;;  %4245 = vmatpush1.bf16.xpose.msra.mxu1 %v8475_v30  ;;  %v745_v30 = vcombine.high %v729_v16, %v729_v16 }
 0x16c   :  { %4276 = vmatprep.mubr.bf16.mxu1 %v694_v31  ;;  %6516 = vmatprep.mubr.bf16.mxu0 %v1380_v32  ;;  %v1449_v29 = vcombine.high %v1441_v27, %v1441_v27  ;;  %v1431_v31 = vcombine.high %v1415_v17, %v1415_v17  ;;  %v8512_v32 = vld [vmem:[%s9647_s1 + $0x2e0] ss:$900 sps:$4 sm:$0x1f]  }
 0x16d   :  { %6524 = vmatprep.subr.bf16.mxu0 %v8482_v33  ;;  %4284 = vmatprep.subr.bf16.mxu1 %v8485_v34  ;;  %v8515_v33 = vld [vmem:[%s9647_s1 + $0x120] ss:$900 sps:$4 sm:$0x1f]   ;;  %v785_v34 = vrot.slane %v763_v28, %v8719_v13  ;;  %v8555_v28 = vld [vmem:[%s9647_s1 + $0x154] ss:$900 sps:$4 sm:$0x1f]  }
 0x176   :  { %4277 = vmatmul.mubr.bf16.vlgmr.msra.gmra.mrb[0].mxu1 %v680_v35  ;;  %6517 = vmatmul.mubr.bf16.vlgmr.msra.gmra.mrb[0].mxu0 %v1366_v36  ;;  %v1471_v35 = vrot.slane %v1449_v29, %v8719_v13  ;;  %v8520_v36 = vld [vmem:[%s9647_s1 + $0x2ec] ss:$900 sps:$4 sm:$0x1f]   ;;  %v811_v29 = vrot.slane %v797_v25, %v8719_v13  ;;  %v8587_v25 = vld [vmem:[%s9647_s1 + $0x178] ss:$900 sps:$4 sm:$0x1f]  }
 0x177   :  { %6525 = vmatpush1.bf16.xpose.msra.mxu0 %v8480_v37  ;;  %4285 = vmatpush1.bf16.xpose.msra.mxu1 %v8483_v38  ;;  %v8523_v37 = vld [vmem:[%s9647_s1 + $0x12c] ss:$900 sps:$4 sm:$0x1f]   ;;  %v771_v38 = vrot.slane %v755_v26, %v8719_v13  ;;  %v1483_v26 = vcombine.high %v40_v5, %v40_v5 }
 0x178   :  { %4316 = vmatprep.mubr.bf16.mxu1 %v698_v39  ;;  %6556 = vmatprep.mubr.bf16.mxu0 %v1384_v40  ;;  %v1457_v39 = vrot.slane %v1441_v27, %v8719_v13  ;;  %v8518_v40 = vld [vmem:[%s9647_s1 + $0x2e8] ss:$900 sps:$4 sm:$0x1f]   ;;  %v1481_v43 = vcombine.high %v1471_v35, %v1471_v35  ;;  %v8552_v27 = vld [vmem:[%s9647_s1 + $0x314] ss:$900 sps:$4 sm:$0x1f]  }
 0x179   :  { %6564 = vmatprep.subr.bf16.mxu0 %v8488_v41  ;;  %4324 = vmatprep.subr.bf16.mxu1 %v8491_v42  ;;  %v8521_v41 = vld [vmem:[%s9647_s1 + $0x128] ss:$900 sps:$4 sm:$0x1f]   ;;  %v795_v42 = vcombine.high %v785_v34, %v785_v34 }
 0x182   :  { %4317 = vmatmul.mubr.bf16.vlgmr.msra.gmra.mrb[0].mxu1 %v696_v49  ;;  %6557 = vmatmul.mubr.bf16.vlgmr.msra.gmra.mrb[0].mxu0 %v1382_v50  ;;  %v1448_v49 = vrot.slane %v1434_v45, %v8719_v13  ;;  %v764_v50 = vcombine.high %v762_v48, %v762_v48 }
 0x183   :  { %6565 = vmatpush1.bf16.xpose.msra.mxu0 %v8486_v51  ;;  %4325 = vmatpush1.bf16.xpose.msra.mxu1 %v8489_v52  ;;  %v793_v52 = vcombine.high %v771_v38, %v771_v38 }
 0x184   :  { %4356 = vmatprep.mubr.bf16.mxu1 %v736_v53  ;;  %6596 = vmatprep.mubr.bf16.mxu0 %v1422_v54  ;;  %v1450_v51 = vcombine.high %v1448_v49, %v1448_v49  ;;  %v1479_v53 = vcombine.high %v1457_v39, %v1457_v39  ;;  %v8524_v54 = vld [vmem:[%s9647_s1 + $0x2f0] ss:$900 sps:$4 sm:$0x1f]  }
 0x185   :  { %6604 = vmatprep.subr.bf16.mxu0 %v8494_v55  ;;  %4364 = vmatprep.subr.bf16.mxu1 %v8497_v56  ;;  %v8527_v55 = vld [vmem:[%s9647_s1 + $0x130] ss:$900 sps:$4 sm:$0x1f]   ;;  %v792_v56 = vrot.slane %v764_v50, %v8719_v13  ;;  %v41_v50 = vld [vmem:[%s9646_s0 + $0xc8] sm:$0xff] }
 0x187   :  { %v796_v0 = vcombine.high %v792_v56, %v792_v56 }
 0x18e   :  { %4357 = vmatmul.mubr.bf16.vlgmr.msra.gmra.mrb[0].mxu1 %v722_v57  ;;  %6597 = vmatmul.mubr.bf16.vlgmr.msra.gmra.mrb[0].mxu0 %v1408_v58  ;;  %v1478_v57 = vrot.slane %v1450_v51, %v8719_v13  ;;  %v8534_v58 = vld [vmem:[%s9647_s1 + $0x2fc] ss:$900 sps:$4 sm:$0x1f]  }
 0x18f   :  { %6605 = vmatpush1.bf16.xpose.msra.mxu0 %v8492_v59  ;;  %4365 = vmatpush1.bf16.xpose.msra.mxu1 %v8495_v60  ;;  %v8537_v59 = vld [vmem:[%s9647_s1 + $0x13c] ss:$900 sps:$4 sm:$0x1f]   ;;  %v778_v60 = vrot.slane %v762_v48, %v8719_v13  ;;  %v8569_v48 = vld [vmem:[%s9647_s1 + $0x164] ss:$900 sps:$4 sm:$0x1f]  }
 0x190   :  { %4396 = vmatprep.mubr.bf16.mxu1 %v746_v61  ;;  %6636 = vmatprep.mubr.bf16.mxu0 %v1432_v62  ;;  %v1464_v61 = vrot.slane %v1448_v49, %v8719_v13  ;;  %v8532_v62 = vld [vmem:[%s9647_s1 + $0x2f8] ss:$900 sps:$4 sm:$0x1f]  }
 0x191   :  { %6644 = vmatprep.subr.bf16.mxu0 %v8500_v1  ;;  %4404 = vmatprep.subr.bf16.mxu1 %v8503_v2  ;;  %v1482_v1 = vcombine.high %v1478_v57, %v1478_v57  ;;  %v8540_v2 = vld [vmem:[%s9647_s1 + $0x304] ss:$900 sps:$4 sm:$0x1f]   ;;  %v27_v49 = vld [vmem:[%s9646_s0 + $0x58] sm:$0xff] }
 0x192   :  { %v853_v51 = vrot.slane %v27_v49, %v8719_v13 }
 0x19a   :  { %4397 = vmatmul.mubr.bf16.vlgmr.msra.gmra.mrb[0].mxu1 %v744_v7  ;;  %6637 = vmatmul.mubr.bf16.vlgmr.msra.gmra.mrb[0].mxu0 %v1430_v8  ;;  %v1490_v7 = vrot.slane %v40_v5, %v8719_v13  ;;  %v812_v8 = vcombine.high %v804_v6, %v804_v6  ;;  %v846_v5 = vcombine.high %v27_v49, %v27_v49 }
 0x19b   :  { %6645 = vmatpush1.bf16.xpose.msra.mxu0 %v8498_v9  ;;  %4405 = vmatpush1.bf16.xpose.msra.mxu1 %v8501_v10  ;;  %v794_v10 = vcombine.high %v778_v60, %v778_v60 }
 0x19c   :  { %4436 = vmatprep.mubr.bf16.mxu1 %v743_v11  ;;  %6676 = vmatprep.mubr.bf16.mxu0 %v1429_v12  ;;  %v1498_v9 = vcombine.high %v1490_v7, %v1490_v7  ;;  %v1480_v11 = vcombine.high %v1464_v61, %v1464_v61  ;;  %v8538_v12 = vld [vmem:[%s9647_s1 + $0x300] ss:$900 sps:$4 sm:$0x1f]  }
 0x19d   :  { %6684 = vmatprep.subr.bf16.mxu0 %v8508_v14  ;;  %4444 = vmatprep.subr.bf16.mxu1 %v8511_v15  ;;  %v8541_v14 = vld [vmem:[%s9647_s1 + $0x140] ss:$900 sps:$4 sm:$0x1f]   ;;  %v834_v15 = vrot.slane %v812_v8, %v8719_v13  ;;  %v8581_v8 = vld [vmem:[%s9647_s1 + $0x174] ss:$900 sps:$4 sm:$0x1f]  }
 0x1a6   :  { %4437 = vmatmul.mubr.bf16.vlgmr.msra.gmra.mrb[0].mxu1 %v729_v16  ;;  %6677 = vmatmul.mubr.bf16.vlgmr.msra.gmra.mrb[0].mxu0 %v1415_v17  ;;  %v1520_v16 = vrot.slane %v1498_v9, %v8719_v13  ;;  %v8546_v17 = vld [vmem:[%s9647_s1 + $0x30c] ss:$900 sps:$4 sm:$0x1f]   ;;  %v860_v9 = vrot.slane %v846_v5, %v8719_v13  ;;  %v8613_v5 = vld [vmem:[%s9647_s1 + $0x198] ss:$900 sps:$4 sm:$0x1f]  }
 0x1a7   :  { %6685 = vmatpush1.bf16.xpose.msra.mxu0 %v8506_v18  ;;  %4445 = vmatpush1.bf16.xpose.msra.mxu1 %v8509_v19  ;;  %v8549_v18 = vld [vmem:[%s9647_s1 + $0x14c] ss:$900 sps:$4 sm:$0x1f]   ;;  %v820_v19 = vrot.slane %v804_v6, %v8719_v13  ;;  %v1532_v6 = vcombine.high %v41_v50, %v41_v50 }
 0x1a8   :  { %4476 = vmatprep.mubr.bf16.mxu1 %v747_v20  ;;  %6716 = vmatprep.mubr.bf16.mxu0 %v1433_v21  ;;  %v1506_v20 = vrot.slane %v1490_v7, %v8719_v13  ;;  %v8544_v21 = vld [vmem:[%s9647_s1 + $0x308] ss:$900 sps:$4 sm:$0x1f]   ;;  %v1530_v24 = vcombine.high %v1520_v16, %v1520_v16  ;;  %v8578_v7 = vld [vmem:[%s9647_s1 + $0x334] ss:$900 sps:$4 sm:$0x1f]  }
 0x1a9   :  { %6724 = vmatprep.subr.bf16.mxu0 %v8514_v22  ;;  %4484 = vmatprep.subr.bf16.mxu1 %v8517_v23  ;;  %v8547_v22 = vld [vmem:[%s9647_s1 + $0x148] ss:$900 sps:$4 sm:$0x1f]   ;;  %v844_v23 = vcombine.high %v834_v15, %v834_v15 }
 0x1b2   :  { %4477 = vmatmul.mubr.bf16.vlgmr.msra.gmra.mrb[0].mxu1 %v745_v30  ;;  %6717 = vmatmul.mubr.bf16.vlgmr.msra.gmra.mrb[0].mxu0 %v1431_v31  ;;  %v1497_v30 = vrot.slane %v1483_v26, %v8719_v13  ;;  %v813_v31 = vcombine.high %v811_v29, %v811_v29 }
 0x1b3   :  { %6725 = vmatpush1.bf16.xpose.msra.mxu0 %v8512_v32  ;;  %4485 = vmatpush1.bf16.xpose.msra.mxu1 %v8515_v33  ;;  %v842_v33 = vcombine.high %v820_v19, %v820_v19 }
 0x1b4   :  { %4516 = vmatprep.mubr.bf16.mxu1 %v785_v34  ;;  %6756 = vmatprep.mubr.bf16.mxu0 %v1471_v35  ;;  %v1499_v32 = vcombine.high %v1497_v30, %v1497_v30  ;;  %v1528_v34 = vcombine.high %v1506_v20, %v1506_v20  ;;  %v8550_v35 = vld [vmem:[%s9647_s1 + $0x310] ss:$900 sps:$4 sm:$0x1f]  }
 0x1b5   :  { %6764 = vmatprep.subr.bf16.mxu0 %v8520_v36  ;;  %4524 = vmatprep.subr.bf16.mxu1 %v8523_v37  ;;  %v8553_v36 = vld [vmem:[%s9647_s1 + $0x150] ss:$900 sps:$4 sm:$0x1f]   ;;  %v841_v37 = vrot.slane %v813_v31, %v8719_v13 }
 0x1b6   :  { %v42_v31 = vld [vmem:[%s9646_s0 + $0xd0] sm:$0xff] }
 0x1b7   :  { %v845_v45 = vcombine.high %v841_v37, %v841_v37 }
 0x1be   :  { %4517 = vmatmul.mubr.bf16.vlgmr.msra.gmra.mrb[0].mxu1 %v771_v38  ;;  %6757 = vmatmul.mubr.bf16.vlgmr.msra.gmra.mrb[0].mxu0 %v1457_v39  ;;  %v1527_v38 = vrot.slane %v1499_v32, %v8719_v13  ;;  %v8560_v39 = vld [vmem:[%s9647_s1 + $0x31c] ss:$900 sps:$4 sm:$0x1f]  }
 0x1bf   :  { %6765 = vmatpush1.bf16.xpose.msra.mxu0 %v8518_v40  ;;  %4525 = vmatpush1.bf16.xpose.msra.mxu1 %v8521_v41  ;;  %v8563_v40 = vld [vmem:[%s9647_s1 + $0x15c] ss:$900 sps:$4 sm:$0x1f]   ;;  %v827_v41 = vrot.slane %v811_v29, %v8719_v13  ;;  %v8595_v29 = vld [vmem:[%s9647_s1 + $0x184] ss:$900 sps:$4 sm:$0x1f]  }
 0x1c0   :  { %4556 = vmatprep.mubr.bf16.mxu1 %v795_v42  ;;  %6796 = vmatprep.mubr.bf16.mxu0 %v1481_v43  ;;  %v1513_v42 = vrot.slane %v1497_v30, %v8719_v13  ;;  %v8558_v43 = vld [vmem:[%s9647_s1 + $0x318] ss:$900 sps:$4 sm:$0x1f]   ;;  %v28_v30 = vld [vmem:[%s9646_s0 + $0x60] sm:$0xff] }
 0x1c1   :  { %6804 = vmatprep.subr.bf16.mxu0 %v8526_v46  ;;  %4564 = vmatprep.subr.bf16.mxu1 %v8529_v47  ;;  %v1531_v46 = vcombine.high %v1527_v38, %v1527_v38  ;;  %v8566_v47 = vld [vmem:[%s9647_s1 + $0x324] ss:$900 sps:$4 sm:$0x1f]   ;;  %v902_v32 = vrot.slane %v28_v30, %v8719_v13 }
 0x1ca   :  { %4557 = vmatmul.mubr.bf16.vlgmr.msra.gmra.mrb[0].mxu1 %v793_v52  ;;  %6797 = vmatmul.mubr.bf16.vlgmr.msra.gmra.mrb[0].mxu0 %v1479_v53  ;;  %v1539_v52 = vrot.slane %v41_v50, %v8719_v13  ;;  %v861_v53 = vcombine.high %v853_v51, %v853_v51  ;;  %v895_v50 = vcombine.high %v28_v30, %v28_v30 }
 0x1cb   :  { %6805 = vmatpush1.bf16.xpose.msra.mxu0 %v8524_v54  ;;  %4565 = vmatpush1.bf16.xpose.msra.mxu1 %v8527_v55  ;;  %v843_v55 = vcombine.high %v827_v41, %v827_v41 }
 0x1cc   :  { %4596 = vmatprep.mubr.bf16.mxu1 %v792_v56  ;;  %6836 = vmatprep.mubr.bf16.mxu0 %v1478_v57  ;;  %v1547_v54 = vcombine.high %v1539_v52, %v1539_v52  ;;  %v1529_v56 = vcombine.high %v1513_v42, %v1513_v42  ;;  %v8564_v57 = vld [vmem:[%s9647_s1 + $0x320] ss:$900 sps:$4 sm:$0x1f]  }
 0x1cd   :  { %6844 = vmatprep.subr.bf16.mxu0 %v8534_v58  ;;  %4604 = vmatprep.subr.bf16.mxu1 %v8537_v59  ;;  %v8567_v58 = vld [vmem:[%s9647_s1 + $0x160] ss:$900 sps:$4 sm:$0x1f]   ;;  %v883_v59 = vrot.slane %v861_v53, %v8719_v13  ;;  %v8607_v53 = vld [vmem:[%s9647_s1 + $0x194] ss:$900 sps:$4 sm:$0x1f]  }
 0x1d6   :  { %4597 = vmatmul.mubr.bf16.vlgmr.msra.gmra.mrb[0].mxu1 %v778_v60  ;;  %6837 = vmatmul.mubr.bf16.vlgmr.msra.gmra.mrb[0].mxu0 %v1464_v61  ;;  %v1569_v60 = vrot.slane %v1547_v54, %v8719_v13  ;;  %v8572_v61 = vld [vmem:[%s9647_s1 + $0x32c] ss:$900 sps:$4 sm:$0x1f]   ;;  %v909_v54 = vrot.slane %v895_v50, %v8719_v13  ;;  %v8639_v50 = vld [vmem:[%s9647_s1 + $0x1b8] ss:$900 sps:$4 sm:$0x1f]  }
 0x1d7   :  { %6845 = vmatpush1.bf16.xpose.msra.mxu0 %v8532_v62  ;;  %4605 = vmatpush1.bf16.xpose.msra.mxu1 %v8535_v63  ;;  %v8575_v62 = vld [vmem:[%s9647_s1 + $0x16c] ss:$900 sps:$4 sm:$0x1f]   ;;  %v869_v63 = vrot.slane %v853_v51, %v8719_v13  ;;  %v1581_v51 = vcombine.high %v42_v31, %v42_v31 }
 0x1d8   :  { %4636 = vmatprep.mubr.bf16.mxu1 %v796_v0  ;;  %6876 = vmatprep.mubr.bf16.mxu0 %v1482_v1  ;;  %v1555_v0 = vrot.slane %v1539_v52, %v8719_v13  ;;  %v8570_v1 = vld [vmem:[%s9647_s1 + $0x328] ss:$900 sps:$4 sm:$0x1f]   ;;  %v1579_v4 = vcombine.high %v1569_v60, %v1569_v60  ;;  %v8604_v52 = vld [vmem:[%s9647_s1 + $0x354] ss:$900 sps:$4 sm:$0x1f]  }
 0x1d9   :  { %6884 = vmatprep.subr.bf16.mxu0 %v8540_v2  ;;  %4644 = vmatprep.subr.bf16.mxu1 %v8543_v3  ;;  %v8573_v2 = vld [vmem:[%s9647_s1 + $0x168] ss:$900 sps:$4 sm:$0x1f]   ;;  %v893_v3 = vcombine.high %v883_v59, %v883_v59 }
 0x1e2   :  { %4637 = vmatmul.mubr.bf16.vlgmr.msra.gmra.mrb[0].mxu1 %v794_v10  ;;  %6877 = vmatmul.mubr.bf16.vlgmr.msra.gmra.mrb[0].mxu0 %v1480_v11  ;;  %v1546_v10 = vrot.slane %v1532_v6, %v8719_v13  ;;  %v862_v11 = vcombine.high %v860_v9, %v860_v9 }
 0x1e3   :  { %6885 = vmatpush1.bf16.xpose.msra.mxu0 %v8538_v12  ;;  %4645 = vmatpush1.bf16.xpose.msra.mxu1 %v8541_v14  ;;  %v891_v14 = vcombine.high %v869_v63, %v869_v63 }
 0x1e4   :  { %4676 = vmatprep.mubr.bf16.mxu1 %v834_v15  ;;  %6916 = vmatprep.mubr.bf16.mxu0 %v1520_v16  ;;  %v1548_v12 = vcombine.high %v1546_v10, %v1546_v10  ;;  %v1577_v15 = vcombine.high %v1555_v0, %v1555_v0  ;;  %v8576_v16 = vld [vmem:[%s9647_s1 + $0x330] ss:$900 sps:$4 sm:$0x1f]  }
 0x1e5   :  { %6924 = vmatprep.subr.bf16.mxu0 %v8546_v17  ;;  %4684 = vmatprep.subr.bf16.mxu1 %v8549_v18  ;;  %v8579_v17 = vld [vmem:[%s9647_s1 + $0x170] ss:$900 sps:$4 sm:$0x1f]   ;;  %v890_v18 = vrot.slane %v862_v11, %v8719_v13  ;;  %v43_v11 = vld [vmem:[%s9646_s0 + $0xd8] sm:$0xff] }
 0x1e7   :  { %v894_v26 = vcombine.high %v890_v18, %v890_v18 }
 0x1ee   :  { %4677 = vmatmul.mubr.bf16.vlgmr.msra.gmra.mrb[0].mxu1 %v820_v19  ;;  %6917 = vmatmul.mubr.bf16.vlgmr.msra.gmra.mrb[0].mxu0 %v1506_v20  ;;  %v1576_v19 = vrot.slane %v1548_v12, %v8719_v13  ;;  %v8586_v20 = vld [vmem:[%s9647_s1 + $0x33c] ss:$900 sps:$4 sm:$0x1f]  }
 0x1ef   :  { %6925 = vmatpush1.bf16.xpose.msra.mxu0 %v8544_v21  ;;  %4685 = vmatpush1.bf16.xpose.msra.mxu1 %v8547_v22  ;;  %v8589_v21 = vld [vmem:[%s9647_s1 + $0x17c] ss:$900 sps:$4 sm:$0x1f]   ;;  %v876_v22 = vrot.slane %v860_v9, %v8719_v13  ;;  %v8621_v9 = vld [vmem:[%s9647_s1 + $0x1a4] ss:$900 sps:$4 sm:$0x1f]  }
 0x1f0   :  { %4716 = vmatprep.mubr.bf16.mxu1 %v844_v23  ;;  %6956 = vmatprep.mubr.bf16.mxu0 %v1530_v24  ;;  %v1562_v23 = vrot.slane %v1546_v10, %v8719_v13  ;;  %v8584_v24 = vld [vmem:[%s9647_s1 + $0x338] ss:$900 sps:$4 sm:$0x1f]   ;;  %v29_v10 = vld [vmem:[%s9646_s0 + $0x68] sm:$0xff] }
 0x1f1   :  { %6964 = vmatprep.subr.bf16.mxu0 %v8552_v27  ;;  %4724 = vmatprep.subr.bf16.mxu1 %v8555_v28  ;;  %v1580_v27 = vcombine.high %v1576_v19, %v1576_v19  ;;  %v8592_v28 = vld [vmem:[%s9647_s1 + $0x344] ss:$900 sps:$4 sm:$0x1f]   ;;  %v951_v12 = vrot.slane %v29_v10, %v8719_v13 }
 0x1fa   :  { %4717 = vmatmul.mubr.bf16.vlgmr.msra.gmra.mrb[0].mxu1 %v842_v33  ;;  %6957 = vmatmul.mubr.bf16.vlgmr.msra.gmra.mrb[0].mxu0 %v1528_v34  ;;  %v1588_v33 = vrot.slane %v42_v31, %v8719_v13  ;;  %v910_v34 = vcombine.high %v902_v32, %v902_v32  ;;  %v944_v31 = vcombine.high %v29_v10, %v29_v10 }
 0x1fb   :  { %6965 = vmatpush1.bf16.xpose.msra.mxu0 %v8550_v35  ;;  %4725 = vmatpush1.bf16.xpose.msra.mxu1 %v8553_v36  ;;  %v892_v36 = vcombine.high %v876_v22, %v876_v22 }
 0x1fc   :  { %4756 = vmatprep.mubr.bf16.mxu1 %v841_v37  ;;  %6996 = vmatprep.mubr.bf16.mxu0 %v1527_v38  ;;  %v1596_v35 = vcombine.high %v1588_v33, %v1588_v33  ;;  %v1578_v37 = vcombine.high %v1562_v23, %v1562_v23  ;;  %v8590_v38 = vld [vmem:[%s9647_s1 + $0x340] ss:$900 sps:$4 sm:$0x1f]  }
 0x1fd   :  { %7004 = vmatprep.subr.bf16.mxu0 %v8560_v39  ;;  %4764 = vmatprep.subr.bf16.mxu1 %v8563_v40  ;;  %v8593_v39 = vld [vmem:[%s9647_s1 + $0x180] ss:$900 sps:$4 sm:$0x1f]   ;;  %v932_v40 = vrot.slane %v910_v34, %v8719_v13  ;;  %v8633_v34 = vld [vmem:[%s9647_s1 + $0x1b4] ss:$900 sps:$4 sm:$0x1f]  }
 0x206   :  { %4757 = vmatmul.mubr.bf16.vlgmr.msra.gmra.mrb[0].mxu1 %v827_v41  ;;  %6997 = vmatmul.mubr.bf16.vlgmr.msra.gmra.mrb[0].mxu0 %v1513_v42  ;;  %v1618_v41 = vrot.slane %v1596_v35, %v8719_v13  ;;  %v8598_v42 = vld [vmem:[%s9647_s1 + $0x34c] ss:$900 sps:$4 sm:$0x1f]   ;;  %v958_v35 = vrot.slane %v944_v31, %v8719_v13 }
 0x207   :  { %7005 = vmatpush1.bf16.xpose.msra.mxu0 %v8558_v43  ;;  %4765 = vmatpush1.bf16.xpose.msra.mxu1 %v8561_v44  ;;  %v8601_v43 = vld [vmem:[%s9647_s1 + $0x18c] ss:$900 sps:$4 sm:$0x1f]   ;;  %v918_v44 = vrot.slane %v902_v32, %v8719_v13  ;;  %v1630_v32 = vcombine.high %v43_v11, %v43_v11 }
 0x208   :  { %4796 = vmatprep.mubr.bf16.mxu1 %v845_v45  ;;  %7036 = vmatprep.mubr.bf16.mxu0 %v1531_v46  ;;  %v1604_v45 = vrot.slane %v1588_v33, %v8719_v13  ;;  %v8596_v46 = vld [vmem:[%s9647_s1 + $0x348] ss:$900 sps:$4 sm:$0x1f]   ;;  %v1628_v49 = vcombine.high %v1618_v41, %v1618_v41  ;;  %v8630_v33 = vld [vmem:[%s9647_s1 + $0x374] ss:$900 sps:$4 sm:$0x1f]  }
 0x209   :  { %7044 = vmatprep.subr.bf16.mxu0 %v8566_v47  ;;  %4804 = vmatprep.subr.bf16.mxu1 %v8569_v48  ;;  %v8599_v47 = vld [vmem:[%s9647_s1 + $0x188] ss:$900 sps:$4 sm:$0x1f]   ;;  %v942_v48 = vcombine.high %v932_v40, %v932_v40 }
 0x212   :  { %4797 = vmatmul.mubr.bf16.vlgmr.msra.gmra.mrb[0].mxu1 %v843_v55  ;;  %7037 = vmatmul.mubr.bf16.vlgmr.msra.gmra.mrb[0].mxu0 %v1529_v56  ;;  %v1595_v55 = vrot.slane %v1581_v51, %v8719_v13  ;;  %v911_v56 = vcombine.high %v909_v54, %v909_v54 }
 0x213   :  { %7045 = vmatpush1.bf16.xpose.msra.mxu0 %v8564_v57  ;;  %4805 = vmatpush1.bf16.xpose.msra.mxu1 %v8567_v58  ;;  %v940_v58 = vcombine.high %v918_v44, %v918_v44 }
 0x214   :  { %4836 = vmatprep.mubr.bf16.mxu1 %v883_v59  ;;  %7076 = vmatprep.mubr.bf16.mxu0 %v1569_v60  ;;  %v1597_v57 = vcombine.high %v1595_v55, %v1595_v55  ;;  %v1626_v59 = vcombine.high %v1604_v45, %v1604_v45  ;;  %v8602_v60 = vld [vmem:[%s9647_s1 + $0x350] ss:$900 sps:$4 sm:$0x1f]  }
 0x215   :  { %7084 = vmatprep.subr.bf16.mxu0 %v8572_v61  ;;  %4844 = vmatprep.subr.bf16.mxu1 %v8575_v62  ;;  %v8605_v61 = vld [vmem:[%s9647_s1 + $0x190] ss:$900 sps:$4 sm:$0x1f]   ;;  %v939_v62 = vrot.slane %v911_v56, %v8719_v13  ;;  %v8642_v56 = vld [vmem:[%s9647_s1 + $0x380] ss:$900 sps:$4 sm:$0x1f]  }
 0x217   :  { %v943_v6 = vcombine.high %v939_v62, %v939_v62 }
 0x21e   :  { %4837 = vmatmul.mubr.bf16.vlgmr.msra.gmra.mrb[0].mxu1 %v869_v63  ;;  %7077 = vmatmul.mubr.bf16.vlgmr.msra.gmra.mrb[0].mxu0 %v1555_v0  ;;  %v1625_v63 = vrot.slane %v1597_v57, %v8719_v13  ;;  %v8612_v0 = vld [vmem:[%s9647_s1 + $0x35c] ss:$900 sps:$4 sm:$0x1f]  }
 0x21f   :  { %7085 = vmatpush1.bf16.xpose.msra.mxu0 %v8570_v1  ;;  %4845 = vmatpush1.bf16.xpose.msra.mxu1 %v8573_v2  ;;  %v8615_v1 = vld [vmem:[%s9647_s1 + $0x19c] ss:$900 sps:$4 sm:$0x1f]   ;;  %v925_v2 = vrot.slane %v909_v54, %v8719_v13 }
 0x220   :  { %4876 = vmatprep.mubr.bf16.mxu1 %v893_v3  ;;  %7116 = vmatprep.mubr.bf16.mxu0 %v1579_v4  ;;  %v1611_v3 = vrot.slane %v1595_v55, %v8719_v13  ;;  %v8610_v4 = vld [vmem:[%s9647_s1 + $0x358] ss:$900 sps:$4 sm:$0x1f]  }
 0x221   :  { %7124 = vmatprep.subr.bf16.mxu0 %v8578_v7  ;;  %4884 = vmatprep.subr.bf16.mxu1 %v8581_v8  ;;  %v1629_v7 = vcombine.high %v1625_v63, %v1625_v63  ;;  %v8618_v8 = vld [vmem:[%s9647_s1 + $0x364] ss:$900 sps:$4 sm:$0x1f]  }
 0x222   :  { %v7594_v57 = vld.sshfl [vmem:[%s9646_s0 + $0xe0] sm:$0x1 pattern:$0x75316420]  ;;  %s8674_s0 = smov [#allocation2]  }
 0x22a   :  { %4877 = vmatmul.mubr.bf16.vlgmr.msra.gmra.mrb[0].mxu1 %v891_v14  ;;  %7117 = vmatmul.mubr.bf16.vlgmr.msra.gmra.mrb[0].mxu0 %v1577_v15  ;;  %v1637_v14 = vrot.slane %v43_v11, %v8719_v13  ;;  %v959_v15 = vcombine.high %v951_v12, %v951_v12 }
 0x22b   :  { %7125 = vmatpush1.bf16.xpose.msra.mxu0 %v8576_v16  ;;  %4885 = vmatpush1.bf16.xpose.msra.mxu1 %v8579_v17  ;;  %v941_v17 = vcombine.high %v925_v2, %v925_v2 }
 0x22c   :  { %4916 = vmatprep.mubr.bf16.mxu1 %v890_v18  ;;  %7156 = vmatprep.mubr.bf16.mxu0 %v1576_v19  ;;  %v1645_v16 = vcombine.high %v1637_v14, %v1637_v14  ;;  %v1627_v18 = vcombine.high %v1611_v3, %v1611_v3  ;;  %v8616_v19 = vld [vmem:[%s9647_s1 + $0x360] ss:$900 sps:$4 sm:$0x1f]  }
 0x22d   :  { %7164 = vmatprep.subr.bf16.mxu0 %v8586_v20  ;;  %4924 = vmatprep.subr.bf16.mxu1 %v8589_v21  ;;  %v8619_v20 = vld [vmem:[%s9647_s1 + $0x1a0] ss:$900 sps:$4 sm:$0x1f]   ;;  %v981_v21 = vrot.slane %v959_v15, %v8719_v13 }
 0x236   :  { %4917 = vmatmul.mubr.bf16.vlgmr.msra.gmra.mrb[0].mxu1 %v876_v22  ;;  %7157 = vmatmul.mubr.bf16.vlgmr.msra.gmra.mrb[0].mxu0 %v1562_v23  ;;  %v1667_v22 = vrot.slane %v1645_v16, %v8719_v13  ;;  %v8624_v23 = vld [vmem:[%s9647_s1 + $0x36c] ss:$900 sps:$4 sm:$0x1f]  }
 0x237   :  { %7165 = vmatpush1.bf16.xpose.msra.mxu0 %v8584_v24  ;;  %4925 = vmatpush1.bf16.xpose.msra.mxu1 %v8587_v25  ;;  %v8627_v24 = vld [vmem:[%s9647_s1 + $0x1ac] ss:$900 sps:$4 sm:$0x1f]   ;;  %v967_v25 = vrot.slane %v951_v12, %v8719_v13 }
 0x238   :  { %4956 = vmatprep.mubr.bf16.mxu1 %v894_v26  ;;  %7196 = vmatprep.mubr.bf16.mxu0 %v1580_v27  ;;  %v1653_v26 = vrot.slane %v1637_v14, %v8719_v13  ;;  %v8622_v27 = vld [vmem:[%s9647_s1 + $0x368] ss:$900 sps:$4 sm:$0x1f]   ;;  %v1677_v30 = vcombine.high %v1667_v22, %v1667_v22 }
 0x239   :  { %7204 = vmatprep.subr.bf16.mxu0 %v8592_v28  ;;  %4964 = vmatprep.subr.bf16.mxu1 %v8595_v29  ;;  %v8625_v28 = vld [vmem:[%s9647_s1 + $0x1a8] ss:$900 sps:$4 sm:$0x1f]   ;;  %v991_v29 = vcombine.high %v981_v21, %v981_v21 }
 0x242   :  { %4957 = vmatmul.mubr.bf16.vlgmr.msra.gmra.mrb[0].mxu1 %v892_v36  ;;  %7197 = vmatmul.mubr.bf16.vlgmr.msra.gmra.mrb[0].mxu0 %v1578_v37  ;;  %v1644_v36 = vrot.slane %v1630_v32, %v8719_v13  ;;  %v960_v37 = vcombine.high %v958_v35, %v958_v35 }
 0x243   :  { %7205 = vmatpush1.bf16.xpose.msra.mxu0 %v8590_v38  ;;  %4965 = vmatpush1.bf16.xpose.msra.mxu1 %v8593_v39  ;;  %v989_v39 = vcombine.high %v967_v25, %v967_v25 }
 0x244   :  { %4996 = vmatprep.mubr.bf16.mxu1 %v932_v40  ;;  %7236 = vmatprep.mubr.bf16.mxu0 %v1618_v41  ;;  %v1646_v38 = vcombine.high %v1644_v36, %v1644_v36  ;;  %v1675_v40 = vcombine.high %v1653_v26, %v1653_v26  ;;  %v8628_v41 = vld [vmem:[%s9647_s1 + $0x370] ss:$900 sps:$4 sm:$0x1f]  }
 0x245   :  { %7244 = vmatprep.subr.bf16.mxu0 %v8598_v42  ;;  %5004 = vmatprep.subr.bf16.mxu1 %v8601_v43  ;;  %v8631_v42 = vld [vmem:[%s9647_s1 + $0x1b0] ss:$900 sps:$4 sm:$0x1f]   ;;  %v988_v43 = vrot.slane %v960_v37, %v8719_v13 }
 0x247   :  { %v992_v51 = vcombine.high %v988_v43, %v988_v43 }
 0x24e   :  { %4997 = vmatmul.mubr.bf16.vlgmr.msra.gmra.mrb[0].mxu1 %v918_v44  ;;  %7237 = vmatmul.mubr.bf16.vlgmr.msra.gmra.mrb[0].mxu0 %v1604_v45  ;;  %v1674_v44 = vrot.slane %v1646_v38, %v8719_v13  ;;  %v8638_v45 = vld [vmem:[%s9647_s1 + $0x37c] ss:$900 sps:$4 sm:$0x1f]  }
 0x24f   :  { %7245 = vmatpush1.bf16.xpose.msra.mxu0 %v8596_v46  ;;  %5005 = vmatpush1.bf16.xpose.msra.mxu1 %v8599_v47  ;;  %v8641_v46 = vld [vmem:[%s9647_s1 + $0x1bc] ss:$900 sps:$4 sm:$0x1f]   ;;  %v974_v47 = vrot.slane %v958_v35, %v8719_v13 }
 0x250   :  { %5036 = vmatprep.mubr.bf16.mxu1 %v942_v48  ;;  %7276 = vmatprep.mubr.bf16.mxu0 %v1628_v49  ;;  %v1660_v48 = vrot.slane %v1644_v36, %v8719_v13  ;;  %v8636_v49 = vld [vmem:[%s9647_s1 + $0x378] ss:$900 sps:$4 sm:$0x1f]   ;;  %s7585_s1 = sshll.u32 %s8674_s0, 4  ;;  %s7586_s1 = int_to_ptr.vmem [resolvable:$true] %s7585_s1 }
 0x251   :  { %7284 = vmatprep.subr.bf16.mxu0 %v8604_v52  ;;  %5044 = vmatprep.subr.bf16.mxu1 %v8607_v53  ;;  %v1678_v52 = vcombine.high %v1674_v44, %v1674_v44  ;;  %v8672_v53 = vmov 0.0   ;;  %v990_v54 = vcombine.high %v974_v47, %v974_v47  ;;  %p8652_p1 = scmp.lt.s32.totalorder %s7586_s1, %s7586_s1 }
 0x252   :  { %v1676_v55 = vcombine.high %v1660_v48, %v1660_v48 }
 0x25a   :  { %5037 = vmatmul.mubr.bf16.vlgmr.msra.gmra.mrb[0].mxu1 %v940_v58  ;;  %7277 = vmatmul.mubr.bf16.vlgmr.msra.gmra.mrb[0].mxu0 %v1626_v59  ;;  %v1692_v58 = vrot.slane %v7594_v57, %v8719_v13 }
 0x25b   :  { %7285 = vmatpush1.bf16.xpose.msra.mxu0 %v8602_v60  ;;  %5045 = vmatpush1.bf16.xpose.msra.mxu1 %v8605_v61 }
 0x25c   :  { %5076 = vmatprep.mubr.bf16.mxu1 %v939_v62  ;;  %7316 = vmatprep.mubr.bf16.mxu0 %v1625_v63  ;;  %v7593_v63 = vld [vmem:[%s9648_s2] ss:$0 sm:$0xff]  ;;  %s8647_s2 = scalar_lea.vmem %s7586_s1, 32 }
 0x25d   :  { %7324 = vmatprep.subr.bf16.mxu0 %v8612_v0  ;;  %5084 = vmatprep.subr.bf16.mxu1 %v8615_v1  ;;  %p8648_p0 = scmp.ne.s32.totalorder %s7586_s1, %s8647_s2  ;;  %p8653_p2 = scmp.lt.s32.totalorder %s8647_s2, %s8647_s2 }
 0x25f   :  { %p8654_p3 = por %p8653_p2, %p8652_p1 }
 0x261   :  { %p8655_p4 = pnand %p8654_p3, %p8648_p0 }
 0x266   :  { %5077 = vmatmul.mubr.bf16.vlgmr.msra.gmra.mrb[0].mxu1 %v925_v2  ;;  %7317 = vmatmul.mubr.bf16.vlgmr.msra.gmra.mrb[0].mxu0 %v1611_v3 }
 0x267   :  { %7325 = vmatpush1.bf16.xpose.msra.mxu0 %v8610_v4  ;;  %5085 = vmatpush1.bf16.xpose.msra.mxu1 %v8613_v5 }
 0x268   :  { %5116 = vmatprep.mubr.bf16.mxu1 %v943_v6  ;;  %7356 = vmatprep.mubr.bf16.mxu0 %v1629_v7 }
 0x269   :  { %7364 = vmatprep.subr.bf16.mxu0 %v8618_v8  ;;  %5124 = vmatprep.subr.bf16.mxu1 %v8621_v9 }
 0x272   :  { %5117 = vmatmul.mubr.bf16.vlgmr.msra.gmra.mrb[0].mxu1 %v941_v17  ;;  %7357 = vmatmul.mubr.bf16.vlgmr.msra.gmra.mrb[0].mxu0 %v1627_v18 }
 0x273   :  { %7365 = vmatpush1.bf16.xpose.msra.mxu0 %v8616_v19  ;;  %5125 = vmatpush1.bf16.xpose.msra.mxu1 %v8619_v20 }
 0x274   :  { %5156 = vmatprep.mubr.bf16.mxu1 %v981_v21  ;;  %7396 = vmatprep.mubr.bf16.mxu0 %v1667_v22 }
 0x275   :  { %7404 = vmatprep.subr.bf16.mxu0 %v8624_v23  ;;  %5164 = vmatprep.subr.bf16.mxu1 %v8627_v24 }
 0x27e   :  { %5157 = vmatmul.mubr.bf16.vlgmr.msra.gmra.mrb[0].mxu1 %v967_v25  ;;  %7397 = vmatmul.mubr.bf16.vlgmr.msra.gmra.mrb[0].mxu0 %v1653_v26 }
 0x27f   :  { %7405 = vmatpush1.bf16.xpose.msra.mxu0 %v8622_v27  ;;  %5165 = vmatpush1.bf16.xpose.msra.mxu1 %v8625_v28 }
 0x280   :  { %5196 = vmatprep.mubr.bf16.mxu1 %v991_v29  ;;  %7436 = vmatprep.mubr.bf16.mxu0 %v1677_v30 }
 0x281   :  { %7444 = vmatprep.subr.bf16.mxu0 %v8630_v33  ;;  %5204 = vmatprep.subr.bf16.mxu1 %v8633_v34 }
 0x28a   :  { %5197 = vmatmul.mubr.bf16.vlgmr.msra.gmra.mrb[0].mxu1 %v989_v39  ;;  %7437 = vmatmul.mubr.bf16.vlgmr.msra.gmra.mrb[0].mxu0 %v1675_v40 }
 0x28b   :  { %7445 = vmatpush1.bf16.xpose.msra.mxu0 %v8628_v41  ;;  %5205 = vmatpush1.bf16.xpose.msra.mxu1 %v8631_v42 }
 0x28c   :  { %5236 = vmatprep.mubr.bf16.mxu1 %v988_v43  ;;  %7476 = vmatprep.mubr.bf16.mxu0 %v1674_v44 }
 0x28d   :  { %7484 = vmatprep.subr.bf16.mxu0 %v8638_v45  ;;  %5244 = vmatprep.subr.bf16.mxu1 %v8641_v46 }
 0x296   :  { %5237 = vmatmul.mubr.bf16.vlgmr.msra.gmra.mrb[0].mxu1 %v974_v47  ;;  %7477 = vmatmul.mubr.bf16.vlgmr.msra.gmra.mrb[0].mxu0 %v1660_v48 }
 0x297   :  { %7485 = vmatpush1.bf16.xpose.msra.mxu0 %v8636_v49  ;;  %5245 = vmatpush1.bf16.xpose.msra.mxu1 %v8639_v50 }
 0x298   :  { %5276 = vmatprep.mubr.bf16.mxu1 %v992_v51  ;;  %7516 = vmatprep.mubr.bf16.mxu0 %v1678_v52 }
 0x299   :  { %7822 = vmatprep.subr.bf16.mxu0 %v8672_v53 }
 0x2a2   :  { %5277 = vmatmul.mubr.bf16.vlgmr.msra.gmra.mrb[0].mxu1 %v990_v54  ;;  %7517 = vmatmul.mubr.bf16.vlgmr.msra.gmra.mrb[0].mxu0 %v1676_v55 }
 0x2a3   :  { %7823 = vmatpush3.bf16.xpose.msra.mxu0 %v8642_v56  ;;  %7824 = vmatprep.mubr.msk.bf16.mxu0 %vm8673_vm0, %v8672_v53 }
 0x2ae   :  { %7825 = vmatmul.mubr.bf16.vlgmr.msra.gmra.mrb[0].mxu0 %v1692_v58 }
 0x375   :  { %v5278_v59 = vpop.f32.mrb[0].mxu1 }
 0x376   :  { %v5280_v60 = vpop.f32.mrb[1].mxu1  ;;  %v7828_v0 = vadd.f32 %v7593_v63, %v5278_v59 }
 0x377   :  { %v5281_v61 = vpop.f32.mrb[2].mxu1 }
 0x378   :  { %v5282_v62 = vpop.f32.mrb[3].mxu1 }
 0x381   :  { %v7558_v1 = vpop.f32.mrb[0].mxu0 }
 0x382   :  { %v7829_v2 = vadd.f32 %v7828_v0, %v7558_v1  ;;  %v7826_v3 = vpop.f32.mrb[1].mxu0 }
 0x383   :  { %v7561_v4 = vpop.f32.mrb[2].mxu0 }
 0x384   :  { %v7827_v5 = vpop.f32.mrb[3].mxu0  ;;  %v7565_v6 = vsel %vm7564_vm1, %v7829_v2, -inf }
 0x385   :  { %7566 = vmax.xlane.f32.xlu0 %v7565_v6 }
 0x412   :  { %v7567_v13 = vpop.xlane.xlu0 %7566 }
 0x413   :  { %v7568_v7 = vsub.f32 %v7829_v2, %v7567_v13 }
 0x415   :  { %v7569_v8 = vmul.f32 1.442695, %v7568_v7 }
 0x417   :  { %8643 = vpow2.f32 %v7569_v8 }
 0x421   :  { %v8644_v9 = vpop.eup %8643 }
 0x422   :  { %v7571_v10 = vsel %vm7564_vm1, %v8644_v9, 0.0 }
 0x423   :  { %7572 = vadd.xlane.f32.xlu0 %v7571_v10 }
 0x4b0   :  { %v7573_v11 = vpop.xlane.xlu0 %7572 }
 0x4b1   :  { %8645 = vlog2.f32 %v7573_v11 }
 0x4bb   :  { %v8646_v12 = vpop.eup %8645 }
 0x4bc   :  { %v7575_v14 = vmul.f32 0.6931472, %v8646_v12 }
 0x4be   :  { %v7576_v15 = vadd.f32 %v7575_v14, %v7567_v13 }
 0x4c0   :  { %v7577_v16 = vsub.f32 %v7829_v2, %v7576_v15 }
 0x4c2   :  { %7578 = vst.msk [vmem:[#allocation2] sm:$0x3] %vm7564_vm1, %v7577_v16 }
 0x4c3   :  { %8658 = shalt.err (!%p8655_p4)
}
 0x4c4   :  { %s8659_s11 = scalar_lea.hbm %s9649_s3, 32 }
 0x4c5   :  { %p8660_p5 = scmp.ne.s32.totalorder %s9649_s3, %s8659_s11  ;;  %p8663_p6 = scmp.lt.u32.totalorder %s8659_s11, %s9649_s3 }
 0x4c7   :  { %p8665_p7 = pnand %p8663_p6, %p8660_p5 }
 0x4c9   :  { %8668 = shalt.err (!%p8665_p7)
}
 0x4ca   :  { %7588 = dma.vmem_to_hbm [thread:$0]  %s7586_s1, 32, %s9649_s3, [#allocation3]  }
 0x4cb   :  { %8669 = dma.done.wait [#allocation3], 32  }
 0x4cc   :  { %8670 = vsyncadd [#allocation3], 4294967264 }
 0x4cd   :  { %7592 = vsyncpa [#allocation3], 1 }

</bundles_post_ra>
